<compile_context>
chip_gen: v7x
topology: tpu7x:2x2x1
jax: 0.10.0
libtpu: 0.0.40
codegen_flags: <defaults>
</compile_context>

<pallas_src>
import functools

import jax
import jax.numpy as jnp
from jax.experimental import pallas as pl
from jax.experimental.pallas import tpu as pltpu

EPS = 1e-5            # BatchNorm eps
NEG_SLOPE = 0.2       # LeakyReLU negative slope
_MXU_DTYPE = jnp.bfloat16   # MXU operand dtype (accumulation stays f32)
_PAD = 128            # flat-axis guard band (multiple of 128 lanes, >= W+1)


# ----------------------------- in-kernel helpers ---------------------------

def _mdot(a, b):
    return jnp.dot(a.astype(_MXU_DTYPE), b.astype(_MXU_DTYPE),
                   preferred_element_type=jnp.float32)


def _lrelu(z):
    return jnp.where(z >= 0, z, NEG_SLOPE * z)


def _bn_lrelu_rows(y, g, be):
    """Training-mode BatchNorm (batch stats, biased var) + LeakyReLU(0.2).
    y: (C, S) channel-major, S = N*H*W; g, be: (C, 1)."""
    mean = jnp.mean(y, axis=1, keepdims=True)
    var = jnp.mean(jnp.square(y - mean), axis=1, keepdims=True)
    scale = g * jax.lax.rsqrt(var + EPS)
    return _lrelu((y - mean) * scale + be)


def _border_masks(h, w, s):
    """9 tap border-validity masks ((1,S) bool or None), built from iota —
    no mask DMA.  Requires H, W powers of two (row/col via shift & and)."""
    assert (h & (h - 1)) == 0 and (w & (w - 1)) == 0, "H, W must be powers of 2"
    lw = (w - 1).bit_length()
    flat = jax.lax.broadcasted_iota(jnp.int32, (1, s), 1)
    col = jnp.bitwise_and(flat, w - 1)
    row = jnp.bitwise_and(jnp.right_shift(flat, lw), h - 1)
    rmask = {-1: row >= 1, 0: None, 1: row <= h - 2}
    cmask = {-1: col >= 1, 0: None, 1: col <= w - 2}
    masks = []
    for di in (-1, 0, 1):
        for dj in (-1, 0, 1):
            r, c = rmask[di], cmask[dj]
            if r is None:
                masks.append(c)
            elif c is None:
                masks.append(r)
            else:
                masks.append(jnp.logical_and(r, c))
    return masks


def _fill_padded(xbuf_ref, interior, *, pad, s):
    """Write `interior` into the padded staging buffer; zero only the gutters."""
    c = xbuf_ref.shape[0]
    xbuf_ref[:, :pad] = jnp.zeros((c, pad), xbuf_ref.dtype)
    xbuf_ref[:, pad + s:] = jnp.zeros((c, pad), xbuf_ref.dtype)
    xbuf_ref[:, pad:pad + s] = interior


def _stage_taps(xbuf_ref, pbuf_ref, masks, *, w, pad, cin, s):
    """Stage the 9 masked shifted windows (tap-major) into pbuf (9*Cin, S)."""
    t = 0
    for di in (-1, 0, 1):
        for dj in (-1, 0, 1):
            off = di * w + dj
            win = xbuf_ref[:, pad + off: pad + off + s]
            m = masks[t]
            if m is not None:
                win = jnp.where(m, win, 0.0)
            pbuf_ref[t * cin:(t + 1) * cin, :] = win
            t += 1


# ----------------------------- Pallas kernels ------------------------------

def _conv3x3_bn_kernel(x_ref, w_ref, b_ref, g_ref, be_ref, o_ref, xbuf, pbuf,
                       *, h, w, pad):
    cin, s = x_ref.shape
    _fill_padded(xbuf, x_ref[...], pad=pad, s=s)
    masks = _border_masks(h, w, s)
    _stage_taps(xbuf, pbuf, masks, w=w, pad=pad, cin=cin, s=s)
    y = _mdot(w_ref[...], pbuf[...]) + b_ref[...]
    o_ref[...] = _bn_lrelu_rows(y, g_ref[...], be_ref[...])


def _conv3x3_kernel(x_ref, w_ref, b_ref, o_ref, xbuf, pbuf, *, h, w, pad):
    cin, s = x_ref.shape
    _fill_padded(xbuf, x_ref[...], pad=pad, s=s)
    masks = _border_masks(h, w, s)
    _stage_taps(xbuf, pbuf, masks, w=w, pad=pad, cin=cin, s=s)
    o_ref[...] = _mdot(w_ref[...], pbuf[...]) + b_ref[...]


def _resblocks_kernel(x_ref, w1_ref, b1_ref, g1_ref, be1_ref,
                      w2_ref, b2_ref, g2_ref, be2_ref, o_ref, xbuf, pbuf,
                      *, h, w, pad, n_res):
    """n_res residual blocks (conv3x3->BN->LReLU x2 + skip add) in one call.
    Block weights are stacked on a leading axis; the padded activation lives
    in VMEM for the whole call (gutters zeroed once)."""
    c, s = x_ref.shape
    masks = _border_masks(h, w, s)
    _fill_padded(xbuf, x_ref[...], pad=pad, s=s)
    for r in range(n_res):
        x_in = xbuf[:, pad:pad + s]
        _stage_taps(xbuf, pbuf, masks, w=w, pad=pad, cin=c, s=s)
        h1 = _bn_lrelu_rows(_mdot(w1_ref[r], pbuf[...]) + b1_ref[r],
                            g1_ref[r], be1_ref[r])
        xbuf[:, pad:pad + s] = h1
        _stage_taps(xbuf, pbuf, masks, w=w, pad=pad, cin=c, s=s)
        h2 = _bn_lrelu_rows(_mdot(w2_ref[r], pbuf[...]) + b2_ref[r],
                            g2_ref[r], be2_ref[r])
        xbuf[:, pad:pad + s] = x_in + h2
    o_ref[...] = xbuf[:, pad:pad + s]


def _enc_tail_kernel(*refs, h, w, pad, n_skips):
    """Encoder tail: multi-res skip adds + output 3x3 conv + pre-VQ 1x1 conv,
    all fused (the 4x4 path never round-trips HBM)."""
    x_ref = refs[0]
    skip_refs = refs[1:1 + n_skips]
    wout_ref, bout_ref, wpre_ref, bpre_ref, o_ref, xbuf, pbuf = refs[1 + n_skips:]
    c, s = x_ref.shape
    xsum = x_ref[...]
    for sr in skip_refs:
        xsum = xsum + sr[...]
    _fill_padded(xbuf, xsum, pad=pad, s=s)
    masks = _border_masks(h, w, s)
    _stage_taps(xbuf, pbuf, masks, w=w, pad=pad, cin=c, s=s)
    y = _mdot(wout_ref[...], pbuf[...]) + bout_ref[...]       # output_conv
    o_ref[...] = _mdot(wpre_ref[...], y) + bpre_ref[...]      # pre_vq 1x1


def _gemm_bn_lrelu_kernel(p_ref, w_ref, b_ref, g_ref, be_ref, o_ref):
    """Strided conv (kernel==stride) as GEMM + BN(batch stats) + LeakyReLU."""
    y = _mdot(w_ref[...], p_ref[...]) + b_ref[...]
    o_ref[...] = _bn_lrelu_rows(y, g_ref[...], be_ref[...])


def _convt_bn_lrelu_kernel(a_ref, w_ref, b_ref, g_ref, be_ref, o_ref,
                           *, cout, k2, inv_count):
    """ConvTranspose2d(kernel=k, stride=k) as one GEMM with tap-major rows.
    Per-channel BN stats built from k2 block row-sums (VPU adds) — no one-hot
    matmuls or extra MXU round trips."""
    y = _mdot(w_ref[...], a_ref[...])                         # (k2*Cout, S)
    b = b_ref[...]
    blocks = [y[t * cout:(t + 1) * cout, :] + b for t in range(k2)]
    tot = jnp.zeros((cout, 1), jnp.float32)
    for blk in blocks:
        tot = tot + jnp.sum(blk, axis=1, keepdims=True)
    mean_c = tot * inv_count
    vtot = jnp.zeros((cout, 1), jnp.float32)
    for blk in blocks:
        d = blk - mean_c
        vtot = vtot + jnp.sum(d * d, axis=1, keepdims=True)
    var_c = vtot * inv_count
    scale = g_ref[...] * jax.lax.rsqrt(var_c + EPS)
    shift = be_ref[...] - mean_c * scale
    for t, blk in enumerate(blocks):
        o_ref[t * cout:(t + 1) * cout, :] = _lrelu(blk * scale + shift)


def _vq_kernel(x_ref, e_ref, et_ref, q_ref, idx_ref, cnt_ref, sq_ref, *, num_emb):
    x = x_ref[...]                                            # (M, D)
    e = e_ref[...]                                            # (D, Kp) padded
    d = (jnp.sum(x * x, axis=1, keepdims=True)
         - 2.0 * jnp.dot(x, e, preferred_element_type=jnp.float32)
         + jnp.sum(e * e, axis=0, keepdims=True))             # (M, Kp)
    kp = d.shape[1]
    iota_k = jax.lax.broadcasted_iota(jnp.int32, d.shape, 1)
    d = jnp.where(iota_k < num_emb, d, 1e30)                  # mask padded codes
    dmin = jnp.min(d, axis=1, keepdims=True)
    idx = jnp.min(jnp.where(d <= dmin, iota_k, kp), axis=1)   # first-min index
    onehot = (iota_k == idx[:, None]).astype(jnp.float32)     # (M, Kp)
    q = jnp.dot(onehot, et_ref[...], preferred_element_type=jnp.float32)
    q_ref[...] = q
    idx_ref[...] = idx[None, :].astype(jnp.int32)             # lane-dense (1, M)
    cnt_ref[...] = jnp.sum(onehot, axis=0, keepdims=True)     # (1, Kp)
    diff = q - x
    sq_ref[...] = jnp.sum(diff * diff, keepdims=True)         # (1, 1)


# ----------------------------- layer wrappers ------------------------------

def to_flat(x_nchw):
    n, c, h, w = x_nchw.shape
    return x_nchw.transpose(1, 0, 2, 3).reshape(c, n * h * w), (n, h, w)


def to_nchw(a, nhw):
    n, h, w = nhw
    return a.reshape(a.shape[0], n, h, w).transpose(1, 0, 2, 3)


def conv3x3(a, nhw, lp, with_bn=True):
    n, h, w = nhw
    cin, s = a.shape
    cout = lp['w'].shape[0]
    kern = functools.partial(_conv3x3_bn_kernel if with_bn else _conv3x3_kernel,
                             h=h, w=w, pad=_PAD)
    scratch = [pltpu.VMEM((cin, s + 2 * _PAD), jnp.float32),
               pltpu.VMEM((9 * cin, s), jnp.float32)]
    args = (a, lp['w'], lp['b']) + ((lp['g'], lp['be']) if with_bn else ())
    return pl.pallas_call(
        kern, out_shape=jax.ShapeDtypeStruct((cout, s), jnp.float32),
        scratch_shapes=scratch)(*args)


def residual_blocks(a, nhw, lp):
    n, h, w = nhw
    c, s = a.shape
    n_res = lp['w1'].shape[0]
    kern = functools.partial(_resblocks_kernel, h=h, w=w, pad=_PAD, n_res=n_res)
    return pl.pallas_call(
        kern, out_shape=jax.ShapeDtypeStruct((c, s), jnp.float32),
        scratch_shapes=[pltpu.VMEM((c, s + 2 * _PAD), jnp.float32),
                        pltpu.VMEM((9 * c, s), jnp.float32)],
    )(a, lp['w1'], lp['b1'], lp['g1'], lp['be1'],
      lp['w2'], lp['b2'], lp['g2'], lp['be2'])


def encoder_tail(a, skips, nhw, out_lp, pre_lp):
    n, h, w = nhw
    c, s = a.shape
    d = pre_lp['w'].shape[0]
    kern = functools.partial(_enc_tail_kernel, h=h, w=w, pad=_PAD,
                             n_skips=len(skips))
    return pl.pallas_call(
        kern, out_shape=jax.ShapeDtypeStruct((d, s), jnp.float32),
        scratch_shapes=[pltpu.VMEM((c, s + 2 * _PAD), jnp.float32),
                        pltpu.VMEM((9 * c, s), jnp.float32)],
    )(a, *skips, out_lp['w'], out_lp['b'], pre_lp['w'], pre_lp['b'])


def conv_stride_bn(a, nhw, lp, k):
    """Conv2d(kernel=k, stride=k, pad=0) + BN + LeakyReLU.
    Disjoint patches → pure transpose (no duplication), kept in XLA.
    TODO(synk): absorb the patch transpose into the kernel via strided loads."""
    n, h, w = nhw
    cin, s = a.shape
    cout = lp['w'].shape[0]
    oh, ow = h // k, w // k
    patches = jnp.transpose(a.reshape(cin, n, oh, k, ow, k),
                            (0, 3, 5, 1, 2, 4)).reshape(cin * k * k, n * oh * ow)
    out = pl.pallas_call(
        _gemm_bn_lrelu_kernel,
        out_shape=jax.ShapeDtypeStruct((cout, n * oh * ow), jnp.float32),
    )(patches, lp['w'], lp['b'], lp['g'], lp['be'])
    return out, (n, oh, ow)


def convt_bn_lrelu(a, nhw, lp, k):
    """ConvTranspose2d(kernel=k, stride=k, pad=0) + BN + LeakyReLU.
    TODO(synk): write the spatial interleave directly from the kernel instead
    of the post-kernel 6-D reshape/transpose (kept in XLA, tiny here)."""
    n, h, w = nhw
    cin, s = a.shape
    k2 = k * k
    cout = lp['w'].shape[0] // k2
    kern = functools.partial(_convt_bn_lrelu_kernel, cout=cout, k2=k2,
                             inv_count=1.0 / (k2 * s))
    y = pl.pallas_call(
        kern, out_shape=jax.ShapeDtypeStruct((k2 * cout, s), jnp.float32),
    )(a, lp['w'], lp['b'], lp['g'], lp['be'])
    y = (y.reshape(k, k, cout, n, h, w)
         .transpose(2, 3, 4, 0, 5, 1)
         .reshape(cout, n * h * k * w * k))
    return y, (n, h * k, w * k)


def vector_quantizer(x_nchw, vqp, commitment_cost, num_embeddings):
    """x_nchw: NCHW with C == embedding_dim.  Reproduces the torch module's
    direct .view(-1, D) on NCHW (no NHWC permute), as in the reference."""
    emb_p, emb_pt = vqp['emb_p'], vqp['emb_pt']
    d_dim, kp = emb_p.shape
    flat_x = x_nchw.reshape(-1, d_dim)
    m = flat_x.shape[0]
    kern = functools.partial(_vq_kernel, num_emb=num_embeddings)
    q_flat, idx, counts, sqsum = pl.pallas_call(
        kern,
        out_shape=(jax.ShapeDtypeStruct((m, d_dim), jnp.float32),
                   jax.ShapeDtypeStruct((1, m), jnp.int32),
                   jax.ShapeDtypeStruct((1, kp), jnp.float32),
                   jax.ShapeDtypeStruct((1, 1), jnp.float32)),
    )(flat_x, emb_p, emb_pt)
    quantized = q_flat.reshape(x_nchw.shape)
    mse = sqsum[0, 0] / (m * d_dim)
    loss = mse + commitment_cost * mse          # q_latent + c * e_latent (forward)
    avg_probs = counts[0, :num_embeddings] / m
    perplexity = jnp.exp(-jnp.sum(avg_probs * jnp.log(avg_probs + 1e-10)))
    enc_idx = idx[0].reshape((x_nchw.shape[0],) + x_nchw.shape[2:])
    # TODO(synk): straight-through estimator x + (q - x).detach() and the
    # detach() split of the two losses only affect gradients; forward matches.
    return loss, quantized, perplexity, enc_idx


# ----------------------------- network forward -----------------------------

def encoder_fwd(p, a, nhw, n_levels):
    a = conv3x3(a, nhw, p['in'], with_bn=True)
    skips = []
    for i in range(n_levels):
        a = residual_blocks(a, nhw, p['res'][i])
        s, _ = conv_stride_bn(a, nhw, p['skip'][i], 2 ** (n_levels - i))
        skips.append(s)
        a, nhw = conv_stride_bn(a, nhw, p['down'][i], 2)
    return a, skips, nhw


def decoder_fwd(p, a, nhw, n_levels):
    a = conv3x3(a, nhw, p['in'], with_bn=True)
    a_top, top_nhw = a, nhw
    for i in range(n_levels):
        a, nhw = convt_bn_lrelu(a, nhw, p['up'][i], 2)
        a = residual_blocks(a, nhw, p['res'][i])
        s, _ = convt_bn_lrelu(a_top, top_nhw, p['skip'][i], 2 ** (i + 1))
        a = a + s
    a = conv3x3(a, nhw, p['out'], with_bn=False)
    return a, nhw


def resnet_vqvae_fwd(prep, x, *, n_levels, commitment_cost, num_embeddings):
    a, nhw = to_flat(x)
    enc_a, skips, enc_nhw = encoder_fwd(prep['encoder'], a, nhw, n_levels)
    pre = encoder_tail(enc_a, skips, enc_nhw,
                       prep['encoder']['out'], prep['pre_vq'])
    pre_nchw = to_nchw(pre, enc_nhw)
    loss, quantized, perplexity, enc_idx = vector_quantizer(
        pre_nchw, prep['vq'], commitment_cost, num_embeddings)
    qa, q_nhw = to_flat(quantized)
    recon, rec_nhw = decoder_fwd(prep['decoder'], qa, q_nhw, n_levels)
    x_recon = to_nchw(recon, rec_nhw)
    return loss, x_recon, perplexity, enc_idx


# ----------------------------- parameter init / prep -----------------------

def init_params(key, *, input_ch, n_levels, n_res, z_dim,
                vq_num_embeddings, vq_embedding_dim):
    keys = iter(jax.random.split(key, 4096))

    def nk():
        return next(keys)

    def conv(cin, cout, k):
        return {'w': jax.random.normal(nk(), (cout, cin, k, k), jnp.float32) * 0.05,
                'b': jnp.zeros((cout,), jnp.float32)}

    def convT(cin, cout, k):
        return {'w': jax.random.normal(nk(), (cin, cout, k, k), jnp.float32) * 0.05,
                'b': jnp.zeros((cout,), jnp.float32)}

    def bn(c):
        return {'g': jnp.ones((c,), jnp.float32), 'be': jnp.zeros((c,), jnp.float32)}

    def resblock(c):
        return {'c1': conv(c, c, 3), 'bn1': bn(c), 'c2': conv(c, c, 3), 'bn2': bn(c)}

    max_filters = 2 ** (n_levels + 3)

    enc = {'in_c': conv(input_ch, 8, 3), 'in_bn': bn(8),
           'res': [], 'skip': [], 'down': []}
    for i in range(n_levels):
        f1, f2, ks = 2 ** (i + 3), 2 ** (i + 4), 2 ** (n_levels - i)
        enc['res'].append([resblock(f1) for _ in range(n_res)])
        enc['down'].append({'c': conv(f1, f2, 2), 'bn': bn(f2)})
        enc['skip'].append({'c': conv(f1, max_filters, ks), 'bn': bn(max_filters)})
    enc['out_c'] = conv(max_filters, z_dim, 3)

    dec = {'in_c': conv(vq_embedding_dim, max_filters, 3), 'in_bn': bn(max_filters),
           'res': [], 'skip': [], 'up': []}
    f1 = None
    for i in range(n_levels):
        f0, f1, ks = 2 ** (n_levels - i + 3), 2 ** (n_levels - i + 2), 2 ** (i + 1)
        dec['res'].append([resblock(f1) for _ in range(n_res)])
        dec['up'].append({'c': convT(f0, f1, 2), 'bn': bn(f1)})
        dec['skip'].append({'c': convT(max_filters, f1, ks), 'bn': bn(f1)})
    dec['out_c'] = conv(f1, input_ch, 3)

    return {'encoder': enc,
            'decoder': dec,
            'pre_vq': conv(z_dim, vq_embedding_dim, 1),
            'embedding': jax.random.normal(
                nk(), (vq_embedding_dim, vq_num_embeddings), jnp.float32)}


def _prep_conv3x3(cp):
    cout, cin = cp['w'].shape[:2]
    return {'w': jnp.transpose(cp['w'], (0, 2, 3, 1)).reshape(cout, 9 * cin),
            'b': cp['b'].reshape(cout, 1)}


def _prep_bn(bnp):
    return {'g': bnp['g'].reshape(-1, 1), 'be': bnp['be'].reshape(-1, 1)}


def _prep_conv3x3_bn(cp, bnp):
    d = _prep_conv3x3(cp)
    d.update(_prep_bn(bnp))
    return d


def _prep_res_level(blocks):
    def flat_w(cp):
        return _prep_conv3x3(cp)['w']
    return {'w1': jnp.stack([flat_w(b['c1']) for b in blocks]),
            'b1': jnp.stack([b['c1']['b'].reshape(-1, 1) for b in blocks]),
            'g1': jnp.stack([b['bn1']['g'].reshape(-1, 1) for b in blocks]),
            'be1': jnp.stack([b['bn1']['be'].reshape(-1, 1) for b in blocks]),
            'w2': jnp.stack([flat_w(b['c2']) for b in blocks]),
            'b2': jnp.stack([b['c2']['b'].reshape(-1, 1) for b in blocks]),
            'g2': jnp.stack([b['bn2']['g'].reshape(-1, 1) for b in blocks]),
            'be2': jnp.stack([b['bn2']['be'].reshape(-1, 1) for b in blocks])}


def _prep_conv_stride(cp, bnp):
    cout = cp['w'].shape[0]
    d = {'w': cp['w'].reshape(cout, -1), 'b': cp['b'].reshape(cout, 1)}
    d.update(_prep_bn(bnp))
    return d


def _prep_convt(cp, bnp):
    cin, cout, k, _ = cp['w'].shape
    d = {'w': jnp.transpose(cp['w'], (2, 3, 1, 0)).reshape(k * k * cout, cin),
         'b': cp['b'].reshape(cout, 1)}
    d.update(_prep_bn(bnp))
    return d


def prepare_params(params, n_levels):
    """One-time re-layout of all weights into kernel-ready tensors."""
    enc, dec = params['encoder'], params['decoder']
    pe = {'in': _prep_conv3x3_bn(enc['in_c'], enc['in_bn']),
          'res': [_prep_res_level(enc['res'][i]) for i in range(n_levels)],
          'skip': [_prep_conv_stride(enc['skip'][i]['c'], enc['skip'][i]['bn'])
                   for i in range(n_levels)],
          'down': [_prep_conv_stride(enc['down'][i]['c'], enc['down'][i]['bn'])
                   for i in range(n_levels)],
          'out': _prep_conv3x3(enc['out_c'])}
    pd = {'in': _prep_conv3x3_bn(dec['in_c'], dec['in_bn']),
          'res': [_prep_res_level(dec['res'][i]) for i in range(n_levels)],
          'up': [_prep_convt(dec['up'][i]['c'], dec['up'][i]['bn'])
                 for i in range(n_levels)],
          'skip': [_prep_convt(dec['skip'][i]['c'], dec['skip'][i]['bn'])
                   for i in range(n_levels)],
          'out': _prep_conv3x3(dec['out_c'])}
    d_dim, kq = params['embedding'].shape
    kp = max(128, ((kq + 127) // 128) * 128)
    emb_p = jnp.pad(params['embedding'], ((0, 0), (0, kp - kq)))
    pre_w = params['pre_vq']['w']
    pre = {'w': pre_w.reshape(pre_w.shape[0], -1),
           'b': params['pre_vq']['b'].reshape(-1, 1)}
    return {'encoder': pe, 'decoder': pd, 'pre_vq': pre,
            'vq': {'emb_p': emb_p, 'emb_pt': emb_p.T}}


# ----------------------------- main -----------------------------

if __name__ == "__main__":
    # Small config consistent with the module: input (3,16,16), n_levels=2,
    # n_ResidualBlock=1, z_dim=16, vq_embedding_dim=8, vq_num_embeddings=32.
    n_levels = 2
    n_res = 1
    z_dim = 16
    vq_embedding_dim = 8
    vq_num_embeddings = 32
    commitment = 0.25

    key = jax.random.PRNGKey(0)
    pkey, xkey = jax.random.split(key)
    params = init_params(pkey, input_ch=3, n_levels=n_levels, n_res=n_res,
                         z_dim=z_dim, vq_num_embeddings=vq_num_embeddings,
                         vq_embedding_dim=vq_embedding_dim)
    prep = prepare_params(params, n_levels)            # weight re-layouts hoisted
    x = jax.random.normal(xkey, (2, 3, 16, 16), jnp.float32)   # NCHW

    fwd = jax.jit(functools.partial(resnet_vqvae_fwd,
                                    n_levels=n_levels,
                                    commitment_cost=commitment,
                                    num_embeddings=vq_num_embeddings))
    loss, x_recon, perplexity, enc_idx = fwd(prep, x)
    jax.block_until_ready((loss, x_recon, perplexity, enc_idx))

    assert x_recon.shape == (2, 3, 16, 16), x_recon.shape
    assert enc_idx.shape == (2, 4, 4), enc_idx.shape
    assert loss.shape == () and perplexity.shape == ()
    print("KERNEL_OK")
</pallas_src>

<mosaic_0001>
module attributes {stable_mosaic.version = 11 : i64} {
  func.func @_conv3x3_bn_kernel(%arg0: memref<3x512xf32, #tpu.memory_space<vmem>>, %arg1: memref<8x27xf32, #tpu.memory_space<vmem>>, %arg2: memref<8x1xf32, #tpu.memory_space<vmem>>, %arg3: memref<8x1xf32, #tpu.memory_space<vmem>>, %arg4: memref<8x1xf32, #tpu.memory_space<vmem>>, %arg5: memref<8x512xf32, #tpu.memory_space<vmem>>, %arg6: memref<3x768xf32, #tpu.memory_space<vmem>>, %arg7: memref<27x512xf32, #tpu.memory_space<vmem>>) attributes {dimension_semantics = [], scalar_prefetch = 0 : i64, scratch_operands = 2 : i64, tpu.core_type = #tpu.core_type<tc>} {
    %c0 = arith.constant 0 : index
    %c0_0 = arith.constant 0 : index
    %0 = vector.load %arg0[%c0, %c0_0] : memref<3x512xf32, #tpu.memory_space<vmem>>, vector<3x512xf32>
    %cst = arith.constant 0.000000e+00 : f32
    %1 = vector.broadcast %cst : f32 to vector<3x128xf32>
    %c0_1 = arith.constant 0 : index
    %c0_2 = arith.constant 0 : index
    %2 = vector.load %arg6[%c0_1, %c0_2] : memref<3x768xf32, #tpu.memory_space<vmem>>, vector<3x128xf32>
    tpu.vector_store %arg6[%c0_1, %c0_2], %1 {strides = array<i32>} : memref<3x768xf32, #tpu.memory_space<vmem>>, vector<3x128xf32>,
    %cst_3 = arith.constant 0.000000e+00 : f32
    %3 = vector.broadcast %cst_3 : f32 to vector<3x128xf32>
    %c0_4 = arith.constant 0 : index
    %c640 = arith.constant 640 : index
    %4 = vector.load %arg6[%c0_4, %c640] : memref<3x768xf32, #tpu.memory_space<vmem>>, vector<3x128xf32>
    tpu.vector_store %arg6[%c0_4, %c640], %3 {strides = array<i32>} : memref<3x768xf32, #tpu.memory_space<vmem>>, vector<3x128xf32>,
    %c0_5 = arith.constant 0 : index
    %c128 = arith.constant 128 : index
    %5 = vector.load %arg6[%c0_5, %c128] : memref<3x768xf32, #tpu.memory_space<vmem>>, vector<3x512xf32>
    tpu.vector_store %arg6[%c0_5, %c128], %0 {strides = array<i32>} : memref<3x768xf32, #tpu.memory_space<vmem>>, vector<3x512xf32>,
    %6 = tpu.iota {dimensions = array<i32: 1>} : vector<1x512xi32>
    %c15_i32 = arith.constant 15 : i32
    %7 = vector.broadcast %c15_i32 : i32 to vector<1x512xi32>
    %8 = arith.andi %6, %7 : vector<1x512xi32>
    %c4_i32 = arith.constant 4 : i32
    %9 = vector.broadcast %c4_i32 : i32 to vector<1x512xi32>
    %10 = arith.shrsi %6, %9 : vector<1x512xi32>
    %c15_i32_6 = arith.constant 15 : i32
    %11 = vector.broadcast %c15_i32_6 : i32 to vector<1x512xi32>
    %12 = arith.andi %10, %11 : vector<1x512xi32>
    %c1_i32 = arith.constant 1 : i32
    %13 = vector.broadcast %c1_i32 : i32 to vector<1x512xi32>
    %14 = arith.cmpi sge, %12, %13 : vector<1x512xi32>
    %c14_i32 = arith.constant 14 : i32
    %15 = vector.broadcast %c14_i32 : i32 to vector<1x512xi32>
    %16 = arith.cmpi sle, %12, %15 : vector<1x512xi32>
    %c1_i32_7 = arith.constant 1 : i32
    %17 = vector.broadcast %c1_i32_7 : i32 to vector<1x512xi32>
    %18 = arith.cmpi sge, %8, %17 : vector<1x512xi32>
    %c14_i32_8 = arith.constant 14 : i32
    %19 = vector.broadcast %c14_i32_8 : i32 to vector<1x512xi32>
    %20 = arith.cmpi sle, %8, %19 : vector<1x512xi32>
    %21 = arith.andi %14, %18 : vector<1x512xi1>
    %22 = arith.andi %14, %20 : vector<1x512xi1>
    %23 = arith.andi %16, %18 : vector<1x512xi1>
    %24 = arith.andi %16, %20 : vector<1x512xi1>
    %c0_9 = arith.constant 0 : index
    %c111 = arith.constant 111 : index
    %25 = vector.load %arg6[%c0_9, %c111] : memref<3x768xf32, #tpu.memory_space<vmem>>, vector<3x512xf32>
    %cst_10 = arith.constant 0.000000e+00 : f32
    %26 = vector.shape_cast %21 : vector<1x512xi1> to vector<1x512xi1>
    %27 = vector.broadcast %26 : vector<1x512xi1> to vector<3x512xi1>
    %28 = vector.broadcast %cst_10 : f32 to vector<3x512xf32>
    %29 = arith.select %27, %25, %28 : vector<3x512xi1>, vector<3x512xf32>
    %c0_11 = arith.constant 0 : index
    %c0_12 = arith.constant 0 : index
    %30 = vector.load %arg7[%c0_11, %c0_12] : memref<27x512xf32, #tpu.memory_space<vmem>>, vector<3x512xf32>
    tpu.vector_store %arg7[%c0_11, %c0_12], %29 {strides = array<i32>} : memref<27x512xf32, #tpu.memory_space<vmem>>, vector<3x512xf32>,
    %c0_13 = arith.constant 0 : index
    %c112 = arith.constant 112 : index
    %31 = vector.load %arg6[%c0_13, %c112] : memref<3x768xf32, #tpu.memory_space<vmem>>, vector<3x512xf32>
    %cst_14 = arith.constant 0.000000e+00 : f32
    %32 = vector.shape_cast %14 : vector<1x512xi1> to vector<1x512xi1>
    %33 = vector.broadcast %32 : vector<1x512xi1> to vector<3x512xi1>
    %34 = vector.broadcast %cst_14 : f32 to vector<3x512xf32>
    %35 = arith.select %33, %31, %34 : vector<3x512xi1>, vector<3x512xf32>
    %c3 = arith.constant 3 : index
    %c0_15 = arith.constant 0 : index
    %36 = vector.load %arg7[%c3, %c0_15] : memref<27x512xf32, #tpu.memory_space<vmem>>, vector<3x512xf32>
    tpu.vector_store %arg7[%c3, %c0_15], %35 {strides = array<i32>} : memref<27x512xf32, #tpu.memory_space<vmem>>, vector<3x512xf32>,
    %c0_16 = arith.constant 0 : index
    %c113 = arith.constant 113 : index
    %37 = vector.load %arg6[%c0_16, %c113] : memref<3x768xf32, #tpu.memory_space<vmem>>, vector<3x512xf32>
    %cst_17 = arith.constant 0.000000e+00 : f32
    %38 = vector.shape_cast %22 : vector<1x512xi1> to vector<1x512xi1>
    %39 = vector.broadcast %38 : vector<1x512xi1> to vector<3x512xi1>
    %40 = vector.broadcast %cst_17 : f32 to vector<3x512xf32>
    %41 = arith.select %39, %37, %40 : vector<3x512xi1>, vector<3x512xf32>
    %c6 = arith.constant 6 : index
    %c0_18 = arith.constant 0 : index
    %42 = vector.load %arg7[%c6, %c0_18] : memref<27x512xf32, #tpu.memory_space<vmem>>, vector<3x512xf32>
    tpu.vector_store %arg7[%c6, %c0_18], %41 {strides = array<i32>} : memref<27x512xf32, #tpu.memory_space<vmem>>, vector<3x512xf32>,
    %c0_19 = arith.constant 0 : index
    %c127 = arith.constant 127 : index
    %43 = vector.load %arg6[%c0_19, %c127] : memref<3x768xf32, #tpu.memory_space<vmem>>, vector<3x512xf32>
    %cst_20 = arith.constant 0.000000e+00 : f32
    %44 = vector.shape_cast %18 : vector<1x512xi1> to vector<1x512xi1>
    %45 = vector.broadcast %44 : vector<1x512xi1> to vector<3x512xi1>
    %46 = vector.broadcast %cst_20 : f32 to vector<3x512xf32>
    %47 = arith.select %45, %43, %46 : vector<3x512xi1>, vector<3x512xf32>
    %c9 = arith.constant 9 : index
    %c0_21 = arith.constant 0 : index
    %48 = vector.load %arg7[%c9, %c0_21] : memref<27x512xf32, #tpu.memory_space<vmem>>, vector<3x512xf32>
    tpu.vector_store %arg7[%c9, %c0_21], %47 {strides = array<i32>} : memref<27x512xf32, #tpu.memory_space<vmem>>, vector<3x512xf32>,
    %c0_22 = arith.constant 0 : index
    %c128_23 = arith.constant 128 : index
    %49 = vector.load %arg6[%c0_22, %c128_23] : memref<3x768xf32, #tpu.memory_space<vmem>>, vector<3x512xf32>
    %c12 = arith.constant 12 : index
    %c0_24 = arith.constant 0 : index
    %50 = vector.load %arg7[%c12, %c0_24] : memref<27x512xf32, #tpu.memory_space<vmem>>, vector<3x512xf32>
    tpu.vector_store %arg7[%c12, %c0_24], %49 {strides = array<i32>} : memref<27x512xf32, #tpu.memory_space<vmem>>, vector<3x512xf32>,
    %c0_25 = arith.constant 0 : index
    %c129 = arith.constant 129 : index
    %51 = vector.load %arg6[%c0_25, %c129] : memref<3x768xf32, #tpu.memory_space<vmem>>, vector<3x512xf32>
    %cst_26 = arith.constant 0.000000e+00 : f32
    %52 = vector.shape_cast %20 : vector<1x512xi1> to vector<1x512xi1>
    %53 = vector.broadcast %52 : vector<1x512xi1> to vector<3x512xi1>
    %54 = vector.broadcast %cst_26 : f32 to vector<3x512xf32>
    %55 = arith.select %53, %51, %54 : vector<3x512xi1>, vector<3x512xf32>
    %c15 = arith.constant 15 : index
    %c0_27 = arith.constant 0 : index
    %56 = vector.load %arg7[%c15, %c0_27] : memref<27x512xf32, #tpu.memory_space<vmem>>, vector<3x512xf32>
    tpu.vector_store %arg7[%c15, %c0_27], %55 {strides = array<i32>} : memref<27x512xf32, #tpu.memory_space<vmem>>, vector<3x512xf32>,
    %c0_28 = arith.constant 0 : index
    %c143 = arith.constant 143 : index
    %57 = vector.load %arg6[%c0_28, %c143] : memref<3x768xf32, #tpu.memory_space<vmem>>, vector<3x512xf32>
    %cst_29 = arith.constant 0.000000e+00 : f32
    %58 = vector.shape_cast %23 : vector<1x512xi1> to vector<1x512xi1>
    %59 = vector.broadcast %58 : vector<1x512xi1> to vector<3x512xi1>
    %60 = vector.broadcast %cst_29 : f32 to vector<3x512xf32>
    %61 = arith.select %59, %57, %60 : vector<3x512xi1>, vector<3x512xf32>
    %c18 = arith.constant 18 : index
    %c0_30 = arith.constant 0 : index
    %62 = vector.load %arg7[%c18, %c0_30] : memref<27x512xf32, #tpu.memory_space<vmem>>, vector<3x512xf32>
    tpu.vector_store %arg7[%c18, %c0_30], %61 {strides = array<i32>} : memref<27x512xf32, #tpu.memory_space<vmem>>, vector<3x512xf32>,
    %c0_31 = arith.constant 0 : index
    %c144 = arith.constant 144 : index
    %63 = vector.load %arg6[%c0_31, %c144] : memref<3x768xf32, #tpu.memory_space<vmem>>, vector<3x512xf32>
    %cst_32 = arith.constant 0.000000e+00 : f32
    %64 = vector.shape_cast %16 : vector<1x512xi1> to vector<1x512xi1>
    %65 = vector.broadcast %64 : vector<1x512xi1> to vector<3x512xi1>
    %66 = vector.broadcast %cst_32 : f32 to vector<3x512xf32>
    %67 = arith.select %65, %63, %66 : vector<3x512xi1>, vector<3x512xf32>
    %c21 = arith.constant 21 : index
    %c0_33 = arith.constant 0 : index
    %68 = vector.load %arg7[%c21, %c0_33] : memref<27x512xf32, #tpu.memory_space<vmem>>, vector<3x512xf32>
    tpu.vector_store %arg7[%c21, %c0_33], %67 {strides = array<i32>} : memref<27x512xf32, #tpu.memory_space<vmem>>, vector<3x512xf32>,
    %c0_34 = arith.constant 0 : index
    %c145 = arith.constant 145 : index
    %69 = vector.load %arg6[%c0_34, %c145] : memref<3x768xf32, #tpu.memory_space<vmem>>, vector<3x512xf32>
    %cst_35 = arith.constant 0.000000e+00 : f32
    %70 = vector.shape_cast %24 : vector<1x512xi1> to vector<1x512xi1>
    %71 = vector.broadcast %70 : vector<1x512xi1> to vector<3x512xi1>
    %72 = vector.broadcast %cst_35 : f32 to vector<3x512xf32>
    %73 = arith.select %71, %69, %72 : vector<3x512xi1>, vector<3x512xf32>
    %c24 = arith.constant 24 : index
    %c0_36 = arith.constant 0 : index
    %74 = vector.load %arg7[%c24, %c0_36] : memref<27x512xf32, #tpu.memory_space<vmem>>, vector<3x512xf32>
    tpu.vector_store %arg7[%c24, %c0_36], %73 {strides = array<i32>} : memref<27x512xf32, #tpu.memory_space<vmem>>, vector<3x512xf32>,
    %c0_37 = arith.constant 0 : index
    %c0_38 = arith.constant 0 : index
    %75 = vector.load %arg1[%c0_37, %c0_38] : memref<8x27xf32, #tpu.memory_space<vmem>>, vector<8x27xf32>
    %c0_39 = arith.constant 0 : index
    %c0_40 = arith.constant 0 : index
    %76 = vector.load %arg7[%c0_39, %c0_40] : memref<27x512xf32, #tpu.memory_space<vmem>>, vector<27x512xf32>
    %77 = arith.truncf %75 : vector<8x27xf32> to vector<8x27xbf16>
    %78 = arith.truncf %76 : vector<27x512xf32> to vector<27x512xbf16>
    %cst_41 = arith.constant dense<0.000000e+00> : vector<8x512xf32>
    %79 = tpu.matmul %77, %78, %cst_41 {dimension_numbers = #tpu.dot_dimension_numbers<[1], [0], [0], [1], [0, 0, 1, 1], [], []>} : vector<8x27xbf16>, vector<27x512xbf16>, vector<8x512xf32> -> vector<8x512xf32>
    %c0_42 = arith.constant 0 : index
    %c0_43 = arith.constant 0 : index
    %80 = vector.load %arg2[%c0_42, %c0_43] : memref<8x1xf32, #tpu.memory_space<vmem>>, vector<8x1xf32>
    %81 = vector.broadcast %80 : vector<8x1xf32> to vector<8x512xf32>
    %82 = arith.addf %79, %81 : vector<8x512xf32>
    %c0_44 = arith.constant 0 : index
    %c0_45 = arith.constant 0 : index
    %83 = vector.load %arg3[%c0_44, %c0_45] : memref<8x1xf32, #tpu.memory_space<vmem>>, vector<8x1xf32>
    %c0_46 = arith.constant 0 : index
    %c0_47 = arith.constant 0 : index
    %84 = vector.load %arg4[%c0_46, %c0_47] : memref<8x1xf32, #tpu.memory_space<vmem>>, vector<8x1xf32>
    %cst_48 = arith.constant dense<0.000000e+00> : vector<8xf32>
    %85 = vector.multi_reduction <add>, %82, %cst_48 [1] : vector<8x512xf32> to vector<8xf32>
    %86 = vector.shape_cast %85 : vector<8xf32> to vector<8x1xf32>
    %cst_49 = arith.constant 5.120000e+02 : f32
    %87 = vector.broadcast %cst_49 : f32 to vector<8x1xf32>
    %88 = arith.divf %86, %87 : vector<8x1xf32>
    %89 = vector.broadcast %88 : vector<8x1xf32> to vector<8x512xf32>
    %90 = arith.subf %82, %89 : vector<8x512xf32>
    %91 = arith.mulf %90, %90 : vector<8x512xf32>
    %cst_50 = arith.constant dense<0.000000e+00> : vector<8xf32>
    %92 = vector.multi_reduction <add>, %91, %cst_50 [1] : vector<8x512xf32> to vector<8xf32>
    %93 = vector.shape_cast %92 : vector<8xf32> to vector<8x1xf32>
    %cst_51 = arith.constant 5.120000e+02 : f32
    %94 = vector.broadcast %cst_51 : f32 to vector<8x1xf32>
    %95 = arith.divf %93, %94 : vector<8x1xf32>
    %cst_52 = arith.constant 9.99999974E-6 : f32
    %96 = vector.broadcast %cst_52 : f32 to vector<8x1xf32>
    %97 = arith.addf %95, %96 : vector<8x1xf32>
    %98 = math.rsqrt %97 : vector<8x1xf32>
    %99 = arith.mulf %83, %98 : vector<8x1xf32>
    %100 = vector.broadcast %88 : vector<8x1xf32> to vector<8x512xf32>
    %101 = arith.subf %82, %100 : vector<8x512xf32>
    %102 = vector.broadcast %99 : vector<8x1xf32> to vector<8x512xf32>
    %103 = arith.mulf %101, %102 : vector<8x512xf32>
    %104 = vector.broadcast %84 : vector<8x1xf32> to vector<8x512xf32>
    %105 = arith.addf %103, %104 : vector<8x512xf32>
    %cst_53 = arith.constant 0.000000e+00 : f32
    %106 = vector.broadcast %cst_53 : f32 to vector<8x512xf32>
    %107 = arith.cmpf oge, %105, %106 : vector<8x512xf32>
    %cst_54 = arith.constant 2.000000e-01 : f32
    %108 = vector.broadcast %cst_54 : f32 to vector<8x512xf32>
    %109 = arith.mulf %108, %105 : vector<8x512xf32>
    %110 = arith.select %107, %105, %109 : vector<8x512xi1>, vector<8x512xf32>
    %c0_55 = arith.constant 0 : index
    %c0_56 = arith.constant 0 : index
    %111 = vector.load %arg5[%c0_55, %c0_56] : memref<8x512xf32, #tpu.memory_space<vmem>>, vector<8x512xf32>
    tpu.vector_store %arg5[%c0_55, %c0_56], %110 {strides = array<i32>} : memref<8x512xf32, #tpu.memory_space<vmem>>, vector<8x512xf32>,
    return
  }
}

module attributes {stable_mosaic.version = 11 : i64} {
  func.func @_resblocks_kernel(%arg0: memref<8x512xf32, #tpu.memory_space<vmem>>, %arg1: memref<1x8x72xf32, #tpu.memory_space<vmem>>, %arg2: memref<1x8x1xf32, #tpu.memory_space<vmem>>, %arg3: memref<1x8x1xf32, #tpu.memory_space<vmem>>, %arg4: memref<1x8x1xf32, #tpu.memory_space<vmem>>, %arg5: memref<1x8x72xf32, #tpu.memory_space<vmem>>, %arg6: memref<1x8x1xf32, #tpu.memory_space<vmem>>, %arg7: memref<1x8x1xf32, #tpu.memory_space<vmem>>, %arg8: memref<1x8x1xf32, #tpu.memory_space<vmem>>, %arg9: memref<8x512xf32, #tpu.memory_space<vmem>>, %arg10: memref<8x768xf32, #tpu.memory_space<vmem>>, %arg11: memref<72x512xf32, #tpu.memory_space<vmem>>) attributes {dimension_semantics = [], scalar_prefetch = 0 : i64, scratch_operands = 2 : i64, tpu.core_type = #tpu.core_type<tc>} {
    %0 = tpu.iota {dimensions = array<i32: 1>} : vector<1x512xi32>
    %c15_i32 = arith.constant 15 : i32
    %1 = vector.broadcast %c15_i32 : i32 to vector<1x512xi32>
    %2 = arith.andi %0, %1 : vector<1x512xi32>
    %c4_i32 = arith.constant 4 : i32
    %3 = vector.broadcast %c4_i32 : i32 to vector<1x512xi32>
    %4 = arith.shrsi %0, %3 : vector<1x512xi32>
    %c15_i32_0 = arith.constant 15 : i32
    %5 = vector.broadcast %c15_i32_0 : i32 to vector<1x512xi32>
    %6 = arith.andi %4, %5 : vector<1x512xi32>
    %c1_i32 = arith.constant 1 : i32
    %7 = vector.broadcast %c1_i32 : i32 to vector<1x512xi32>
    %8 = arith.cmpi sge, %6, %7 : vector<1x512xi32>
    %c14_i32 = arith.constant 14 : i32
    %9 = vector.broadcast %c14_i32 : i32 to vector<1x512xi32>
    %10 = arith.cmpi sle, %6, %9 : vector<1x512xi32>
    %c1_i32_1 = arith.constant 1 : i32
    %11 = vector.broadcast %c1_i32_1 : i32 to vector<1x512xi32>
    %12 = arith.cmpi sge, %2, %11 : vector<1x512xi32>
    %c14_i32_2 = arith.constant 14 : i32
    %13 = vector.broadcast %c14_i32_2 : i32 to vector<1x512xi32>
    %14 = arith.cmpi sle, %2, %13 : vector<1x512xi32>
    %15 = arith.andi %8, %12 : vector<1x512xi1>
    %16 = arith.andi %8, %14 : vector<1x512xi1>
    %17 = arith.andi %10, %12 : vector<1x512xi1>
    %18 = arith.andi %10, %14 : vector<1x512xi1>
    %c0 = arith.constant 0 : index
    %c0_3 = arith.constant 0 : index
    %19 = vector.load %arg0[%c0, %c0_3] : memref<8x512xf32, #tpu.memory_space<vmem>>, vector<8x512xf32>
    %cst = arith.constant 0.000000e+00 : f32
    %20 = vector.broadcast %cst : f32 to vector<8x128xf32>
    %c0_4 = arith.constant 0 : index
    %c0_5 = arith.constant 0 : index
    %21 = vector.load %arg10[%c0_4, %c0_5] : memref<8x768xf32, #tpu.memory_space<vmem>>, vector<8x128xf32>
    tpu.vector_store %arg10[%c0_4, %c0_5], %20 {strides = array<i32>} : memref<8x768xf32, #tpu.memory_space<vmem>>, vector<8x128xf32>,
    %cst_6 = arith.constant 0.000000e+00 : f32
    %22 = vector.broadcast %cst_6 : f32 to vector<8x128xf32>
    %c0_7 = arith.constant 0 : index
    %c640 = arith.constant 640 : index
    %23 = vector.load %arg10[%c0_7, %c640] : memref<8x768xf32, #tpu.memory_space<vmem>>, vector<8x128xf32>
    tpu.vector_store %arg10[%c0_7, %c640], %22 {strides = array<i32>} : memref<8x768xf32, #tpu.memory_space<vmem>>, vector<8x128xf32>,
    %c0_8 = arith.constant 0 : index
    %c128 = arith.constant 128 : index
    %24 = vector.load %arg10[%c0_8, %c128] : memref<8x768xf32, #tpu.memory_space<vmem>>, vector<8x512xf32>
    tpu.vector_store %arg10[%c0_8, %c128], %19 {strides = array<i32>} : memref<8x768xf32, #tpu.memory_space<vmem>>, vector<8x512xf32>,
    %c0_9 = arith.constant 0 : index
    %c128_10 = arith.constant 128 : index
    %25 = vector.load %arg10[%c0_9, %c128_10] : memref<8x768xf32, #tpu.memory_space<vmem>>, vector<8x512xf32>
    %c0_11 = arith.constant 0 : index
    %c111 = arith.constant 111 : index
    %26 = vector.load %arg10[%c0_11, %c111] : memref<8x768xf32, #tpu.memory_space<vmem>>, vector<8x512xf32>
    %cst_12 = arith.constant 0.000000e+00 : f32
    %27 = vector.shape_cast %15 : vector<1x512xi1> to vector<1x512xi1>
    %28 = vector.broadcast %27 : vector<1x512xi1> to vector<8x512xi1>
    %29 = vector.broadcast %cst_12 : f32 to vector<8x512xf32>
    %30 = arith.select %28, %26, %29 : vector<8x512xi1>, vector<8x512xf32>
    %c0_13 = arith.constant 0 : index
    %c0_14 = arith.constant 0 : index
    %31 = vector.load %arg11[%c0_13, %c0_14] : memref<72x512xf32, #tpu.memory_space<vmem>>, vector<8x512xf32>
    tpu.vector_store %arg11[%c0_13, %c0_14], %30 {strides = array<i32>} : memref<72x512xf32, #tpu.memory_space<vmem>>, vector<8x512xf32>,
    %c0_15 = arith.constant 0 : index
    %c112 = arith.constant 112 : index
    %32 = vector.load %arg10[%c0_15, %c112] : memref<8x768xf32, #tpu.memory_space<vmem>>, vector<8x512xf32>
    %cst_16 = arith.constant 0.000000e+00 : f32
    %33 = vector.shape_cast %8 : vector<1x512xi1> to vector<1x512xi1>
    %34 = vector.broadcast %33 : vector<1x512xi1> to vector<8x512xi1>
    %35 = vector.broadcast %cst_16 : f32 to vector<8x512xf32>
    %36 = arith.select %34, %32, %35 : vector<8x512xi1>, vector<8x512xf32>
    %c8 = arith.constant 8 : index
    %c0_17 = arith.constant 0 : index
    %37 = vector.load %arg11[%c8, %c0_17] : memref<72x512xf32, #tpu.memory_space<vmem>>, vector<8x512xf32>
    tpu.vector_store %arg11[%c8, %c0_17], %36 {strides = array<i32>} : memref<72x512xf32, #tpu.memory_space<vmem>>, vector<8x512xf32>,
    %c0_18 = arith.constant 0 : index
    %c113 = arith.constant 113 : index
    %38 = vector.load %arg10[%c0_18, %c113] : memref<8x768xf32, #tpu.memory_space<vmem>>, vector<8x512xf32>
    %cst_19 = arith.constant 0.000000e+00 : f32
    %39 = vector.shape_cast %16 : vector<1x512xi1> to vector<1x512xi1>
    %40 = vector.broadcast %39 : vector<1x512xi1> to vector<8x512xi1>
    %41 = vector.broadcast %cst_19 : f32 to vector<8x512xf32>
    %42 = arith.select %40, %38, %41 : vector<8x512xi1>, vector<8x512xf32>
    %c16 = arith.constant 16 : index
    %c0_20 = arith.constant 0 : index
    %43 = vector.load %arg11[%c16, %c0_20] : memref<72x512xf32, #tpu.memory_space<vmem>>, vector<8x512xf32>
    tpu.vector_store %arg11[%c16, %c0_20], %42 {strides = array<i32>} : memref<72x512xf32, #tpu.memory_space<vmem>>, vector<8x512xf32>,
    %c0_21 = arith.constant 0 : index
    %c127 = arith.constant 127 : index
    %44 = vector.load %arg10[%c0_21, %c127] : memref<8x768xf32, #tpu.memory_space<vmem>>, vector<8x512xf32>
    %cst_22 = arith.constant 0.000000e+00 : f32
    %45 = vector.shape_cast %12 : vector<1x512xi1> to vector<1x512xi1>
    %46 = vector.broadcast %45 : vector<1x512xi1> to vector<8x512xi1>
    %47 = vector.broadcast %cst_22 : f32 to vector<8x512xf32>
    %48 = arith.select %46, %44, %47 : vector<8x512xi1>, vector<8x512xf32>
    %c24 = arith.constant 24 : index
    %c0_23 = arith.constant 0 : index
    %49 = vector.load %arg11[%c24, %c0_23] : memref<72x512xf32, #tpu.memory_space<vmem>>, vector<8x512xf32>
    tpu.vector_store %arg11[%c24, %c0_23], %48 {strides = array<i32>} : memref<72x512xf32, #tpu.memory_space<vmem>>, vector<8x512xf32>,
    %c0_24 = arith.constant 0 : index
    %c128_25 = arith.constant 128 : index
    %50 = vector.load %arg10[%c0_24, %c128_25] : memref<8x768xf32, #tpu.memory_space<vmem>>, vector<8x512xf32>
    %c32 = arith.constant 32 : index
    %c0_26 = arith.constant 0 : index
    %51 = vector.load %arg11[%c32, %c0_26] : memref<72x512xf32, #tpu.memory_space<vmem>>, vector<8x512xf32>
    tpu.vector_store %arg11[%c32, %c0_26], %50 {strides = array<i32>} : memref<72x512xf32, #tpu.memory_space<vmem>>, vector<8x512xf32>,
    %c0_27 = arith.constant 0 : index
    %c129 = arith.constant 129 : index
    %52 = vector.load %arg10[%c0_27, %c129] : memref<8x768xf32, #tpu.memory_space<vmem>>, vector<8x512xf32>
    %cst_28 = arith.constant 0.000000e+00 : f32
    %53 = vector.shape_cast %14 : vector<1x512xi1> to vector<1x512xi1>
    %54 = vector.broadcast %53 : vector<1x512xi1> to vector<8x512xi1>
    %55 = vector.broadcast %cst_28 : f32 to vector<8x512xf32>
    %56 = arith.select %54, %52, %55 : vector<8x512xi1>, vector<8x512xf32>
    %c40 = arith.constant 40 : index
    %c0_29 = arith.constant 0 : index
    %57 = vector.load %arg11[%c40, %c0_29] : memref<72x512xf32, #tpu.memory_space<vmem>>, vector<8x512xf32>
    tpu.vector_store %arg11[%c40, %c0_29], %56 {strides = array<i32>} : memref<72x512xf32, #tpu.memory_space<vmem>>, vector<8x512xf32>,
    %c0_30 = arith.constant 0 : index
    %c143 = arith.constant 143 : index
    %58 = vector.load %arg10[%c0_30, %c143] : memref<8x768xf32, #tpu.memory_space<vmem>>, vector<8x512xf32>
    %cst_31 = arith.constant 0.000000e+00 : f32
    %59 = vector.shape_cast %17 : vector<1x512xi1> to vector<1x512xi1>
    %60 = vector.broadcast %59 : vector<1x512xi1> to vector<8x512xi1>
    %61 = vector.broadcast %cst_31 : f32 to vector<8x512xf32>
    %62 = arith.select %60, %58, %61 : vector<8x512xi1>, vector<8x512xf32>
    %c48 = arith.constant 48 : index
    %c0_32 = arith.constant 0 : index
    %63 = vector.load %arg11[%c48, %c0_32] : memref<72x512xf32, #tpu.memory_space<vmem>>, vector<8x512xf32>
    tpu.vector_store %arg11[%c48, %c0_32], %62 {strides = array<i32>} : memref<72x512xf32, #tpu.memory_space<vmem>>, vector<8x512xf32>,
    %c0_33 = arith.constant 0 : index
    %c144 = arith.constant 144 : index
    %64 = vector.load %arg10[%c0_33, %c144] : memref<8x768xf32, #tpu.memory_space<vmem>>, vector<8x512xf32>
    %cst_34 = arith.constant 0.000000e+00 : f32
    %65 = vector.shape_cast %10 : vector<1x512xi1> to vector<1x512xi1>
    %66 = vector.broadcast %65 : vector<1x512xi1> to vector<8x512xi1>
    %67 = vector.broadcast %cst_34 : f32 to vector<8x512xf32>
    %68 = arith.select %66, %64, %67 : vector<8x512xi1>, vector<8x512xf32>
    %c56 = arith.constant 56 : index
    %c0_35 = arith.constant 0 : index
    %69 = vector.load %arg11[%c56, %c0_35] : memref<72x512xf32, #tpu.memory_space<vmem>>, vector<8x512xf32>
    tpu.vector_store %arg11[%c56, %c0_35], %68 {strides = array<i32>} : memref<72x512xf32, #tpu.memory_space<vmem>>, vector<8x512xf32>,
    %c0_36 = arith.constant 0 : index
    %c145 = arith.constant 145 : index
    %70 = vector.load %arg10[%c0_36, %c145] : memref<8x768xf32, #tpu.memory_space<vmem>>, vector<8x512xf32>
    %cst_37 = arith.constant 0.000000e+00 : f32
    %71 = vector.shape_cast %18 : vector<1x512xi1> to vector<1x512xi1>
    %72 = vector.broadcast %71 : vector<1x512xi1> to vector<8x512xi1>
    %73 = vector.broadcast %cst_37 : f32 to vector<8x512xf32>
    %74 = arith.select %72, %70, %73 : vector<8x512xi1>, vector<8x512xf32>
    %c64 = arith.constant 64 : index
    %c0_38 = arith.constant 0 : index
    %75 = vector.load %arg11[%c64, %c0_38] : memref<72x512xf32, #tpu.memory_space<vmem>>, vector<8x512xf32>
    tpu.vector_store %arg11[%c64, %c0_38], %74 {strides = array<i32>} : memref<72x512xf32, #tpu.memory_space<vmem>>, vector<8x512xf32>,
    %c0_39 = arith.constant 0 : index
    %c0_40 = arith.constant 0 : index
    %c0_41 = arith.constant 0 : index
    %76 = vector.load %arg1[%c0_39, %c0_40, %c0_41] : memref<1x8x72xf32, #tpu.memory_space<vmem>>, vector<1x8x72xf32>
    %77 = vector.shape_cast %76 : vector<1x8x72xf32> to vector<8x72xf32>
    %c0_42 = arith.constant 0 : index
    %c0_43 = arith.constant 0 : index
    %78 = vector.load %arg11[%c0_42, %c0_43] : memref<72x512xf32, #tpu.memory_space<vmem>>, vector<72x512xf32>
    %79 = arith.truncf %77 : vector<8x72xf32> to vector<8x72xbf16>
    %80 = arith.truncf %78 : vector<72x512xf32> to vector<72x512xbf16>
    %cst_44 = arith.constant dense<0.000000e+00> : vector<8x512xf32>
    %81 = tpu.matmul %79, %80, %cst_44 {dimension_numbers = #tpu.dot_dimension_numbers<[1], [0], [0], [1], [0, 0, 1, 1], [], []>} : vector<8x72xbf16>, vector<72x512xbf16>, vector<8x512xf32> -> vector<8x512xf32>
    %c0_45 = arith.constant 0 : index
    %c0_46 = arith.constant 0 : index
    %c0_47 = arith.constant 0 : index
    %82 = vector.load %arg2[%c0_45, %c0_46, %c0_47] : memref<1x8x1xf32, #tpu.memory_space<vmem>>, vector<1x8x1xf32>
    %83 = vector.shape_cast %82 : vector<1x8x1xf32> to vector<8x1xf32>
    %84 = vector.broadcast %83 : vector<8x1xf32> to vector<8x512xf32>
    %85 = arith.addf %81, %84 : vector<8x512xf32>
    %c0_48 = arith.constant 0 : index
    %c0_49 = arith.constant 0 : index
    %c0_50 = arith.constant 0 : index
    %86 = vector.load %arg3[%c0_48, %c0_49, %c0_50] : memref<1x8x1xf32, #tpu.memory_space<vmem>>, vector<1x8x1xf32>
    %87 = vector.shape_cast %86 : vector<1x8x1xf32> to vector<8x1xf32>
    %c0_51 = arith.constant 0 : index
    %c0_52 = arith.constant 0 : index
    %c0_53 = arith.constant 0 : index
    %88 = vector.load %arg4[%c0_51, %c0_52, %c0_53] : memref<1x8x1xf32, #tpu.memory_space<vmem>>, vector<1x8x1xf32>
    %89 = vector.shape_cast %88 : vector<1x8x1xf32> to vector<8x1xf32>
    %cst_54 = arith.constant dense<0.000000e+00> : vector<8xf32>
    %90 = vector.multi_reduction <add>, %85, %cst_54 [1] : vector<8x512xf32> to vector<8xf32>
    %91 = vector.shape_cast %90 : vector<8xf32> to vector<8x1xf32>
    %cst_55 = arith.constant 5.120000e+02 : f32
    %92 = vector.broadcast %cst_55 : f32 to vector<8x1xf32>
    %93 = arith.divf %91, %92 : vector<8x1xf32>
    %94 = vector.broadcast %93 : vector<8x1xf32> to vector<8x512xf32>
    %95 = arith.subf %85, %94 : vector<8x512xf32>
    %96 = arith.mulf %95, %95 : vector<8x512xf32>
    %cst_56 = arith.constant dense<0.000000e+00> : vector<8xf32>
    %97 = vector.multi_reduction <add>, %96, %cst_56 [1] : vector<8x512xf32> to vector<8xf32>
    %98 = vector.shape_cast %97 : vector<8xf32> to vector<8x1xf32>
    %cst_57 = arith.constant 5.120000e+02 : f32
    %99 = vector.broadcast %cst_57 : f32 to vector<8x1xf32>
    %100 = arith.divf %98, %99 : vector<8x1xf32>
    %cst_58 = arith.constant 9.99999974E-6 : f32
    %101 = vector.broadcast %cst_58 : f32 to vector<8x1xf32>
    %102 = arith.addf %100, %101 : vector<8x1xf32>
    %103 = math.rsqrt %102 : vector<8x1xf32>
    %104 = arith.mulf %87, %103 : vector<8x1xf32>
    %105 = vector.broadcast %93 : vector<8x1xf32> to vector<8x512xf32>
    %106 = arith.subf %85, %105 : vector<8x512xf32>
    %107 = vector.broadcast %104 : vector<8x1xf32> to vector<8x512xf32>
    %108 = arith.mulf %106, %107 : vector<8x512xf32>
    %109 = vector.broadcast %89 : vector<8x1xf32> to vector<8x512xf32>
    %110 = arith.addf %108, %109 : vector<8x512xf32>
    %cst_59 = arith.constant 0.000000e+00 : f32
    %111 = vector.broadcast %cst_59 : f32 to vector<8x512xf32>
    %112 = arith.cmpf oge, %110, %111 : vector<8x512xf32>
    %cst_60 = arith.constant 2.000000e-01 : f32
    %113 = vector.broadcast %cst_60 : f32 to vector<8x512xf32>
    %114 = arith.mulf %113, %110 : vector<8x512xf32>
    %115 = arith.select %112, %110, %114 : vector<8x512xi1>, vector<8x512xf32>
    %c0_61 = arith.constant 0 : index
    %c128_62 = arith.constant 128 : index
    %116 = vector.load %arg10[%c0_61, %c128_62] : memref<8x768xf32, #tpu.memory_space<vmem>>, vector<8x512xf32>
    tpu.vector_store %arg10[%c0_61, %c128_62], %115 {strides = array<i32>} : memref<8x768xf32, #tpu.memory_space<vmem>>, vector<8x512xf32>,
    %c0_63 = arith.constant 0 : index
    %c111_64 = arith.constant 111 : index
    %117 = vector.load %arg10[%c0_63, %c111_64] : memref<8x768xf32, #tpu.memory_space<vmem>>, vector<8x512xf32>
    %cst_65 = arith.constant 0.000000e+00 : f32
    %118 = vector.shape_cast %15 : vector<1x512xi1> to vector<1x512xi1>
    %119 = vector.broadcast %118 : vector<1x512xi1> to vector<8x512xi1>
    %120 = vector.broadcast %cst_65 : f32 to vector<8x512xf32>
    %121 = arith.select %119, %117, %120 : vector<8x512xi1>, vector<8x512xf32>
    %c0_66 = arith.constant 0 : index
    %c0_67 = arith.constant 0 : index
    %122 = vector.load %arg11[%c0_66, %c0_67] : memref<72x512xf32, #tpu.memory_space<vmem>>, vector<8x512xf32>
    tpu.vector_store %arg11[%c0_66, %c0_67], %121 {strides = array<i32>} : memref<72x512xf32, #tpu.memory_space<vmem>>, vector<8x512xf32>,
    %c0_68 = arith.constant 0 : index
    %c112_69 = arith.constant 112 : index
    %123 = vector.load %arg10[%c0_68, %c112_69] : memref<8x768xf32, #tpu.memory_space<vmem>>, vector<8x512xf32>
    %cst_70 = arith.constant 0.000000e+00 : f32
    %124 = vector.shape_cast %8 : vector<1x512xi1> to vector<1x512xi1>
    %125 = vector.broadcast %124 : vector<1x512xi1> to vector<8x512xi1>
    %126 = vector.broadcast %cst_70 : f32 to vector<8x512xf32>
    %127 = arith.select %125, %123, %126 : vector<8x512xi1>, vector<8x512xf32>
    %c8_71 = arith.constant 8 : index
    %c0_72 = arith.constant 0 : index
    %128 = vector.load %arg11[%c8_71, %c0_72] : memref<72x512xf32, #tpu.memory_space<vmem>>, vector<8x512xf32>
    tpu.vector_store %arg11[%c8_71, %c0_72], %127 {strides = array<i32>} : memref<72x512xf32, #tpu.memory_space<vmem>>, vector<8x512xf32>,
    %c0_73 = arith.constant 0 : index
    %c113_74 = arith.constant 113 : index
    %129 = vector.load %arg10[%c0_73, %c113_74] : memref<8x768xf32, #tpu.memory_space<vmem>>, vector<8x512xf32>
    %cst_75 = arith.constant 0.000000e+00 : f32
    %130 = vector.shape_cast %16 : vector<1x512xi1> to vector<1x512xi1>
    %131 = vector.broadcast %130 : vector<1x512xi1> to vector<8x512xi1>
    %132 = vector.broadcast %cst_75 : f32 to vector<8x512xf32>
    %133 = arith.select %131, %129, %132 : vector<8x512xi1>, vector<8x512xf32>
    %c16_76 = arith.constant 16 : index
    %c0_77 = arith.constant 0 : index
    %134 = vector.load %arg11[%c16_76, %c0_77] : memref<72x512xf32, #tpu.memory_space<vmem>>, vector<8x512xf32>
    tpu.vector_store %arg11[%c16_76, %c0_77], %133 {strides = array<i32>} : memref<72x512xf32, #tpu.memory_space<vmem>>, vector<8x512xf32>,
    %c0_78 = arith.constant 0 : index
    %c127_79 = arith.constant 127 : index
    %135 = vector.load %arg10[%c0_78, %c127_79] : memref<8x768xf32, #tpu.memory_space<vmem>>, vector<8x512xf32>
    %cst_80 = arith.constant 0.000000e+00 : f32
    %136 = vector.shape_cast %12 : vector<1x512xi1> to vector<1x512xi1>
    %137 = vector.broadcast %136 : vector<1x512xi1> to vector<8x512xi1>
    %138 = vector.broadcast %cst_80 : f32 to vector<8x512xf32>
    %139 = arith.select %137, %135, %138 : vector<8x512xi1>, vector<8x512xf32>
    %c24_81 = arith.constant 24 : index
    %c0_82 = arith.constant 0 : index
    %140 = vector.load %arg11[%c24_81, %c0_82] : memref<72x512xf32, #tpu.memory_space<vmem>>, vector<8x512xf32>
    tpu.vector_store %arg11[%c24_81, %c0_82], %139 {strides = array<i32>} : memref<72x512xf32, #tpu.memory_space<vmem>>, vector<8x512xf32>,
    %c0_83 = arith.constant 0 : index
    %c128_84 = arith.constant 128 : index
    %141 = vector.load %arg10[%c0_83, %c128_84] : memref<8x768xf32, #tpu.memory_space<vmem>>, vector<8x512xf32>
    %c32_85 = arith.constant 32 : index
    %c0_86 = arith.constant 0 : index
    %142 = vector.load %arg11[%c32_85, %c0_86] : memref<72x512xf32, #tpu.memory_space<vmem>>, vector<8x512xf32>
    tpu.vector_store %arg11[%c32_85, %c0_86], %141 {strides = array<i32>} : memref<72x512xf32, #tpu.memory_space<vmem>>, vector<8x512xf32>,
    %c0_87 = arith.constant 0 : index
    %c129_88 = arith.constant 129 : index
    %143 = vector.load %arg10[%c0_87, %c129_88] : memref<8x768xf32, #tpu.memory_space<vmem>>, vector<8x512xf32>
    %cst_89 = arith.constant 0.000000e+00 : f32
    %144 = vector.shape_cast %14 : vector<1x512xi1> to vector<1x512xi1>
    %145 = vector.broadcast %144 : vector<1x512xi1> to vector<8x512xi1>
    %146 = vector.broadcast %cst_89 : f32 to vector<8x512xf32>
    %147 = arith.select %145, %143, %146 : vector<8x512xi1>, vector<8x512xf32>
    %c40_90 = arith.constant 40 : index
    %c0_91 = arith.constant 0 : index
    %148 = vector.load %arg11[%c40_90, %c0_91] : memref<72x512xf32, #tpu.memory_space<vmem>>, vector<8x512xf32>
    tpu.vector_store %arg11[%c40_90, %c0_91], %147 {strides = array<i32>} : memref<72x512xf32, #tpu.memory_space<vmem>>, vector<8x512xf32>,
    %c0_92 = arith.constant 0 : index
    %c143_93 = arith.constant 143 : index
    %149 = vector.load %arg10[%c0_92, %c143_93] : memref<8x768xf32, #tpu.memory_space<vmem>>, vector<8x512xf32>
    %cst_94 = arith.constant 0.000000e+00 : f32
    %150 = vector.shape_cast %17 : vector<1x512xi1> to vector<1x512xi1>
    %151 = vector.broadcast %150 : vector<1x512xi1> to vector<8x512xi1>
    %152 = vector.broadcast %cst_94 : f32 to vector<8x512xf32>
    %153 = arith.select %151, %149, %152 : vector<8x512xi1>, vector<8x512xf32>
    %c48_95 = arith.constant 48 : index
    %c0_96 = arith.constant 0 : index
    %154 = vector.load %arg11[%c48_95, %c0_96] : memref<72x512xf32, #tpu.memory_space<vmem>>, vector<8x512xf32>
    tpu.vector_store %arg11[%c48_95, %c0_96], %153 {strides = array<i32>} : memref<72x512xf32, #tpu.memory_space<vmem>>, vector<8x512xf32>,
    %c0_97 = arith.constant 0 : index
    %c144_98 = arith.constant 144 : index
    %155 = vector.load %arg10[%c0_97, %c144_98] : memref<8x768xf32, #tpu.memory_space<vmem>>, vector<8x512xf32>
    %cst_99 = arith.constant 0.000000e+00 : f32
    %156 = vector.shape_cast %10 : vector<1x512xi1> to vector<1x512xi1>
    %157 = vector.broadcast %156 : vector<1x512xi1> to vector<8x512xi1>
    %158 = vector.broadcast %cst_99 : f32 to vector<8x512xf32>
    %159 = arith.select %157, %155, %158 : vector<8x512xi1>, vector<8x512xf32>
    %c56_100 = arith.constant 56 : index
    %c0_101 = arith.constant 0 : index
    %160 = vector.load %arg11[%c56_100, %c0_101] : memref<72x512xf32, #tpu.memory_space<vmem>>, vector<8x512xf32>
    tpu.vector_store %arg11[%c56_100, %c0_101], %159 {strides = array<i32>} : memref<72x512xf32, #tpu.memory_space<vmem>>, vector<8x512xf32>,
    %c0_102 = arith.constant 0 : index
    %c145_103 = arith.constant 145 : index
    %161 = vector.load %arg10[%c0_102, %c145_103] : memref<8x768xf32, #tpu.memory_space<vmem>>, vector<8x512xf32>
    %cst_104 = arith.constant 0.000000e+00 : f32
    %162 = vector.shape_cast %18 : vector<1x512xi1> to vector<1x512xi1>
    %163 = vector.broadcast %162 : vector<1x512xi1> to vector<8x512xi1>
    %164 = vector.broadcast %cst_104 : f32 to vector<8x512xf32>
    %165 = arith.select %163, %161, %164 : vector<8x512xi1>, vector<8x512xf32>
    %c64_105 = arith.constant 64 : index
    %c0_106 = arith.constant 0 : index
    %166 = vector.load %arg11[%c64_105, %c0_106] : memref<72x512xf32, #tpu.memory_space<vmem>>, vector<8x512xf32>
    tpu.vector_store %arg11[%c64_105, %c0_106], %165 {strides = array<i32>} : memref<72x512xf32, #tpu.memory_space<vmem>>, vector<8x512xf32>,
    %c0_107 = arith.constant 0 : index
    %c0_108 = arith.constant 0 : index
    %c0_109 = arith.constant 0 : index
    %167 = vector.load %arg5[%c0_107, %c0_108, %c0_109] : memref<1x8x72xf32, #tpu.memory_space<vmem>>, vector<1x8x72xf32>
    %168 = vector.shape_cast %167 : vector<1x8x72xf32> to vector<8x72xf32>
    %c0_110 = arith.constant 0 : index
    %c0_111 = arith.constant 0 : index
    %169 = vector.load %arg11[%c0_110, %c0_111] : memref<72x512xf32, #tpu.memory_space<vmem>>, vector<72x512xf32>
    %170 = arith.truncf %168 : vector<8x72xf32> to vector<8x72xbf16>
    %171 = arith.truncf %169 : vector<72x512xf32> to vector<72x512xbf16>
    %cst_112 = arith.constant dense<0.000000e+00> : vector<8x512xf32>
    %172 = tpu.matmul %170, %171, %cst_112 {dimension_numbers = #tpu.dot_dimension_numbers<[1], [0], [0], [1], [0, 0, 1, 1], [], []>} : vector<8x72xbf16>, vector<72x512xbf16>, vector<8x512xf32> -> vector<8x512xf32>
    %c0_113 = arith.constant 0 : index
    %c0_114 = arith.constant 0 : index
    %c0_115 = arith.constant 0 : index
    %173 = vector.load %arg6[%c0_113, %c0_114, %c0_115] : memref<1x8x1xf32, #tpu.memory_space<vmem>>, vector<1x8x1xf32>
    %174 = vector.shape_cast %173 : vector<1x8x1xf32> to vector<8x1xf32>
    %175 = vector.broadcast %174 : vector<8x1xf32> to vector<8x512xf32>
    %176 = arith.addf %172, %175 : vector<8x512xf32>
    %c0_116 = arith.constant 0 : index
    %c0_117 = arith.constant 0 : index
    %c0_118 = arith.constant 0 : index
    %177 = vector.load %arg7[%c0_116, %c0_117, %c0_118] : memref<1x8x1xf32, #tpu.memory_space<vmem>>, vector<1x8x1xf32>
    %178 = vector.shape_cast %177 : vector<1x8x1xf32> to vector<8x1xf32>
    %c0_119 = arith.constant 0 : index
    %c0_120 = arith.constant 0 : index
    %c0_121 = arith.constant 0 : index
    %179 = vector.load %arg8[%c0_119, %c0_120, %c0_121] : memref<1x8x1xf32, #tpu.memory_space<vmem>>, vector<1x8x1xf32>
    %180 = vector.shape_cast %179 : vector<1x8x1xf32> to vector<8x1xf32>
    %cst_122 = arith.constant dense<0.000000e+00> : vector<8xf32>
    %181 = vector.multi_reduction <add>, %176, %cst_122 [1] : vector<8x512xf32> to vector<8xf32>
    %182 = vector.shape_cast %181 : vector<8xf32> to vector<8x1xf32>
    %cst_123 = arith.constant 5.120000e+02 : f32
    %183 = vector.broadcast %cst_123 : f32 to vector<8x1xf32>
    %184 = arith.divf %182, %183 : vector<8x1xf32>
    %185 = vector.broadcast %184 : vector<8x1xf32> to vector<8x512xf32>
    %186 = arith.subf %176, %185 : vector<8x512xf32>
    %187 = arith.mulf %186, %186 : vector<8x512xf32>
    %cst_124 = arith.constant dense<0.000000e+00> : vector<8xf32>
    %188 = vector.multi_reduction <add>, %187, %cst_124 [1] : vector<8x512xf32> to vector<8xf32>
    %189 = vector.shape_cast %188 : vector<8xf32> to vector<8x1xf32>
    %cst_125 = arith.constant 5.120000e+02 : f32
    %190 = vector.broadcast %cst_125 : f32 to vector<8x1xf32>
    %191 = arith.divf %189, %190 : vector<8x1xf32>
    %cst_126 = arith.constant 9.99999974E-6 : f32
    %192 = vector.broadcast %cst_126 : f32 to vector<8x1xf32>
    %193 = arith.addf %191, %192 : vector<8x1xf32>
    %194 = math.rsqrt %193 : vector<8x1xf32>
    %195 = arith.mulf %178, %194 : vector<8x1xf32>
    %196 = vector.broadcast %184 : vector<8x1xf32> to vector<8x512xf32>
    %197 = arith.subf %176, %196 : vector<8x512xf32>
    %198 = vector.broadcast %195 : vector<8x1xf32> to vector<8x512xf32>
    %199 = arith.mulf %197, %198 : vector<8x512xf32>
    %200 = vector.broadcast %180 : vector<8x1xf32> to vector<8x512xf32>
    %201 = arith.addf %199, %200 : vector<8x512xf32>
    %cst_127 = arith.constant 0.000000e+00 : f32
    %202 = vector.broadcast %cst_127 : f32 to vector<8x512xf32>
    %203 = arith.cmpf oge, %201, %202 : vector<8x512xf32>
    %cst_128 = arith.constant 2.000000e-01 : f32
    %204 = vector.broadcast %cst_128 : f32 to vector<8x512xf32>
    %205 = arith.mulf %204, %201 : vector<8x512xf32>
    %206 = arith.select %203, %201, %205 : vector<8x512xi1>, vector<8x512xf32>
    %207 = arith.addf %25, %206 : vector<8x512xf32>
    %c0_129 = arith.constant 0 : index
    %c128_130 = arith.constant 128 : index
    %208 = vector.load %arg10[%c0_129, %c128_130] : memref<8x768xf32, #tpu.memory_space<vmem>>, vector<8x512xf32>
    tpu.vector_store %arg10[%c0_129, %c128_130], %207 {strides = array<i32>} : memref<8x768xf32, #tpu.memory_space<vmem>>, vector<8x512xf32>,
    %c0_131 = arith.constant 0 : index
    %c128_132 = arith.constant 128 : index
    %209 = vector.load %arg10[%c0_131, %c128_132] : memref<8x768xf32, #tpu.memory_space<vmem>>, vector<8x512xf32>
    %c0_133 = arith.constant 0 : index
    %c0_134 = arith.constant 0 : index
    %210 = vector.load %arg9[%c0_133, %c0_134] : memref<8x512xf32, #tpu.memory_space<vmem>>, vector<8x512xf32>
    tpu.vector_store %arg9[%c0_133, %c0_134], %209 {strides = array<i32>} : memref<8x512xf32, #tpu.memory_space<vmem>>, vector<8x512xf32>,
    return
  }
}

module attributes {stable_mosaic.version = 11 : i64} {
  func.func @_gemm_bn_lrelu_kernel(%arg0: memref<32x128xf32, #tpu.memory_space<vmem>>, %arg1: memref<16x32xf32, #tpu.memory_space<vmem>>, %arg2: memref<16x1xf32, #tpu.memory_space<vmem>>, %arg3: memref<16x1xf32, #tpu.memory_space<vmem>>, %arg4: memref<16x1xf32, #tpu.memory_space<vmem>>, %arg5: memref<16x128xf32, #tpu.memory_space<vmem>>) attributes {dimension_semantics = [], scalar_prefetch = 0 : i64, scratch_operands = 0 : i64, tpu.core_type = #tpu.core_type<tc>} {
    %c0 = arith.constant 0 : index
    %c0_0 = arith.constant 0 : index
    %0 = vector.load %arg1[%c0, %c0_0] : memref<16x32xf32, #tpu.memory_space<vmem>>, vector<16x32xf32>
    %c0_1 = arith.constant 0 : index
    %c0_2 = arith.constant 0 : index
    %1 = vector.load %arg0[%c0_1, %c0_2] : memref<32x128xf32, #tpu.memory_space<vmem>>, vector<32x128xf32>
    %2 = arith.truncf %0 : vector<16x32xf32> to vector<16x32xbf16>
    %3 = arith.truncf %1 : vector<32x128xf32> to vector<32x128xbf16>
    %cst = arith.constant dense<0.000000e+00> : vector<16x128xf32>
    %4 = tpu.matmul %2, %3, %cst {dimension_numbers = #tpu.dot_dimension_numbers<[1], [0], [0], [1], [0, 0, 1, 1], [], []>} : vector<16x32xbf16>, vector<32x128xbf16>, vector<16x128xf32> -> vector<16x128xf32>
    %c0_3 = arith.constant 0 : index
    %c0_4 = arith.constant 0 : index
    %5 = vector.load %arg2[%c0_3, %c0_4] : memref<16x1xf32, #tpu.memory_space<vmem>>, vector<16x1xf32>
    %6 = vector.broadcast %5 : vector<16x1xf32> to vector<16x128xf32>
    %7 = arith.addf %4, %6 : vector<16x128xf32>
    %c0_5 = arith.constant 0 : index
    %c0_6 = arith.constant 0 : index
    %8 = vector.load %arg3[%c0_5, %c0_6] : memref<16x1xf32, #tpu.memory_space<vmem>>, vector<16x1xf32>
    %c0_7 = arith.constant 0 : index
    %c0_8 = arith.constant 0 : index
    %9 = vector.load %arg4[%c0_7, %c0_8] : memref<16x1xf32, #tpu.memory_space<vmem>>, vector<16x1xf32>
    %cst_9 = arith.constant dense<0.000000e+00> : vector<16xf32>
    %10 = vector.multi_reduction <add>, %7, %cst_9 [1] : vector<16x128xf32> to vector<16xf32>
    %11 = vector.shape_cast %10 : vector<16xf32> to vector<16x1xf32>
    %cst_10 = arith.constant 1.280000e+02 : f32
    %12 = vector.broadcast %cst_10 : f32 to vector<16x1xf32>
    %13 = arith.divf %11, %12 : vector<16x1xf32>
    %14 = vector.broadcast %13 : vector<16x1xf32> to vector<16x128xf32>
    %15 = arith.subf %7, %14 : vector<16x128xf32>
    %16 = arith.mulf %15, %15 : vector<16x128xf32>
    %cst_11 = arith.constant dense<0.000000e+00> : vector<16xf32>
    %17 = vector.multi_reduction <add>, %16, %cst_11 [1] : vector<16x128xf32> to vector<16xf32>
    %18 = vector.shape_cast %17 : vector<16xf32> to vector<16x1xf32>
    %cst_12 = arith.constant 1.280000e+02 : f32
    %19 = vector.broadcast %cst_12 : f32 to vector<16x1xf32>
    %20 = arith.divf %18, %19 : vector<16x1xf32>
    %cst_13 = arith.constant 9.99999974E-6 : f32
    %21 = vector.broadcast %cst_13 : f32 to vector<16x1xf32>
    %22 = arith.addf %20, %21 : vector<16x1xf32>
    %23 = math.rsqrt %22 : vector<16x1xf32>
    %24 = arith.mulf %8, %23 : vector<16x1xf32>
    %25 = vector.broadcast %13 : vector<16x1xf32> to vector<16x128xf32>
    %26 = arith.subf %7, %25 : vector<16x128xf32>
    %27 = vector.broadcast %24 : vector<16x1xf32> to vector<16x128xf32>
    %28 = arith.mulf %26, %27 : vector<16x128xf32>
    %29 = vector.broadcast %9 : vector<16x1xf32> to vector<16x128xf32>
    %30 = arith.addf %28, %29 : vector<16x128xf32>
    %cst_14 = arith.constant 0.000000e+00 : f32
    %31 = vector.broadcast %cst_14 : f32 to vector<16x128xf32>
    %32 = arith.cmpf oge, %30, %31 : vector<16x128xf32>
    %cst_15 = arith.constant 2.000000e-01 : f32
    %33 = vector.broadcast %cst_15 : f32 to vector<16x128xf32>
    %34 = arith.mulf %33, %30 : vector<16x128xf32>
    %35 = arith.select %32, %30, %34 : vector<16x128xi1>, vector<16x128xf32>
    %c0_16 = arith.constant 0 : index
    %c0_17 = arith.constant 0 : index
    %36 = vector.load %arg5[%c0_16, %c0_17] : memref<16x128xf32, #tpu.memory_space<vmem>>, vector<16x128xf32>
    tpu.vector_store %arg5[%c0_16, %c0_17], %35 {strides = array<i32>} : memref<16x128xf32, #tpu.memory_space<vmem>>, vector<16x128xf32>,
    return
  }
}

module attributes {stable_mosaic.version = 11 : i64} {
  func.func @_resblocks_kernel(%arg0: memref<16x128xf32, #tpu.memory_space<vmem>>, %arg1: memref<1x16x144xf32, #tpu.memory_space<vmem>>, %arg2: memref<1x16x1xf32, #tpu.memory_space<vmem>>, %arg3: memref<1x16x1xf32, #tpu.memory_space<vmem>>, %arg4: memref<1x16x1xf32, #tpu.memory_space<vmem>>, %arg5: memref<1x16x144xf32, #tpu.memory_space<vmem>>, %arg6: memref<1x16x1xf32, #tpu.memory_space<vmem>>, %arg7: memref<1x16x1xf32, #tpu.memory_space<vmem>>, %arg8: memref<1x16x1xf32, #tpu.memory_space<vmem>>, %arg9: memref<16x128xf32, #tpu.memory_space<vmem>>, %arg10: memref<16x384xf32, #tpu.memory_space<vmem>>, %arg11: memref<144x128xf32, #tpu.memory_space<vmem>>) attributes {dimension_semantics = [], scalar_prefetch = 0 : i64, scratch_operands = 2 : i64, tpu.core_type = #tpu.core_type<tc>} {
    %0 = tpu.iota {dimensions = array<i32: 1>} : vector<1x128xi32>
    %c7_i32 = arith.constant 7 : i32
    %1 = vector.broadcast %c7_i32 : i32 to vector<1x128xi32>
    %2 = arith.andi %0, %1 : vector<1x128xi32>
    %c3_i32 = arith.constant 3 : i32
    %3 = vector.broadcast %c3_i32 : i32 to vector<1x128xi32>
    %4 = arith.shrsi %0, %3 : vector<1x128xi32>
    %c7_i32_0 = arith.constant 7 : i32
    %5 = vector.broadcast %c7_i32_0 : i32 to vector<1x128xi32>
    %6 = arith.andi %4, %5 : vector<1x128xi32>
    %c1_i32 = arith.constant 1 : i32
    %7 = vector.broadcast %c1_i32 : i32 to vector<1x128xi32>
    %8 = arith.cmpi sge, %6, %7 : vector<1x128xi32>
    %c6_i32 = arith.constant 6 : i32
    %9 = vector.broadcast %c6_i32 : i32 to vector<1x128xi32>
    %10 = arith.cmpi sle, %6, %9 : vector<1x128xi32>
    %c1_i32_1 = arith.constant 1 : i32
    %11 = vector.broadcast %c1_i32_1 : i32 to vector<1x128xi32>
    %12 = arith.cmpi sge, %2, %11 : vector<1x128xi32>
    %c6_i32_2 = arith.constant 6 : i32
    %13 = vector.broadcast %c6_i32_2 : i32 to vector<1x128xi32>
    %14 = arith.cmpi sle, %2, %13 : vector<1x128xi32>
    %15 = arith.andi %8, %12 : vector<1x128xi1>
    %16 = arith.andi %8, %14 : vector<1x128xi1>
    %17 = arith.andi %10, %12 : vector<1x128xi1>
    %18 = arith.andi %10, %14 : vector<1x128xi1>
    %c0 = arith.constant 0 : index
    %c0_3 = arith.constant 0 : index
    %19 = vector.load %arg0[%c0, %c0_3] : memref<16x128xf32, #tpu.memory_space<vmem>>, vector<16x128xf32>
    %cst = arith.constant 0.000000e+00 : f32
    %20 = vector.broadcast %cst : f32 to vector<16x128xf32>
    %c0_4 = arith.constant 0 : index
    %c0_5 = arith.constant 0 : index
    %21 = vector.load %arg10[%c0_4, %c0_5] : memref<16x384xf32, #tpu.memory_space<vmem>>, vector<16x128xf32>
    tpu.vector_store %arg10[%c0_4, %c0_5], %20 {strides = array<i32>} : memref<16x384xf32, #tpu.memory_space<vmem>>, vector<16x128xf32>,
    %cst_6 = arith.constant 0.000000e+00 : f32
    %22 = vector.broadcast %cst_6 : f32 to vector<16x128xf32>
    %c0_7 = arith.constant 0 : index
    %c256 = arith.constant 256 : index
    %23 = vector.load %arg10[%c0_7, %c256] : memref<16x384xf32, #tpu.memory_space<vmem>>, vector<16x128xf32>
    tpu.vector_store %arg10[%c0_7, %c256], %22 {strides = array<i32>} : memref<16x384xf32, #tpu.memory_space<vmem>>, vector<16x128xf32>,
    %c0_8 = arith.constant 0 : index
    %c128 = arith.constant 128 : index
    %24 = vector.load %arg10[%c0_8, %c128] : memref<16x384xf32, #tpu.memory_space<vmem>>, vector<16x128xf32>
    tpu.vector_store %arg10[%c0_8, %c128], %19 {strides = array<i32>} : memref<16x384xf32, #tpu.memory_space<vmem>>, vector<16x128xf32>,
    %c0_9 = arith.constant 0 : index
    %c128_10 = arith.constant 128 : index
    %25 = vector.load %arg10[%c0_9, %c128_10] : memref<16x384xf32, #tpu.memory_space<vmem>>, vector<16x128xf32>
    %c0_11 = arith.constant 0 : index
    %c119 = arith.constant 119 : index
    %26 = vector.load %arg10[%c0_11, %c119] : memref<16x384xf32, #tpu.memory_space<vmem>>, vector<16x128xf32>
    %cst_12 = arith.constant 0.000000e+00 : f32
    %27 = vector.shape_cast %15 : vector<1x128xi1> to vector<1x128xi1>
    %28 = vector.broadcast %27 : vector<1x128xi1> to vector<16x128xi1>
    %29 = vector.broadcast %cst_12 : f32 to vector<16x128xf32>
    %30 = arith.select %28, %26, %29 : vector<16x128xi1>, vector<16x128xf32>
    %c0_13 = arith.constant 0 : index
    %c0_14 = arith.constant 0 : index
    %31 = vector.load %arg11[%c0_13, %c0_14] : memref<144x128xf32, #tpu.memory_space<vmem>>, vector<16x128xf32>
    tpu.vector_store %arg11[%c0_13, %c0_14], %30 {strides = array<i32>} : memref<144x128xf32, #tpu.memory_space<vmem>>, vector<16x128xf32>,
    %c0_15 = arith.constant 0 : index
    %c120 = arith.constant 120 : index
    %32 = vector.load %arg10[%c0_15, %c120] : memref<16x384xf32, #tpu.memory_space<vmem>>, vector<16x128xf32>
    %cst_16 = arith.constant 0.000000e+00 : f32
    %33 = vector.shape_cast %8 : vector<1x128xi1> to vector<1x128xi1>
    %34 = vector.broadcast %33 : vector<1x128xi1> to vector<16x128xi1>
    %35 = vector.broadcast %cst_16 : f32 to vector<16x128xf32>
    %36 = arith.select %34, %32, %35 : vector<16x128xi1>, vector<16x128xf32>
    %c16 = arith.constant 16 : index
    %c0_17 = arith.constant 0 : index
    %37 = vector.load %arg11[%c16, %c0_17] : memref<144x128xf32, #tpu.memory_space<vmem>>, vector<16x128xf32>
    tpu.vector_store %arg11[%c16, %c0_17], %36 {strides = array<i32>} : memref<144x128xf32, #tpu.memory_space<vmem>>, vector<16x128xf32>,
    %c0_18 = arith.constant 0 : index
    %c121 = arith.constant 121 : index
    %38 = vector.load %arg10[%c0_18, %c121] : memref<16x384xf32, #tpu.memory_space<vmem>>, vector<16x128xf32>
    %cst_19 = arith.constant 0.000000e+00 : f32
    %39 = vector.shape_cast %16 : vector<1x128xi1> to vector<1x128xi1>
    %40 = vector.broadcast %39 : vector<1x128xi1> to vector<16x128xi1>
    %41 = vector.broadcast %cst_19 : f32 to vector<16x128xf32>
    %42 = arith.select %40, %38, %41 : vector<16x128xi1>, vector<16x128xf32>
    %c32 = arith.constant 32 : index
    %c0_20 = arith.constant 0 : index
    %43 = vector.load %arg11[%c32, %c0_20] : memref<144x128xf32, #tpu.memory_space<vmem>>, vector<16x128xf32>
    tpu.vector_store %arg11[%c32, %c0_20], %42 {strides = array<i32>} : memref<144x128xf32, #tpu.memory_space<vmem>>, vector<16x128xf32>,
    %c0_21 = arith.constant 0 : index
    %c127 = arith.constant 127 : index
    %44 = vector.load %arg10[%c0_21, %c127] : memref<16x384xf32, #tpu.memory_space<vmem>>, vector<16x128xf32>
    %cst_22 = arith.constant 0.000000e+00 : f32
    %45 = vector.shape_cast %12 : vector<1x128xi1> to vector<1x128xi1>
    %46 = vector.broadcast %45 : vector<1x128xi1> to vector<16x128xi1>
    %47 = vector.broadcast %cst_22 : f32 to vector<16x128xf32>
    %48 = arith.select %46, %44, %47 : vector<16x128xi1>, vector<16x128xf32>
    %c48 = arith.constant 48 : index
    %c0_23 = arith.constant 0 : index
    %49 = vector.load %arg11[%c48, %c0_23] : memref<144x128xf32, #tpu.memory_space<vmem>>, vector<16x128xf32>
    tpu.vector_store %arg11[%c48, %c0_23], %48 {strides = array<i32>} : memref<144x128xf32, #tpu.memory_space<vmem>>, vector<16x128xf32>,
    %c0_24 = arith.constant 0 : index
    %c128_25 = arith.constant 128 : index
    %50 = vector.load %arg10[%c0_24, %c128_25] : memref<16x384xf32, #tpu.memory_space<vmem>>, vector<16x128xf32>
    %c64 = arith.constant 64 : index
    %c0_26 = arith.constant 0 : index
    %51 = vector.load %arg11[%c64, %c0_26] : memref<144x128xf32, #tpu.memory_space<vmem>>, vector<16x128xf32>
    tpu.vector_store %arg11[%c64, %c0_26], %50 {strides = array<i32>} : memref<144x128xf32, #tpu.memory_space<vmem>>, vector<16x128xf32>,
    %c0_27 = arith.constant 0 : index
    %c129 = arith.constant 129 : index
    %52 = vector.load %arg10[%c0_27, %c129] : memref<16x384xf32, #tpu.memory_space<vmem>>, vector<16x128xf32>
    %cst_28 = arith.constant 0.000000e+00 : f32
    %53 = vector.shape_cast %14 : vector<1x128xi1> to vector<1x128xi1>
    %54 = vector.broadcast %53 : vector<1x128xi1> to vector<16x128xi1>
    %55 = vector.broadcast %cst_28 : f32 to vector<16x128xf32>
    %56 = arith.select %54, %52, %55 : vector<16x128xi1>, vector<16x128xf32>
    %c80 = arith.constant 80 : index
    %c0_29 = arith.constant 0 : index
    %57 = vector.load %arg11[%c80, %c0_29] : memref<144x128xf32, #tpu.memory_space<vmem>>, vector<16x128xf32>
    tpu.vector_store %arg11[%c80, %c0_29], %56 {strides = array<i32>} : memref<144x128xf32, #tpu.memory_space<vmem>>, vector<16x128xf32>,
    %c0_30 = arith.constant 0 : index
    %c135 = arith.constant 135 : index
    %58 = vector.load %arg10[%c0_30, %c135] : memref<16x384xf32, #tpu.memory_space<vmem>>, vector<16x128xf32>
    %cst_31 = arith.constant 0.000000e+00 : f32
    %59 = vector.shape_cast %17 : vector<1x128xi1> to vector<1x128xi1>
    %60 = vector.broadcast %59 : vector<1x128xi1> to vector<16x128xi1>
    %61 = vector.broadcast %cst_31 : f32 to vector<16x128xf32>
    %62 = arith.select %60, %58, %61 : vector<16x128xi1>, vector<16x128xf32>
    %c96 = arith.constant 96 : index
    %c0_32 = arith.constant 0 : index
    %63 = vector.load %arg11[%c96, %c0_32] : memref<144x128xf32, #tpu.memory_space<vmem>>, vector<16x128xf32>
    tpu.vector_store %arg11[%c96, %c0_32], %62 {strides = array<i32>} : memref<144x128xf32, #tpu.memory_space<vmem>>, vector<16x128xf32>,
    %c0_33 = arith.constant 0 : index
    %c136 = arith.constant 136 : index
    %64 = vector.load %arg10[%c0_33, %c136] : memref<16x384xf32, #tpu.memory_space<vmem>>, vector<16x128xf32>
    %cst_34 = arith.constant 0.000000e+00 : f32
    %65 = vector.shape_cast %10 : vector<1x128xi1> to vector<1x128xi1>
    %66 = vector.broadcast %65 : vector<1x128xi1> to vector<16x128xi1>
    %67 = vector.broadcast %cst_34 : f32 to vector<16x128xf32>
    %68 = arith.select %66, %64, %67 : vector<16x128xi1>, vector<16x128xf32>
    %c112 = arith.constant 112 : index
    %c0_35 = arith.constant 0 : index
    %69 = vector.load %arg11[%c112, %c0_35] : memref<144x128xf32, #tpu.memory_space<vmem>>, vector<16x128xf32>
    tpu.vector_store %arg11[%c112, %c0_35], %68 {strides = array<i32>} : memref<144x128xf32, #tpu.memory_space<vmem>>, vector<16x128xf32>,
    %c0_36 = arith.constant 0 : index
    %c137 = arith.constant 137 : index
    %70 = vector.load %arg10[%c0_36, %c137] : memref<16x384xf32, #tpu.memory_space<vmem>>, vector<16x128xf32>
    %cst_37 = arith.constant 0.000000e+00 : f32
    %71 = vector.shape_cast %18 : vector<1x128xi1> to vector<1x128xi1>
    %72 = vector.broadcast %71 : vector<1x128xi1> to vector<16x128xi1>
    %73 = vector.broadcast %cst_37 : f32 to vector<16x128xf32>
    %74 = arith.select %72, %70, %73 : vector<16x128xi1>, vector<16x128xf32>
    %c128_38 = arith.constant 128 : index
    %c0_39 = arith.constant 0 : index
    %75 = vector.load %arg11[%c128_38, %c0_39] : memref<144x128xf32, #tpu.memory_space<vmem>>, vector<16x128xf32>
    tpu.vector_store %arg11[%c128_38, %c0_39], %74 {strides = array<i32>} : memref<144x128xf32, #tpu.memory_space<vmem>>, vector<16x128xf32>,
    %c0_40 = arith.constant 0 : index
    %c0_41 = arith.constant 0 : index
    %c0_42 = arith.constant 0 : index
    %76 = vector.load %arg1[%c0_40, %c0_41, %c0_42] : memref<1x16x144xf32, #tpu.memory_space<vmem>>, vector<1x16x144xf32>
    %77 = vector.shape_cast %76 : vector<1x16x144xf32> to vector<16x144xf32>
    %c0_43 = arith.constant 0 : index
    %c0_44 = arith.constant 0 : index
    %78 = vector.load %arg11[%c0_43, %c0_44] : memref<144x128xf32, #tpu.memory_space<vmem>>, vector<144x128xf32>
    %79 = arith.truncf %77 : vector<16x144xf32> to vector<16x144xbf16>
    %80 = arith.truncf %78 : vector<144x128xf32> to vector<144x128xbf16>
    %cst_45 = arith.constant dense<0.000000e+00> : vector<16x128xf32>
    %81 = tpu.matmul %79, %80, %cst_45 {dimension_numbers = #tpu.dot_dimension_numbers<[1], [0], [0], [1], [0, 0, 1, 1], [], []>} : vector<16x144xbf16>, vector<144x128xbf16>, vector<16x128xf32> -> vector<16x128xf32>
    %c0_46 = arith.constant 0 : index
    %c0_47 = arith.constant 0 : index
    %c0_48 = arith.constant 0 : index
    %82 = vector.load %arg2[%c0_46, %c0_47, %c0_48] : memref<1x16x1xf32, #tpu.memory_space<vmem>>, vector<1x16x1xf32>
    %83 = vector.shape_cast %82 : vector<1x16x1xf32> to vector<16x1xf32>
    %84 = vector.broadcast %83 : vector<16x1xf32> to vector<16x128xf32>
    %85 = arith.addf %81, %84 : vector<16x128xf32>
    %c0_49 = arith.constant 0 : index
    %c0_50 = arith.constant 0 : index
    %c0_51 = arith.constant 0 : index
    %86 = vector.load %arg3[%c0_49, %c0_50, %c0_51] : memref<1x16x1xf32, #tpu.memory_space<vmem>>, vector<1x16x1xf32>
    %87 = vector.shape_cast %86 : vector<1x16x1xf32> to vector<16x1xf32>
    %c0_52 = arith.constant 0 : index
    %c0_53 = arith.constant 0 : index
    %c0_54 = arith.constant 0 : index
    %88 = vector.load %arg4[%c0_52, %c0_53, %c0_54] : memref<1x16x1xf32, #tpu.memory_space<vmem>>, vector<1x16x1xf32>
    %89 = vector.shape_cast %88 : vector<1x16x1xf32> to vector<16x1xf32>
    %cst_55 = arith.constant dense<0.000000e+00> : vector<16xf32>
    %90 = vector.multi_reduction <add>, %85, %cst_55 [1] : vector<16x128xf32> to vector<16xf32>
    %91 = vector.shape_cast %90 : vector<16xf32> to vector<16x1xf32>
    %cst_56 = arith.constant 1.280000e+02 : f32
    %92 = vector.broadcast %cst_56 : f32 to vector<16x1xf32>
    %93 = arith.divf %91, %92 : vector<16x1xf32>
    %94 = vector.broadcast %93 : vector<16x1xf32> to vector<16x128xf32>
    %95 = arith.subf %85, %94 : vector<16x128xf32>
    %96 = arith.mulf %95, %95 : vector<16x128xf32>
    %cst_57 = arith.constant dense<0.000000e+00> : vector<16xf32>
    %97 = vector.multi_reduction <add>, %96, %cst_57 [1] : vector<16x128xf32> to vector<16xf32>
    %98 = vector.shape_cast %97 : vector<16xf32> to vector<16x1xf32>
    %cst_58 = arith.constant 1.280000e+02 : f32
    %99 = vector.broadcast %cst_58 : f32 to vector<16x1xf32>
    %100 = arith.divf %98, %99 : vector<16x1xf32>
    %cst_59 = arith.constant 9.99999974E-6 : f32
    %101 = vector.broadcast %cst_59 : f32 to vector<16x1xf32>
    %102 = arith.addf %100, %101 : vector<16x1xf32>
    %103 = math.rsqrt %102 : vector<16x1xf32>
    %104 = arith.mulf %87, %103 : vector<16x1xf32>
    %105 = vector.broadcast %93 : vector<16x1xf32> to vector<16x128xf32>
    %106 = arith.subf %85, %105 : vector<16x128xf32>
    %107 = vector.broadcast %104 : vector<16x1xf32> to vector<16x128xf32>
    %108 = arith.mulf %106, %107 : vector<16x128xf32>
    %109 = vector.broadcast %89 : vector<16x1xf32> to vector<16x128xf32>
    %110 = arith.addf %108, %109 : vector<16x128xf32>
    %cst_60 = arith.constant 0.000000e+00 : f32
    %111 = vector.broadcast %cst_60 : f32 to vector<16x128xf32>
    %112 = arith.cmpf oge, %110, %111 : vector<16x128xf32>
    %cst_61 = arith.constant 2.000000e-01 : f32
    %113 = vector.broadcast %cst_61 : f32 to vector<16x128xf32>
    %114 = arith.mulf %113, %110 : vector<16x128xf32>
    %115 = arith.select %112, %110, %114 : vector<16x128xi1>, vector<16x128xf32>
    %c0_62 = arith.constant 0 : index
    %c128_63 = arith.constant 128 : index
    %116 = vector.load %arg10[%c0_62, %c128_63] : memref<16x384xf32, #tpu.memory_space<vmem>>, vector<16x128xf32>
    tpu.vector_store %arg10[%c0_62, %c128_63], %115 {strides = array<i32>} : memref<16x384xf32, #tpu.memory_space<vmem>>, vector<16x128xf32>,
    %c0_64 = arith.constant 0 : index
    %c119_65 = arith.constant 119 : index
    %117 = vector.load %arg10[%c0_64, %c119_65] : memref<16x384xf32, #tpu.memory_space<vmem>>, vector<16x128xf32>
    %cst_66 = arith.constant 0.000000e+00 : f32
    %118 = vector.shape_cast %15 : vector<1x128xi1> to vector<1x128xi1>
    %119 = vector.broadcast %118 : vector<1x128xi1> to vector<16x128xi1>
    %120 = vector.broadcast %cst_66 : f32 to vector<16x128xf32>
    %121 = arith.select %119, %117, %120 : vector<16x128xi1>, vector<16x128xf32>
    %c0_67 = arith.constant 0 : index
    %c0_68 = arith.constant 0 : index
    %122 = vector.load %arg11[%c0_67, %c0_68] : memref<144x128xf32, #tpu.memory_space<vmem>>, vector<16x128xf32>
    tpu.vector_store %arg11[%c0_67, %c0_68], %121 {strides = array<i32>} : memref<144x128xf32, #tpu.memory_space<vmem>>, vector<16x128xf32>,
    %c0_69 = arith.constant 0 : index
    %c120_70 = arith.constant 120 : index
    %123 = vector.load %arg10[%c0_69, %c120_70] : memref<16x384xf32, #tpu.memory_space<vmem>>, vector<16x128xf32>
    %cst_71 = arith.constant 0.000000e+00 : f32
    %124 = vector.shape_cast %8 : vector<1x128xi1> to vector<1x128xi1>
    %125 = vector.broadcast %124 : vector<1x128xi1> to vector<16x128xi1>
    %126 = vector.broadcast %cst_71 : f32 to vector<16x128xf32>
    %127 = arith.select %125, %123, %126 : vector<16x128xi1>, vector<16x128xf32>
    %c16_72 = arith.constant 16 : index
    %c0_73 = arith.constant 0 : index
    %128 = vector.load %arg11[%c16_72, %c0_73] : memref<144x128xf32, #tpu.memory_space<vmem>>, vector<16x128xf32>
    tpu.vector_store %arg11[%c16_72, %c0_73], %127 {strides = array<i32>} : memref<144x128xf32, #tpu.memory_space<vmem>>, vector<16x128xf32>,
    %c0_74 = arith.constant 0 : index
    %c121_75 = arith.constant 121 : index
    %129 = vector.load %arg10[%c0_74, %c121_75] : memref<16x384xf32, #tpu.memory_space<vmem>>, vector<16x128xf32>
    %cst_76 = arith.constant 0.000000e+00 : f32
    %130 = vector.shape_cast %16 : vector<1x128xi1> to vector<1x128xi1>
    %131 = vector.broadcast %130 : vector<1x128xi1> to vector<16x128xi1>
    %132 = vector.broadcast %cst_76 : f32 to vector<16x128xf32>
    %133 = arith.select %131, %129, %132 : vector<16x128xi1>, vector<16x128xf32>
    %c32_77 = arith.constant 32 : index
    %c0_78 = arith.constant 0 : index
    %134 = vector.load %arg11[%c32_77, %c0_78] : memref<144x128xf32, #tpu.memory_space<vmem>>, vector<16x128xf32>
    tpu.vector_store %arg11[%c32_77, %c0_78], %133 {strides = array<i32>} : memref<144x128xf32, #tpu.memory_space<vmem>>, vector<16x128xf32>,
    %c0_79 = arith.constant 0 : index
    %c127_80 = arith.constant 127 : index
    %135 = vector.load %arg10[%c0_79, %c127_80] : memref<16x384xf32, #tpu.memory_space<vmem>>, vector<16x128xf32>
    %cst_81 = arith.constant 0.000000e+00 : f32
    %136 = vector.shape_cast %12 : vector<1x128xi1> to vector<1x128xi1>
    %137 = vector.broadcast %136 : vector<1x128xi1> to vector<16x128xi1>
    %138 = vector.broadcast %cst_81 : f32 to vector<16x128xf32>
    %139 = arith.select %137, %135, %138 : vector<16x128xi1>, vector<16x128xf32>
    %c48_82 = arith.constant 48 : index
    %c0_83 = arith.constant 0 : index
    %140 = vector.load %arg11[%c48_82, %c0_83] : memref<144x128xf32, #tpu.memory_space<vmem>>, vector<16x128xf32>
    tpu.vector_store %arg11[%c48_82, %c0_83], %139 {strides = array<i32>} : memref<144x128xf32, #tpu.memory_space<vmem>>, vector<16x128xf32>,
    %c0_84 = arith.constant 0 : index
    %c128_85 = arith.constant 128 : index
    %141 = vector.load %arg10[%c0_84, %c128_85] : memref<16x384xf32, #tpu.memory_space<vmem>>, vector<16x128xf32>
    %c64_86 = arith.constant 64 : index
    %c0_87 = arith.constant 0 : index
    %142 = vector.load %arg11[%c64_86, %c0_87] : memref<144x128xf32, #tpu.memory_space<vmem>>, vector<16x128xf32>
    tpu.vector_store %arg11[%c64_86, %c0_87], %141 {strides = array<i32>} : memref<144x128xf32, #tpu.memory_space<vmem>>, vector<16x128xf32>,
    %c0_88 = arith.constant 0 : index
    %c129_89 = arith.constant 129 : index
    %143 = vector.load %arg10[%c0_88, %c129_89] : memref<16x384xf32, #tpu.memory_space<vmem>>, vector<16x128xf32>
    %cst_90 = arith.constant 0.000000e+00 : f32
    %144 = vector.shape_cast %14 : vector<1x128xi1> to vector<1x128xi1>
    %145 = vector.broadcast %144 : vector<1x128xi1> to vector<16x128xi1>
    %146 = vector.broadcast %cst_90 : f32 to vector<16x128xf32>
    %147 = arith.select %145, %143, %146 : vector<16x128xi1>, vector<16x128xf32>
    %c80_91 = arith.constant 80 : index
    %c0_92 = arith.constant 0 : index
    %148 = vector.load %arg11[%c80_91, %c0_92] : memref<144x128xf32, #tpu.memory_space<vmem>>, vector<16x128xf32>
    tpu.vector_store %arg11[%c80_91, %c0_92], %147 {strides = array<i32>} : memref<144x128xf32, #tpu.memory_space<vmem>>, vector<16x128xf32>,
    %c0_93 = arith.constant 0 : index
    %c135_94 = arith.constant 135 : index
    %149 = vector.load %arg10[%c0_93, %c135_94] : memref<16x384xf32, #tpu.memory_space<vmem>>, vector<16x128xf32>
    %cst_95 = arith.constant 0.000000e+00 : f32
    %150 = vector.shape_cast %17 : vector<1x128xi1> to vector<1x128xi1>
    %151 = vector.broadcast %150 : vector<1x128xi1> to vector<16x128xi1>
    %152 = vector.broadcast %cst_95 : f32 to vector<16x128xf32>
    %153 = arith.select %151, %149, %152 : vector<16x128xi1>, vector<16x128xf32>
    %c96_96 = arith.constant 96 : index
    %c0_97 = arith.constant 0 : index
    %154 = vector.load %arg11[%c96_96, %c0_97] : memref<144x128xf32, #tpu.memory_space<vmem>>, vector<16x128xf32>
    tpu.vector_store %arg11[%c96_96, %c0_97], %153 {strides = array<i32>} : memref<144x128xf32, #tpu.memory_space<vmem>>, vector<16x128xf32>,
    %c0_98 = arith.constant 0 : index
    %c136_99 = arith.constant 136 : index
    %155 = vector.load %arg10[%c0_98, %c136_99] : memref<16x384xf32, #tpu.memory_space<vmem>>, vector<16x128xf32>
    %cst_100 = arith.constant 0.000000e+00 : f32
    %156 = vector.shape_cast %10 : vector<1x128xi1> to vector<1x128xi1>
    %157 = vector.broadcast %156 : vector<1x128xi1> to vector<16x128xi1>
    %158 = vector.broadcast %cst_100 : f32 to vector<16x128xf32>
    %159 = arith.select %157, %155, %158 : vector<16x128xi1>, vector<16x128xf32>
    %c112_101 = arith.constant 112 : index
    %c0_102 = arith.constant 0 : index
    %160 = vector.load %arg11[%c112_101, %c0_102] : memref<144x128xf32, #tpu.memory_space<vmem>>, vector<16x128xf32>
    tpu.vector_store %arg11[%c112_101, %c0_102], %159 {strides = array<i32>} : memref<144x128xf32, #tpu.memory_space<vmem>>, vector<16x128xf32>,
    %c0_103 = arith.constant 0 : index
    %c137_104 = arith.constant 137 : index
    %161 = vector.load %arg10[%c0_103, %c137_104] : memref<16x384xf32, #tpu.memory_space<vmem>>, vector<16x128xf32>
    %cst_105 = arith.constant 0.000000e+00 : f32
    %162 = vector.shape_cast %18 : vector<1x128xi1> to vector<1x128xi1>
    %163 = vector.broadcast %162 : vector<1x128xi1> to vector<16x128xi1>
    %164 = vector.broadcast %cst_105 : f32 to vector<16x128xf32>
    %165 = arith.select %163, %161, %164 : vector<16x128xi1>, vector<16x128xf32>
    %c128_106 = arith.constant 128 : index
    %c0_107 = arith.constant 0 : index
    %166 = vector.load %arg11[%c128_106, %c0_107] : memref<144x128xf32, #tpu.memory_space<vmem>>, vector<16x128xf32>
    tpu.vector_store %arg11[%c128_106, %c0_107], %165 {strides = array<i32>} : memref<144x128xf32, #tpu.memory_space<vmem>>, vector<16x128xf32>,
    %c0_108 = arith.constant 0 : index
    %c0_109 = arith.constant 0 : index
    %c0_110 = arith.constant 0 : index
    %167 = vector.load %arg5[%c0_108, %c0_109, %c0_110] : memref<1x16x144xf32, #tpu.memory_space<vmem>>, vector<1x16x144xf32>
    %168 = vector.shape_cast %167 : vector<1x16x144xf32> to vector<16x144xf32>
    %c0_111 = arith.constant 0 : index
    %c0_112 = arith.constant 0 : index
    %169 = vector.load %arg11[%c0_111, %c0_112] : memref<144x128xf32, #tpu.memory_space<vmem>>, vector<144x128xf32>
    %170 = arith.truncf %168 : vector<16x144xf32> to vector<16x144xbf16>
    %171 = arith.truncf %169 : vector<144x128xf32> to vector<144x128xbf16>
    %cst_113 = arith.constant dense<0.000000e+00> : vector<16x128xf32>
    %172 = tpu.matmul %170, %171, %cst_113 {dimension_numbers = #tpu.dot_dimension_numbers<[1], [0], [0], [1], [0, 0, 1, 1], [], []>} : vector<16x144xbf16>, vector<144x128xbf16>, vector<16x128xf32> -> vector<16x128xf32>
    %c0_114 = arith.constant 0 : index
    %c0_115 = arith.constant 0 : index
    %c0_116 = arith.constant 0 : index
    %173 = vector.load %arg6[%c0_114, %c0_115, %c0_116] : memref<1x16x1xf32, #tpu.memory_space<vmem>>, vector<1x16x1xf32>
    %174 = vector.shape_cast %173 : vector<1x16x1xf32> to vector<16x1xf32>
    %175 = vector.broadcast %174 : vector<16x1xf32> to vector<16x128xf32>
    %176 = arith.addf %172, %175 : vector<16x128xf32>
    %c0_117 = arith.constant 0 : index
    %c0_118 = arith.constant 0 : index
    %c0_119 = arith.constant 0 : index
    %177 = vector.load %arg7[%c0_117, %c0_118, %c0_119] : memref<1x16x1xf32, #tpu.memory_space<vmem>>, vector<1x16x1xf32>
    %178 = vector.shape_cast %177 : vector<1x16x1xf32> to vector<16x1xf32>
    %c0_120 = arith.constant 0 : index
    %c0_121 = arith.constant 0 : index
    %c0_122 = arith.constant 0 : index
    %179 = vector.load %arg8[%c0_120, %c0_121, %c0_122] : memref<1x16x1xf32, #tpu.memory_space<vmem>>, vector<1x16x1xf32>
    %180 = vector.shape_cast %179 : vector<1x16x1xf32> to vector<16x1xf32>
    %cst_123 = arith.constant dense<0.000000e+00> : vector<16xf32>
    %181 = vector.multi_reduction <add>, %176, %cst_123 [1] : vector<16x128xf32> to vector<16xf32>
    %182 = vector.shape_cast %181 : vector<16xf32> to vector<16x1xf32>
    %cst_124 = arith.constant 1.280000e+02 : f32
    %183 = vector.broadcast %cst_124 : f32 to vector<16x1xf32>
    %184 = arith.divf %182, %183 : vector<16x1xf32>
    %185 = vector.broadcast %184 : vector<16x1xf32> to vector<16x128xf32>
    %186 = arith.subf %176, %185 : vector<16x128xf32>
    %187 = arith.mulf %186, %186 : vector<16x128xf32>
    %cst_125 = arith.constant dense<0.000000e+00> : vector<16xf32>
    %188 = vector.multi_reduction <add>, %187, %cst_125 [1] : vector<16x128xf32> to vector<16xf32>
    %189 = vector.shape_cast %188 : vector<16xf32> to vector<16x1xf32>
    %cst_126 = arith.constant 1.280000e+02 : f32
    %190 = vector.broadcast %cst_126 : f32 to vector<16x1xf32>
    %191 = arith.divf %189, %190 : vector<16x1xf32>
    %cst_127 = arith.constant 9.99999974E-6 : f32
    %192 = vector.broadcast %cst_127 : f32 to vector<16x1xf32>
    %193 = arith.addf %191, %192 : vector<16x1xf32>
    %194 = math.rsqrt %193 : vector<16x1xf32>
    %195 = arith.mulf %178, %194 : vector<16x1xf32>
    %196 = vector.broadcast %184 : vector<16x1xf32> to vector<16x128xf32>
    %197 = arith.subf %176, %196 : vector<16x128xf32>
    %198 = vector.broadcast %195 : vector<16x1xf32> to vector<16x128xf32>
    %199 = arith.mulf %197, %198 : vector<16x128xf32>
    %200 = vector.broadcast %180 : vector<16x1xf32> to vector<16x128xf32>
    %201 = arith.addf %199, %200 : vector<16x128xf32>
    %cst_128 = arith.constant 0.000000e+00 : f32
    %202 = vector.broadcast %cst_128 : f32 to vector<16x128xf32>
    %203 = arith.cmpf oge, %201, %202 : vector<16x128xf32>
    %cst_129 = arith.constant 2.000000e-01 : f32
    %204 = vector.broadcast %cst_129 : f32 to vector<16x128xf32>
    %205 = arith.mulf %204, %201 : vector<16x128xf32>
    %206 = arith.select %203, %201, %205 : vector<16x128xi1>, vector<16x128xf32>
    %207 = arith.addf %25, %206 : vector<16x128xf32>
    %c0_130 = arith.constant 0 : index
    %c128_131 = arith.constant 128 : index
    %208 = vector.load %arg10[%c0_130, %c128_131] : memref<16x384xf32, #tpu.memory_space<vmem>>, vector<16x128xf32>
    tpu.vector_store %arg10[%c0_130, %c128_131], %207 {strides = array<i32>} : memref<16x384xf32, #tpu.memory_space<vmem>>, vector<16x128xf32>,
    %c0_132 = arith.constant 0 : index
    %c128_133 = arith.constant 128 : index
    %209 = vector.load %arg10[%c0_132, %c128_133] : memref<16x384xf32, #tpu.memory_space<vmem>>, vector<16x128xf32>
    %c0_134 = arith.constant 0 : index
    %c0_135 = arith.constant 0 : index
    %210 = vector.load %arg9[%c0_134, %c0_135] : memref<16x128xf32, #tpu.memory_space<vmem>>, vector<16x128xf32>
    tpu.vector_store %arg9[%c0_134, %c0_135], %209 {strides = array<i32>} : memref<16x128xf32, #tpu.memory_space<vmem>>, vector<16x128xf32>,
    return
  }
}

module attributes {stable_mosaic.version = 11 : i64} {
  func.func @_gemm_bn_lrelu_kernel(%arg0: memref<64x32xf32, #tpu.memory_space<vmem>>, %arg1: memref<32x64xf32, #tpu.memory_space<vmem>>, %arg2: memref<32x1xf32, #tpu.memory_space<vmem>>, %arg3: memref<32x1xf32, #tpu.memory_space<vmem>>, %arg4: memref<32x1xf32, #tpu.memory_space<vmem>>, %arg5: memref<32x32xf32, #tpu.memory_space<vmem>>) attributes {dimension_semantics = [], scalar_prefetch = 0 : i64, scratch_operands = 0 : i64, tpu.core_type = #tpu.core_type<tc>} {
    %c0 = arith.constant 0 : index
    %c0_0 = arith.constant 0 : index
    %0 = vector.load %arg1[%c0, %c0_0] : memref<32x64xf32, #tpu.memory_space<vmem>>, vector<32x64xf32>
    %c0_1 = arith.constant 0 : index
    %c0_2 = arith.constant 0 : index
    %1 = vector.load %arg0[%c0_1, %c0_2] : memref<64x32xf32, #tpu.memory_space<vmem>>, vector<64x32xf32>
    %2 = arith.truncf %0 : vector<32x64xf32> to vector<32x64xbf16>
    %3 = arith.truncf %1 : vector<64x32xf32> to vector<64x32xbf16>
    %cst = arith.constant dense<0.000000e+00> : vector<32x32xf32>
    %4 = tpu.matmul %2, %3, %cst {dimension_numbers = #tpu.dot_dimension_numbers<[1], [0], [0], [1], [0, 0, 1, 1], [], []>} : vector<32x64xbf16>, vector<64x32xbf16>, vector<32x32xf32> -> vector<32x32xf32>
    %c0_3 = arith.constant 0 : index
    %c0_4 = arith.constant 0 : index
    %5 = vector.load %arg2[%c0_3, %c0_4] : memref<32x1xf32, #tpu.memory_space<vmem>>, vector<32x1xf32>
    %6 = vector.broadcast %5 : vector<32x1xf32> to vector<32x32xf32>
    %7 = arith.addf %4, %6 : vector<32x32xf32>
    %c0_5 = arith.constant 0 : index
    %c0_6 = arith.constant 0 : index
    %8 = vector.load %arg3[%c0_5, %c0_6] : memref<32x1xf32, #tpu.memory_space<vmem>>, vector<32x1xf32>
    %c0_7 = arith.constant 0 : index
    %c0_8 = arith.constant 0 : index
    %9 = vector.load %arg4[%c0_7, %c0_8] : memref<32x1xf32, #tpu.memory_space<vmem>>, vector<32x1xf32>
    %cst_9 = arith.constant dense<0.000000e+00> : vector<32xf32>
    %10 = vector.multi_reduction <add>, %7, %cst_9 [1] : vector<32x32xf32> to vector<32xf32>
    %11 = vector.shape_cast %10 : vector<32xf32> to vector<32x1xf32>
    %cst_10 = arith.constant 3.200000e+01 : f32
    %12 = vector.broadcast %cst_10 : f32 to vector<32x1xf32>
    %13 = arith.divf %11, %12 : vector<32x1xf32>
    %14 = vector.broadcast %13 : vector<32x1xf32> to vector<32x32xf32>
    %15 = arith.subf %7, %14 : vector<32x32xf32>
    %16 = arith.mulf %15, %15 : vector<32x32xf32>
    %cst_11 = arith.constant dense<0.000000e+00> : vector<32xf32>
    %17 = vector.multi_reduction <add>, %16, %cst_11 [1] : vector<32x32xf32> to vector<32xf32>
    %18 = vector.shape_cast %17 : vector<32xf32> to vector<32x1xf32>
    %cst_12 = arith.constant 3.200000e+01 : f32
    %19 = vector.broadcast %cst_12 : f32 to vector<32x1xf32>
    %20 = arith.divf %18, %19 : vector<32x1xf32>
    %cst_13 = arith.constant 9.99999974E-6 : f32
    %21 = vector.broadcast %cst_13 : f32 to vector<32x1xf32>
    %22 = arith.addf %20, %21 : vector<32x1xf32>
    %23 = math.rsqrt %22 : vector<32x1xf32>
    %24 = arith.mulf %8, %23 : vector<32x1xf32>
    %25 = vector.broadcast %13 : vector<32x1xf32> to vector<32x32xf32>
    %26 = arith.subf %7, %25 : vector<32x32xf32>
    %27 = vector.broadcast %24 : vector<32x1xf32> to vector<32x32xf32>
    %28 = arith.mulf %26, %27 : vector<32x32xf32>
    %29 = vector.broadcast %9 : vector<32x1xf32> to vector<32x32xf32>
    %30 = arith.addf %28, %29 : vector<32x32xf32>
    %cst_14 = arith.constant 0.000000e+00 : f32
    %31 = vector.broadcast %cst_14 : f32 to vector<32x32xf32>
    %32 = arith.cmpf oge, %30, %31 : vector<32x32xf32>
    %cst_15 = arith.constant 2.000000e-01 : f32
    %33 = vector.broadcast %cst_15 : f32 to vector<32x32xf32>
    %34 = arith.mulf %33, %30 : vector<32x32xf32>
    %35 = arith.select %32, %30, %34 : vector<32x32xi1>, vector<32x32xf32>
    %c0_16 = arith.constant 0 : index
    %c0_17 = arith.constant 0 : index
    %36 = vector.load %arg5[%c0_16, %c0_17] : memref<32x32xf32, #tpu.memory_space<vmem>>, vector<32x32xf32>
    tpu.vector_store %arg5[%c0_16, %c0_17], %35 {strides = array<i32>} : memref<32x32xf32, #tpu.memory_space<vmem>>, vector<32x32xf32>,
    return
  }
}

module attributes {stable_mosaic.version = 11 : i64} {
  func.func @_enc_tail_kernel(%arg0: memref<32x32xf32, #tpu.memory_space<vmem>>, %arg1: memref<32x32xf32, #tpu.memory_space<vmem>>, %arg2: memref<32x32xf32, #tpu.memory_space<vmem>>, %arg3: memref<16x288xf32, #tpu.memory_space<vmem>>, %arg4: memref<16x1xf32, #tpu.memory_space<vmem>>, %arg5: memref<8x16xf32, #tpu.memory_space<vmem>>, %arg6: memref<8x1xf32, #tpu.memory_space<vmem>>, %arg7: memref<8x32xf32, #tpu.memory_space<vmem>>, %arg8: memref<32x288xf32, #tpu.memory_space<vmem>>, %arg9: memref<288x32xf32, #tpu.memory_space<vmem>>) attributes {dimension_semantics = [], scalar_prefetch = 0 : i64, scratch_operands = 2 : i64, tpu.core_type = #tpu.core_type<tc>} {
    %c0 = arith.constant 0 : index
    %c0_0 = arith.constant 0 : index
    %0 = vector.load %arg0[%c0, %c0_0] : memref<32x32xf32, #tpu.memory_space<vmem>>, vector<32x32xf32>
    %c0_1 = arith.constant 0 : index
    %c0_2 = arith.constant 0 : index
    %1 = vector.load %arg1[%c0_1, %c0_2] : memref<32x32xf32, #tpu.memory_space<vmem>>, vector<32x32xf32>
    %2 = arith.addf %0, %1 : vector<32x32xf32>
    %c0_3 = arith.constant 0 : index
    %c0_4 = arith.constant 0 : index
    %3 = vector.load %arg2[%c0_3, %c0_4] : memref<32x32xf32, #tpu.memory_space<vmem>>, vector<32x32xf32>
    %4 = arith.addf %2, %3 : vector<32x32xf32>
    %cst = arith.constant 0.000000e+00 : f32
    %5 = vector.broadcast %cst : f32 to vector<32x128xf32>
    %c0_5 = arith.constant 0 : index
    %c0_6 = arith.constant 0 : index
    %6 = vector.load %arg8[%c0_5, %c0_6] : memref<32x288xf32, #tpu.memory_space<vmem>>, vector<32x128xf32>
    tpu.vector_store %arg8[%c0_5, %c0_6], %5 {strides = array<i32>} : memref<32x288xf32, #tpu.memory_space<vmem>>, vector<32x128xf32>,
    %cst_7 = arith.constant 0.000000e+00 : f32
    %7 = vector.broadcast %cst_7 : f32 to vector<32x128xf32>
    %c0_8 = arith.constant 0 : index
    %c160 = arith.constant 160 : index
    %8 = vector.load %arg8[%c0_8, %c160] : memref<32x288xf32, #tpu.memory_space<vmem>>, vector<32x128xf32>
    tpu.vector_store %arg8[%c0_8, %c160], %7 {strides = array<i32>} : memref<32x288xf32, #tpu.memory_space<vmem>>, vector<32x128xf32>,
    %c0_9 = arith.constant 0 : index
    %c128 = arith.constant 128 : index
    %9 = vector.load %arg8[%c0_9, %c128] : memref<32x288xf32, #tpu.memory_space<vmem>>, vector<32x32xf32>
    tpu.vector_store %arg8[%c0_9, %c128], %4 {strides = array<i32>} : memref<32x288xf32, #tpu.memory_space<vmem>>, vector<32x32xf32>,
    %10 = tpu.iota {dimensions = array<i32: 1>} : vector<1x32xi32>
    %c3_i32 = arith.constant 3 : i32
    %11 = vector.broadcast %c3_i32 : i32 to vector<1x32xi32>
    %12 = arith.andi %10, %11 : vector<1x32xi32>
    %c2_i32 = arith.constant 2 : i32
    %13 = vector.broadcast %c2_i32 : i32 to vector<1x32xi32>
    %14 = arith.shrsi %10, %13 : vector<1x32xi32>
    %c3_i32_10 = arith.constant 3 : i32
    %15 = vector.broadcast %c3_i32_10 : i32 to vector<1x32xi32>
    %16 = arith.andi %14, %15 : vector<1x32xi32>
    %c1_i32 = arith.constant 1 : i32
    %17 = vector.broadcast %c1_i32 : i32 to vector<1x32xi32>
    %18 = arith.cmpi sge, %16, %17 : vector<1x32xi32>
    %c2_i32_11 = arith.constant 2 : i32
    %19 = vector.broadcast %c2_i32_11 : i32 to vector<1x32xi32>
    %20 = arith.cmpi sle, %16, %19 : vector<1x32xi32>
    %c1_i32_12 = arith.constant 1 : i32
    %21 = vector.broadcast %c1_i32_12 : i32 to vector<1x32xi32>
    %22 = arith.cmpi sge, %12, %21 : vector<1x32xi32>
    %c2_i32_13 = arith.constant 2 : i32
    %23 = vector.broadcast %c2_i32_13 : i32 to vector<1x32xi32>
    %24 = arith.cmpi sle, %12, %23 : vector<1x32xi32>
    %25 = arith.andi %18, %22 : vector<1x32xi1>
    %26 = arith.andi %18, %24 : vector<1x32xi1>
    %27 = arith.andi %20, %22 : vector<1x32xi1>
    %28 = arith.andi %20, %24 : vector<1x32xi1>
    %c0_14 = arith.constant 0 : index
    %c123 = arith.constant 123 : index
    %29 = vector.load %arg8[%c0_14, %c123] : memref<32x288xf32, #tpu.memory_space<vmem>>, vector<32x32xf32>
    %cst_15 = arith.constant 0.000000e+00 : f32
    %30 = vector.shape_cast %25 : vector<1x32xi1> to vector<1x32xi1>
    %31 = vector.broadcast %30 : vector<1x32xi1> to vector<32x32xi1>
    %32 = vector.broadcast %cst_15 : f32 to vector<32x32xf32>
    %33 = arith.select %31, %29, %32 : vector<32x32xi1>, vector<32x32xf32>
    %c0_16 = arith.constant 0 : index
    %c0_17 = arith.constant 0 : index
    %34 = vector.load %arg9[%c0_16, %c0_17] : memref<288x32xf32, #tpu.memory_space<vmem>>, vector<32x32xf32>
    tpu.vector_store %arg9[%c0_16, %c0_17], %33 {strides = array<i32>} : memref<288x32xf32, #tpu.memory_space<vmem>>, vector<32x32xf32>,
    %c0_18 = arith.constant 0 : index
    %c124 = arith.constant 124 : index
    %35 = vector.load %arg8[%c0_18, %c124] : memref<32x288xf32, #tpu.memory_space<vmem>>, vector<32x32xf32>
    %cst_19 = arith.constant 0.000000e+00 : f32
    %36 = vector.shape_cast %18 : vector<1x32xi1> to vector<1x32xi1>
    %37 = vector.broadcast %36 : vector<1x32xi1> to vector<32x32xi1>
    %38 = vector.broadcast %cst_19 : f32 to vector<32x32xf32>
    %39 = arith.select %37, %35, %38 : vector<32x32xi1>, vector<32x32xf32>
    %c32 = arith.constant 32 : index
    %c0_20 = arith.constant 0 : index
    %40 = vector.load %arg9[%c32, %c0_20] : memref<288x32xf32, #tpu.memory_space<vmem>>, vector<32x32xf32>
    tpu.vector_store %arg9[%c32, %c0_20], %39 {strides = array<i32>} : memref<288x32xf32, #tpu.memory_space<vmem>>, vector<32x32xf32>,
    %c0_21 = arith.constant 0 : index
    %c125 = arith.constant 125 : index
    %41 = vector.load %arg8[%c0_21, %c125] : memref<32x288xf32, #tpu.memory_space<vmem>>, vector<32x32xf32>
    %cst_22 = arith.constant 0.000000e+00 : f32
    %42 = vector.shape_cast %26 : vector<1x32xi1> to vector<1x32xi1>
    %43 = vector.broadcast %42 : vector<1x32xi1> to vector<32x32xi1>
    %44 = vector.broadcast %cst_22 : f32 to vector<32x32xf32>
    %45 = arith.select %43, %41, %44 : vector<32x32xi1>, vector<32x32xf32>
    %c64 = arith.constant 64 : index
    %c0_23 = arith.constant 0 : index
    %46 = vector.load %arg9[%c64, %c0_23] : memref<288x32xf32, #tpu.memory_space<vmem>>, vector<32x32xf32>
    tpu.vector_store %arg9[%c64, %c0_23], %45 {strides = array<i32>} : memref<288x32xf32, #tpu.memory_space<vmem>>, vector<32x32xf32>,
    %c0_24 = arith.constant 0 : index
    %c127 = arith.constant 127 : index
    %47 = vector.load %arg8[%c0_24, %c127] : memref<32x288xf32, #tpu.memory_space<vmem>>, vector<32x32xf32>
    %cst_25 = arith.constant 0.000000e+00 : f32
    %48 = vector.shape_cast %22 : vector<1x32xi1> to vector<1x32xi1>
    %49 = vector.broadcast %48 : vector<1x32xi1> to vector<32x32xi1>
    %50 = vector.broadcast %cst_25 : f32 to vector<32x32xf32>
    %51 = arith.select %49, %47, %50 : vector<32x32xi1>, vector<32x32xf32>
    %c96 = arith.constant 96 : index
    %c0_26 = arith.constant 0 : index
    %52 = vector.load %arg9[%c96, %c0_26] : memref<288x32xf32, #tpu.memory_space<vmem>>, vector<32x32xf32>
    tpu.vector_store %arg9[%c96, %c0_26], %51 {strides = array<i32>} : memref<288x32xf32, #tpu.memory_space<vmem>>, vector<32x32xf32>,
    %c0_27 = arith.constant 0 : index
    %c128_28 = arith.constant 128 : index
    %53 = vector.load %arg8[%c0_27, %c128_28] : memref<32x288xf32, #tpu.memory_space<vmem>>, vector<32x32xf32>
    %c128_29 = arith.constant 128 : index
    %c0_30 = arith.constant 0 : index
    %54 = vector.load %arg9[%c128_29, %c0_30] : memref<288x32xf32, #tpu.memory_space<vmem>>, vector<32x32xf32>
    tpu.vector_store %arg9[%c128_29, %c0_30], %53 {strides = array<i32>} : memref<288x32xf32, #tpu.memory_space<vmem>>, vector<32x32xf32>,
    %c0_31 = arith.constant 0 : index
    %c129 = arith.constant 129 : index
    %55 = vector.load %arg8[%c0_31, %c129] : memref<32x288xf32, #tpu.memory_space<vmem>>, vector<32x32xf32>
    %cst_32 = arith.constant 0.000000e+00 : f32
    %56 = vector.shape_cast %24 : vector<1x32xi1> to vector<1x32xi1>
    %57 = vector.broadcast %56 : vector<1x32xi1> to vector<32x32xi1>
    %58 = vector.broadcast %cst_32 : f32 to vector<32x32xf32>
    %59 = arith.select %57, %55, %58 : vector<32x32xi1>, vector<32x32xf32>
    %c160_33 = arith.constant 160 : index
    %c0_34 = arith.constant 0 : index
    %60 = vector.load %arg9[%c160_33, %c0_34] : memref<288x32xf32, #tpu.memory_space<vmem>>, vector<32x32xf32>
    tpu.vector_store %arg9[%c160_33, %c0_34], %59 {strides = array<i32>} : memref<288x32xf32, #tpu.memory_space<vmem>>, vector<32x32xf32>,
    %c0_35 = arith.constant 0 : index
    %c131 = arith.constant 131 : index
    %61 = vector.load %arg8[%c0_35, %c131] : memref<32x288xf32, #tpu.memory_space<vmem>>, vector<32x32xf32>
    %cst_36 = arith.constant 0.000000e+00 : f32
    %62 = vector.shape_cast %27 : vector<1x32xi1> to vector<1x32xi1>
    %63 = vector.broadcast %62 : vector<1x32xi1> to vector<32x32xi1>
    %64 = vector.broadcast %cst_36 : f32 to vector<32x32xf32>
    %65 = arith.select %63, %61, %64 : vector<32x32xi1>, vector<32x32xf32>
    %c192 = arith.constant 192 : index
    %c0_37 = arith.constant 0 : index
    %66 = vector.load %arg9[%c192, %c0_37] : memref<288x32xf32, #tpu.memory_space<vmem>>, vector<32x32xf32>
    tpu.vector_store %arg9[%c192, %c0_37], %65 {strides = array<i32>} : memref<288x32xf32, #tpu.memory_space<vmem>>, vector<32x32xf32>,
    %c0_38 = arith.constant 0 : index
    %c132 = arith.constant 132 : index
    %67 = vector.load %arg8[%c0_38, %c132] : memref<32x288xf32, #tpu.memory_space<vmem>>, vector<32x32xf32>
    %cst_39 = arith.constant 0.000000e+00 : f32
    %68 = vector.shape_cast %20 : vector<1x32xi1> to vector<1x32xi1>
    %69 = vector.broadcast %68 : vector<1x32xi1> to vector<32x32xi1>
    %70 = vector.broadcast %cst_39 : f32 to vector<32x32xf32>
    %71 = arith.select %69, %67, %70 : vector<32x32xi1>, vector<32x32xf32>
    %c224 = arith.constant 224 : index
    %c0_40 = arith.constant 0 : index
    %72 = vector.load %arg9[%c224, %c0_40] : memref<288x32xf32, #tpu.memory_space<vmem>>, vector<32x32xf32>
    tpu.vector_store %arg9[%c224, %c0_40], %71 {strides = array<i32>} : memref<288x32xf32, #tpu.memory_space<vmem>>, vector<32x32xf32>,
    %c0_41 = arith.constant 0 : index
    %c133 = arith.constant 133 : index
    %73 = vector.load %arg8[%c0_41, %c133] : memref<32x288xf32, #tpu.memory_space<vmem>>, vector<32x32xf32>
    %cst_42 = arith.constant 0.000000e+00 : f32
    %74 = vector.shape_cast %28 : vector<1x32xi1> to vector<1x32xi1>
    %75 = vector.broadcast %74 : vector<1x32xi1> to vector<32x32xi1>
    %76 = vector.broadcast %cst_42 : f32 to vector<32x32xf32>
    %77 = arith.select %75, %73, %76 : vector<32x32xi1>, vector<32x32xf32>
    %c256 = arith.constant 256 : index
    %c0_43 = arith.constant 0 : index
    %78 = vector.load %arg9[%c256, %c0_43] : memref<288x32xf32, #tpu.memory_space<vmem>>, vector<32x32xf32>
    tpu.vector_store %arg9[%c256, %c0_43], %77 {strides = array<i32>} : memref<288x32xf32, #tpu.memory_space<vmem>>, vector<32x32xf32>,
    %c0_44 = arith.constant 0 : index
    %c0_45 = arith.constant 0 : index
    %79 = vector.load %arg3[%c0_44, %c0_45] : memref<16x288xf32, #tpu.memory_space<vmem>>, vector<16x288xf32>
    %c0_46 = arith.constant 0 : index
    %c0_47 = arith.constant 0 : index
    %80 = vector.load %arg9[%c0_46, %c0_47] : memref<288x32xf32, #tpu.memory_space<vmem>>, vector<288x32xf32>
    %81 = arith.truncf %79 : vector<16x288xf32> to vector<16x288xbf16>
    %82 = arith.truncf %80 : vector<288x32xf32> to vector<288x32xbf16>
    %cst_48 = arith.constant dense<0.000000e+00> : vector<16x32xf32>
    %83 = tpu.matmul %81, %82, %cst_48 {dimension_numbers = #tpu.dot_dimension_numbers<[1], [0], [0], [1], [0, 0, 1, 1], [], []>} : vector<16x288xbf16>, vector<288x32xbf16>, vector<16x32xf32> -> vector<16x32xf32>
    %c0_49 = arith.constant 0 : index
    %c0_50 = arith.constant 0 : index
    %84 = vector.load %arg4[%c0_49, %c0_50] : memref<16x1xf32, #tpu.memory_space<vmem>>, vector<16x1xf32>
    %85 = vector.broadcast %84 : vector<16x1xf32> to vector<16x32xf32>
    %86 = arith.addf %83, %85 : vector<16x32xf32>
    %c0_51 = arith.constant 0 : index
    %c0_52 = arith.constant 0 : index
    %87 = vector.load %arg5[%c0_51, %c0_52] : memref<8x16xf32, #tpu.memory_space<vmem>>, vector<8x16xf32>
    %88 = arith.truncf %87 : vector<8x16xf32> to vector<8x16xbf16>
    %89 = arith.truncf %86 : vector<16x32xf32> to vector<16x32xbf16>
    %cst_53 = arith.constant dense<0.000000e+00> : vector<8x32xf32>
    %90 = tpu.matmul %88, %89, %cst_53 {dimension_numbers = #tpu.dot_dimension_numbers<[1], [0], [0], [1], [0, 0, 1, 1], [], []>} : vector<8x16xbf16>, vector<16x32xbf16>, vector<8x32xf32> -> vector<8x32xf32>
    %c0_54 = arith.constant 0 : index
    %c0_55 = arith.constant 0 : index
    %91 = vector.load %arg6[%c0_54, %c0_55] : memref<8x1xf32, #tpu.memory_space<vmem>>, vector<8x1xf32>
    %92 = vector.broadcast %91 : vector<8x1xf32> to vector<8x32xf32>
    %93 = arith.addf %90, %92 : vector<8x32xf32>
    %c0_56 = arith.constant 0 : index
    %c0_57 = arith.constant 0 : index
    %94 = vector.load %arg7[%c0_56, %c0_57] : memref<8x32xf32, #tpu.memory_space<vmem>>, vector<8x32xf32>
    tpu.vector_store %arg7[%c0_56, %c0_57], %93 {strides = array<i32>} : memref<8x32xf32, #tpu.memory_space<vmem>>, vector<8x32xf32>,
    return
  }
}

module attributes {stable_mosaic.version = 11 : i64} {
  func.func @_gemm_bn_lrelu_kernel(%arg0: memref<128x32xf32, #tpu.memory_space<vmem>>, %arg1: memref<32x128xf32, #tpu.memory_space<vmem>>, %arg2: memref<32x1xf32, #tpu.memory_space<vmem>>, %arg3: memref<32x1xf32, #tpu.memory_space<vmem>>, %arg4: memref<32x1xf32, #tpu.memory_space<vmem>>, %arg5: memref<32x32xf32, #tpu.memory_space<vmem>>) attributes {dimension_semantics = [], scalar_prefetch = 0 : i64, scratch_operands = 0 : i64, tpu.core_type = #tpu.core_type<tc>} {
    %c0 = arith.constant 0 : index
    %c0_0 = arith.constant 0 : index
    %0 = vector.load %arg1[%c0, %c0_0] : memref<32x128xf32, #tpu.memory_space<vmem>>, vector<32x128xf32>
    %c0_1 = arith.constant 0 : index
    %c0_2 = arith.constant 0 : index
    %1 = vector.load %arg0[%c0_1, %c0_2] : memref<128x32xf32, #tpu.memory_space<vmem>>, vector<128x32xf32>
    %2 = arith.truncf %0 : vector<32x128xf32> to vector<32x128xbf16>
    %3 = arith.truncf %1 : vector<128x32xf32> to vector<128x32xbf16>
    %cst = arith.constant dense<0.000000e+00> : vector<32x32xf32>
    %4 = tpu.matmul %2, %3, %cst {dimension_numbers = #tpu.dot_dimension_numbers<[1], [0], [0], [1], [0, 0, 1, 1], [], []>} : vector<32x128xbf16>, vector<128x32xbf16>, vector<32x32xf32> -> vector<32x32xf32>
    %c0_3 = arith.constant 0 : index
    %c0_4 = arith.constant 0 : index
    %5 = vector.load %arg2[%c0_3, %c0_4] : memref<32x1xf32, #tpu.memory_space<vmem>>, vector<32x1xf32>
    %6 = vector.broadcast %5 : vector<32x1xf32> to vector<32x32xf32>
    %7 = arith.addf %4, %6 : vector<32x32xf32>
    %c0_5 = arith.constant 0 : index
    %c0_6 = arith.constant 0 : index
    %8 = vector.load %arg3[%c0_5, %c0_6] : memref<32x1xf32, #tpu.memory_space<vmem>>, vector<32x1xf32>
    %c0_7 = arith.constant 0 : index
    %c0_8 = arith.constant 0 : index
    %9 = vector.load %arg4[%c0_7, %c0_8] : memref<32x1xf32, #tpu.memory_space<vmem>>, vector<32x1xf32>
    %cst_9 = arith.constant dense<0.000000e+00> : vector<32xf32>
    %10 = vector.multi_reduction <add>, %7, %cst_9 [1] : vector<32x32xf32> to vector<32xf32>
    %11 = vector.shape_cast %10 : vector<32xf32> to vector<32x1xf32>
    %cst_10 = arith.constant 3.200000e+01 : f32
    %12 = vector.broadcast %cst_10 : f32 to vector<32x1xf32>
    %13 = arith.divf %11, %12 : vector<32x1xf32>
    %14 = vector.broadcast %13 : vector<32x1xf32> to vector<32x32xf32>
    %15 = arith.subf %7, %14 : vector<32x32xf32>
    %16 = arith.mulf %15, %15 : vector<32x32xf32>
    %cst_11 = arith.constant dense<0.000000e+00> : vector<32xf32>
    %17 = vector.multi_reduction <add>, %16, %cst_11 [1] : vector<32x32xf32> to vector<32xf32>
    %18 = vector.shape_cast %17 : vector<32xf32> to vector<32x1xf32>
    %cst_12 = arith.constant 3.200000e+01 : f32
    %19 = vector.broadcast %cst_12 : f32 to vector<32x1xf32>
    %20 = arith.divf %18, %19 : vector<32x1xf32>
    %cst_13 = arith.constant 9.99999974E-6 : f32
    %21 = vector.broadcast %cst_13 : f32 to vector<32x1xf32>
    %22 = arith.addf %20, %21 : vector<32x1xf32>
    %23 = math.rsqrt %22 : vector<32x1xf32>
    %24 = arith.mulf %8, %23 : vector<32x1xf32>
    %25 = vector.broadcast %13 : vector<32x1xf32> to vector<32x32xf32>
    %26 = arith.subf %7, %25 : vector<32x32xf32>
    %27 = vector.broadcast %24 : vector<32x1xf32> to vector<32x32xf32>
    %28 = arith.mulf %26, %27 : vector<32x32xf32>
    %29 = vector.broadcast %9 : vector<32x1xf32> to vector<32x32xf32>
    %30 = arith.addf %28, %29 : vector<32x32xf32>
    %cst_14 = arith.constant 0.000000e+00 : f32
    %31 = vector.broadcast %cst_14 : f32 to vector<32x32xf32>
    %32 = arith.cmpf oge, %30, %31 : vector<32x32xf32>
    %cst_15 = arith.constant 2.000000e-01 : f32
    %33 = vector.broadcast %cst_15 : f32 to vector<32x32xf32>
    %34 = arith.mulf %33, %30 : vector<32x32xf32>
    %35 = arith.select %32, %30, %34 : vector<32x32xi1>, vector<32x32xf32>
    %c0_16 = arith.constant 0 : index
    %c0_17 = arith.constant 0 : index
    %36 = vector.load %arg5[%c0_16, %c0_17] : memref<32x32xf32, #tpu.memory_space<vmem>>, vector<32x32xf32>
    tpu.vector_store %arg5[%c0_16, %c0_17], %35 {strides = array<i32>} : memref<32x32xf32, #tpu.memory_space<vmem>>, vector<32x32xf32>,
    return
  }
}

module attributes {stable_mosaic.version = 11 : i64} {
  func.func @_conv3x3_bn_kernel(%arg0: memref<8x32xf32, #tpu.memory_space<vmem>>, %arg1: memref<32x72xf32, #tpu.memory_space<vmem>>, %arg2: memref<32x1xf32, #tpu.memory_space<vmem>>, %arg3: memref<32x1xf32, #tpu.memory_space<vmem>>, %arg4: memref<32x1xf32, #tpu.memory_space<vmem>>, %arg5: memref<32x32xf32, #tpu.memory_space<vmem>>, %arg6: memref<8x288xf32, #tpu.memory_space<vmem>>, %arg7: memref<72x32xf32, #tpu.memory_space<vmem>>) attributes {dimension_semantics = [], scalar_prefetch = 0 : i64, scratch_operands = 2 : i64, tpu.core_type = #tpu.core_type<tc>} {
    %c0 = arith.constant 0 : index
    %c0_0 = arith.constant 0 : index
    %0 = vector.load %arg0[%c0, %c0_0] : memref<8x32xf32, #tpu.memory_space<vmem>>, vector<8x32xf32>
    %cst = arith.constant 0.000000e+00 : f32
    %1 = vector.broadcast %cst : f32 to vector<8x128xf32>
    %c0_1 = arith.constant 0 : index
    %c0_2 = arith.constant 0 : index
    %2 = vector.load %arg6[%c0_1, %c0_2] : memref<8x288xf32, #tpu.memory_space<vmem>>, vector<8x128xf32>
    tpu.vector_store %arg6[%c0_1, %c0_2], %1 {strides = array<i32>} : memref<8x288xf32, #tpu.memory_space<vmem>>, vector<8x128xf32>,
    %cst_3 = arith.constant 0.000000e+00 : f32
    %3 = vector.broadcast %cst_3 : f32 to vector<8x128xf32>
    %c0_4 = arith.constant 0 : index
    %c160 = arith.constant 160 : index
    %4 = vector.load %arg6[%c0_4, %c160] : memref<8x288xf32, #tpu.memory_space<vmem>>, vector<8x128xf32>
    tpu.vector_store %arg6[%c0_4, %c160], %3 {strides = array<i32>} : memref<8x288xf32, #tpu.memory_space<vmem>>, vector<8x128xf32>,
    %c0_5 = arith.constant 0 : index
    %c128 = arith.constant 128 : index
    %5 = vector.load %arg6[%c0_5, %c128] : memref<8x288xf32, #tpu.memory_space<vmem>>, vector<8x32xf32>
    tpu.vector_store %arg6[%c0_5, %c128], %0 {strides = array<i32>} : memref<8x288xf32, #tpu.memory_space<vmem>>, vector<8x32xf32>,
    %6 = tpu.iota {dimensions = array<i32: 1>} : vector<1x32xi32>
    %c3_i32 = arith.constant 3 : i32
    %7 = vector.broadcast %c3_i32 : i32 to vector<1x32xi32>
    %8 = arith.andi %6, %7 : vector<1x32xi32>
    %c2_i32 = arith.constant 2 : i32
    %9 = vector.broadcast %c2_i32 : i32 to vector<1x32xi32>
    %10 = arith.shrsi %6, %9 : vector<1x32xi32>
    %c3_i32_6 = arith.constant 3 : i32
    %11 = vector.broadcast %c3_i32_6 : i32 to vector<1x32xi32>
    %12 = arith.andi %10, %11 : vector<1x32xi32>
    %c1_i32 = arith.constant 1 : i32
    %13 = vector.broadcast %c1_i32 : i32 to vector<1x32xi32>
    %14 = arith.cmpi sge, %12, %13 : vector<1x32xi32>
    %c2_i32_7 = arith.constant 2 : i32
    %15 = vector.broadcast %c2_i32_7 : i32 to vector<1x32xi32>
    %16 = arith.cmpi sle, %12, %15 : vector<1x32xi32>
    %c1_i32_8 = arith.constant 1 : i32
    %17 = vector.broadcast %c1_i32_8 : i32 to vector<1x32xi32>
    %18 = arith.cmpi sge, %8, %17 : vector<1x32xi32>
    %c2_i32_9 = arith.constant 2 : i32
    %19 = vector.broadcast %c2_i32_9 : i32 to vector<1x32xi32>
    %20 = arith.cmpi sle, %8, %19 : vector<1x32xi32>
    %21 = arith.andi %14, %18 : vector<1x32xi1>
    %22 = arith.andi %14, %20 : vector<1x32xi1>
    %23 = arith.andi %16, %18 : vector<1x32xi1>
    %24 = arith.andi %16, %20 : vector<1x32xi1>
    %c0_10 = arith.constant 0 : index
    %c123 = arith.constant 123 : index
    %25 = vector.load %arg6[%c0_10, %c123] : memref<8x288xf32, #tpu.memory_space<vmem>>, vector<8x32xf32>
    %cst_11 = arith.constant 0.000000e+00 : f32
    %26 = vector.shape_cast %21 : vector<1x32xi1> to vector<1x32xi1>
    %27 = vector.broadcast %26 : vector<1x32xi1> to vector<8x32xi1>
    %28 = vector.broadcast %cst_11 : f32 to vector<8x32xf32>
    %29 = arith.select %27, %25, %28 : vector<8x32xi1>, vector<8x32xf32>
    %c0_12 = arith.constant 0 : index
    %c0_13 = arith.constant 0 : index
    %30 = vector.load %arg7[%c0_12, %c0_13] : memref<72x32xf32, #tpu.memory_space<vmem>>, vector<8x32xf32>
    tpu.vector_store %arg7[%c0_12, %c0_13], %29 {strides = array<i32>} : memref<72x32xf32, #tpu.memory_space<vmem>>, vector<8x32xf32>,
    %c0_14 = arith.constant 0 : index
    %c124 = arith.constant 124 : index
    %31 = vector.load %arg6[%c0_14, %c124] : memref<8x288xf32, #tpu.memory_space<vmem>>, vector<8x32xf32>
    %cst_15 = arith.constant 0.000000e+00 : f32
    %32 = vector.shape_cast %14 : vector<1x32xi1> to vector<1x32xi1>
    %33 = vector.broadcast %32 : vector<1x32xi1> to vector<8x32xi1>
    %34 = vector.broadcast %cst_15 : f32 to vector<8x32xf32>
    %35 = arith.select %33, %31, %34 : vector<8x32xi1>, vector<8x32xf32>
    %c8 = arith.constant 8 : index
    %c0_16 = arith.constant 0 : index
    %36 = vector.load %arg7[%c8, %c0_16] : memref<72x32xf32, #tpu.memory_space<vmem>>, vector<8x32xf32>
    tpu.vector_store %arg7[%c8, %c0_16], %35 {strides = array<i32>} : memref<72x32xf32, #tpu.memory_space<vmem>>, vector<8x32xf32>,
    %c0_17 = arith.constant 0 : index
    %c125 = arith.constant 125 : index
    %37 = vector.load %arg6[%c0_17, %c125] : memref<8x288xf32, #tpu.memory_space<vmem>>, vector<8x32xf32>
    %cst_18 = arith.constant 0.000000e+00 : f32
    %38 = vector.shape_cast %22 : vector<1x32xi1> to vector<1x32xi1>
    %39 = vector.broadcast %38 : vector<1x32xi1> to vector<8x32xi1>
    %40 = vector.broadcast %cst_18 : f32 to vector<8x32xf32>
    %41 = arith.select %39, %37, %40 : vector<8x32xi1>, vector<8x32xf32>
    %c16 = arith.constant 16 : index
    %c0_19 = arith.constant 0 : index
    %42 = vector.load %arg7[%c16, %c0_19] : memref<72x32xf32, #tpu.memory_space<vmem>>, vector<8x32xf32>
    tpu.vector_store %arg7[%c16, %c0_19], %41 {strides = array<i32>} : memref<72x32xf32, #tpu.memory_space<vmem>>, vector<8x32xf32>,
    %c0_20 = arith.constant 0 : index
    %c127 = arith.constant 127 : index
    %43 = vector.load %arg6[%c0_20, %c127] : memref<8x288xf32, #tpu.memory_space<vmem>>, vector<8x32xf32>
    %cst_21 = arith.constant 0.000000e+00 : f32
    %44 = vector.shape_cast %18 : vector<1x32xi1> to vector<1x32xi1>
    %45 = vector.broadcast %44 : vector<1x32xi1> to vector<8x32xi1>
    %46 = vector.broadcast %cst_21 : f32 to vector<8x32xf32>
    %47 = arith.select %45, %43, %46 : vector<8x32xi1>, vector<8x32xf32>
    %c24 = arith.constant 24 : index
    %c0_22 = arith.constant 0 : index
    %48 = vector.load %arg7[%c24, %c0_22] : memref<72x32xf32, #tpu.memory_space<vmem>>, vector<8x32xf32>
    tpu.vector_store %arg7[%c24, %c0_22], %47 {strides = array<i32>} : memref<72x32xf32, #tpu.memory_space<vmem>>, vector<8x32xf32>,
    %c0_23 = arith.constant 0 : index
    %c128_24 = arith.constant 128 : index
    %49 = vector.load %arg6[%c0_23, %c128_24] : memref<8x288xf32, #tpu.memory_space<vmem>>, vector<8x32xf32>
    %c32 = arith.constant 32 : index
    %c0_25 = arith.constant 0 : index
    %50 = vector.load %arg7[%c32, %c0_25] : memref<72x32xf32, #tpu.memory_space<vmem>>, vector<8x32xf32>
    tpu.vector_store %arg7[%c32, %c0_25], %49 {strides = array<i32>} : memref<72x32xf32, #tpu.memory_space<vmem>>, vector<8x32xf32>,
    %c0_26 = arith.constant 0 : index
    %c129 = arith.constant 129 : index
    %51 = vector.load %arg6[%c0_26, %c129] : memref<8x288xf32, #tpu.memory_space<vmem>>, vector<8x32xf32>
    %cst_27 = arith.constant 0.000000e+00 : f32
    %52 = vector.shape_cast %20 : vector<1x32xi1> to vector<1x32xi1>
    %53 = vector.broadcast %52 : vector<1x32xi1> to vector<8x32xi1>
    %54 = vector.broadcast %cst_27 : f32 to vector<8x32xf32>
    %55 = arith.select %53, %51, %54 : vector<8x32xi1>, vector<8x32xf32>
    %c40 = arith.constant 40 : index
    %c0_28 = arith.constant 0 : index
    %56 = vector.load %arg7[%c40, %c0_28] : memref<72x32xf32, #tpu.memory_space<vmem>>, vector<8x32xf32>
    tpu.vector_store %arg7[%c40, %c0_28], %55 {strides = array<i32>} : memref<72x32xf32, #tpu.memory_space<vmem>>, vector<8x32xf32>,
    %c0_29 = arith.constant 0 : index
    %c131 = arith.constant 131 : index
    %57 = vector.load %arg6[%c0_29, %c131] : memref<8x288xf32, #tpu.memory_space<vmem>>, vector<8x32xf32>
    %cst_30 = arith.constant 0.000000e+00 : f32
    %58 = vector.shape_cast %23 : vector<1x32xi1> to vector<1x32xi1>
    %59 = vector.broadcast %58 : vector<1x32xi1> to vector<8x32xi1>
    %60 = vector.broadcast %cst_30 : f32 to vector<8x32xf32>
    %61 = arith.select %59, %57, %60 : vector<8x32xi1>, vector<8x32xf32>
    %c48 = arith.constant 48 : index
    %c0_31 = arith.constant 0 : index
    %62 = vector.load %arg7[%c48, %c0_31] : memref<72x32xf32, #tpu.memory_space<vmem>>, vector<8x32xf32>
    tpu.vector_store %arg7[%c48, %c0_31], %61 {strides = array<i32>} : memref<72x32xf32, #tpu.memory_space<vmem>>, vector<8x32xf32>,
    %c0_32 = arith.constant 0 : index
    %c132 = arith.constant 132 : index
    %63 = vector.load %arg6[%c0_32, %c132] : memref<8x288xf32, #tpu.memory_space<vmem>>, vector<8x32xf32>
    %cst_33 = arith.constant 0.000000e+00 : f32
    %64 = vector.shape_cast %16 : vector<1x32xi1> to vector<1x32xi1>
    %65 = vector.broadcast %64 : vector<1x32xi1> to vector<8x32xi1>
    %66 = vector.broadcast %cst_33 : f32 to vector<8x32xf32>
    %67 = arith.select %65, %63, %66 : vector<8x32xi1>, vector<8x32xf32>
    %c56 = arith.constant 56 : index
    %c0_34 = arith.constant 0 : index
    %68 = vector.load %arg7[%c56, %c0_34] : memref<72x32xf32, #tpu.memory_space<vmem>>, vector<8x32xf32>
    tpu.vector_store %arg7[%c56, %c0_34], %67 {strides = array<i32>} : memref<72x32xf32, #tpu.memory_space<vmem>>, vector<8x32xf32>,
    %c0_35 = arith.constant 0 : index
    %c133 = arith.constant 133 : index
    %69 = vector.load %arg6[%c0_35, %c133] : memref<8x288xf32, #tpu.memory_space<vmem>>, vector<8x32xf32>
    %cst_36 = arith.constant 0.000000e+00 : f32
    %70 = vector.shape_cast %24 : vector<1x32xi1> to vector<1x32xi1>
    %71 = vector.broadcast %70 : vector<1x32xi1> to vector<8x32xi1>
    %72 = vector.broadcast %cst_36 : f32 to vector<8x32xf32>
    %73 = arith.select %71, %69, %72 : vector<8x32xi1>, vector<8x32xf32>
    %c64 = arith.constant 64 : index
    %c0_37 = arith.constant 0 : index
    %74 = vector.load %arg7[%c64, %c0_37] : memref<72x32xf32, #tpu.memory_space<vmem>>, vector<8x32xf32>
    tpu.vector_store %arg7[%c64, %c0_37], %73 {strides = array<i32>} : memref<72x32xf32, #tpu.memory_space<vmem>>, vector<8x32xf32>,
    %c0_38 = arith.constant 0 : index
    %c0_39 = arith.constant 0 : index
    %75 = vector.load %arg1[%c0_38, %c0_39] : memref<32x72xf32, #tpu.memory_space<vmem>>, vector<32x72xf32>
    %c0_40 = arith.constant 0 : index
    %c0_41 = arith.constant 0 : index
    %76 = vector.load %arg7[%c0_40, %c0_41] : memref<72x32xf32, #tpu.memory_space<vmem>>, vector<72x32xf32>
    %77 = arith.truncf %75 : vector<32x72xf32> to vector<32x72xbf16>
    %78 = arith.truncf %76 : vector<72x32xf32> to vector<72x32xbf16>
    %cst_42 = arith.constant dense<0.000000e+00> : vector<32x32xf32>
    %79 = tpu.matmul %77, %78, %cst_42 {dimension_numbers = #tpu.dot_dimension_numbers<[1], [0], [0], [1], [0, 0, 1, 1], [], []>} : vector<32x72xbf16>, vector<72x32xbf16>, vector<32x32xf32> -> vector<32x32xf32>
    %c0_43 = arith.constant 0 : index
    %c0_44 = arith.constant 0 : index
    %80 = vector.load %arg2[%c0_43, %c0_44] : memref<32x1xf32, #tpu.memory_space<vmem>>, vector<32x1xf32>
    %81 = vector.broadcast %80 : vector<32x1xf32> to vector<32x32xf32>
    %82 = arith.addf %79, %81 : vector<32x32xf32>
    %c0_45 = arith.constant 0 : index
    %c0_46 = arith.constant 0 : index
    %83 = vector.load %arg3[%c0_45, %c0_46] : memref<32x1xf32, #tpu.memory_space<vmem>>, vector<32x1xf32>
    %c0_47 = arith.constant 0 : index
    %c0_48 = arith.constant 0 : index
    %84 = vector.load %arg4[%c0_47, %c0_48] : memref<32x1xf32, #tpu.memory_space<vmem>>, vector<32x1xf32>
    %cst_49 = arith.constant dense<0.000000e+00> : vector<32xf32>
    %85 = vector.multi_reduction <add>, %82, %cst_49 [1] : vector<32x32xf32> to vector<32xf32>
    %86 = vector.shape_cast %85 : vector<32xf32> to vector<32x1xf32>
    %cst_50 = arith.constant 3.200000e+01 : f32
    %87 = vector.broadcast %cst_50 : f32 to vector<32x1xf32>
    %88 = arith.divf %86, %87 : vector<32x1xf32>
    %89 = vector.broadcast %88 : vector<32x1xf32> to vector<32x32xf32>
    %90 = arith.subf %82, %89 : vector<32x32xf32>
    %91 = arith.mulf %90, %90 : vector<32x32xf32>
    %cst_51 = arith.constant dense<0.000000e+00> : vector<32xf32>
    %92 = vector.multi_reduction <add>, %91, %cst_51 [1] : vector<32x32xf32> to vector<32xf32>
    %93 = vector.shape_cast %92 : vector<32xf32> to vector<32x1xf32>
    %cst_52 = arith.constant 3.200000e+01 : f32
    %94 = vector.broadcast %cst_52 : f32 to vector<32x1xf32>
    %95 = arith.divf %93, %94 : vector<32x1xf32>
    %cst_53 = arith.constant 9.99999974E-6 : f32
    %96 = vector.broadcast %cst_53 : f32 to vector<32x1xf32>
    %97 = arith.addf %95, %96 : vector<32x1xf32>
    %98 = math.rsqrt %97 : vector<32x1xf32>
    %99 = arith.mulf %83, %98 : vector<32x1xf32>
    %100 = vector.broadcast %88 : vector<32x1xf32> to vector<32x32xf32>
    %101 = arith.subf %82, %100 : vector<32x32xf32>
    %102 = vector.broadcast %99 : vector<32x1xf32> to vector<32x32xf32>
    %103 = arith.mulf %101, %102 : vector<32x32xf32>
    %104 = vector.broadcast %84 : vector<32x1xf32> to vector<32x32xf32>
    %105 = arith.addf %103, %104 : vector<32x32xf32>
    %cst_54 = arith.constant 0.000000e+00 : f32
    %106 = vector.broadcast %cst_54 : f32 to vector<32x32xf32>
    %107 = arith.cmpf oge, %105, %106 : vector<32x32xf32>
    %cst_55 = arith.constant 2.000000e-01 : f32
    %108 = vector.broadcast %cst_55 : f32 to vector<32x32xf32>
    %109 = arith.mulf %108, %105 : vector<32x32xf32>
    %110 = arith.select %107, %105, %109 : vector<32x32xi1>, vector<32x32xf32>
    %c0_56 = arith.constant 0 : index
    %c0_57 = arith.constant 0 : index
    %111 = vector.load %arg5[%c0_56, %c0_57] : memref<32x32xf32, #tpu.memory_space<vmem>>, vector<32x32xf32>
    tpu.vector_store %arg5[%c0_56, %c0_57], %110 {strides = array<i32>} : memref<32x32xf32, #tpu.memory_space<vmem>>, vector<32x32xf32>,
    return
  }
}

module attributes {stable_mosaic.version = 11 : i64} {
  func.func @_vq_kernel(%arg0: memref<32x8xf32, #tpu.memory_space<vmem>>, %arg1: memref<8x128xf32, #tpu.memory_space<vmem>>, %arg2: memref<128x8xf32, #tpu.memory_space<vmem>>, %arg3: memref<32x8xf32, #tpu.memory_space<vmem>>, %arg4: memref<1x32xi32, #tpu.memory_space<vmem>>, %arg5: memref<1x128xf32, #tpu.memory_space<vmem>>, %arg6: memref<1x1xf32, #tpu.memory_space<vmem>>) attributes {dimension_semantics = [], scalar_prefetch = 0 : i64, scratch_operands = 0 : i64, tpu.core_type = #tpu.core_type<tc>} {
    %c0 = arith.constant 0 : index
    %c0_0 = arith.constant 0 : index
    %0 = vector.load %arg0[%c0, %c0_0] : memref<32x8xf32, #tpu.memory_space<vmem>>, vector<32x8xf32>
    %c0_1 = arith.constant 0 : index
    %c0_2 = arith.constant 0 : index
    %1 = vector.load %arg1[%c0_1, %c0_2] : memref<8x128xf32, #tpu.memory_space<vmem>>, vector<8x128xf32>
    %2 = arith.mulf %0, %0 : vector<32x8xf32>
    %cst = arith.constant dense<0.000000e+00> : vector<32xf32>
    %3 = vector.multi_reduction <add>, %2, %cst [1] : vector<32x8xf32> to vector<32xf32>
    %4 = vector.shape_cast %3 : vector<32xf32> to vector<32x1xf32>
    %cst_3 = arith.constant dense<0.000000e+00> : vector<32x128xf32>
    %5 = tpu.matmul %0, %1, %cst_3 {dimension_numbers = #tpu.dot_dimension_numbers<[1], [0], [0], [1], [0, 0, 1, 1], [], []>} : vector<32x8xf32>, vector<8x128xf32>, vector<32x128xf32> -> vector<32x128xf32>
    %cst_4 = arith.constant 2.000000e+00 : f32
    %6 = vector.broadcast %cst_4 : f32 to vector<32x128xf32>
    %7 = arith.mulf %6, %5 : vector<32x128xf32>
    %8 = vector.broadcast %4 : vector<32x1xf32> to vector<32x128xf32>
    %9 = arith.subf %8, %7 : vector<32x128xf32>
    %10 = arith.mulf %1, %1 : vector<8x128xf32>
    %cst_5 = arith.constant dense<0.000000e+00> : vector<128xf32>
    %11 = vector.multi_reduction <add>, %10, %cst_5 [0] : vector<8x128xf32> to vector<128xf32>
    %12 = vector.shape_cast %11 : vector<128xf32> to vector<1x128xf32>
    %13 = vector.broadcast %12 : vector<1x128xf32> to vector<32x128xf32>
    %14 = arith.addf %9, %13 : vector<32x128xf32>
    %15 = tpu.iota {dimensions = array<i32: 1>} : vector<32x128xi32>
    %c32_i32 = arith.constant 32 : i32
    %16 = vector.broadcast %c32_i32 : i32 to vector<32x128xi32>
    %17 = arith.cmpi slt, %15, %16 : vector<32x128xi32>
    %cst_6 = arith.constant 1.000000e+30 : f32
    %18 = vector.broadcast %cst_6 : f32 to vector<32x128xf32>
    %19 = arith.select %17, %14, %18 : vector<32x128xi1>, vector<32x128xf32>
    %cst_7 = arith.constant dense<0x7F800000> : vector<32xf32>
    %20 = vector.multi_reduction <minimumf>, %19, %cst_7 [1] : vector<32x128xf32> to vector<32xf32>
    %21 = vector.shape_cast %20 : vector<32xf32> to vector<32x1xf32>
    %22 = vector.broadcast %21 : vector<32x1xf32> to vector<32x128xf32>
    %23 = arith.cmpf ole, %19, %22 : vector<32x128xf32>
    %c128_i32 = arith.constant 128 : i32
    %24 = vector.broadcast %c128_i32 : i32 to vector<32x128xi32>
    %25 = arith.select %23, %15, %24 : vector<32x128xi1>, vector<32x128xi32>
    %cst_8 = arith.constant dense<2147483647> : vector<32xi32>
    %26 = vector.multi_reduction <minsi>, %25, %cst_8 [1] : vector<32x128xi32> to vector<32xi32>
    %27 = vector.shape_cast %26 : vector<32xi32> to vector<32x1xi32>
    %28 = vector.broadcast %27 : vector<32x1xi32> to vector<32x128xi32>
    %29 = arith.cmpi eq, %15, %28 : vector<32x128xi32>
    %30 = arith.extui %29 : vector<32x128xi1> to vector<32x128xi32>
    %31 = arith.sitofp %30 : vector<32x128xi32> to vector<32x128xf32>
    %c0_9 = arith.constant 0 : index
    %c0_10 = arith.constant 0 : index
    %32 = vector.load %arg2[%c0_9, %c0_10] : memref<128x8xf32, #tpu.memory_space<vmem>>, vector<128x8xf32>
    %cst_11 = arith.constant dense<0.000000e+00> : vector<32x8xf32>
    %33 = tpu.matmul %31, %32, %cst_11 {dimension_numbers = #tpu.dot_dimension_numbers<[1], [0], [0], [1], [0, 0, 1, 1], [], []>} : vector<32x128xf32>, vector<128x8xf32>, vector<32x8xf32> -> vector<32x8xf32>
    %c0_12 = arith.constant 0 : index
    %c0_13 = arith.constant 0 : index
    %34 = vector.load %arg3[%c0_12, %c0_13] : memref<32x8xf32, #tpu.memory_space<vmem>>, vector<32x8xf32>
    tpu.vector_store %arg3[%c0_12, %c0_13], %33 {strides = array<i32>} : memref<32x8xf32, #tpu.memory_space<vmem>>, vector<32x8xf32>,
    %35 = vector.shape_cast %26 : vector<32xi32> to vector<1x32xi32>
    %c0_14 = arith.constant 0 : index
    %c0_15 = arith.constant 0 : index
    %36 = vector.load %arg4[%c0_14, %c0_15] : memref<1x32xi32, #tpu.memory_space<vmem>>, vector<1x32xi32>
    tpu.vector_store %arg4[%c0_14, %c0_15], %35 {strides = array<i32>} : memref<1x32xi32, #tpu.memory_space<vmem>>, vector<1x32xi32>,
    %cst_16 = arith.constant dense<0.000000e+00> : vector<128xf32>
    %37 = vector.multi_reduction <add>, %31, %cst_16 [0] : vector<32x128xf32> to vector<128xf32>
    %38 = vector.shape_cast %37 : vector<128xf32> to vector<1x128xf32>
    %c0_17 = arith.constant 0 : index
    %c0_18 = arith.constant 0 : index
    %39 = vector.load %arg5[%c0_17, %c0_18] : memref<1x128xf32, #tpu.memory_space<vmem>>, vector<1x128xf32>
    tpu.vector_store %arg5[%c0_17, %c0_18], %38 {strides = array<i32>} : memref<1x128xf32, #tpu.memory_space<vmem>>, vector<1x128xf32>,
    %40 = arith.subf %33, %0 : vector<32x8xf32>
    %41 = arith.mulf %40, %40 : vector<32x8xf32>
    %42 = vector.shape_cast %41 : vector<32x8xf32> to vector<1x32x8xf32>
    %cst_19 = arith.constant dense<0.000000e+00> : vector<1xf32>
    %43 = vector.multi_reduction <add>, %42, %cst_19 [1, 2] : vector<1x32x8xf32> to vector<1xf32>
    %44 = vector.shape_cast %43 : vector<1xf32> to vector<1x1x1xf32>
    %45 = vector.extract %44[0, 0, 0] : f32 from vector<1x1x1xf32>
    %46 = vector.broadcast %45 : f32 to vector<1x1xf32>
    %c0_20 = arith.constant 0 : index
    %c0_21 = arith.constant 0 : index
    %47 = vector.load %arg6[%c0_20, %c0_21] : memref<1x1xf32, #tpu.memory_space<vmem>>, vector<1x1xf32>
    tpu.vector_store %arg6[%c0_20, %c0_21], %46 {strides = array<i32>} : memref<1x1xf32, #tpu.memory_space<vmem>>, vector<1x1xf32>,
    return
  }
}

module attributes {stable_mosaic.version = 11 : i64} {
  func.func @_convt_bn_lrelu_kernel(%arg0: memref<32x32xf32, #tpu.memory_space<vmem>>, %arg1: memref<64x32xf32, #tpu.memory_space<vmem>>, %arg2: memref<16x1xf32, #tpu.memory_space<vmem>>, %arg3: memref<16x1xf32, #tpu.memory_space<vmem>>, %arg4: memref<16x1xf32, #tpu.memory_space<vmem>>, %arg5: memref<64x32xf32, #tpu.memory_space<vmem>>) attributes {dimension_semantics = [], scalar_prefetch = 0 : i64, scratch_operands = 0 : i64, tpu.core_type = #tpu.core_type<tc>} {
    %c0 = arith.constant 0 : index
    %c0_0 = arith.constant 0 : index
    %0 = vector.load %arg1[%c0, %c0_0] : memref<64x32xf32, #tpu.memory_space<vmem>>, vector<64x32xf32>
    %c0_1 = arith.constant 0 : index
    %c0_2 = arith.constant 0 : index
    %1 = vector.load %arg0[%c0_1, %c0_2] : memref<32x32xf32, #tpu.memory_space<vmem>>, vector<32x32xf32>
    %2 = arith.truncf %0 : vector<64x32xf32> to vector<64x32xbf16>
    %3 = arith.truncf %1 : vector<32x32xf32> to vector<32x32xbf16>
    %cst = arith.constant dense<0.000000e+00> : vector<64x32xf32>
    %4 = tpu.matmul %2, %3, %cst {dimension_numbers = #tpu.dot_dimension_numbers<[1], [0], [0], [1], [0, 0, 1, 1], [], []>} : vector<64x32xbf16>, vector<32x32xbf16>, vector<64x32xf32> -> vector<64x32xf32>
    %c0_3 = arith.constant 0 : index
    %c0_4 = arith.constant 0 : index
    %5 = vector.load %arg2[%c0_3, %c0_4] : memref<16x1xf32, #tpu.memory_space<vmem>>, vector<16x1xf32>
    %6 = vector.extract_strided_slice %4 {offsets = [0, 0], sizes = [16, 32], strides = [1, 1]} : vector<64x32xf32> to vector<16x32xf32>
    %7 = vector.broadcast %5 : vector<16x1xf32> to vector<16x32xf32>
    %8 = arith.addf %6, %7 : vector<16x32xf32>
    %9 = vector.extract_strided_slice %4 {offsets = [16, 0], sizes = [16, 32], strides = [1, 1]} : vector<64x32xf32> to vector<16x32xf32>
    %10 = vector.broadcast %5 : vector<16x1xf32> to vector<16x32xf32>
    %11 = arith.addf %9, %10 : vector<16x32xf32>
    %12 = vector.extract_strided_slice %4 {offsets = [32, 0], sizes = [16, 32], strides = [1, 1]} : vector<64x32xf32> to vector<16x32xf32>
    %13 = vector.broadcast %5 : vector<16x1xf32> to vector<16x32xf32>
    %14 = arith.addf %12, %13 : vector<16x32xf32>
    %15 = vector.extract_strided_slice %4 {offsets = [48, 0], sizes = [16, 32], strides = [1, 1]} : vector<64x32xf32> to vector<16x32xf32>
    %16 = vector.broadcast %5 : vector<16x1xf32> to vector<16x32xf32>
    %17 = arith.addf %15, %16 : vector<16x32xf32>
    %cst_5 = arith.constant 0.000000e+00 : f32
    %18 = vector.broadcast %cst_5 : f32 to vector<16x1xf32>
    %cst_6 = arith.constant dense<0.000000e+00> : vector<16xf32>
    %19 = vector.multi_reduction <add>, %8, %cst_6 [1] : vector<16x32xf32> to vector<16xf32>
    %20 = vector.shape_cast %19 : vector<16xf32> to vector<16x1xf32>
    %21 = arith.addf %18, %20 : vector<16x1xf32>
    %cst_7 = arith.constant dense<0.000000e+00> : vector<16xf32>
    %22 = vector.multi_reduction <add>, %11, %cst_7 [1] : vector<16x32xf32> to vector<16xf32>
    %23 = vector.shape_cast %22 : vector<16xf32> to vector<16x1xf32>
    %24 = arith.addf %21, %23 : vector<16x1xf32>
    %cst_8 = arith.constant dense<0.000000e+00> : vector<16xf32>
    %25 = vector.multi_reduction <add>, %14, %cst_8 [1] : vector<16x32xf32> to vector<16xf32>
    %26 = vector.shape_cast %25 : vector<16xf32> to vector<16x1xf32>
    %27 = arith.addf %24, %26 : vector<16x1xf32>
    %cst_9 = arith.constant dense<0.000000e+00> : vector<16xf32>
    %28 = vector.multi_reduction <add>, %17, %cst_9 [1] : vector<16x32xf32> to vector<16xf32>
    %29 = vector.shape_cast %28 : vector<16xf32> to vector<16x1xf32>
    %30 = arith.addf %27, %29 : vector<16x1xf32>
    %cst_10 = arith.constant 7.812500e-03 : f32
    %31 = vector.broadcast %cst_10 : f32 to vector<16x1xf32>
    %32 = arith.mulf %30, %31 : vector<16x1xf32>
    %cst_11 = arith.constant 0.000000e+00 : f32
    %33 = vector.broadcast %cst_11 : f32 to vector<16x1xf32>
    %34 = vector.broadcast %32 : vector<16x1xf32> to vector<16x32xf32>
    %35 = arith.subf %8, %34 : vector<16x32xf32>
    %36 = arith.mulf %35, %35 : vector<16x32xf32>
    %cst_12 = arith.constant dense<0.000000e+00> : vector<16xf32>
    %37 = vector.multi_reduction <add>, %36, %cst_12 [1] : vector<16x32xf32> to vector<16xf32>
    %38 = vector.shape_cast %37 : vector<16xf32> to vector<16x1xf32>
    %39 = arith.addf %33, %38 : vector<16x1xf32>
    %40 = vector.broadcast %32 : vector<16x1xf32> to vector<16x32xf32>
    %41 = arith.subf %11, %40 : vector<16x32xf32>
    %42 = arith.mulf %41, %41 : vector<16x32xf32>
    %cst_13 = arith.constant dense<0.000000e+00> : vector<16xf32>
    %43 = vector.multi_reduction <add>, %42, %cst_13 [1] : vector<16x32xf32> to vector<16xf32>
    %44 = vector.shape_cast %43 : vector<16xf32> to vector<16x1xf32>
    %45 = arith.addf %39, %44 : vector<16x1xf32>
    %46 = vector.broadcast %32 : vector<16x1xf32> to vector<16x32xf32>
    %47 = arith.subf %14, %46 : vector<16x32xf32>
    %48 = arith.mulf %47, %47 : vector<16x32xf32>
    %cst_14 = arith.constant dense<0.000000e+00> : vector<16xf32>
    %49 = vector.multi_reduction <add>, %48, %cst_14 [1] : vector<16x32xf32> to vector<16xf32>
    %50 = vector.shape_cast %49 : vector<16xf32> to vector<16x1xf32>
    %51 = arith.addf %45, %50 : vector<16x1xf32>
    %52 = vector.broadcast %32 : vector<16x1xf32> to vector<16x32xf32>
    %53 = arith.subf %17, %52 : vector<16x32xf32>
    %54 = arith.mulf %53, %53 : vector<16x32xf32>
    %cst_15 = arith.constant dense<0.000000e+00> : vector<16xf32>
    %55 = vector.multi_reduction <add>, %54, %cst_15 [1] : vector<16x32xf32> to vector<16xf32>
    %56 = vector.shape_cast %55 : vector<16xf32> to vector<16x1xf32>
    %57 = arith.addf %51, %56 : vector<16x1xf32>
    %cst_16 = arith.constant 7.812500e-03 : f32
    %58 = vector.broadcast %cst_16 : f32 to vector<16x1xf32>
    %59 = arith.mulf %57, %58 : vector<16x1xf32>
    %c0_17 = arith.constant 0 : index
    %c0_18 = arith.constant 0 : index
    %60 = vector.load %arg3[%c0_17, %c0_18] : memref<16x1xf32, #tpu.memory_space<vmem>>, vector<16x1xf32>
    %cst_19 = arith.constant 9.99999974E-6 : f32
    %61 = vector.broadcast %cst_19 : f32 to vector<16x1xf32>
    %62 = arith.addf %59, %61 : vector<16x1xf32>
    %63 = math.rsqrt %62 : vector<16x1xf32>
    %64 = arith.mulf %60, %63 : vector<16x1xf32>
    %c0_20 = arith.constant 0 : index
    %c0_21 = arith.constant 0 : index
    %65 = vector.load %arg4[%c0_20, %c0_21] : memref<16x1xf32, #tpu.memory_space<vmem>>, vector<16x1xf32>
    %66 = arith.mulf %32, %64 : vector<16x1xf32>
    %67 = arith.subf %65, %66 : vector<16x1xf32>
    %68 = vector.broadcast %64 : vector<16x1xf32> to vector<16x32xf32>
    %69 = arith.mulf %8, %68 : vector<16x32xf32>
    %70 = vector.broadcast %67 : vector<16x1xf32> to vector<16x32xf32>
    %71 = arith.addf %69, %70 : vector<16x32xf32>
    %cst_22 = arith.constant 0.000000e+00 : f32
    %72 = vector.broadcast %cst_22 : f32 to vector<16x32xf32>
    %73 = arith.cmpf oge, %71, %72 : vector<16x32xf32>
    %cst_23 = arith.constant 2.000000e-01 : f32
    %74 = vector.broadcast %cst_23 : f32 to vector<16x32xf32>
    %75 = arith.mulf %74, %71 : vector<16x32xf32>
    %76 = arith.select %73, %71, %75 : vector<16x32xi1>, vector<16x32xf32>
    %c0_24 = arith.constant 0 : index
    %c0_25 = arith.constant 0 : index
    %77 = vector.load %arg5[%c0_24, %c0_25] : memref<64x32xf32, #tpu.memory_space<vmem>>, vector<16x32xf32>
    tpu.vector_store %arg5[%c0_24, %c0_25], %76 {strides = array<i32>} : memref<64x32xf32, #tpu.memory_space<vmem>>, vector<16x32xf32>,
    %78 = vector.broadcast %64 : vector<16x1xf32> to vector<16x32xf32>
    %79 = arith.mulf %11, %78 : vector<16x32xf32>
    %80 = vector.broadcast %67 : vector<16x1xf32> to vector<16x32xf32>
    %81 = arith.addf %79, %80 : vector<16x32xf32>
    %cst_26 = arith.constant 0.000000e+00 : f32
    %82 = vector.broadcast %cst_26 : f32 to vector<16x32xf32>
    %83 = arith.cmpf oge, %81, %82 : vector<16x32xf32>
    %cst_27 = arith.constant 2.000000e-01 : f32
    %84 = vector.broadcast %cst_27 : f32 to vector<16x32xf32>
    %85 = arith.mulf %84, %81 : vector<16x32xf32>
    %86 = arith.select %83, %81, %85 : vector<16x32xi1>, vector<16x32xf32>
    %c16 = arith.constant 16 : index
    %c0_28 = arith.constant 0 : index
    %87 = vector.load %arg5[%c16, %c0_28] : memref<64x32xf32, #tpu.memory_space<vmem>>, vector<16x32xf32>
    tpu.vector_store %arg5[%c16, %c0_28], %86 {strides = array<i32>} : memref<64x32xf32, #tpu.memory_space<vmem>>, vector<16x32xf32>,
    %88 = vector.broadcast %64 : vector<16x1xf32> to vector<16x32xf32>
    %89 = arith.mulf %14, %88 : vector<16x32xf32>
    %90 = vector.broadcast %67 : vector<16x1xf32> to vector<16x32xf32>
    %91 = arith.addf %89, %90 : vector<16x32xf32>
    %cst_29 = arith.constant 0.000000e+00 : f32
    %92 = vector.broadcast %cst_29 : f32 to vector<16x32xf32>
    %93 = arith.cmpf oge, %91, %92 : vector<16x32xf32>
    %cst_30 = arith.constant 2.000000e-01 : f32
    %94 = vector.broadcast %cst_30 : f32 to vector<16x32xf32>
    %95 = arith.mulf %94, %91 : vector<16x32xf32>
    %96 = arith.select %93, %91, %95 : vector<16x32xi1>, vector<16x32xf32>
    %c32 = arith.constant 32 : index
    %c0_31 = arith.constant 0 : index
    %97 = vector.load %arg5[%c32, %c0_31] : memref<64x32xf32, #tpu.memory_space<vmem>>, vector<16x32xf32>
    tpu.vector_store %arg5[%c32, %c0_31], %96 {strides = array<i32>} : memref<64x32xf32, #tpu.memory_space<vmem>>, vector<16x32xf32>,
    %98 = vector.broadcast %64 : vector<16x1xf32> to vector<16x32xf32>
    %99 = arith.mulf %17, %98 : vector<16x32xf32>
    %100 = vector.broadcast %67 : vector<16x1xf32> to vector<16x32xf32>
    %101 = arith.addf %99, %100 : vector<16x32xf32>
    %cst_32 = arith.constant 0.000000e+00 : f32
    %102 = vector.broadcast %cst_32 : f32 to vector<16x32xf32>
    %103 = arith.cmpf oge, %101, %102 : vector<16x32xf32>
    %cst_33 = arith.constant 2.000000e-01 : f32
    %104 = vector.broadcast %cst_33 : f32 to vector<16x32xf32>
    %105 = arith.mulf %104, %101 : vector<16x32xf32>
    %106 = arith.select %103, %101, %105 : vector<16x32xi1>, vector<16x32xf32>
    %c48 = arith.constant 48 : index
    %c0_34 = arith.constant 0 : index
    %107 = vector.load %arg5[%c48, %c0_34] : memref<64x32xf32, #tpu.memory_space<vmem>>, vector<16x32xf32>
    tpu.vector_store %arg5[%c48, %c0_34], %106 {strides = array<i32>} : memref<64x32xf32, #tpu.memory_space<vmem>>, vector<16x32xf32>,
    return
  }
}

module attributes {stable_mosaic.version = 11 : i64} {
  func.func @_convt_bn_lrelu_kernel(%arg0: memref<16x128xf32, #tpu.memory_space<vmem>>, %arg1: memref<32x16xf32, #tpu.memory_space<vmem>>, %arg2: memref<8x1xf32, #tpu.memory_space<vmem>>, %arg3: memref<8x1xf32, #tpu.memory_space<vmem>>, %arg4: memref<8x1xf32, #tpu.memory_space<vmem>>, %arg5: memref<32x128xf32, #tpu.memory_space<vmem>>) attributes {dimension_semantics = [], scalar_prefetch = 0 : i64, scratch_operands = 0 : i64, tpu.core_type = #tpu.core_type<tc>} {
    %c0 = arith.constant 0 : index
    %c0_0 = arith.constant 0 : index
    %0 = vector.load %arg1[%c0, %c0_0] : memref<32x16xf32, #tpu.memory_space<vmem>>, vector<32x16xf32>
    %c0_1 = arith.constant 0 : index
    %c0_2 = arith.constant 0 : index
    %1 = vector.load %arg0[%c0_1, %c0_2] : memref<16x128xf32, #tpu.memory_space<vmem>>, vector<16x128xf32>
    %2 = arith.truncf %0 : vector<32x16xf32> to vector<32x16xbf16>
    %3 = arith.truncf %1 : vector<16x128xf32> to vector<16x128xbf16>
    %cst = arith.constant dense<0.000000e+00> : vector<32x128xf32>
    %4 = tpu.matmul %2, %3, %cst {dimension_numbers = #tpu.dot_dimension_numbers<[1], [0], [0], [1], [0, 0, 1, 1], [], []>} : vector<32x16xbf16>, vector<16x128xbf16>, vector<32x128xf32> -> vector<32x128xf32>
    %c0_3 = arith.constant 0 : index
    %c0_4 = arith.constant 0 : index
    %5 = vector.load %arg2[%c0_3, %c0_4] : memref<8x1xf32, #tpu.memory_space<vmem>>, vector<8x1xf32>
    %6 = vector.extract_strided_slice %4 {offsets = [0, 0], sizes = [8, 128], strides = [1, 1]} : vector<32x128xf32> to vector<8x128xf32>
    %7 = vector.broadcast %5 : vector<8x1xf32> to vector<8x128xf32>
    %8 = arith.addf %6, %7 : vector<8x128xf32>
    %9 = vector.extract_strided_slice %4 {offsets = [8, 0], sizes = [8, 128], strides = [1, 1]} : vector<32x128xf32> to vector<8x128xf32>
    %10 = vector.broadcast %5 : vector<8x1xf32> to vector<8x128xf32>
    %11 = arith.addf %9, %10 : vector<8x128xf32>
    %12 = vector.extract_strided_slice %4 {offsets = [16, 0], sizes = [8, 128], strides = [1, 1]} : vector<32x128xf32> to vector<8x128xf32>
    %13 = vector.broadcast %5 : vector<8x1xf32> to vector<8x128xf32>
    %14 = arith.addf %12, %13 : vector<8x128xf32>
    %15 = vector.extract_strided_slice %4 {offsets = [24, 0], sizes = [8, 128], strides = [1, 1]} : vector<32x128xf32> to vector<8x128xf32>
    %16 = vector.broadcast %5 : vector<8x1xf32> to vector<8x128xf32>
    %17 = arith.addf %15, %16 : vector<8x128xf32>
    %cst_5 = arith.constant 0.000000e+00 : f32
    %18 = vector.broadcast %cst_5 : f32 to vector<8x1xf32>
    %cst_6 = arith.constant dense<0.000000e+00> : vector<8xf32>
    %19 = vector.multi_reduction <add>, %8, %cst_6 [1] : vector<8x128xf32> to vector<8xf32>
    %20 = vector.shape_cast %19 : vector<8xf32> to vector<8x1xf32>
    %21 = arith.addf %18, %20 : vector<8x1xf32>
    %cst_7 = arith.constant dense<0.000000e+00> : vector<8xf32>
    %22 = vector.multi_reduction <add>, %11, %cst_7 [1] : vector<8x128xf32> to vector<8xf32>
    %23 = vector.shape_cast %22 : vector<8xf32> to vector<8x1xf32>
    %24 = arith.addf %21, %23 : vector<8x1xf32>
    %cst_8 = arith.constant dense<0.000000e+00> : vector<8xf32>
    %25 = vector.multi_reduction <add>, %14, %cst_8 [1] : vector<8x128xf32> to vector<8xf32>
    %26 = vector.shape_cast %25 : vector<8xf32> to vector<8x1xf32>
    %27 = arith.addf %24, %26 : vector<8x1xf32>
    %cst_9 = arith.constant dense<0.000000e+00> : vector<8xf32>
    %28 = vector.multi_reduction <add>, %17, %cst_9 [1] : vector<8x128xf32> to vector<8xf32>
    %29 = vector.shape_cast %28 : vector<8xf32> to vector<8x1xf32>
    %30 = arith.addf %27, %29 : vector<8x1xf32>
    %cst_10 = arith.constant 0.001953125 : f32
    %31 = vector.broadcast %cst_10 : f32 to vector<8x1xf32>
    %32 = arith.mulf %30, %31 : vector<8x1xf32>
    %cst_11 = arith.constant 0.000000e+00 : f32
    %33 = vector.broadcast %cst_11 : f32 to vector<8x1xf32>
    %34 = vector.broadcast %32 : vector<8x1xf32> to vector<8x128xf32>
    %35 = arith.subf %8, %34 : vector<8x128xf32>
    %36 = arith.mulf %35, %35 : vector<8x128xf32>
    %cst_12 = arith.constant dense<0.000000e+00> : vector<8xf32>
    %37 = vector.multi_reduction <add>, %36, %cst_12 [1] : vector<8x128xf32> to vector<8xf32>
    %38 = vector.shape_cast %37 : vector<8xf32> to vector<8x1xf32>
    %39 = arith.addf %33, %38 : vector<8x1xf32>
    %40 = vector.broadcast %32 : vector<8x1xf32> to vector<8x128xf32>
    %41 = arith.subf %11, %40 : vector<8x128xf32>
    %42 = arith.mulf %41, %41 : vector<8x128xf32>
    %cst_13 = arith.constant dense<0.000000e+00> : vector<8xf32>
    %43 = vector.multi_reduction <add>, %42, %cst_13 [1] : vector<8x128xf32> to vector<8xf32>
    %44 = vector.shape_cast %43 : vector<8xf32> to vector<8x1xf32>
    %45 = arith.addf %39, %44 : vector<8x1xf32>
    %46 = vector.broadcast %32 : vector<8x1xf32> to vector<8x128xf32>
    %47 = arith.subf %14, %46 : vector<8x128xf32>
    %48 = arith.mulf %47, %47 : vector<8x128xf32>
    %cst_14 = arith.constant dense<0.000000e+00> : vector<8xf32>
    %49 = vector.multi_reduction <add>, %48, %cst_14 [1] : vector<8x128xf32> to vector<8xf32>
    %50 = vector.shape_cast %49 : vector<8xf32> to vector<8x1xf32>
    %51 = arith.addf %45, %50 : vector<8x1xf32>
    %52 = vector.broadcast %32 : vector<8x1xf32> to vector<8x128xf32>
    %53 = arith.subf %17, %52 : vector<8x128xf32>
    %54 = arith.mulf %53, %53 : vector<8x128xf32>
    %cst_15 = arith.constant dense<0.000000e+00> : vector<8xf32>
    %55 = vector.multi_reduction <add>, %54, %cst_15 [1] : vector<8x128xf32> to vector<8xf32>
    %56 = vector.shape_cast %55 : vector<8xf32> to vector<8x1xf32>
    %57 = arith.addf %51, %56 : vector<8x1xf32>
    %cst_16 = arith.constant 0.001953125 : f32
    %58 = vector.broadcast %cst_16 : f32 to vector<8x1xf32>
    %59 = arith.mulf %57, %58 : vector<8x1xf32>
    %c0_17 = arith.constant 0 : index
    %c0_18 = arith.constant 0 : index
    %60 = vector.load %arg3[%c0_17, %c0_18] : memref<8x1xf32, #tpu.memory_space<vmem>>, vector<8x1xf32>
    %cst_19 = arith.constant 9.99999974E-6 : f32
    %61 = vector.broadcast %cst_19 : f32 to vector<8x1xf32>
    %62 = arith.addf %59, %61 : vector<8x1xf32>
    %63 = math.rsqrt %62 : vector<8x1xf32>
    %64 = arith.mulf %60, %63 : vector<8x1xf32>
    %c0_20 = arith.constant 0 : index
    %c0_21 = arith.constant 0 : index
    %65 = vector.load %arg4[%c0_20, %c0_21] : memref<8x1xf32, #tpu.memory_space<vmem>>, vector<8x1xf32>
    %66 = arith.mulf %32, %64 : vector<8x1xf32>
    %67 = arith.subf %65, %66 : vector<8x1xf32>
    %68 = vector.broadcast %64 : vector<8x1xf32> to vector<8x128xf32>
    %69 = arith.mulf %8, %68 : vector<8x128xf32>
    %70 = vector.broadcast %67 : vector<8x1xf32> to vector<8x128xf32>
    %71 = arith.addf %69, %70 : vector<8x128xf32>
    %cst_22 = arith.constant 0.000000e+00 : f32
    %72 = vector.broadcast %cst_22 : f32 to vector<8x128xf32>
    %73 = arith.cmpf oge, %71, %72 : vector<8x128xf32>
    %cst_23 = arith.constant 2.000000e-01 : f32
    %74 = vector.broadcast %cst_23 : f32 to vector<8x128xf32>
    %75 = arith.mulf %74, %71 : vector<8x128xf32>
    %76 = arith.select %73, %71, %75 : vector<8x128xi1>, vector<8x128xf32>
    %c0_24 = arith.constant 0 : index
    %c0_25 = arith.constant 0 : index
    %77 = vector.load %arg5[%c0_24, %c0_25] : memref<32x128xf32, #tpu.memory_space<vmem>>, vector<8x128xf32>
    tpu.vector_store %arg5[%c0_24, %c0_25], %76 {strides = array<i32>} : memref<32x128xf32, #tpu.memory_space<vmem>>, vector<8x128xf32>,
    %78 = vector.broadcast %64 : vector<8x1xf32> to vector<8x128xf32>
    %79 = arith.mulf %11, %78 : vector<8x128xf32>
    %80 = vector.broadcast %67 : vector<8x1xf32> to vector<8x128xf32>
    %81 = arith.addf %79, %80 : vector<8x128xf32>
    %cst_26 = arith.constant 0.000000e+00 : f32
    %82 = vector.broadcast %cst_26 : f32 to vector<8x128xf32>
    %83 = arith.cmpf oge, %81, %82 : vector<8x128xf32>
    %cst_27 = arith.constant 2.000000e-01 : f32
    %84 = vector.broadcast %cst_27 : f32 to vector<8x128xf32>
    %85 = arith.mulf %84, %81 : vector<8x128xf32>
    %86 = arith.select %83, %81, %85 : vector<8x128xi1>, vector<8x128xf32>
    %c8 = arith.constant 8 : index
    %c0_28 = arith.constant 0 : index
    %87 = vector.load %arg5[%c8, %c0_28] : memref<32x128xf32, #tpu.memory_space<vmem>>, vector<8x128xf32>
    tpu.vector_store %arg5[%c8, %c0_28], %86 {strides = array<i32>} : memref<32x128xf32, #tpu.memory_space<vmem>>, vector<8x128xf32>,
    %88 = vector.broadcast %64 : vector<8x1xf32> to vector<8x128xf32>
    %89 = arith.mulf %14, %88 : vector<8x128xf32>
    %90 = vector.broadcast %67 : vector<8x1xf32> to vector<8x128xf32>
    %91 = arith.addf %89, %90 : vector<8x128xf32>
    %cst_29 = arith.constant 0.000000e+00 : f32
    %92 = vector.broadcast %cst_29 : f32 to vector<8x128xf32>
    %93 = arith.cmpf oge, %91, %92 : vector<8x128xf32>
    %cst_30 = arith.constant 2.000000e-01 : f32
    %94 = vector.broadcast %cst_30 : f32 to vector<8x128xf32>
    %95 = arith.mulf %94, %91 : vector<8x128xf32>
    %96 = arith.select %93, %91, %95 : vector<8x128xi1>, vector<8x128xf32>
    %c16 = arith.constant 16 : index
    %c0_31 = arith.constant 0 : index
    %97 = vector.load %arg5[%c16, %c0_31] : memref<32x128xf32, #tpu.memory_space<vmem>>, vector<8x128xf32>
    tpu.vector_store %arg5[%c16, %c0_31], %96 {strides = array<i32>} : memref<32x128xf32, #tpu.memory_space<vmem>>, vector<8x128xf32>,
    %98 = vector.broadcast %64 : vector<8x1xf32> to vector<8x128xf32>
    %99 = arith.mulf %17, %98 : vector<8x128xf32>
    %100 = vector.broadcast %67 : vector<8x1xf32> to vector<8x128xf32>
    %101 = arith.addf %99, %100 : vector<8x128xf32>
    %cst_32 = arith.constant 0.000000e+00 : f32
    %102 = vector.broadcast %cst_32 : f32 to vector<8x128xf32>
    %103 = arith.cmpf oge, %101, %102 : vector<8x128xf32>
    %cst_33 = arith.constant 2.000000e-01 : f32
    %104 = vector.broadcast %cst_33 : f32 to vector<8x128xf32>
    %105 = arith.mulf %104, %101 : vector<8x128xf32>
    %106 = arith.select %103, %101, %105 : vector<8x128xi1>, vector<8x128xf32>
    %c24 = arith.constant 24 : index
    %c0_34 = arith.constant 0 : index
    %107 = vector.load %arg5[%c24, %c0_34] : memref<32x128xf32, #tpu.memory_space<vmem>>, vector<8x128xf32>
    tpu.vector_store %arg5[%c24, %c0_34], %106 {strides = array<i32>} : memref<32x128xf32, #tpu.memory_space<vmem>>, vector<8x128xf32>,
    return
  }
}

module attributes {stable_mosaic.version = 11 : i64} {
  func.func @_convt_bn_lrelu_kernel(%arg0: memref<32x32xf32, #tpu.memory_space<vmem>>, %arg1: memref<128x32xf32, #tpu.memory_space<vmem>>, %arg2: memref<8x1xf32, #tpu.memory_space<vmem>>, %arg3: memref<8x1xf32, #tpu.memory_space<vmem>>, %arg4: memref<8x1xf32, #tpu.memory_space<vmem>>, %arg5: memref<128x32xf32, #tpu.memory_space<vmem>>) attributes {dimension_semantics = [], scalar_prefetch = 0 : i64, scratch_operands = 0 : i64, tpu.core_type = #tpu.core_type<tc>} {
    %c0 = arith.constant 0 : index
    %c0_0 = arith.constant 0 : index
    %0 = vector.load %arg1[%c0, %c0_0] : memref<128x32xf32, #tpu.memory_space<vmem>>, vector<128x32xf32>
    %c0_1 = arith.constant 0 : index
    %c0_2 = arith.constant 0 : index
    %1 = vector.load %arg0[%c0_1, %c0_2] : memref<32x32xf32, #tpu.memory_space<vmem>>, vector<32x32xf32>
    %2 = arith.truncf %0 : vector<128x32xf32> to vector<128x32xbf16>
    %3 = arith.truncf %1 : vector<32x32xf32> to vector<32x32xbf16>
    %cst = arith.constant dense<0.000000e+00> : vector<128x32xf32>
    %4 = tpu.matmul %2, %3, %cst {dimension_numbers = #tpu.dot_dimension_numbers<[1], [0], [0], [1], [0, 0, 1, 1], [], []>} : vector<128x32xbf16>, vector<32x32xbf16>, vector<128x32xf32> -> vector<128x32xf32>
    %c0_3 = arith.constant 0 : index
    %c0_4 = arith.constant 0 : index
    %5 = vector.load %arg2[%c0_3, %c0_4] : memref<8x1xf32, #tpu.memory_space<vmem>>, vector<8x1xf32>
    %6 = vector.extract_strided_slice %4 {offsets = [0, 0], sizes = [8, 32], strides = [1, 1]} : vector<128x32xf32> to vector<8x32xf32>
    %7 = vector.broadcast %5 : vector<8x1xf32> to vector<8x32xf32>
    %8 = arith.addf %6, %7 : vector<8x32xf32>
    %9 = vector.extract_strided_slice %4 {offsets = [8, 0], sizes = [8, 32], strides = [1, 1]} : vector<128x32xf32> to vector<8x32xf32>
    %10 = vector.broadcast %5 : vector<8x1xf32> to vector<8x32xf32>
    %11 = arith.addf %9, %10 : vector<8x32xf32>
    %12 = vector.extract_strided_slice %4 {offsets = [16, 0], sizes = [8, 32], strides = [1, 1]} : vector<128x32xf32> to vector<8x32xf32>
    %13 = vector.broadcast %5 : vector<8x1xf32> to vector<8x32xf32>
    %14 = arith.addf %12, %13 : vector<8x32xf32>
    %15 = vector.extract_strided_slice %4 {offsets = [24, 0], sizes = [8, 32], strides = [1, 1]} : vector<128x32xf32> to vector<8x32xf32>
    %16 = vector.broadcast %5 : vector<8x1xf32> to vector<8x32xf32>
    %17 = arith.addf %15, %16 : vector<8x32xf32>
    %18 = vector.extract_strided_slice %4 {offsets = [32, 0], sizes = [8, 32], strides = [1, 1]} : vector<128x32xf32> to vector<8x32xf32>
    %19 = vector.broadcast %5 : vector<8x1xf32> to vector<8x32xf32>
    %20 = arith.addf %18, %19 : vector<8x32xf32>
    %21 = vector.extract_strided_slice %4 {offsets = [40, 0], sizes = [8, 32], strides = [1, 1]} : vector<128x32xf32> to vector<8x32xf32>
    %22 = vector.broadcast %5 : vector<8x1xf32> to vector<8x32xf32>
    %23 = arith.addf %21, %22 : vector<8x32xf32>
    %24 = vector.extract_strided_slice %4 {offsets = [48, 0], sizes = [8, 32], strides = [1, 1]} : vector<128x32xf32> to vector<8x32xf32>
    %25 = vector.broadcast %5 : vector<8x1xf32> to vector<8x32xf32>
    %26 = arith.addf %24, %25 : vector<8x32xf32>
    %27 = vector.extract_strided_slice %4 {offsets = [56, 0], sizes = [8, 32], strides = [1, 1]} : vector<128x32xf32> to vector<8x32xf32>
    %28 = vector.broadcast %5 : vector<8x1xf32> to vector<8x32xf32>
    %29 = arith.addf %27, %28 : vector<8x32xf32>
    %30 = vector.extract_strided_slice %4 {offsets = [64, 0], sizes = [8, 32], strides = [1, 1]} : vector<128x32xf32> to vector<8x32xf32>
    %31 = vector.broadcast %5 : vector<8x1xf32> to vector<8x32xf32>
    %32 = arith.addf %30, %31 : vector<8x32xf32>
    %33 = vector.extract_strided_slice %4 {offsets = [72, 0], sizes = [8, 32], strides = [1, 1]} : vector<128x32xf32> to vector<8x32xf32>
    %34 = vector.broadcast %5 : vector<8x1xf32> to vector<8x32xf32>
    %35 = arith.addf %33, %34 : vector<8x32xf32>
    %36 = vector.extract_strided_slice %4 {offsets = [80, 0], sizes = [8, 32], strides = [1, 1]} : vector<128x32xf32> to vector<8x32xf32>
    %37 = vector.broadcast %5 : vector<8x1xf32> to vector<8x32xf32>
    %38 = arith.addf %36, %37 : vector<8x32xf32>
    %39 = vector.extract_strided_slice %4 {offsets = [88, 0], sizes = [8, 32], strides = [1, 1]} : vector<128x32xf32> to vector<8x32xf32>
    %40 = vector.broadcast %5 : vector<8x1xf32> to vector<8x32xf32>
    %41 = arith.addf %39, %40 : vector<8x32xf32>
    %42 = vector.extract_strided_slice %4 {offsets = [96, 0], sizes = [8, 32], strides = [1, 1]} : vector<128x32xf32> to vector<8x32xf32>
    %43 = vector.broadcast %5 : vector<8x1xf32> to vector<8x32xf32>
    %44 = arith.addf %42, %43 : vector<8x32xf32>
    %45 = vector.extract_strided_slice %4 {offsets = [104, 0], sizes = [8, 32], strides = [1, 1]} : vector<128x32xf32> to vector<8x32xf32>
    %46 = vector.broadcast %5 : vector<8x1xf32> to vector<8x32xf32>
    %47 = arith.addf %45, %46 : vector<8x32xf32>
    %48 = vector.extract_strided_slice %4 {offsets = [112, 0], sizes = [8, 32], strides = [1, 1]} : vector<128x32xf32> to vector<8x32xf32>
    %49 = vector.broadcast %5 : vector<8x1xf32> to vector<8x32xf32>
    %50 = arith.addf %48, %49 : vector<8x32xf32>
    %51 = vector.extract_strided_slice %4 {offsets = [120, 0], sizes = [8, 32], strides = [1, 1]} : vector<128x32xf32> to vector<8x32xf32>
    %52 = vector.broadcast %5 : vector<8x1xf32> to vector<8x32xf32>
    %53 = arith.addf %51, %52 : vector<8x32xf32>
    %cst_5 = arith.constant 0.000000e+00 : f32
    %54 = vector.broadcast %cst_5 : f32 to vector<8x1xf32>
    %cst_6 = arith.constant dense<0.000000e+00> : vector<8xf32>
    %55 = vector.multi_reduction <add>, %8, %cst_6 [1] : vector<8x32xf32> to vector<8xf32>
    %56 = vector.shape_cast %55 : vector<8xf32> to vector<8x1xf32>
    %57 = arith.addf %54, %56 : vector<8x1xf32>
    %cst_7 = arith.constant dense<0.000000e+00> : vector<8xf32>
    %58 = vector.multi_reduction <add>, %11, %cst_7 [1] : vector<8x32xf32> to vector<8xf32>
    %59 = vector.shape_cast %58 : vector<8xf32> to vector<8x1xf32>
    %60 = arith.addf %57, %59 : vector<8x1xf32>
    %cst_8 = arith.constant dense<0.000000e+00> : vector<8xf32>
    %61 = vector.multi_reduction <add>, %14, %cst_8 [1] : vector<8x32xf32> to vector<8xf32>
    %62 = vector.shape_cast %61 : vector<8xf32> to vector<8x1xf32>
    %63 = arith.addf %60, %62 : vector<8x1xf32>
    %cst_9 = arith.constant dense<0.000000e+00> : vector<8xf32>
    %64 = vector.multi_reduction <add>, %17, %cst_9 [1] : vector<8x32xf32> to vector<8xf32>
    %65 = vector.shape_cast %64 : vector<8xf32> to vector<8x1xf32>
    %66 = arith.addf %63, %65 : vector<8x1xf32>
    %cst_10 = arith.constant dense<0.000000e+00> : vector<8xf32>
    %67 = vector.multi_reduction <add>, %20, %cst_10 [1] : vector<8x32xf32> to vector<8xf32>
    %68 = vector.shape_cast %67 : vector<8xf32> to vector<8x1xf32>
    %69 = arith.addf %66, %68 : vector<8x1xf32>
    %cst_11 = arith.constant dense<0.000000e+00> : vector<8xf32>
    %70 = vector.multi_reduction <add>, %23, %cst_11 [1] : vector<8x32xf32> to vector<8xf32>
    %71 = vector.shape_cast %70 : vector<8xf32> to vector<8x1xf32>
    %72 = arith.addf %69, %71 : vector<8x1xf32>
    %cst_12 = arith.constant dense<0.000000e+00> : vector<8xf32>
    %73 = vector.multi_reduction <add>, %26, %cst_12 [1] : vector<8x32xf32> to vector<8xf32>
    %74 = vector.shape_cast %73 : vector<8xf32> to vector<8x1xf32>
    %75 = arith.addf %72, %74 : vector<8x1xf32>
    %cst_13 = arith.constant dense<0.000000e+00> : vector<8xf32>
    %76 = vector.multi_reduction <add>, %29, %cst_13 [1] : vector<8x32xf32> to vector<8xf32>
    %77 = vector.shape_cast %76 : vector<8xf32> to vector<8x1xf32>
    %78 = arith.addf %75, %77 : vector<8x1xf32>
    %cst_14 = arith.constant dense<0.000000e+00> : vector<8xf32>
    %79 = vector.multi_reduction <add>, %32, %cst_14 [1] : vector<8x32xf32> to vector<8xf32>
    %80 = vector.shape_cast %79 : vector<8xf32> to vector<8x1xf32>
    %81 = arith.addf %78, %80 : vector<8x1xf32>
    %cst_15 = arith.constant dense<0.000000e+00> : vector<8xf32>
    %82 = vector.multi_reduction <add>, %35, %cst_15 [1] : vector<8x32xf32> to vector<8xf32>
    %83 = vector.shape_cast %82 : vector<8xf32> to vector<8x1xf32>
    %84 = arith.addf %81, %83 : vector<8x1xf32>
    %cst_16 = arith.constant dense<0.000000e+00> : vector<8xf32>
    %85 = vector.multi_reduction <add>, %38, %cst_16 [1] : vector<8x32xf32> to vector<8xf32>
    %86 = vector.shape_cast %85 : vector<8xf32> to vector<8x1xf32>
    %87 = arith.addf %84, %86 : vector<8x1xf32>
    %cst_17 = arith.constant dense<0.000000e+00> : vector<8xf32>
    %88 = vector.multi_reduction <add>, %41, %cst_17 [1] : vector<8x32xf32> to vector<8xf32>
    %89 = vector.shape_cast %88 : vector<8xf32> to vector<8x1xf32>
    %90 = arith.addf %87, %89 : vector<8x1xf32>
    %cst_18 = arith.constant dense<0.000000e+00> : vector<8xf32>
    %91 = vector.multi_reduction <add>, %44, %cst_18 [1] : vector<8x32xf32> to vector<8xf32>
    %92 = vector.shape_cast %91 : vector<8xf32> to vector<8x1xf32>
    %93 = arith.addf %90, %92 : vector<8x1xf32>
    %cst_19 = arith.constant dense<0.000000e+00> : vector<8xf32>
    %94 = vector.multi_reduction <add>, %47, %cst_19 [1] : vector<8x32xf32> to vector<8xf32>
    %95 = vector.shape_cast %94 : vector<8xf32> to vector<8x1xf32>
    %96 = arith.addf %93, %95 : vector<8x1xf32>
    %cst_20 = arith.constant dense<0.000000e+00> : vector<8xf32>
    %97 = vector.multi_reduction <add>, %50, %cst_20 [1] : vector<8x32xf32> to vector<8xf32>
    %98 = vector.shape_cast %97 : vector<8xf32> to vector<8x1xf32>
    %99 = arith.addf %96, %98 : vector<8x1xf32>
    %cst_21 = arith.constant dense<0.000000e+00> : vector<8xf32>
    %100 = vector.multi_reduction <add>, %53, %cst_21 [1] : vector<8x32xf32> to vector<8xf32>
    %101 = vector.shape_cast %100 : vector<8xf32> to vector<8x1xf32>
    %102 = arith.addf %99, %101 : vector<8x1xf32>
    %cst_22 = arith.constant 0.001953125 : f32
    %103 = vector.broadcast %cst_22 : f32 to vector<8x1xf32>
    %104 = arith.mulf %102, %103 : vector<8x1xf32>
    %cst_23 = arith.constant 0.000000e+00 : f32
    %105 = vector.broadcast %cst_23 : f32 to vector<8x1xf32>
    %106 = vector.broadcast %104 : vector<8x1xf32> to vector<8x32xf32>
    %107 = arith.subf %8, %106 : vector<8x32xf32>
    %108 = arith.mulf %107, %107 : vector<8x32xf32>
    %cst_24 = arith.constant dense<0.000000e+00> : vector<8xf32>
    %109 = vector.multi_reduction <add>, %108, %cst_24 [1] : vector<8x32xf32> to vector<8xf32>
    %110 = vector.shape_cast %109 : vector<8xf32> to vector<8x1xf32>
    %111 = arith.addf %105, %110 : vector<8x1xf32>
    %112 = vector.broadcast %104 : vector<8x1xf32> to vector<8x32xf32>
    %113 = arith.subf %11, %112 : vector<8x32xf32>
    %114 = arith.mulf %113, %113 : vector<8x32xf32>
    %cst_25 = arith.constant dense<0.000000e+00> : vector<8xf32>
    %115 = vector.multi_reduction <add>, %114, %cst_25 [1] : vector<8x32xf32> to vector<8xf32>
    %116 = vector.shape_cast %115 : vector<8xf32> to vector<8x1xf32>
    %117 = arith.addf %111, %116 : vector<8x1xf32>
    %118 = vector.broadcast %104 : vector<8x1xf32> to vector<8x32xf32>
    %119 = arith.subf %14, %118 : vector<8x32xf32>
    %120 = arith.mulf %119, %119 : vector<8x32xf32>
    %cst_26 = arith.constant dense<0.000000e+00> : vector<8xf32>
    %121 = vector.multi_reduction <add>, %120, %cst_26 [1] : vector<8x32xf32> to vector<8xf32>
    %122 = vector.shape_cast %121 : vector<8xf32> to vector<8x1xf32>
    %123 = arith.addf %117, %122 : vector<8x1xf32>
    %124 = vector.broadcast %104 : vector<8x1xf32> to vector<8x32xf32>
    %125 = arith.subf %17, %124 : vector<8x32xf32>
    %126 = arith.mulf %125, %125 : vector<8x32xf32>
    %cst_27 = arith.constant dense<0.000000e+00> : vector<8xf32>
    %127 = vector.multi_reduction <add>, %126, %cst_27 [1] : vector<8x32xf32> to vector<8xf32>
    %128 = vector.shape_cast %127 : vector<8xf32> to vector<8x1xf32>
    %129 = arith.addf %123, %128 : vector<8x1xf32>
    %130 = vector.broadcast %104 : vector<8x1xf32> to vector<8x32xf32>
    %131 = arith.subf %20, %130 : vector<8x32xf32>
    %132 = arith.mulf %131, %131 : vector<8x32xf32>
    %cst_28 = arith.constant dense<0.000000e+00> : vector<8xf32>
    %133 = vector.multi_reduction <add>, %132, %cst_28 [1] : vector<8x32xf32> to vector<8xf32>
    %134 = vector.shape_cast %133 : vector<8xf32> to vector<8x1xf32>
    %135 = arith.addf %129, %134 : vector<8x1xf32>
    %136 = vector.broadcast %104 : vector<8x1xf32> to vector<8x32xf32>
    %137 = arith.subf %23, %136 : vector<8x32xf32>
    %138 = arith.mulf %137, %137 : vector<8x32xf32>
    %cst_29 = arith.constant dense<0.000000e+00> : vector<8xf32>
    %139 = vector.multi_reduction <add>, %138, %cst_29 [1] : vector<8x32xf32> to vector<8xf32>
    %140 = vector.shape_cast %139 : vector<8xf32> to vector<8x1xf32>
    %141 = arith.addf %135, %140 : vector<8x1xf32>
    %142 = vector.broadcast %104 : vector<8x1xf32> to vector<8x32xf32>
    %143 = arith.subf %26, %142 : vector<8x32xf32>
    %144 = arith.mulf %143, %143 : vector<8x32xf32>
    %cst_30 = arith.constant dense<0.000000e+00> : vector<8xf32>
    %145 = vector.multi_reduction <add>, %144, %cst_30 [1] : vector<8x32xf32> to vector<8xf32>
    %146 = vector.shape_cast %145 : vector<8xf32> to vector<8x1xf32>
    %147 = arith.addf %141, %146 : vector<8x1xf32>
    %148 = vector.broadcast %104 : vector<8x1xf32> to vector<8x32xf32>
    %149 = arith.subf %29, %148 : vector<8x32xf32>
    %150 = arith.mulf %149, %149 : vector<8x32xf32>
    %cst_31 = arith.constant dense<0.000000e+00> : vector<8xf32>
    %151 = vector.multi_reduction <add>, %150, %cst_31 [1] : vector<8x32xf32> to vector<8xf32>
    %152 = vector.shape_cast %151 : vector<8xf32> to vector<8x1xf32>
    %153 = arith.addf %147, %152 : vector<8x1xf32>
    %154 = vector.broadcast %104 : vector<8x1xf32> to vector<8x32xf32>
    %155 = arith.subf %32, %154 : vector<8x32xf32>
    %156 = arith.mulf %155, %155 : vector<8x32xf32>
    %cst_32 = arith.constant dense<0.000000e+00> : vector<8xf32>
    %157 = vector.multi_reduction <add>, %156, %cst_32 [1] : vector<8x32xf32> to vector<8xf32>
    %158 = vector.shape_cast %157 : vector<8xf32> to vector<8x1xf32>
    %159 = arith.addf %153, %158 : vector<8x1xf32>
    %160 = vector.broadcast %104 : vector<8x1xf32> to vector<8x32xf32>
    %161 = arith.subf %35, %160 : vector<8x32xf32>
    %162 = arith.mulf %161, %161 : vector<8x32xf32>
    %cst_33 = arith.constant dense<0.000000e+00> : vector<8xf32>
    %163 = vector.multi_reduction <add>, %162, %cst_33 [1] : vector<8x32xf32> to vector<8xf32>
    %164 = vector.shape_cast %163 : vector<8xf32> to vector<8x1xf32>
    %165 = arith.addf %159, %164 : vector<8x1xf32>
    %166 = vector.broadcast %104 : vector<8x1xf32> to vector<8x32xf32>
    %167 = arith.subf %38, %166 : vector<8x32xf32>
    %168 = arith.mulf %167, %167 : vector<8x32xf32>
    %cst_34 = arith.constant dense<0.000000e+00> : vector<8xf32>
    %169 = vector.multi_reduction <add>, %168, %cst_34 [1] : vector<8x32xf32> to vector<8xf32>
    %170 = vector.shape_cast %169 : vector<8xf32> to vector<8x1xf32>
    %171 = arith.addf %165, %170 : vector<8x1xf32>
    %172 = vector.broadcast %104 : vector<8x1xf32> to vector<8x32xf32>
    %173 = arith.subf %41, %172 : vector<8x32xf32>
    %174 = arith.mulf %173, %173 : vector<8x32xf32>
    %cst_35 = arith.constant dense<0.000000e+00> : vector<8xf32>
    %175 = vector.multi_reduction <add>, %174, %cst_35 [1] : vector<8x32xf32> to vector<8xf32>
    %176 = vector.shape_cast %175 : vector<8xf32> to vector<8x1xf32>
    %177 = arith.addf %171, %176 : vector<8x1xf32>
    %178 = vector.broadcast %104 : vector<8x1xf32> to vector<8x32xf32>
    %179 = arith.subf %44, %178 : vector<8x32xf32>
    %180 = arith.mulf %179, %179 : vector<8x32xf32>
    %cst_36 = arith.constant dense<0.000000e+00> : vector<8xf32>
    %181 = vector.multi_reduction <add>, %180, %cst_36 [1] : vector<8x32xf32> to vector<8xf32>
    %182 = vector.shape_cast %181 : vector<8xf32> to vector<8x1xf32>
    %183 = arith.addf %177, %182 : vector<8x1xf32>
    %184 = vector.broadcast %104 : vector<8x1xf32> to vector<8x32xf32>
    %185 = arith.subf %47, %184 : vector<8x32xf32>
    %186 = arith.mulf %185, %185 : vector<8x32xf32>
    %cst_37 = arith.constant dense<0.000000e+00> : vector<8xf32>
    %187 = vector.multi_reduction <add>, %186, %cst_37 [1] : vector<8x32xf32> to vector<8xf32>
    %188 = vector.shape_cast %187 : vector<8xf32> to vector<8x1xf32>
    %189 = arith.addf %183, %188 : vector<8x1xf32>
    %190 = vector.broadcast %104 : vector<8x1xf32> to vector<8x32xf32>
    %191 = arith.subf %50, %190 : vector<8x32xf32>
    %192 = arith.mulf %191, %191 : vector<8x32xf32>
    %cst_38 = arith.constant dense<0.000000e+00> : vector<8xf32>
    %193 = vector.multi_reduction <add>, %192, %cst_38 [1] : vector<8x32xf32> to vector<8xf32>
    %194 = vector.shape_cast %193 : vector<8xf32> to vector<8x1xf32>
    %195 = arith.addf %189, %194 : vector<8x1xf32>
    %196 = vector.broadcast %104 : vector<8x1xf32> to vector<8x32xf32>
    %197 = arith.subf %53, %196 : vector<8x32xf32>
    %198 = arith.mulf %197, %197 : vector<8x32xf32>
    %cst_39 = arith.constant dense<0.000000e+00> : vector<8xf32>
    %199 = vector.multi_reduction <add>, %198, %cst_39 [1] : vector<8x32xf32> to vector<8xf32>
    %200 = vector.shape_cast %199 : vector<8xf32> to vector<8x1xf32>
    %201 = arith.addf %195, %200 : vector<8x1xf32>
    %cst_40 = arith.constant 0.001953125 : f32
    %202 = vector.broadcast %cst_40 : f32 to vector<8x1xf32>
    %203 = arith.mulf %201, %202 : vector<8x1xf32>
    %c0_41 = arith.constant 0 : index
    %c0_42 = arith.constant 0 : index
    %204 = vector.load %arg3[%c0_41, %c0_42] : memref<8x1xf32, #tpu.memory_space<vmem>>, vector<8x1xf32>
    %cst_43 = arith.constant 9.99999974E-6 : f32
    %205 = vector.broadcast %cst_43 : f32 to vector<8x1xf32>
    %206 = arith.addf %203, %205 : vector<8x1xf32>
    %207 = math.rsqrt %206 : vector<8x1xf32>
    %208 = arith.mulf %204, %207 : vector<8x1xf32>
    %c0_44 = arith.constant 0 : index
    %c0_45 = arith.constant 0 : index
    %209 = vector.load %arg4[%c0_44, %c0_45] : memref<8x1xf32, #tpu.memory_space<vmem>>, vector<8x1xf32>
    %210 = arith.mulf %104, %208 : vector<8x1xf32>
    %211 = arith.subf %209, %210 : vector<8x1xf32>
    %212 = vector.broadcast %208 : vector<8x1xf32> to vector<8x32xf32>
    %213 = arith.mulf %8, %212 : vector<8x32xf32>
    %214 = vector.broadcast %211 : vector<8x1xf32> to vector<8x32xf32>
    %215 = arith.addf %213, %214 : vector<8x32xf32>
    %cst_46 = arith.constant 0.000000e+00 : f32
    %216 = vector.broadcast %cst_46 : f32 to vector<8x32xf32>
    %217 = arith.cmpf oge, %215, %216 : vector<8x32xf32>
    %cst_47 = arith.constant 2.000000e-01 : f32
    %218 = vector.broadcast %cst_47 : f32 to vector<8x32xf32>
    %219 = arith.mulf %218, %215 : vector<8x32xf32>
    %220 = arith.select %217, %215, %219 : vector<8x32xi1>, vector<8x32xf32>
    %c0_48 = arith.constant 0 : index
    %c0_49 = arith.constant 0 : index
    %221 = vector.load %arg5[%c0_48, %c0_49] : memref<128x32xf32, #tpu.memory_space<vmem>>, vector<8x32xf32>
    tpu.vector_store %arg5[%c0_48, %c0_49], %220 {strides = array<i32>} : memref<128x32xf32, #tpu.memory_space<vmem>>, vector<8x32xf32>,
    %222 = vector.broadcast %208 : vector<8x1xf32> to vector<8x32xf32>
    %223 = arith.mulf %11, %222 : vector<8x32xf32>
    %224 = vector.broadcast %211 : vector<8x1xf32> to vector<8x32xf32>
    %225 = arith.addf %223, %224 : vector<8x32xf32>
    %cst_50 = arith.constant 0.000000e+00 : f32
    %226 = vector.broadcast %cst_50 : f32 to vector<8x32xf32>
    %227 = arith.cmpf oge, %225, %226 : vector<8x32xf32>
    %cst_51 = arith.constant 2.000000e-01 : f32
    %228 = vector.broadcast %cst_51 : f32 to vector<8x32xf32>
    %229 = arith.mulf %228, %225 : vector<8x32xf32>
    %230 = arith.select %227, %225, %229 : vector<8x32xi1>, vector<8x32xf32>
    %c8 = arith.constant 8 : index
    %c0_52 = arith.constant 0 : index
    %231 = vector.load %arg5[%c8, %c0_52] : memref<128x32xf32, #tpu.memory_space<vmem>>, vector<8x32xf32>
    tpu.vector_store %arg5[%c8, %c0_52], %230 {strides = array<i32>} : memref<128x32xf32, #tpu.memory_space<vmem>>, vector<8x32xf32>,
    %232 = vector.broadcast %208 : vector<8x1xf32> to vector<8x32xf32>
    %233 = arith.mulf %14, %232 : vector<8x32xf32>
    %234 = vector.broadcast %211 : vector<8x1xf32> to vector<8x32xf32>
    %235 = arith.addf %233, %234 : vector<8x32xf32>
    %cst_53 = arith.constant 0.000000e+00 : f32
    %236 = vector.broadcast %cst_53 : f32 to vector<8x32xf32>
    %237 = arith.cmpf oge, %235, %236 : vector<8x32xf32>
    %cst_54 = arith.constant 2.000000e-01 : f32
    %238 = vector.broadcast %cst_54 : f32 to vector<8x32xf32>
    %239 = arith.mulf %238, %235 : vector<8x32xf32>
    %240 = arith.select %237, %235, %239 : vector<8x32xi1>, vector<8x32xf32>
    %c16 = arith.constant 16 : index
    %c0_55 = arith.constant 0 : index
    %241 = vector.load %arg5[%c16, %c0_55] : memref<128x32xf32, #tpu.memory_space<vmem>>, vector<8x32xf32>
    tpu.vector_store %arg5[%c16, %c0_55], %240 {strides = array<i32>} : memref<128x32xf32, #tpu.memory_space<vmem>>, vector<8x32xf32>,
    %242 = vector.broadcast %208 : vector<8x1xf32> to vector<8x32xf32>
    %243 = arith.mulf %17, %242 : vector<8x32xf32>
    %244 = vector.broadcast %211 : vector<8x1xf32> to vector<8x32xf32>
    %245 = arith.addf %243, %244 : vector<8x32xf32>
    %cst_56 = arith.constant 0.000000e+00 : f32
    %246 = vector.broadcast %cst_56 : f32 to vector<8x32xf32>
    %247 = arith.cmpf oge, %245, %246 : vector<8x32xf32>
    %cst_57 = arith.constant 2.000000e-01 : f32
    %248 = vector.broadcast %cst_57 : f32 to vector<8x32xf32>
    %249 = arith.mulf %248, %245 : vector<8x32xf32>
    %250 = arith.select %247, %245, %249 : vector<8x32xi1>, vector<8x32xf32>
    %c24 = arith.constant 24 : index
    %c0_58 = arith.constant 0 : index
    %251 = vector.load %arg5[%c24, %c0_58] : memref<128x32xf32, #tpu.memory_space<vmem>>, vector<8x32xf32>
    tpu.vector_store %arg5[%c24, %c0_58], %250 {strides = array<i32>} : memref<128x32xf32, #tpu.memory_space<vmem>>, vector<8x32xf32>,
    %252 = vector.broadcast %208 : vector<8x1xf32> to vector<8x32xf32>
    %253 = arith.mulf %20, %252 : vector<8x32xf32>
    %254 = vector.broadcast %211 : vector<8x1xf32> to vector<8x32xf32>
    %255 = arith.addf %253, %254 : vector<8x32xf32>
    %cst_59 = arith.constant 0.000000e+00 : f32
    %256 = vector.broadcast %cst_59 : f32 to vector<8x32xf32>
    %257 = arith.cmpf oge, %255, %256 : vector<8x32xf32>
    %cst_60 = arith.constant 2.000000e-01 : f32
    %258 = vector.broadcast %cst_60 : f32 to vector<8x32xf32>
    %259 = arith.mulf %258, %255 : vector<8x32xf32>
    %260 = arith.select %257, %255, %259 : vector<8x32xi1>, vector<8x32xf32>
    %c32 = arith.constant 32 : index
    %c0_61 = arith.constant 0 : index
    %261 = vector.load %arg5[%c32, %c0_61] : memref<128x32xf32, #tpu.memory_space<vmem>>, vector<8x32xf32>
    tpu.vector_store %arg5[%c32, %c0_61], %260 {strides = array<i32>} : memref<128x32xf32, #tpu.memory_space<vmem>>, vector<8x32xf32>,
    %262 = vector.broadcast %208 : vector<8x1xf32> to vector<8x32xf32>
    %263 = arith.mulf %23, %262 : vector<8x32xf32>
    %264 = vector.broadcast %211 : vector<8x1xf32> to vector<8x32xf32>
    %265 = arith.addf %263, %264 : vector<8x32xf32>
    %cst_62 = arith.constant 0.000000e+00 : f32
    %266 = vector.broadcast %cst_62 : f32 to vector<8x32xf32>
    %267 = arith.cmpf oge, %265, %266 : vector<8x32xf32>
    %cst_63 = arith.constant 2.000000e-01 : f32
    %268 = vector.broadcast %cst_63 : f32 to vector<8x32xf32>
    %269 = arith.mulf %268, %265 : vector<8x32xf32>
    %270 = arith.select %267, %265, %269 : vector<8x32xi1>, vector<8x32xf32>
    %c40 = arith.constant 40 : index
    %c0_64 = arith.constant 0 : index
    %271 = vector.load %arg5[%c40, %c0_64] : memref<128x32xf32, #tpu.memory_space<vmem>>, vector<8x32xf32>
    tpu.vector_store %arg5[%c40, %c0_64], %270 {strides = array<i32>} : memref<128x32xf32, #tpu.memory_space<vmem>>, vector<8x32xf32>,
    %272 = vector.broadcast %208 : vector<8x1xf32> to vector<8x32xf32>
    %273 = arith.mulf %26, %272 : vector<8x32xf32>
    %274 = vector.broadcast %211 : vector<8x1xf32> to vector<8x32xf32>
    %275 = arith.addf %273, %274 : vector<8x32xf32>
    %cst_65 = arith.constant 0.000000e+00 : f32
    %276 = vector.broadcast %cst_65 : f32 to vector<8x32xf32>
    %277 = arith.cmpf oge, %275, %276 : vector<8x32xf32>
    %cst_66 = arith.constant 2.000000e-01 : f32
    %278 = vector.broadcast %cst_66 : f32 to vector<8x32xf32>
    %279 = arith.mulf %278, %275 : vector<8x32xf32>
    %280 = arith.select %277, %275, %279 : vector<8x32xi1>, vector<8x32xf32>
    %c48 = arith.constant 48 : index
    %c0_67 = arith.constant 0 : index
    %281 = vector.load %arg5[%c48, %c0_67] : memref<128x32xf32, #tpu.memory_space<vmem>>, vector<8x32xf32>
    tpu.vector_store %arg5[%c48, %c0_67], %280 {strides = array<i32>} : memref<128x32xf32, #tpu.memory_space<vmem>>, vector<8x32xf32>,
    %282 = vector.broadcast %208 : vector<8x1xf32> to vector<8x32xf32>
    %283 = arith.mulf %29, %282 : vector<8x32xf32>
    %284 = vector.broadcast %211 : vector<8x1xf32> to vector<8x32xf32>
    %285 = arith.addf %283, %284 : vector<8x32xf32>
    %cst_68 = arith.constant 0.000000e+00 : f32
    %286 = vector.broadcast %cst_68 : f32 to vector<8x32xf32>
    %287 = arith.cmpf oge, %285, %286 : vector<8x32xf32>
    %cst_69 = arith.constant 2.000000e-01 : f32
    %288 = vector.broadcast %cst_69 : f32 to vector<8x32xf32>
    %289 = arith.mulf %288, %285 : vector<8x32xf32>
    %290 = arith.select %287, %285, %289 : vector<8x32xi1>, vector<8x32xf32>
    %c56 = arith.constant 56 : index
    %c0_70 = arith.constant 0 : index
    %291 = vector.load %arg5[%c56, %c0_70] : memref<128x32xf32, #tpu.memory_space<vmem>>, vector<8x32xf32>
    tpu.vector_store %arg5[%c56, %c0_70], %290 {strides = array<i32>} : memref<128x32xf32, #tpu.memory_space<vmem>>, vector<8x32xf32>,
    %292 = vector.broadcast %208 : vector<8x1xf32> to vector<8x32xf32>
    %293 = arith.mulf %32, %292 : vector<8x32xf32>
    %294 = vector.broadcast %211 : vector<8x1xf32> to vector<8x32xf32>
    %295 = arith.addf %293, %294 : vector<8x32xf32>
    %cst_71 = arith.constant 0.000000e+00 : f32
    %296 = vector.broadcast %cst_71 : f32 to vector<8x32xf32>
    %297 = arith.cmpf oge, %295, %296 : vector<8x32xf32>
    %cst_72 = arith.constant 2.000000e-01 : f32
    %298 = vector.broadcast %cst_72 : f32 to vector<8x32xf32>
    %299 = arith.mulf %298, %295 : vector<8x32xf32>
    %300 = arith.select %297, %295, %299 : vector<8x32xi1>, vector<8x32xf32>
    %c64 = arith.constant 64 : index
    %c0_73 = arith.constant 0 : index
    %301 = vector.load %arg5[%c64, %c0_73] : memref<128x32xf32, #tpu.memory_space<vmem>>, vector<8x32xf32>
    tpu.vector_store %arg5[%c64, %c0_73], %300 {strides = array<i32>} : memref<128x32xf32, #tpu.memory_space<vmem>>, vector<8x32xf32>,
    %302 = vector.broadcast %208 : vector<8x1xf32> to vector<8x32xf32>
    %303 = arith.mulf %35, %302 : vector<8x32xf32>
    %304 = vector.broadcast %211 : vector<8x1xf32> to vector<8x32xf32>
    %305 = arith.addf %303, %304 : vector<8x32xf32>
    %cst_74 = arith.constant 0.000000e+00 : f32
    %306 = vector.broadcast %cst_74 : f32 to vector<8x32xf32>
    %307 = arith.cmpf oge, %305, %306 : vector<8x32xf32>
    %cst_75 = arith.constant 2.000000e-01 : f32
    %308 = vector.broadcast %cst_75 : f32 to vector<8x32xf32>
    %309 = arith.mulf %308, %305 : vector<8x32xf32>
    %310 = arith.select %307, %305, %309 : vector<8x32xi1>, vector<8x32xf32>
    %c72 = arith.constant 72 : index
    %c0_76 = arith.constant 0 : index
    %311 = vector.load %arg5[%c72, %c0_76] : memref<128x32xf32, #tpu.memory_space<vmem>>, vector<8x32xf32>
    tpu.vector_store %arg5[%c72, %c0_76], %310 {strides = array<i32>} : memref<128x32xf32, #tpu.memory_space<vmem>>, vector<8x32xf32>,
    %312 = vector.broadcast %208 : vector<8x1xf32> to vector<8x32xf32>
    %313 = arith.mulf %38, %312 : vector<8x32xf32>
    %314 = vector.broadcast %211 : vector<8x1xf32> to vector<8x32xf32>
    %315 = arith.addf %313, %314 : vector<8x32xf32>
    %cst_77 = arith.constant 0.000000e+00 : f32
    %316 = vector.broadcast %cst_77 : f32 to vector<8x32xf32>
    %317 = arith.cmpf oge, %315, %316 : vector<8x32xf32>
    %cst_78 = arith.constant 2.000000e-01 : f32
    %318 = vector.broadcast %cst_78 : f32 to vector<8x32xf32>
    %319 = arith.mulf %318, %315 : vector<8x32xf32>
    %320 = arith.select %317, %315, %319 : vector<8x32xi1>, vector<8x32xf32>
    %c80 = arith.constant 80 : index
    %c0_79 = arith.constant 0 : index
    %321 = vector.load %arg5[%c80, %c0_79] : memref<128x32xf32, #tpu.memory_space<vmem>>, vector<8x32xf32>
    tpu.vector_store %arg5[%c80, %c0_79], %320 {strides = array<i32>} : memref<128x32xf32, #tpu.memory_space<vmem>>, vector<8x32xf32>,
    %322 = vector.broadcast %208 : vector<8x1xf32> to vector<8x32xf32>
    %323 = arith.mulf %41, %322 : vector<8x32xf32>
    %324 = vector.broadcast %211 : vector<8x1xf32> to vector<8x32xf32>
    %325 = arith.addf %323, %324 : vector<8x32xf32>
    %cst_80 = arith.constant 0.000000e+00 : f32
    %326 = vector.broadcast %cst_80 : f32 to vector<8x32xf32>
    %327 = arith.cmpf oge, %325, %326 : vector<8x32xf32>
    %cst_81 = arith.constant 2.000000e-01 : f32
    %328 = vector.broadcast %cst_81 : f32 to vector<8x32xf32>
    %329 = arith.mulf %328, %325 : vector<8x32xf32>
    %330 = arith.select %327, %325, %329 : vector<8x32xi1>, vector<8x32xf32>
    %c88 = arith.constant 88 : index
    %c0_82 = arith.constant 0 : index
    %331 = vector.load %arg5[%c88, %c0_82] : memref<128x32xf32, #tpu.memory_space<vmem>>, vector<8x32xf32>
    tpu.vector_store %arg5[%c88, %c0_82], %330 {strides = array<i32>} : memref<128x32xf32, #tpu.memory_space<vmem>>, vector<8x32xf32>,
    %332 = vector.broadcast %208 : vector<8x1xf32> to vector<8x32xf32>
    %333 = arith.mulf %44, %332 : vector<8x32xf32>
    %334 = vector.broadcast %211 : vector<8x1xf32> to vector<8x32xf32>
    %335 = arith.addf %333, %334 : vector<8x32xf32>
    %cst_83 = arith.constant 0.000000e+00 : f32
    %336 = vector.broadcast %cst_83 : f32 to vector<8x32xf32>
    %337 = arith.cmpf oge, %335, %336 : vector<8x32xf32>
    %cst_84 = arith.constant 2.000000e-01 : f32
    %338 = vector.broadcast %cst_84 : f32 to vector<8x32xf32>
    %339 = arith.mulf %338, %335 : vector<8x32xf32>
    %340 = arith.select %337, %335, %339 : vector<8x32xi1>, vector<8x32xf32>
    %c96 = arith.constant 96 : index
    %c0_85 = arith.constant 0 : index
    %341 = vector.load %arg5[%c96, %c0_85] : memref<128x32xf32, #tpu.memory_space<vmem>>, vector<8x32xf32>
    tpu.vector_store %arg5[%c96, %c0_85], %340 {strides = array<i32>} : memref<128x32xf32, #tpu.memory_space<vmem>>, vector<8x32xf32>,
    %342 = vector.broadcast %208 : vector<8x1xf32> to vector<8x32xf32>
    %343 = arith.mulf %47, %342 : vector<8x32xf32>
    %344 = vector.broadcast %211 : vector<8x1xf32> to vector<8x32xf32>
    %345 = arith.addf %343, %344 : vector<8x32xf32>
    %cst_86 = arith.constant 0.000000e+00 : f32
    %346 = vector.broadcast %cst_86 : f32 to vector<8x32xf32>
    %347 = arith.cmpf oge, %345, %346 : vector<8x32xf32>
    %cst_87 = arith.constant 2.000000e-01 : f32
    %348 = vector.broadcast %cst_87 : f32 to vector<8x32xf32>
    %349 = arith.mulf %348, %345 : vector<8x32xf32>
    %350 = arith.select %347, %345, %349 : vector<8x32xi1>, vector<8x32xf32>
    %c104 = arith.constant 104 : index
    %c0_88 = arith.constant 0 : index
    %351 = vector.load %arg5[%c104, %c0_88] : memref<128x32xf32, #tpu.memory_space<vmem>>, vector<8x32xf32>
    tpu.vector_store %arg5[%c104, %c0_88], %350 {strides = array<i32>} : memref<128x32xf32, #tpu.memory_space<vmem>>, vector<8x32xf32>,
    %352 = vector.broadcast %208 : vector<8x1xf32> to vector<8x32xf32>
    %353 = arith.mulf %50, %352 : vector<8x32xf32>
    %354 = vector.broadcast %211 : vector<8x1xf32> to vector<8x32xf32>
    %355 = arith.addf %353, %354 : vector<8x32xf32>
    %cst_89 = arith.constant 0.000000e+00 : f32
    %356 = vector.broadcast %cst_89 : f32 to vector<8x32xf32>
    %357 = arith.cmpf oge, %355, %356 : vector<8x32xf32>
    %cst_90 = arith.constant 2.000000e-01 : f32
    %358 = vector.broadcast %cst_90 : f32 to vector<8x32xf32>
    %359 = arith.mulf %358, %355 : vector<8x32xf32>
    %360 = arith.select %357, %355, %359 : vector<8x32xi1>, vector<8x32xf32>
    %c112 = arith.constant 112 : index
    %c0_91 = arith.constant 0 : index
    %361 = vector.load %arg5[%c112, %c0_91] : memref<128x32xf32, #tpu.memory_space<vmem>>, vector<8x32xf32>
    tpu.vector_store %arg5[%c112, %c0_91], %360 {strides = array<i32>} : memref<128x32xf32, #tpu.memory_space<vmem>>, vector<8x32xf32>,
    %362 = vector.broadcast %208 : vector<8x1xf32> to vector<8x32xf32>
    %363 = arith.mulf %53, %362 : vector<8x32xf32>
    %364 = vector.broadcast %211 : vector<8x1xf32> to vector<8x32xf32>
    %365 = arith.addf %363, %364 : vector<8x32xf32>
    %cst_92 = arith.constant 0.000000e+00 : f32
    %366 = vector.broadcast %cst_92 : f32 to vector<8x32xf32>
    %367 = arith.cmpf oge, %365, %366 : vector<8x32xf32>
    %cst_93 = arith.constant 2.000000e-01 : f32
    %368 = vector.broadcast %cst_93 : f32 to vector<8x32xf32>
    %369 = arith.mulf %368, %365 : vector<8x32xf32>
    %370 = arith.select %367, %365, %369 : vector<8x32xi1>, vector<8x32xf32>
    %c120 = arith.constant 120 : index
    %c0_94 = arith.constant 0 : index
    %371 = vector.load %arg5[%c120, %c0_94] : memref<128x32xf32, #tpu.memory_space<vmem>>, vector<8x32xf32>
    tpu.vector_store %arg5[%c120, %c0_94], %370 {strides = array<i32>} : memref<128x32xf32, #tpu.memory_space<vmem>>, vector<8x32xf32>,
    return
  }
}

module attributes {stable_mosaic.version = 11 : i64} {
  func.func @_conv3x3_kernel(%arg0: memref<8x512xf32, #tpu.memory_space<vmem>>, %arg1: memref<3x72xf32, #tpu.memory_space<vmem>>, %arg2: memref<3x1xf32, #tpu.memory_space<vmem>>, %arg3: memref<3x512xf32, #tpu.memory_space<vmem>>, %arg4: memref<8x768xf32, #tpu.memory_space<vmem>>, %arg5: memref<72x512xf32, #tpu.memory_space<vmem>>) attributes {dimension_semantics = [], scalar_prefetch = 0 : i64, scratch_operands = 2 : i64, tpu.core_type = #tpu.core_type<tc>} {
    %c0 = arith.constant 0 : index
    %c0_0 = arith.constant 0 : index
    %0 = vector.load %arg0[%c0, %c0_0] : memref<8x512xf32, #tpu.memory_space<vmem>>, vector<8x512xf32>
    %cst = arith.constant 0.000000e+00 : f32
    %1 = vector.broadcast %cst : f32 to vector<8x128xf32>
    %c0_1 = arith.constant 0 : index
    %c0_2 = arith.constant 0 : index
    %2 = vector.load %arg4[%c0_1, %c0_2] : memref<8x768xf32, #tpu.memory_space<vmem>>, vector<8x128xf32>
    tpu.vector_store %arg4[%c0_1, %c0_2], %1 {strides = array<i32>} : memref<8x768xf32, #tpu.memory_space<vmem>>, vector<8x128xf32>,
    %cst_3 = arith.constant 0.000000e+00 : f32
    %3 = vector.broadcast %cst_3 : f32 to vector<8x128xf32>
    %c0_4 = arith.constant 0 : index
    %c640 = arith.constant 640 : index
    %4 = vector.load %arg4[%c0_4, %c640] : memref<8x768xf32, #tpu.memory_space<vmem>>, vector<8x128xf32>
    tpu.vector_store %arg4[%c0_4, %c640], %3 {strides = array<i32>} : memref<8x768xf32, #tpu.memory_space<vmem>>, vector<8x128xf32>,
    %c0_5 = arith.constant 0 : index
    %c128 = arith.constant 128 : index
    %5 = vector.load %arg4[%c0_5, %c128] : memref<8x768xf32, #tpu.memory_space<vmem>>, vector<8x512xf32>
    tpu.vector_store %arg4[%c0_5, %c128], %0 {strides = array<i32>} : memref<8x768xf32, #tpu.memory_space<vmem>>, vector<8x512xf32>,
    %6 = tpu.iota {dimensions = array<i32: 1>} : vector<1x512xi32>
    %c15_i32 = arith.constant 15 : i32
    %7 = vector.broadcast %c15_i32 : i32 to vector<1x512xi32>
    %8 = arith.andi %6, %7 : vector<1x512xi32>
    %c4_i32 = arith.constant 4 : i32
    %9 = vector.broadcast %c4_i32 : i32 to vector<1x512xi32>
    %10 = arith.shrsi %6, %9 : vector<1x512xi32>
    %c15_i32_6 = arith.constant 15 : i32
    %11 = vector.broadcast %c15_i32_6 : i32 to vector<1x512xi32>
    %12 = arith.andi %10, %11 : vector<1x512xi32>
    %c1_i32 = arith.constant 1 : i32
    %13 = vector.broadcast %c1_i32 : i32 to vector<1x512xi32>
    %14 = arith.cmpi sge, %12, %13 : vector<1x512xi32>
    %c14_i32 = arith.constant 14 : i32
    %15 = vector.broadcast %c14_i32 : i32 to vector<1x512xi32>
    %16 = arith.cmpi sle, %12, %15 : vector<1x512xi32>
    %c1_i32_7 = arith.constant 1 : i32
    %17 = vector.broadcast %c1_i32_7 : i32 to vector<1x512xi32>
    %18 = arith.cmpi sge, %8, %17 : vector<1x512xi32>
    %c14_i32_8 = arith.constant 14 : i32
    %19 = vector.broadcast %c14_i32_8 : i32 to vector<1x512xi32>
    %20 = arith.cmpi sle, %8, %19 : vector<1x512xi32>
    %21 = arith.andi %14, %18 : vector<1x512xi1>
    %22 = arith.andi %14, %20 : vector<1x512xi1>
    %23 = arith.andi %16, %18 : vector<1x512xi1>
    %24 = arith.andi %16, %20 : vector<1x512xi1>
    %c0_9 = arith.constant 0 : index
    %c111 = arith.constant 111 : index
    %25 = vector.load %arg4[%c0_9, %c111] : memref<8x768xf32, #tpu.memory_space<vmem>>, vector<8x512xf32>
    %cst_10 = arith.constant 0.000000e+00 : f32
    %26 = vector.shape_cast %21 : vector<1x512xi1> to vector<1x512xi1>
    %27 = vector.broadcast %26 : vector<1x512xi1> to vector<8x512xi1>
    %28 = vector.broadcast %cst_10 : f32 to vector<8x512xf32>
    %29 = arith.select %27, %25, %28 : vector<8x512xi1>, vector<8x512xf32>
    %c0_11 = arith.constant 0 : index
    %c0_12 = arith.constant 0 : index
    %30 = vector.load %arg5[%c0_11, %c0_12] : memref<72x512xf32, #tpu.memory_space<vmem>>, vector<8x512xf32>
    tpu.vector_store %arg5[%c0_11, %c0_12], %29 {strides = array<i32>} : memref<72x512xf32, #tpu.memory_space<vmem>>, vector<8x512xf32>,
    %c0_13 = arith.constant 0 : index
    %c112 = arith.constant 112 : index
    %31 = vector.load %arg4[%c0_13, %c112] : memref<8x768xf32, #tpu.memory_space<vmem>>, vector<8x512xf32>
    %cst_14 = arith.constant 0.000000e+00 : f32
    %32 = vector.shape_cast %14 : vector<1x512xi1> to vector<1x512xi1>
    %33 = vector.broadcast %32 : vector<1x512xi1> to vector<8x512xi1>
    %34 = vector.broadcast %cst_14 : f32 to vector<8x512xf32>
    %35 = arith.select %33, %31, %34 : vector<8x512xi1>, vector<8x512xf32>
    %c8 = arith.constant 8 : index
    %c0_15 = arith.constant 0 : index
    %36 = vector.load %arg5[%c8, %c0_15] : memref<72x512xf32, #tpu.memory_space<vmem>>, vector<8x512xf32>
    tpu.vector_store %arg5[%c8, %c0_15], %35 {strides = array<i32>} : memref<72x512xf32, #tpu.memory_space<vmem>>, vector<8x512xf32>,
    %c0_16 = arith.constant 0 : index
    %c113 = arith.constant 113 : index
    %37 = vector.load %arg4[%c0_16, %c113] : memref<8x768xf32, #tpu.memory_space<vmem>>, vector<8x512xf32>
    %cst_17 = arith.constant 0.000000e+00 : f32
    %38 = vector.shape_cast %22 : vector<1x512xi1> to vector<1x512xi1>
    %39 = vector.broadcast %38 : vector<1x512xi1> to vector<8x512xi1>
    %40 = vector.broadcast %cst_17 : f32 to vector<8x512xf32>
    %41 = arith.select %39, %37, %40 : vector<8x512xi1>, vector<8x512xf32>
    %c16 = arith.constant 16 : index
    %c0_18 = arith.constant 0 : index
    %42 = vector.load %arg5[%c16, %c0_18] : memref<72x512xf32, #tpu.memory_space<vmem>>, vector<8x512xf32>
    tpu.vector_store %arg5[%c16, %c0_18], %41 {strides = array<i32>} : memref<72x512xf32, #tpu.memory_space<vmem>>, vector<8x512xf32>,
    %c0_19 = arith.constant 0 : index
    %c127 = arith.constant 127 : index
    %43 = vector.load %arg4[%c0_19, %c127] : memref<8x768xf32, #tpu.memory_space<vmem>>, vector<8x512xf32>
    %cst_20 = arith.constant 0.000000e+00 : f32
    %44 = vector.shape_cast %18 : vector<1x512xi1> to vector<1x512xi1>
    %45 = vector.broadcast %44 : vector<1x512xi1> to vector<8x512xi1>
    %46 = vector.broadcast %cst_20 : f32 to vector<8x512xf32>
    %47 = arith.select %45, %43, %46 : vector<8x512xi1>, vector<8x512xf32>
    %c24 = arith.constant 24 : index
    %c0_21 = arith.constant 0 : index
    %48 = vector.load %arg5[%c24, %c0_21] : memref<72x512xf32, #tpu.memory_space<vmem>>, vector<8x512xf32>
    tpu.vector_store %arg5[%c24, %c0_21], %47 {strides = array<i32>} : memref<72x512xf32, #tpu.memory_space<vmem>>, vector<8x512xf32>,
    %c0_22 = arith.constant 0 : index
    %c128_23 = arith.constant 128 : index
    %49 = vector.load %arg4[%c0_22, %c128_23] : memref<8x768xf32, #tpu.memory_space<vmem>>, vector<8x512xf32>
    %c32 = arith.constant 32 : index
    %c0_24 = arith.constant 0 : index
    %50 = vector.load %arg5[%c32, %c0_24] : memref<72x512xf32, #tpu.memory_space<vmem>>, vector<8x512xf32>
    tpu.vector_store %arg5[%c32, %c0_24], %49 {strides = array<i32>} : memref<72x512xf32, #tpu.memory_space<vmem>>, vector<8x512xf32>,
    %c0_25 = arith.constant 0 : index
    %c129 = arith.constant 129 : index
    %51 = vector.load %arg4[%c0_25, %c129] : memref<8x768xf32, #tpu.memory_space<vmem>>, vector<8x512xf32>
    %cst_26 = arith.constant 0.000000e+00 : f32
    %52 = vector.shape_cast %20 : vector<1x512xi1> to vector<1x512xi1>
    %53 = vector.broadcast %52 : vector<1x512xi1> to vector<8x512xi1>
    %54 = vector.broadcast %cst_26 : f32 to vector<8x512xf32>
    %55 = arith.select %53, %51, %54 : vector<8x512xi1>, vector<8x512xf32>
    %c40 = arith.constant 40 : index
    %c0_27 = arith.constant 0 : index
    %56 = vector.load %arg5[%c40, %c0_27] : memref<72x512xf32, #tpu.memory_space<vmem>>, vector<8x512xf32>
    tpu.vector_store %arg5[%c40, %c0_27], %55 {strides = array<i32>} : memref<72x512xf32, #tpu.memory_space<vmem>>, vector<8x512xf32>,
    %c0_28 = arith.constant 0 : index
    %c143 = arith.constant 143 : index
    %57 = vector.load %arg4[%c0_28, %c143] : memref<8x768xf32, #tpu.memory_space<vmem>>, vector<8x512xf32>
    %cst_29 = arith.constant 0.000000e+00 : f32
    %58 = vector.shape_cast %23 : vector<1x512xi1> to vector<1x512xi1>
    %59 = vector.broadcast %58 : vector<1x512xi1> to vector<8x512xi1>
    %60 = vector.broadcast %cst_29 : f32 to vector<8x512xf32>
    %61 = arith.select %59, %57, %60 : vector<8x512xi1>, vector<8x512xf32>
    %c48 = arith.constant 48 : index
    %c0_30 = arith.constant 0 : index
    %62 = vector.load %arg5[%c48, %c0_30] : memref<72x512xf32, #tpu.memory_space<vmem>>, vector<8x512xf32>
    tpu.vector_store %arg5[%c48, %c0_30], %61 {strides = array<i32>} : memref<72x512xf32, #tpu.memory_space<vmem>>, vector<8x512xf32>,
    %c0_31 = arith.constant 0 : index
    %c144 = arith.constant 144 : index
    %63 = vector.load %arg4[%c0_31, %c144] : memref<8x768xf32, #tpu.memory_space<vmem>>, vector<8x512xf32>
    %cst_32 = arith.constant 0.000000e+00 : f32
    %64 = vector.shape_cast %16 : vector<1x512xi1> to vector<1x512xi1>
    %65 = vector.broadcast %64 : vector<1x512xi1> to vector<8x512xi1>
    %66 = vector.broadcast %cst_32 : f32 to vector<8x512xf32>
    %67 = arith.select %65, %63, %66 : vector<8x512xi1>, vector<8x512xf32>
    %c56 = arith.constant 56 : index
    %c0_33 = arith.constant 0 : index
    %68 = vector.load %arg5[%c56, %c0_33] : memref<72x512xf32, #tpu.memory_space<vmem>>, vector<8x512xf32>
    tpu.vector_store %arg5[%c56, %c0_33], %67 {strides = array<i32>} : memref<72x512xf32, #tpu.memory_space<vmem>>, vector<8x512xf32>,
    %c0_34 = arith.constant 0 : index
    %c145 = arith.constant 145 : index
    %69 = vector.load %arg4[%c0_34, %c145] : memref<8x768xf32, #tpu.memory_space<vmem>>, vector<8x512xf32>
    %cst_35 = arith.constant 0.000000e+00 : f32
    %70 = vector.shape_cast %24 : vector<1x512xi1> to vector<1x512xi1>
    %71 = vector.broadcast %70 : vector<1x512xi1> to vector<8x512xi1>
    %72 = vector.broadcast %cst_35 : f32 to vector<8x512xf32>
    %73 = arith.select %71, %69, %72 : vector<8x512xi1>, vector<8x512xf32>
    %c64 = arith.constant 64 : index
    %c0_36 = arith.constant 0 : index
    %74 = vector.load %arg5[%c64, %c0_36] : memref<72x512xf32, #tpu.memory_space<vmem>>, vector<8x512xf32>
    tpu.vector_store %arg5[%c64, %c0_36], %73 {strides = array<i32>} : memref<72x512xf32, #tpu.memory_space<vmem>>, vector<8x512xf32>,
    %c0_37 = arith.constant 0 : index
    %c0_38 = arith.constant 0 : index
    %75 = vector.load %arg1[%c0_37, %c0_38] : memref<3x72xf32, #tpu.memory_space<vmem>>, vector<3x72xf32>
    %c0_39 = arith.constant 0 : index
    %c0_40 = arith.constant 0 : index
    %76 = vector.load %arg5[%c0_39, %c0_40] : memref<72x512xf32, #tpu.memory_space<vmem>>, vector<72x512xf32>
    %77 = arith.truncf %75 : vector<3x72xf32> to vector<3x72xbf16>
    %78 = arith.truncf %76 : vector<72x512xf32> to vector<72x512xbf16>
    %cst_41 = arith.constant dense<0.000000e+00> : vector<3x512xf32>
    %79 = tpu.matmul %77, %78, %cst_41 {dimension_numbers = #tpu.dot_dimension_numbers<[1], [0], [0], [1], [0, 0, 1, 1], [], []>} : vector<3x72xbf16>, vector<72x512xbf16>, vector<3x512xf32> -> vector<3x512xf32>
    %c0_42 = arith.constant 0 : index
    %c0_43 = arith.constant 0 : index
    %80 = vector.load %arg2[%c0_42, %c0_43] : memref<3x1xf32, #tpu.memory_space<vmem>>, vector<3x1xf32>
    %81 = vector.broadcast %80 : vector<3x1xf32> to vector<3x512xf32>
    %82 = arith.addf %79, %81 : vector<3x512xf32>
    %c0_44 = arith.constant 0 : index
    %c0_45 = arith.constant 0 : index
    %83 = vector.load %arg3[%c0_44, %c0_45] : memref<3x512xf32, #tpu.memory_space<vmem>>, vector<3x512xf32>
    tpu.vector_store %arg3[%c0_44, %c0_45], %82 {strides = array<i32>} : memref<3x512xf32, #tpu.memory_space<vmem>>, vector<3x512xf32>,
    return
  }
}

</mosaic_0001>

<bundles_post_ra>
// kernel: resnet_vqvae_fwd.20
= control target key start
LH: loop header
LB: loop body
LE: loop exit
PB: predicated region body
PF: predicated region fallthrough
CT: control target
= control target key end

     0   :  { %v171_v0 = vmov 0.0   ;;  %vm172_vm0 = vmmov 0   ;;  %v173_v6 = vmov 0   ;;  %vm42_vm1 = vcmask 261120   ;;  %s246_s0 = inlined_call_operand.vmem [shape: f32[32,128], index: 0, kind: input, shape index: {}]   ;;  %s247_s2 = inlined_call_operand.vmem [shape: f32[16,1], index: 2, kind: input, shape index: {}]   ;;  %s248_s1 = inlined_call_operand.vmem [shape: f32[16,32], index: 1, kind: input, shape index: {}]   ;;  %s249_s4 = inlined_call_operand.vmem [shape: f32[16,1], index: 4, kind: input, shape index: {}]   ;;  %s250_s3 = inlined_call_operand.vmem [shape: f32[16,1], index: 3, kind: input, shape index: {}]   ;;  %s251_s5 = inlined_call_operand.vmem [shape: f32[16,128], index: 5, kind: output, shape index: {}]  }
   0x1   :  { %154 = vmatprep.subr.bf16.mxu0 %v171_v0  ;;  %v23_v1 = vld [vmem:[%s246_s0] sm:$0xff]  ;;  %v24_v2 = vld [vmem:[%s246_s0 + $0x8] sm:$0xff]  ;;  %v25_v3 = vld [vmem:[%s246_s0 + $0x10] sm:$0xff]  ;;  %158 = vmatprep.mubr.msk.bf16.mxu0 %vm172_vm0, %v171_v0 }
   0x2   :  { %v28_v4 = vpack.c.bf16 %v24_v2, %v23_v1  ;;  %v26_v5 = vld [vmem:[%s246_s0 + $0x18] sm:$0xff]  ;;  %165 = vset.pattern.permute.xlu0 %v173_v6  ;;  %166 = vset.pattern.permute.xlu1 %v173_v6  ;;  %v30_v7 = vld [vmem:[%s247_s2] sm:$0xff]  ;;  %v22_v10 = vld [vmem:[%s248_s1 + $0x8] sm:$0xff] }
   0x3   :  { %v29_v8 = vpack.c.bf16 %v26_v5, %v25_v3  ;;  %v21_v9 = vld [vmem:[%s248_s1] sm:$0xff]  ;;  %34 = vperm.xlu0 %165, %v30_v7   ;;  %v31_v11 = vld [vmem:[%s247_s2 + $0x8] sm:$0xff] }
   0x4   :  { %155 = vmatpush3.bf16.msra.mxu0 %v28_v4  ;;  %v27_v12 = vpack.c.bf16 %v22_v10, %v21_v9  ;;  %v89_v29 = vld [vmem:[%s249_s4] sm:$0xff]  ;;  %v88_v39 = vld [vmem:[%s250_s3 + $0x8] sm:$0xff] }
   0x5   :  { %156 = vmatprep.subr.bf16.mxu0 %v171_v0  ;;  %v87_v36 = vld [vmem:[%s250_s3] sm:$0xff]  ;;  %v90_v42 = vld [vmem:[%s249_s4 + $0x8] sm:$0xff] }
   0x7   :  { %39 = vperm.xlu0 %165, %v31_v11  }
   0x8   :  { %157 = vmatpush3.bf16.msra.mxu0 %v29_v8 }
   0xb   :  { %159 = vmatmul.mubr.msk.bf16.vlgmr.msra.gmra.mrb[0].mxu0 %vm42_vm1, %v27_v12 }
  0x82   :  { %v35_v13 = vpop.permute.xlu0 %34 }
  0x86   :  { %v40_v19 = vpop.permute.xlu0 %39 }
  0xde   :  { %v80_v14 = vpop.f32.mrb[0].mxu0 }
  0xdf   :  { %v81_v15 = vadd.f32 %v80_v14, %v35_v13  ;;  %v160_v16 = vpop.f32.mrb[1].mxu0 }
  0xe0   :  { %v83_v17 = vpop.f32.mrb[2].mxu0 }
  0xe1   :  { %91 = vadd.xlane.f32.xlu1 %v81_v15  ;;  %v161_v18 = vpop.f32.mrb[3].mxu0  ;;  %v84_v20 = vadd.f32 %v83_v17, %v40_v19 }
  0xe5   :  { %93 = vadd.xlane.f32.xlu1 %v84_v20 }
 0x16e   :  { %v92_v21 = vpop.xlane.xlu1 %91 }
 0x16f   :  { %v96_v22 = vmul.f32 0.0078125, %v92_v21 }
 0x171   :  { %v98_v23 = vsub.f32 %v81_v15, %v96_v22 }
 0x172   :  { %v94_v24 = vpop.xlane.xlu1 %93 }
 0x173   :  { %v97_v25 = vmul.f32 0.0078125, %v94_v24  ;;  %v100_v26 = vmul.f32 %v98_v23, %v98_v23 }
 0x175   :  { %v99_v27 = vsub.f32 %v84_v20, %v97_v25  ;;  %102 = vadd.xlane.f32.xlu0 %v100_v26 }
 0x177   :  { %v101_v28 = vmul.f32 %v99_v27, %v99_v27 }
 0x179   :  { %104 = vadd.xlane.f32.xlu1 %v101_v28 }
 0x18a   :  { %128 = vperm.xlu1 %166, %v89_v29  }
 0x202   :  { %v103_v30 = vpop.xlane.xlu0 %102 }
 0x203   :  { %v106_v31 = vmul.f32 0.0078125, %v103_v30 }
 0x205   :  { %v108_v32 = vadd.f32 1e-05, %v106_v31 }
 0x206   :  { %v105_v33 = vpop.xlane.xlu1 %104 }
 0x207   :  { %167 = vrsqrt.f32 %v108_v32  ;;  %v107_v34 = vmul.f32 0.0078125, %v105_v33 }
 0x209   :  { %v109_v35 = vadd.f32 1e-05, %v107_v34 }
 0x20a   :  { %v129_v43 = vpop.permute.xlu1 %128 }
 0x20b   :  { %169 = vrsqrt.f32 %v109_v35 }
 0x211   :  { %v168_v37 = vpop.eup %167 }
 0x212   :  { %v112_v38 = vmul.f32 %v168_v37, %v87_v36 }
 0x214   :  { %116 = vperm.xlu1 %166, %v112_v38  }
 0x215   :  { %v170_v40 = vpop.eup %169 }
 0x216   :  { %v113_v41 = vmul.f32 %v170_v40, %v88_v39 }
 0x218   :  { %121 = vperm.xlu1 %166, %v113_v41  }
 0x21c   :  { %133 = vperm.xlu1 %166, %v90_v42  }
 0x293   :  { %v117_v44 = vpop.permute.xlu1 %116 }
 0x294   :  { %v124_v45 = vmul.f32 %v117_v44, %v98_v23 }
 0x296   :  { %v136_v46 = vadd.f32 %v129_v43, %v124_v45 }
 0x297   :  { %v122_v47 = vpop.permute.xlu1 %121 }
 0x298   :  { %vm138_vm2 = vcmp.ge.f32.partialorder %v136_v46, 0.0  ;;  %v140_v48 = vmul.f32 0.2, %v136_v46  ;;  %v125_v50 = vmul.f32 %v122_v47, %v99_v27 }
 0x29a   :  { %v142_v49 = vsel %vm138_vm2, %v136_v46, %v140_v48 }
 0x29b   :  { %144 = vst [vmem:[%s251_s5] sm:$0xff] %v142_v49  ;;  %v134_v51 = vpop.permute.xlu1 %133 }
 0x29c   :  { %v137_v52 = vadd.f32 %v134_v51, %v125_v50 }
 0x29e   :  { %vm139_vm3 = vcmp.ge.f32.partialorder %v137_v52, 0.0  ;;  %v141_v53 = vmul.f32 0.2, %v137_v52 }
 0x2a0   :  { %v143_v54 = vsel %vm139_vm3, %v137_v52, %v141_v53 }
 0x2a1   :  { %145 = vst [vmem:[%s251_s5 + $0x8] sm:$0xff] %v143_v54 }

// kernel: resnet_vqvae_fwd.17
= control target key start
LH: loop header
LB: loop body
LE: loop exit
PB: predicated region body
PF: predicated region fallthrough
CT: control target
= control target key end

     0   :  { %v745_v2 = vmov 0.0   ;;  %s746_s22 = smov 15   ;;  %s747_s23 = smov 16   ;;  %v754_v47 = vmov 0   ;;  %v27_v49 = vlaneseq  ;;  %vm145_vm0 = vcmask 130048   ;;  %s1076_s0 = inlined_call_operand.vmem [shape: f32[3,512], index: 0, kind: input, shape index: {}]   ;;  %s1077_s2 = inlined_call_operand.vmem [shape: f32[8,1], index: 2, kind: input, shape index: {}]   ;;  %s1078_s1 = inlined_call_operand.vmem [shape: f32[8,27], index: 1, kind: input, shape index: {}]   ;;  %s1079_s4 = inlined_call_operand.vmem [shape: f32[8,1], index: 4, kind: input, shape index: {}]   ;;  %s1080_s3 = inlined_call_operand.vmem [shape: f32[8,1], index: 3, kind: input, shape index: {}]   ;;  %s1081_s5 = inlined_call_operand.vmem [shape: f32[8,512], index: 5, kind: output, shape index: {}]  }
   0x1   :  { %v21_v0 = vld [vmem:[%s1076_s0] sm:$0x77]  ;;  %v22_v1 = vld [vmem:[%s1076_s0 + $0x8] sm:$0x77]  ;;  %23 = vst [vmem:[#allocation2] sm:$0x7] %v745_v2  ;;  %596 = vmatprep.mubr.bf16.mxu0 %v754_v47  ;;  %637 = vmatprep.mubr.bf16.mxu1 %v754_v47 }
   0x2   :  { %24 = vst [vmem:[#allocation2 + $0x14] sm:$0x7] %v745_v2  ;;  %25 = vst [vmem:[#allocation2 + $0x4] sm:$0x77] %v21_v0  ;;  %s748_s24 = smov 1   ;;  %s749_s0 = smov 127   ;;  %723 = vset.pattern.permute.xlu0 %v754_v47  ;;  %724 = vset.pattern.permute.xlu1 %v754_v47 }
   0x3   :  { %26 = vst [vmem:[#allocation2 + $0xc] sm:$0x77] %v22_v1  ;;  %s750_s25 = smov 17   ;;  %s751_s26 = smov 113   ;;  %v538_v48 = vld [vmem:[%s1077_s2] sm:$0xff]  ;;  %v830_v50 = vand.u32 127, %v27_v49 }
   0x4   :  { %s752_s27 = smov 112   ;;  %s753_s28 = smov 111   ;;  %vm259_vm2 = vcmask 7168   ;;  %vm200_vm5 = vcmask 121856   ;;  %vm326_vm6 = vcmask 1039360   ;;  %vm1083_vm12 = vcmask 138240  }
   0x5   :  { %v29_v51 = vadd.s32 128, %v830_v50  ;;  %v36_v59 = vshra.s32 %v830_v50, 4  ;;  %vm385_vm15 = vcmask 924672  }
   0x7   :  { %v37_v52 = vshra.s32 %v29_v51, 4  ;;  %v33_v56 = vand.u32 15, %v29_v51 }
   0x9   :  { %v119_v5 = vld [vmem:[#allocation2] sm:$0x77]  ;;  %v302_v35 = vld [vmem:[#allocation2 + $0x14] sm:$0x7]  ;;  %v833_v53 = vand.u32 15, %v37_v52  ;;  %vm847_vm3 = vcmp.ge.s32.totalorder %v33_v56, 1 }
   0xa   :  { %v175_v3 = vld [vmem:[#allocation2 + $0x8] sm:$0x77]  ;;  %v133_v7 = vcombine.high %v119_v5, %v119_v5  ;;  %v233_v8 = vld [vmem:[#allocation2] sm:$0x77]  ;;  %v121_v29 = vld [vmem:[#allocation2 + $0x10] sm:$0x7] }
   0xb   :  { %v120_v4 = vld [vmem:[#allocation2 + $0x8] sm:$0x77]  ;;  %194 = vrot.lane.b32.xlu1 %v175_v3, %s746_s22  ;;  %v247_v9 = vcombine.high %v233_v8, %v233_v8  ;;  %v174_v11 = vld [vmem:[#allocation2] sm:$0x77]  ;;  %v189_v27 = vcombine.high %v175_v3, %v175_v3  ;;  %v176_v32 = vld [vmem:[#allocation2 + $0x10] sm:$0x7] }
   0xc   :  { %139 = vrot.lane.b32.xlu0 %v120_v4, %s747_s23  ;;  %v234_v6 = vld [vmem:[#allocation2 + $0x8] sm:$0x77]  ;;  %v188_v14 = vcombine.high %v174_v11, %v174_v11  ;;  %v76_v17 = vld [vmem:[#allocation2] sm:$0x77]  ;;  %v134_v26 = vcombine.high %v120_v4, %v120_v4  ;;  %v235_v34 = vld [vmem:[#allocation2 + $0x10] sm:$0x7] }
   0xd   :  { %v301_v10 = vld [vmem:[#allocation2 + $0xc] sm:$0x77]  ;;  %v300_v12 = vld [vmem:[#allocation2 + $0x4] sm:$0x77]  ;;  %v90_v18 = vcombine.high %v76_v17, %v76_v17  ;;  %v248_v31 = vcombine.high %v234_v6, %v234_v6  ;;  %v361_v43 = vld [vmem:[#allocation2 + $0x14] sm:$0x7] }
   0xe   :  { %v288_v13 = vld [vmem:[#allocation2 + $0x4] sm:$0x77]  ;;  %v314_v15 = vcombine.high %v300_v12, %v300_v12  ;;  %v360_v22 = vld [vmem:[#allocation2 + $0xc] sm:$0x77]  ;;  %v315_v33 = vcombine.high %v301_v10, %v301_v10  ;;  %v416_v44 = vld [vmem:[#allocation2 + $0x14] sm:$0x7] }
   0xf   :  { %253 = vrot.lane.b32.xlu1 %v234_v6, %s748_s24  ;;  %297 = vst [vmem:[#allocation3 + $0x28] sm:$0x70] %v288_v13  ;;  %v292_v16 = vcombine.low %v288_v13, %v288_v13  ;;  %v77_v19 = vld [vmem:[#allocation2 + $0x8] sm:$0x77]  ;;  %v374_v40 = vcombine.high %v360_v22, %v360_v22  ;;  %v78_v41 = vld [vmem:[#allocation2 + $0x10] sm:$0x7] }
  0x10   :  { %137 = vrot.lane.b32.xlu0 %v133_v7, %s747_s23  ;;  %v359_v20 = vld [vmem:[#allocation2 + $0x4] sm:$0x77]  ;;  %v415_v25 = vld [vmem:[#allocation2 + $0xc] sm:$0x77]  ;;  %v91_v38 = vcombine.high %v77_v19, %v77_v19  ;;  %v471_v46 = vld [vmem:[#allocation2 + $0x14] sm:$0x7] }
  0x11   :  { %296 = vst [vmem:[#allocation3 + $0x20] sm:$0x70] %v292_v16  ;;  %v373_v21 = vcombine.high %v359_v20, %v359_v20  ;;  %v414_v23 = vld [vmem:[#allocation2 + $0x4] sm:$0x77]  ;;  %v289_v28 = vld [vmem:[#allocation2 + $0xc] sm:$0x77]  ;;  %v429_v42 = vcombine.high %v415_v25, %v415_v25 }
  0x12   :  { %v428_v24 = vcombine.high %v414_v23, %v414_v23  ;;  %299 = vst [vmem:[#allocation3 + $0x38] sm:$0x70] %v289_v28  ;;  %v293_v30 = vcombine.low %v289_v28, %v289_v28  ;;  %v469_v36 = vld [vmem:[#allocation2 + $0x4] sm:$0x77]  ;;  %v470_v39 = vld [vmem:[#allocation2 + $0xc] sm:$0x77] }
  0x13   :  { %320 = vrot.lane.b32.xlu1 %v301_v10, %s749_s0  ;;  %v483_v37 = vcombine.high %v469_v36, %v469_v36  ;;  %v484_v45 = vcombine.high %v470_v39, %v470_v39  ;;  %vm45_vm1 = vcmp.ge.s32.totalorder %v833_v53, 1  ;;  %vm853_vm4 = vcmp.le.s32.totalorder %v33_v56, 14 }
  0x14   :  { %251 = vrot.lane.b32.xlu0 %v247_v9, %s748_s24  ;;  %298 = vst [vmem:[#allocation3 + $0x30] sm:$0x70] %v293_v30  ;;  %v32_v3 = vand.u32 15, %v830_v50  ;;  %v858_v4 = vand.u32 15, %v36_v59  ;;  %vm65_vm7 = vmand %vm45_vm1, %vm853_vm4  ;;  %vm1082_vm14 = vcmp.le.s32.totalorder %v833_v53, 14 }
  0x15   :  { %vm61_vm13 = vmand %vm45_vm1, %vm847_vm3 }
  0x16   :  { %vm44_vm8 = vcmp.ge.s32.totalorder %v858_v4, 1  ;;  %vm869_vm9 = vcmp.le.s32.totalorder %v32_v3, 14  ;;  %vm887_vm11 = vcmp.ge.s32.totalorder %v32_v3, 1 }
  0x17   :  { %192 = vrot.lane.b32.xlu1 %v188_v14, %s746_s22  ;;  %vm64_vm10 = vmand %vm44_vm8, %vm869_vm9 }
  0x18   :  { %318 = vrot.lane.b32.xlu0 %v314_v15, %s749_s0 }
  0x1b   :  { %190 = vrot.lane.b32.xlu1 %v174_v11, %s746_s22 }
  0x1c   :  { %135 = vrot.lane.b32.xlu0 %v119_v5, %s747_s23 }
  0x1f   :  { %316 = vrot.lane.b32.xlu1 %v300_v12, %s749_s0 }
  0x20   :  { %249 = vrot.lane.b32.xlu0 %v233_v8, %s748_s24 }
  0x23   :  { %96 = vrot.lane.b32.xlu1 %v77_v19, %s750_s25 }
  0x24   :  { %94 = vrot.lane.b32.xlu0 %v90_v18, %s750_s25 }
  0x27   :  { %379 = vrot.lane.b32.xlu1 %v360_v22, %s751_s26 }
  0x28   :  { %377 = vrot.lane.b32.xlu0 %v373_v21, %s751_s26 }
  0x2b   :  { %434 = vrot.lane.b32.xlu1 %v415_v25, %s752_s27 }
  0x2c   :  { %432 = vrot.lane.b32.xlu0 %v428_v24, %s752_s27 }
  0x2f   :  { %141 = vrot.lane.b32.xlu1 %v134_v26, %s747_s23 }
  0x30   :  { %92 = vrot.lane.b32.xlu0 %v76_v17, %s750_s25 }
  0x33   :  { %196 = vrot.lane.b32.xlu1 %v189_v27, %s746_s22 }
  0x34   :  { %143 = vrot.lane.b32.xlu0 %v121_v29, %s747_s23 }
  0x37   :  { %255 = vrot.lane.b32.xlu1 %v248_v31, %s748_s24 }
  0x38   :  { %198 = vrot.lane.b32.xlu0 %v176_v32, %s746_s22 }
  0x3b   :  { %322 = vrot.lane.b32.xlu1 %v315_v33, %s749_s0 }
  0x3c   :  { %257 = vrot.lane.b32.xlu0 %v235_v34, %s748_s24  ;;  %v30_v34 = vadd.s32 256, %v830_v50 }
  0x3e   :  { %v34_v51 = vand.u32 15, %v30_v34 }
  0x3f   :  { %375 = vrot.lane.b32.xlu1 %v359_v20, %s751_s26 }
  0x40   :  { %324 = vrot.lane.b32.xlu0 %v302_v35, %s749_s0 }
  0x43   :  { %487 = vrot.lane.b32.xlu1 %v483_v37, %s753_s28 }
  0x44   :  { %430 = vrot.lane.b32.xlu0 %v414_v23, %s752_s27 }
  0x47   :  { %98 = vrot.lane.b32.xlu1 %v91_v38, %s750_s25 }
  0x48   :  { %489 = vrot.lane.b32.xlu0 %v470_v39, %s753_s28  ;;  %v38_v39 = vshra.s32 %v30_v34, 4 }
  0x4b   :  { %381 = vrot.lane.b32.xlu1 %v374_v40, %s751_s26  ;;  %v31_v40 = vadd.s32 384, %v830_v50 }
  0x4c   :  { %100 = vrot.lane.b32.xlu0 %v78_v41, %s750_s25 }
  0x4d   :  { %v39_v47 = vshra.s32 %v31_v40, 4  ;;  %v35_v3 = vand.u32 15, %v31_v40 }
  0x4f   :  { %436 = vrot.lane.b32.xlu1 %v429_v42, %s752_s27 }
  0x50   :  { %383 = vrot.lane.b32.xlu0 %v361_v43, %s751_s26 }
  0x53   :  { %485 = vrot.lane.b32.xlu1 %v469_v36, %s753_s28 }
  0x54   :  { %438 = vrot.lane.b32.xlu0 %v416_v44, %s752_s27 }
  0x57   :  { %493 = vrot.lane.b32.xlu1 %v471_v46, %s753_s28  ;;  %v919_v46 = vand.u32 15, %v38_v39 }
  0x58   :  { %491 = vrot.lane.b32.xlu0 %v484_v45, %s753_s28 }
  0x5c   :  { %541 = vperm.xlu0 %723, %v538_v48  }
  0x7d   :  { %v835_v54 = vpop.permute.xlu1 %194 }
  0x7e   :  { %v837_v55 = vpop.permute.xlu0 %139 }
  0x81   :  { %v840_v57 = vpop.permute.xlu1 %253 }
  0x82   :  { %v138_v58 = vpop.permute.xlu0 %137 }
  0x83   :  { %v147_v60 = vsel %vm145_vm0, %v138_v58, %v837_v55 }
  0x84   :  { %v155_v61 = vsel %vm45_vm1, %v147_v60, 0.0  ;;  %vm69_vm1 = vmand %vm1082_vm14, %vm847_vm3 }
  0x85   :  { %v163_v62 = vrot.slane %v155_v61, 5  ;;  %v851_v0 = vpop.permute.xlu1 %320  ;;  %v935_v61 = vand.u32 15, %v39_v47 }
  0x86   :  { %v252_v1 = vpop.permute.xlu0 %251 }
  0x87   :  { %171 = vst [vmem:[#allocation3 + $0x8] sm:$0x38] %v163_v62  ;;  %v261_v5 = vsel %vm259_vm2, %v252_v1, %v840_v57 }
  0x88   :  { %v269_v6 = vsel %vm847_vm3, %v261_v5, 0.0  ;;  %vm46_vm3 = vcmp.ge.s32.totalorder %v919_v46, 1 }
  0x89   :  { %v277_v7 = vrot.slane %v269_v6, 7  ;;  %v193_v8 = vpop.permute.xlu1 %192 }
  0x8a   :  { %v319_v9 = vpop.permute.xlu0 %318  ;;  %v202_v11 = vsel %vm200_vm5, %v193_v8, %v835_v54 }
  0x8b   :  { %285 = vst [vmem:[#allocation3 + $0x28] sm:$0xe] %v277_v7  ;;  %v328_v12 = vsel %vm326_vm6, %v319_v9, %v851_v0  ;;  %v210_v13 = vsel %vm65_vm7, %v202_v11, 0.0  ;;  %vm1084_vm7 = vcmask 916480  }
  0x8c   :  { %v336_v14 = vsel %vm853_vm4, %v328_v12, 0.0  ;;  %v218_v15 = vrot.slane %v210_v13, 2 }
  0x8d   :  { %v344_v16 = vrot.slane %v336_v14, 1  ;;  %v191_v17 = vpop.permute.xlu1 %190 }
  0x8e   :  { %v136_v18 = vpop.permute.xlu0 %135  ;;  %226 = vst [vmem:[#allocation3 + $0x28] ss:$-28 sps:$4 sm:$0xc1] %v218_v15   ;;  %v201_v19 = vsel %vm200_vm5, %v191_v17, %v193_v8 }
  0x8f   :  { %352 = vst [vmem:[#allocation3 + $0x48] ss:$-28 sps:$4 sm:$0x83] %v344_v16   ;;  %v146_v20 = vsel %vm145_vm0, %v136_v18, %v138_v58  ;;  %v209_v21 = vsel %vm64_vm10, %v201_v19, 0.0  ;;  %vm60_vm10 = vmand %vm44_vm8, %vm887_vm11 }
  0x90   :  { %v154_v22 = vsel %vm44_vm8, %v146_v20, 0.0  ;;  %v217_v23 = vrot.slane %v209_v21, 2 }
  0x91   :  { %v162_v24 = vrot.slane %v154_v22, 5  ;;  %v317_v26 = vpop.permute.xlu1 %316 }
  0x92   :  { %v250_v27 = vpop.permute.xlu0 %249  ;;  %225 = vst [vmem:[#allocation3 + $0x20] ss:$-28 sps:$4 sm:$0xc1] %v217_v23   ;;  %v327_v28 = vsel %vm326_vm6, %v317_v26, %v319_v9 }
  0x93   :  { %170 = vst [vmem:[#allocation3] sm:$0x38] %v162_v24  ;;  %v260_v29 = vsel %vm259_vm2, %v250_v27, %v252_v1  ;;  %v335_v30 = vsel %vm869_vm9, %v327_v28, 0.0 }
  0x94   :  { %v268_v31 = vsel %vm887_vm11, %v260_v29, 0.0  ;;  %v343_v32 = vrot.slane %v335_v30, 1 }
  0x95   :  { %v276_v33 = vrot.slane %v268_v31, 7  ;;  %v902_v35 = vpop.permute.xlu1 %96 }
  0x96   :  { %v95_v36 = vpop.permute.xlu0 %94  ;;  %351 = vst [vmem:[#allocation3 + $0x40] ss:$-28 sps:$4 sm:$0x83] %v343_v32   ;;  %v518_v58 = vld [vmem:[#allocation3 + $0x28] sm:$0xff] }
  0x97   :  { %284 = vst [vmem:[#allocation3 + $0x20] sm:$0xe] %v276_v33  ;;  %v104_v37 = vsel %vm1083_vm12, %v95_v36, %v902_v35 }
  0x98   :  { %v112_v38 = vsel %vm61_vm13, %v104_v37, 0.0  ;;  %vm937_vm13 = vcmp.le.s32.totalorder %v34_v51, 14 }
  0x99   :  { %116 = vst [vmem:[#allocation3 + $0x8] sm:$0x7] %v112_v38  ;;  %v912_v41 = vpop.permute.xlu1 %379  ;;  %vm66_vm8 = vmand %vm46_vm3, %vm937_vm13 }
  0x9a   :  { %v914_v42 = vpop.permute.xlu0 %377 }
  0x9b   :  { %v387_v43 = vsel %vm385_vm15, %v914_v42, %v912_v41 }
  0x9c   :  { %v395_v44 = vsel %vm69_vm1, %v387_v43, 0.0  ;;  %vm47_vm1 = vcmp.ge.s32.totalorder %v935_v61, 1 }
  0x9d   :  { %v403_v45 = vrot.slane %v395_v44, 6  ;;  %v921_v48 = vpop.permute.xlu1 %434 }
  0x9e   :  { %v923_v49 = vpop.permute.xlu0 %432  ;;  %v517_v27 = vld [vmem:[#allocation3 + $0x20] sm:$0xff] }
  0x9f   :  { %411 = vst [vmem:[#allocation3 + $0x48] sm:$0x1c] %v403_v45  ;;  %v442_v50 = vsel %vm1084_vm7, %v923_v49, %v921_v48 }
  0xa0   :  { %v450_v52 = vsel %vm1082_vm14, %v442_v50, 0.0  ;;  %v514_v56 = vld [vmem:[#allocation3 + $0x8] sm:$0xff]  ;;  %vm951_vm14 = vcmp.le.s32.totalorder %v35_v3, 14 }
  0xa1   :  { %v458_v59 = vrot.slane %v450_v52, 3  ;;  %v531_v60 = vpack.c.bf16 %v518_v58, %v514_v56  ;;  %v142_v62 = vpop.permute.xlu1 %141 }
  0xa2   :  { %v93_v63 = vpop.permute.xlu0 %92  ;;  %v148_v5 = vsel %vm145_vm0, %v837_v55, %v142_v62 }
  0xa3   :  { %466 = vst [vmem:[#allocation3 + $0x48] sm:$0xe0] %v458_v59  ;;  %v103_v6 = vsel %vm1083_vm12, %v93_v63, %v95_v36  ;;  %564 = vmatprep.subr.bf16.mxu0 %v531_v60  ;;  %v156_v7 = vsel %vm46_vm3, %v148_v5, 0.0  ;;  %vm67_vm12 = vmand %vm47_vm1, %vm951_vm14 }
  0xa4   :  { %v111_v8 = vsel %vm60_vm10, %v103_v6, 0.0  ;;  %v164_v9 = vrot.slane %v156_v7, 5  ;;  %vm960_vm10 = vcmp.ge.s32.totalorder %v34_v51, 1 }
  0xa5   :  { %115 = vst [vmem:[#allocation3] sm:$0x7] %v111_v8  ;;  %v197_v11 = vpop.permute.xlu1 %196 }
  0xa6   :  { %v144_v12 = vpop.permute.xlu0 %143  ;;  %172 = vst [vmem:[#allocation3 + $0x10] sm:$0x38] %v164_v9  ;;  %v203_v13 = vsel %vm200_vm5, %v835_v54, %v197_v11  ;;  %v755_v9 = vmov 65535  }
  0xa7   :  { %v149_v14 = vsel %vm145_vm0, %v142_v62, %v144_v12  ;;  %v211_v15 = vsel %vm66_vm8, %v203_v13, 0.0  ;;  %vm973_vm0 = vcmp.ge.s32.totalorder %v35_v3, 1  ;;  %vm48_vm8 = vcmp.le.s32.totalorder %v858_v4, 14 }
  0xa8   :  { %v157_v16 = vsel %vm47_vm1, %v149_v14, 0.0  ;;  %v219_v17 = vrot.slane %v211_v15, 2 }
  0xa9   :  { %v165_v18 = vrot.slane %v157_v16, 5  ;;  %v256_v20 = vpop.permute.xlu1 %255 }
  0xaa   :  { %v199_v21 = vpop.permute.xlu0 %198  ;;  %227 = vst [vmem:[#allocation3 + $0x30] ss:$-28 sps:$4 sm:$0xc1] %v219_v17   ;;  %v262_v54 = vsel %vm259_vm2, %v840_v57, %v256_v20  ;;  %v522_v17 = vld [vmem:[#allocation3 + $0x48] sm:$0xff] }
  0xab   :  { %173 = vst [vmem:[#allocation3 + $0x18] sm:$0x38] %v165_v18  ;;  %v204_v22 = vsel %vm200_vm5, %v197_v11, %v199_v21  ;;  %v270_v23 = vsel %vm960_vm10, %v262_v54, 0.0  ;;  %vm68_vm5 = vmand %vm48_vm8, %vm887_vm11  ;;  %vm1101_vm11 = vcmp.le.s32.totalorder %v833_v53, 14 }
  0xac   :  { %v212_v24 = vsel %vm67_vm12, %v204_v22, 0.0  ;;  %v513_v26 = vld [vmem:[#allocation3] sm:$0xff]  ;;  %v278_v28 = vrot.slane %v270_v23, 7  ;;  %vm73_vm12 = vmand %vm1101_vm11, %vm853_vm4  ;;  %vm548_vm11 = vcmask 1044480  }
  0xad   :  { %v220_v29 = vrot.slane %v212_v24, 2  ;;  %v530_v31 = vpack.c.bf16 %v517_v27, %v513_v26  ;;  %v323_v32 = vpop.permute.xlu1 %322  ;;  %vm63_vm4 = vmand %vm47_vm1, %vm973_vm0  ;;  %vm549_vm1 = vcmask 1045504   ;;  %v550_v11 = vsel %vm548_vm11, 4294967295, %v755_v9 }
  0xae   :  { %v258_v33 = vpop.permute.xlu0 %257  ;;  %286 = vst [vmem:[#allocation3 + $0x30] sm:$0xe] %v278_v28  ;;  %v329_v57 = vsel %vm326_vm6, %v851_v0, %v323_v32  ;;  %v551_v19 = vsel %vm549_vm1, %v550_v11, 0 }
  0xaf   :  { %228 = vst [vmem:[#allocation3 + $0x38] ss:$-28 sps:$4 sm:$0xc1] %v220_v29   ;;  %v263_v34 = vsel %vm259_vm2, %v256_v20, %v258_v33  ;;  %565 = vmatpush1.bf16.msra.mxu0 %v530_v31  ;;  %v337_v36 = vsel %vm937_vm13, %v329_v57, 0.0  ;;  %vm62_vm2 = vmand %vm46_vm3, %vm960_vm10 }
  0xb0   :  { %v271_v37 = vsel %vm973_vm0, %v263_v34, 0.0  ;;  %v345_v38 = vrot.slane %v337_v36, 1 }
  0xb1   :  { %v279_v39 = vrot.slane %v271_v37, 7  ;;  %v376_v40 = vpop.permute.xlu1 %375 }
  0xb2   :  { %v325_v43 = vpop.permute.xlu0 %324  ;;  %353 = vst [vmem:[#allocation3 + $0x50] ss:$-28 sps:$4 sm:$0x83] %v345_v38   ;;  %v386_v0 = vsel %vm385_vm15, %v376_v40, %v914_v42  ;;  %v512_v40 = vld [vmem:[%s1078_s1] sm:$0xff] }
  0xb3   :  { %287 = vst [vmem:[#allocation3 + $0x38] sm:$0xe] %v279_v39  ;;  %v330_v44 = vsel %vm326_vm6, %v323_v32, %v325_v43  ;;  %v394_v45 = vsel %vm68_vm5, %v386_v0, 0.0  ;;  %vm495_vm6 = vcmask 908288   ;;  %vm50_vm5 = vcmp.le.s32.totalorder %v919_v46, 14 }
  0xb4   :  { %v338_v47 = vsel %vm951_vm14, %v330_v44, 0.0  ;;  %v402_v51 = vrot.slane %v394_v45, 6  ;;  %vm70_vm3 = vmand %vm50_vm5, %vm960_vm10  ;;  %v529_v44 = vpack.c.bf16 %v512_v40, %v512_v40 }
  0xb5   :  { %v346_v50 = vrot.slane %v338_v47, 1  ;;  %v488_v52 = vpop.permute.xlu1 %487 }
  0xb6   :  { %v431_v25 = vpop.permute.xlu0 %430  ;;  %410 = vst [vmem:[#allocation3 + $0x40] sm:$0x1c] %v402_v51 }
  0xb7   :  { %354 = vst [vmem:[#allocation3 + $0x58] ss:$-28 sps:$4 sm:$0x83] %v346_v50   ;;  %v441_v56 = vsel %vm1084_vm7, %v431_v25, %v923_v49  ;;  %vm1102_vm7 = vcmask 138240  }
  0xb8   :  { %v449_v58 = vsel %vm48_vm8, %v441_v56, 0.0 }
  0xb9   :  { %v457_v42 = vrot.slane %v449_v58, 3  ;;  %v99_v59 = vpop.permute.xlu1 %98  ;;  %v519_v33 = vld [vmem:[#allocation3 + $0x30] sm:$0xff] }
  0xba   :  { %v490_v60 = vpop.permute.xlu0 %489  ;;  %v105_v49 = vsel %vm1102_vm7, %v902_v35, %v99_v59  ;;  %vm51_vm7 = vcmp.le.s32.totalorder %v935_v61, 14 }
  0xbb   :  { %465 = vst [vmem:[#allocation3 + $0x40] sm:$0xe0] %v457_v42  ;;  %v497_v62 = vsel %vm495_vm6, %v488_v52, %v490_v60  ;;  %v113_v63 = vsel %vm62_vm2, %v105_v49, 0.0  ;;  %vm1103_vm2 = vcmask 138240   ;;  %vm71_vm10 = vmand %vm51_vm7, %vm973_vm0 }
  0xbc   :  { %v505_v3 = vsel %vm73_vm12, %v497_v62, 0.0  ;;  %117 = vst [vmem:[#allocation3 + $0x10] sm:$0x7] %v113_v63  ;;  %vm1104_vm12 = vcmask 916480   ;;  %vm72_vm0 = vmand %vm48_vm8, %vm869_vm9 }
  0xbd   :  { %509 = vst [vmem:[#allocation3 + $0x68] sm:$0x7] %v505_v3  ;;  %v382_v53 = vpop.permute.xlu1 %381  ;;  %vm1043_vm9 = vmand %vm50_vm5, %vm937_vm13 }
  0xbe   :  { %v101_v2 = vpop.permute.xlu0 %100  ;;  %v388_v35 = vsel %vm385_vm15, %v912_v41, %v382_v53  ;;  %v520_v30 = vld [vmem:[#allocation3 + $0x38] sm:$0xff]  ;;  %vm75_vm8 = vmand %vm51_vm7, %vm951_vm14  ;;  %vm544_vm14 = vcmask 220160  }
  0xbf   :  { %v106_v5 = vsel %vm1103_vm2, %v99_v59, %v101_v2  ;;  %v396_v6 = vsel %vm70_vm3, %v388_v35, 0.0 }
  0xc0   :  { %v114_v7 = vsel %vm63_vm4, %v106_v5, 0.0  ;;  %v404_v8 = vrot.slane %v396_v6, 6 }
  0xc1   :  { %118 = vst [vmem:[#allocation3 + $0x18] sm:$0x7] %v114_v7  ;;  %v437_v12 = vpop.permute.xlu1 %436 }
  0xc2   :  { %v384_v13 = vpop.permute.xlu0 %383  ;;  %412 = vst [vmem:[#allocation3 + $0x50] sm:$0x1c] %v404_v8  ;;  %v443_v41 = vsel %vm1104_vm12, %v921_v48, %v437_v12  ;;  %v521_v61 = vld [vmem:[#allocation3 + $0x40] sm:$0xff] }
  0xc3   :  { %v389_v14 = vsel %vm385_vm15, %v382_v53, %v384_v13  ;;  %v451_v15 = vsel %vm50_vm5, %v443_v41, 0.0  ;;  %vm1105_vm15 = vmmov %vm1104_vm12  ;;  %v515_v27 = vld [vmem:[#allocation3 + $0x10] sm:$0xff] }
  0xc4   :  { %v397_v16 = vsel %vm71_vm10, %v389_v14, 0.0  ;;  %v526_v18 = vld [vmem:[#allocation3 + $0x68] sm:$0x7]  ;;  %v459_v20 = vrot.slane %v451_v15, 3  ;;  %v532_v34 = vpack.c.bf16 %v519_v33, %v515_v27 }
  0xc5   :  { %v405_v21 = vrot.slane %v397_v16, 6  ;;  %v535_v54 = vpack.c.bf16 %v526_v18, %v522_v17  ;;  %v486_v22 = vpop.permute.xlu1 %485 }
  0xc6   :  { %v439_v23 = vpop.permute.xlu0 %438  ;;  %467 = vst [vmem:[#allocation3 + $0x50] sm:$0xe0] %v459_v20  ;;  %v496_v48 = vsel %vm495_vm6, %v486_v22, %v488_v52  ;;  %v647_v22 = vld [vmem:[%s1079_s4] sm:$0xff] }
  0xc7   :  { %413 = vst [vmem:[#allocation3 + $0x58] sm:$0x1c] %v405_v21  ;;  %v444_v24 = vsel %vm1105_vm15, %v437_v12, %v439_v23  ;;  %v556_v26 = vand.u32 %v551_v19, %v535_v54  ;;  %v504_v28 = vsel %vm72_vm0, %v496_v48, 0.0 }
  0xc8   :  { %v452_v29 = vsel %vm51_vm7, %v444_v24, 0.0  ;;  %v516_v10 = vld [vmem:[#allocation3 + $0x18] sm:$0xff]  ;;  %508 = vst [vmem:[#allocation3 + $0x60] sm:$0x7] %v504_v28 }
  0xc9   :  { %v460_v31 = vrot.slane %v452_v29, 3  ;;  %566 = vmatprep.subr.bf16.mxu0 %v556_v26  ;;  %v533_v32 = vpack.c.bf16 %v520_v30, %v516_v10  ;;  %v494_v57 = vpop.permute.xlu1 %493  ;;  %v646_v26 = vld [vmem:[%s1080_s3] sm:$0xff] }
  0xca   :  { %v492_v1 = vpop.permute.xlu0 %491 }
  0xcb   :  { %468 = vst [vmem:[#allocation3 + $0x58] sm:$0xe0] %v460_v31  ;;  %v498_v46 = vsel %vm495_vm6, %v490_v60, %v492_v1  ;;  %v499_v36 = vsel %vm495_vm6, %v492_v1, %v494_v57  ;;  %605 = vmatprep.subr.bf16.mxu1 %v533_v32 }
  0xcc   :  { %v506_v37 = vsel %vm1043_vm9, %v498_v46, 0.0  ;;  %v507_v38 = vsel %vm75_vm8, %v499_v36, 0.0  ;;  %606 = vmatpush1.bf16.msra.mxu1 %v532_v34 }
  0xcd   :  { %510 = vst [vmem:[#allocation3 + $0x70] sm:$0x7] %v506_v37  ;;  %511 = vst [vmem:[#allocation3 + $0x78] sm:$0x7] %v507_v38  ;;  %v523_v0 = vld [vmem:[#allocation3 + $0x50] sm:$0xff] }
  0xcf   :  { %v525_v55 = vld [vmem:[#allocation3 + $0x60] sm:$0x7] }
  0xd0   :  { %v534_v39 = vpack.c.bf16 %v525_v55, %v521_v61 }
  0xd2   :  { %v553_v43 = vand.u32 %v551_v19, %v534_v39  ;;  %v524_v45 = vld [vmem:[#allocation3 + $0x58] sm:$0xff] }
  0xd4   :  { %v528_v47 = vld [vmem:[#allocation3 + $0x78] sm:$0x7]  ;;  %v527_v51 = vld [vmem:[#allocation3 + $0x70] sm:$0x7]  ;;  %567 = vmatpush1.bf16.msra.mxu0 %v553_v43 }
  0xd5   :  { %v537_v50 = vpack.c.bf16 %v528_v47, %v524_v45  ;;  %v536_v52 = vpack.c.bf16 %v527_v51, %v523_v0 }
  0xd7   :  { %v562_v25 = vand.u32 %v551_v19, %v537_v50  ;;  %v559_v56 = vand.u32 %v551_v19, %v536_v52  ;;  %710 = vmatmul.mubr.msk.bf16.vlgmr.msra.gmra.mrb[0].mxu0 %vm544_vm14, %v529_v44 }
  0xd9   :  { %607 = vmatprep.subr.bf16.mxu1 %v562_v25 }
  0xda   :  { %608 = vmatpush1.bf16.msra.mxu1 %v559_v56 }
  0xdb   :  { %v542_v58 = vpop.permute.xlu0 %541 }
  0xdd   :  { %711 = vmatmul.mubr.msk.bf16.vlgmr.msra.gmra.mrb[0].mxu1 %vm544_vm14, %v529_v44 }
 0x1aa   :  { %v598_v42 = vpop.f32.mrb[0].mxu0 }
 0x1ab   :  { %v600_v59 = vpop.f32.mrb[1].mxu0  ;;  %v599_v60 = vadd.f32 %v598_v42, %v542_v58 }
 0x1ac   :  { %v602_v49 = vpop.f32.mrb[2].mxu0  ;;  %v601_v62 = vadd.f32 %v600_v59, %v542_v58 }
 0x1ad   :  { %v603_v63 = vpop.f32.mrb[3].mxu0 }
 0x1ae   :  { %v648_v3 = vadd.f32 %v601_v62, %v599_v60 }
 0x1b0   :  { %v639_v53 = vpop.f32.mrb[0].mxu1 }
 0x1b1   :  { %v640_v2 = vadd.f32 %v639_v53, %v542_v58  ;;  %v641_v35 = vpop.f32.mrb[1].mxu1 }
 0x1b2   :  { %v642_v5 = vadd.f32 %v641_v35, %v542_v58  ;;  %v643_v6 = vpop.f32.mrb[2].mxu1 }
 0x1b3   :  { %v649_v7 = vadd.f32 %v648_v3, %v640_v2  ;;  %v644_v8 = vpop.f32.mrb[3].mxu1 }
 0x1b5   :  { %v650_v9 = vadd.f32 %v649_v7, %v642_v5 }
 0x1b7   :  { %651 = vadd.xlane.f32.xlu1 %v650_v9 }
 0x244   :  { %v652_v11 = vpop.xlane.xlu1 %651 }
 0x245   :  { %v654_v12 = vmul.f32 0.001953125, %v652_v11 }
 0x247   :  { %v655_v13 = vsub.f32 %v599_v60, %v654_v12  ;;  %v656_v41 = vsub.f32 %v601_v62, %v654_v12  ;;  %v657_v14 = vsub.f32 %v640_v2, %v654_v12  ;;  %v658_v15 = vsub.f32 %v642_v5, %v654_v12 }
 0x249   :  { %v659_v16 = vmul.f32 %v655_v13, %v655_v13  ;;  %v660_v17 = vmul.f32 %v656_v41, %v656_v41  ;;  %v661_v18 = vmul.f32 %v657_v14, %v657_v14  ;;  %v662_v20 = vmul.f32 %v658_v15, %v658_v15 }
 0x24b   :  { %v663_v19 = vadd.f32 %v660_v17, %v659_v16 }
 0x24d   :  { %v664_v21 = vadd.f32 %v663_v19, %v661_v18 }
 0x24f   :  { %v665_v54 = vadd.f32 %v664_v21, %v662_v20 }
 0x251   :  { %666 = vadd.xlane.f32.xlu0 %v665_v54 }
 0x267   :  { %683 = vperm.xlu0 %723, %v647_v22  }
 0x2de   :  { %v667_v23 = vpop.xlane.xlu0 %666 }
 0x2df   :  { %v668_v48 = vmul.f32 0.001953125, %v667_v23 }
 0x2e1   :  { %v669_v24 = vadd.f32 1e-05, %v668_v48 }
 0x2e3   :  { %743 = vrsqrt.f32 %v669_v24 }
 0x2e6   :  { %v684_v32 = vpop.permute.xlu0 %683 }
 0x2ed   :  { %v744_v27 = vpop.eup %743 }
 0x2ee   :  { %v671_v28 = vmul.f32 %v744_v27, %v646_v26 }
 0x2f0   :  { %674 = vperm.xlu1 %724, %v671_v28  }
 0x36f   :  { %v675_v29 = vpop.permute.xlu1 %674 }
 0x370   :  { %v677_v4 = vmul.f32 %v675_v29, %v655_v13  ;;  %v678_v10 = vmul.f32 %v675_v29, %v656_v41  ;;  %v679_v30 = vmul.f32 %v675_v29, %v657_v14  ;;  %v680_v31 = vmul.f32 %v675_v29, %v658_v15 }
 0x372   :  { %v686_v33 = vadd.f32 %v684_v32, %v677_v4  ;;  %v687_v57 = vadd.f32 %v684_v32, %v678_v10  ;;  %v688_v1 = vadd.f32 %v684_v32, %v679_v30  ;;  %v689_v34 = vadd.f32 %v684_v32, %v680_v31 }
 0x374   :  { %vm690_vm13 = vcmp.ge.f32.partialorder %v686_v33, 0.0  ;;  %vm691_vm6 = vcmp.ge.f32.partialorder %v687_v57, 0.0  ;;  %vm692_vm5 = vcmp.ge.f32.partialorder %v688_v1, 0.0  ;;  %vm693_vm3 = vcmp.ge.f32.partialorder %v689_v34, 0.0 }
 0x375   :  { %v694_v46 = vmul.f32 0.2, %v686_v33  ;;  %v695_v36 = vmul.f32 0.2, %v687_v57  ;;  %v696_v37 = vmul.f32 0.2, %v688_v1 }
 0x376   :  { %v697_v38 = vmul.f32 0.2, %v689_v34 }
 0x377   :  { %v698_v61 = vsel %vm690_vm13, %v686_v33, %v694_v46  ;;  %v699_v55 = vsel %vm691_vm6, %v687_v57, %v695_v36  ;;  %v700_v39 = vsel %vm692_vm5, %v688_v1, %v696_v37 }
 0x378   :  { %v701_v40 = vsel %vm693_vm3, %v689_v34, %v697_v38  ;;  %702 = vst [vmem:[%s1081_s5] sm:$0xff] %v698_v61  ;;  %703 = vst [vmem:[%s1081_s5 + $0x8] sm:$0xff] %v699_v55 }
 0x379   :  { %704 = vst [vmem:[%s1081_s5 + $0x10] sm:$0xff] %v700_v39  ;;  %705 = vst [vmem:[%s1081_s5 + $0x18] sm:$0xff] %v701_v40 }

// kernel: resnet_vqvae_fwd.18
= control target key start
LH: loop header
LB: loop body
LE: loop exit
PB: predicated region body
PF: predicated region fallthrough
CT: control target
= control target key end

     0   :  { %v1500_v3 = vmov 0.0   ;;  %s1501_s15 = smov 17   ;;  %s1502_s16 = smov 16   ;;  %v1508_v9 = vmov 0   ;;  %v33_v12 = vlaneseq  ;;  %v2249_v32 = vmov 0  ;;  %s2201_s0 = inlined_call_operand.vmem [shape: f32[8,512], index: 0, kind: input, shape index: {}]   ;;  %s2202_s2 = inlined_call_operand.vmem [shape: f32[1,8,1], index: 2, kind: input, shape index: {}]   ;;  %s2203_s1 = inlined_call_operand.vmem [shape: f32[1,8,72], index: 1, kind: input, shape index: {}]   ;;  %s2204_s4 = inlined_call_operand.vmem [shape: f32[1,8,1], index: 4, kind: input, shape index: {}]   ;;  %s2205_s3 = inlined_call_operand.vmem [shape: f32[1,8,1], index: 3, kind: input, shape index: {}]   ;;  %s2206_s6 = inlined_call_operand.vmem [shape: f32[1,8,1], index: 6, kind: input, shape index: {}]   ;;  %s2207_s5 = inlined_call_operand.vmem [shape: f32[1,8,72], index: 5, kind: input, shape index: {}]   ;;  %s2208_s8 = inlined_call_operand.vmem [shape: f32[1,8,1], index: 8, kind: input, shape index: {}]   ;;  %s2209_s7 = inlined_call_operand.vmem [shape: f32[1,8,1], index: 7, kind: input, shape index: {}]   ;;  %s2210_s9 = inlined_call_operand.vmem [shape: f32[8,512], index: 9, kind: output, shape index: {}]  }
   0x1   :  { %v1564_v0 = vld [vmem:[%s2201_s0 + $0x10] sm:$0xff]  ;;  %v1569_v1 = vld [vmem:[%s2201_s0] sm:$0xff]  ;;  %v1574_v2 = vld [vmem:[%s2201_s0 + $0x8] sm:$0xff]  ;;  %s1503_s19 = smov 1   ;;  %s1504_s20 = smov 15   ;;  %573 = vmatprep.mubr.bf16.mxu0 %v1508_v9  ;;  %614 = vmatprep.mubr.bf16.mxu1 %v1508_v9  ;;  %vm2212_vm7 = vcmask 130048  }
   0x2   :  { %v1340_v4 = vpack.i.bf16 %v1564_v0, %v1500_v3  ;;  %v1330_v5 = vpack.i.bf16 %v1574_v2, %v1569_v1  ;;  %v1587_v6 = vld [vmem:[%s2201_s0 + $0x18] sm:$0xff]  ;;  %v1370_v8 = vpack.i.bf16 %v1564_v0, %v1574_v2  ;;  %s1505_s21 = smov 127   ;;  %s1506_s22 = smov 113   ;;  %1410 = vset.pattern.permute.xlu0 %v1508_v9  ;;  %1411 = vset.pattern.permute.xlu1 %v1508_v9  ;;  %v518_v11 = vld [vmem:[%s2202_s2] sm:$0xff]  ;;  %v1630_v13 = vand.u32 127, %v33_v12 }
   0x3   :  { %v1375_v7 = vpack.i.bf16 %v1587_v6, %v1569_v1  ;;  %s1507_s23 = smov 112   ;;  %s1509_s24 = smov 111   ;;  %v1405_v10 = vpack.i.bf16 %v1587_v6, %v1564_v0  ;;  %vm2213_vm8 = vcmask 138240   ;;  %v2259_v46 = vmov 0 }
   0x4   :  { %1341 = vrot.lane.b32.xlu1 %v1340_v4, %s1501_s15  ;;  %1331 = vrot.lane.b32.xlu0 %v1330_v5, %s1501_s15  ;;  %v35_v14 = vadd.s32 128, %v1630_v13  ;;  %v1634_v16 = vadd.s32 384, %v1630_v13  ;;  %v1637_v17 = vadd.s32 256, %v1630_v13  ;;  %v42_v18 = vshra.s32 %v1630_v13, 4 }
   0x5   :  { %v38_v23 = vand.u32 15, %v1630_v13  ;;  %v2261_v55 = vmov 0  ;;  %v2263_v60 = vmov 0  ;;  %v2278_v33 = vmov 0 }
   0x6   :  { %v43_v15 = vshra.s32 %v35_v14, 4  ;;  %v39_v19 = vand.u32 15, %v35_v14  ;;  %v45_v21 = vshra.s32 %v1634_v16, 4  ;;  %v44_v22 = vshra.s32 %v1637_v17, 4 }
   0x7   :  { %v1645_v24 = vand.u32 15, %v42_v18  ;;  %v41_v25 = vand.u32 15, %v1634_v16  ;;  %v40_v30 = vand.u32 15, %v1637_v17  ;;  %vm1659_vm3 = vcmp.ge.s32.totalorder %v38_v23, 1 }
   0x8   :  { %1346 = vrot.lane.b32.xlu1 %v1340_v4, %s1502_s16  ;;  %1336 = vrot.lane.b32.xlu0 %v1330_v5, %s1502_s16  ;;  %v1640_v20 = vand.u32 15, %v43_v15  ;;  %vm1649_vm1 = vcmp.ge.s32.totalorder %v39_v19, 1  ;;  %v1653_v27 = vand.u32 15, %v45_v21  ;;  %v1656_v31 = vand.u32 15, %v44_v22 }
   0x9   :  { %vm50_vm2 = vcmp.ge.s32.totalorder %v1645_v24, 1  ;;  %v2250_v32 = vsel %vm1659_vm3, 4294967295, %v2249_v32  ;;  %vm1673_vm5 = vcmp.ge.s32.totalorder %v41_v25, 1  ;;  %vm1689_vm11 = vcmp.ge.s32.totalorder %v40_v30, 1 }
   0xa   :  { %vm2211_vm0 = vcmp.ge.s32.totalorder %v1640_v20, 1  ;;  %vm2215_vm6 = vcmp.ge.s32.totalorder %v1653_v27, 1  ;;  %vm1682_vm9 = vmand %vm50_vm2, %vm1659_vm3  ;;  %vm2214_vm10 = vcmp.ge.s32.totalorder %v1656_v31, 1  ;;  %v2274_v18 = vmov 0 }
   0xb   :  { %vm1667_vm4 = vmand %vm2211_vm0, %vm1649_vm1  ;;  %v2281_v16 = vmov 0 }
   0xc   :  { %163 = vrot.lane.b32.xlu1 %v1587_v6, %s1502_s16  ;;  %118 = vrot.lane.b32.xlu0 %v1587_v6, %s1501_s15  ;;  %vm1697_vm12 = vmpackc.low %vm2211_vm0, %vm1667_vm4  ;;  %vm1730_vm0 = vcmp.le.s32.totalorder %v39_v19, 14 }
   0xd   :  { %v2260_v46 = vsel %vm1697_vm12, 4294967295, %v2259_v46  ;;  %vm69_vm13 = vmand %vm2215_vm6, %vm1673_vm5 }
   0xe   :  { %vm68_vm14 = vmand %vm2214_vm10, %vm1689_vm11 }
   0xf   :  { %vm1717_vm15 = vmpackc.low %vm50_vm2, %vm1682_vm9 }
  0x10   :  { %1356 = vrot.lane.b32.xlu1 %v1330_v5, %s1503_s19  ;;  %1351 = vrot.lane.b32.xlu0 %v1330_v5, %s1504_s20  ;;  %v2262_v55 = vsel %vm1717_vm15, 4294967295, %v2261_v55  ;;  %vm1726_vm4 = vmpackc.low %vm2215_vm6, %vm69_vm13  ;;  %vm1745_vm13 = vcmp.le.s32.totalorder %v38_v23, 14 }
  0x11   :  { %v2264_v60 = vsel %vm1726_vm4, 4294967295, %v2263_v60  ;;  %vm1739_vm9 = vmpackc.low %vm2214_vm10, %vm68_vm14  ;;  %vm2271_vm14 = vcmp.ge.s32.totalorder %v1640_v20, 1 }
  0x12   :  { %vm1755_vm10 = vmand %vm2271_vm14, %vm1730_vm0 }
  0x13   :  { %vm1765_vm6 = vmand %vm50_vm2, %vm1745_vm13  ;;  %vm1783_vm2 = vcmp.le.s32.totalorder %v40_v30, 14  ;;  %v2286_v30 = vmov 0 }
  0x14   :  { %1366 = vrot.lane.b32.xlu1 %v1340_v4, %s1503_s19  ;;  %1361 = vrot.lane.b32.xlu0 %v1340_v4, %s1504_s20  ;;  %v2267_v4 = vmov 0  ;;  %v2275_v18 = vsel %vm1765_vm6, 4294967295, %v2274_v18  ;;  %vm2224_vm14 = vmpackc.low %vm1649_vm1, %vm1755_vm10  ;;  %v2279_v33 = vsel %vm1783_vm2, 4294967295, %v2278_v33 }
  0x15   :  { %v2268_v4 = vsel %vm1739_vm9, 4294967295, %v2267_v4 }
  0x18   :  { %253 = vrot.lane.b32.xlu1 %v1587_v6, %s1503_s19  ;;  %208 = vrot.lane.b32.xlu0 %v1587_v6, %s1504_s20 }
  0x1c   :  { %1376 = vrot.lane.b32.xlu1 %v1375_v7, %s1505_s21  ;;  %1371 = vrot.lane.b32.xlu0 %v1370_v8, %s1505_s21 }
  0x20   :  { %1381 = vrot.lane.b32.xlu1 %v1370_v8, %s1506_s22  ;;  %306 = vrot.lane.b32.xlu0 %v1500_v3, %s1505_s21 }
  0x24   :  { %1391 = vrot.lane.b32.xlu1 %v1375_v7, %s1506_s22  ;;  %1386 = vrot.lane.b32.xlu0 %v1370_v8, %s1507_s23 }
  0x28   :  { %1396 = vrot.lane.b32.xlu0 %v1375_v7, %s1507_s23  ;;  %351 = vrot.lane.b32.xlu1 %v1500_v3, %s1506_s22  ;;  %v2269_v7 = vmov 0 }
  0x29   :  { %v2270_v7 = vsel %vm1745_vm13, 4294967295, %v2269_v7 }
  0x2c   :  { %396 = vrot.lane.b32.xlu0 %v1500_v3, %s1507_s23  ;;  %1401 = vrot.lane.b32.xlu1 %v1330_v5, %s1509_s24 }
  0x30   :  { %1406 = vrot.lane.b32.xlu0 %v1405_v10, %s1509_s24  ;;  %441 = vrot.lane.b32.xlu1 %v1500_v3, %s1509_s24 }
  0x34   :  { %521 = vperm.xlu0 %1410, %v518_v11   ;;  %v2272_v11 = vmov 0 }
  0x35   :  { %v2273_v11 = vsel %vm1755_vm10, 4294967295, %v2272_v11 }
  0x76   :  { %v1342_v28 = vpop.permute.xlu1 %1341  ;;  %v1332_v29 = vpop.permute.xlu0 %1331 }
  0x77   :  { %v1343_v35 = vunpack.i.l.bf16 %v1342_v28  ;;  %v1334_v36 = vunpack.i.h.bf16 %v1332_v29  ;;  %v1333_v37 = vunpack.i.l.bf16 %v1332_v29  ;;  %v1344_v47 = vunpack.i.h.bf16 %v1342_v28 }
  0x79   :  { %v122_v48 = vsel %vm2213_vm8, %v1333_v37, %v1334_v36  ;;  %v121_v50 = vsel %vm2213_vm8, %v1343_v35, %v1333_v37  ;;  %v123_v63 = vsel %vm2213_vm8, %v1334_v36, %v1344_v47 }
  0x7a   :  { %v1347_v38 = vpop.permute.xlu1 %1346  ;;  %v1337_v39 = vpop.permute.xlu0 %1336 }
  0x7b   :  { %v1349_v42 = vunpack.i.h.bf16 %v1347_v38  ;;  %v1348_v43 = vunpack.i.l.bf16 %v1347_v38  ;;  %v1339_v44 = vunpack.i.h.bf16 %v1337_v39  ;;  %v1338_v45 = vunpack.i.l.bf16 %v1337_v39 }
  0x7d   :  { %v167_v49 = vsel %vm2212_vm7, %v1338_v45, %v1339_v44  ;;  %v166_v51 = vsel %vm2212_vm7, %v1348_v43, %v1338_v45  ;;  %v168_v57 = vsel %vm2212_vm7, %v1339_v44, %v1349_v42 }
  0x7e   :  { %v164_v52 = vpop.permute.xlu1 %163  ;;  %v119_v53 = vpop.permute.xlu0 %118  ;;  %v1224_v54 = vpack.c.bf16 %v167_v49, %v122_v48  ;;  %v1227_v56 = vpack.c.bf16 %v166_v51, %v121_v50  ;;  %v1251_v5 = vpack.c.bf16 %v168_v57, %v123_v63 }
  0x7f   :  { %v169_v58 = vsel %vm2212_vm7, %v1349_v42, %v164_v52  ;;  %v124_v59 = vsel %vm2213_vm8, %v1344_v47, %v119_v53  ;;  %vm2218_vm7 = vcmask 7168   ;;  %vm2217_vm8 = vcmask 121856  }
  0x80   :  { %1225 = vmatprep.subr.msk.bf16.mxu0 %vm1697_vm12, %v1224_v54  ;;  %v1248_v62 = vpack.c.bf16 %v169_v58, %v124_v59  ;;  %vm2284_vm12 = vcmask 121856   ;;  %v2293_v59 = vmov 0 }
  0x81   :  { %1228 = vmatpush1.bf16.msk.msra.mxu0 %vm1717_vm15, %v1227_v56  ;;  %vm2283_vm15 = vcmask 7168   ;;  %vm2289_vm10 = vmmov %vm2284_vm12 }
  0x82   :  { %v1357_v8 = vpop.permute.xlu1 %1356  ;;  %1249 = vmatprep.subr.msk.bf16.mxu1 %vm1726_vm4, %v1248_v62  ;;  %v1352_v10 = vpop.permute.xlu0 %1351 }
  0x83   :  { %v1359_v12 = vunpack.i.h.bf16 %v1357_v8  ;;  %v1358_v13 = vunpack.i.l.bf16 %v1357_v8  ;;  %v1354_v14 = vunpack.i.h.bf16 %v1352_v10  ;;  %v1353_v15 = vunpack.i.l.bf16 %v1352_v10  ;;  %1252 = vmatpush1.bf16.msk.msra.mxu1 %vm1739_vm9, %v1251_v5 }
  0x84   :  { %vm1777_vm9 = vcmp.le.s32.totalorder %v41_v25, 14 }
  0x85   :  { %v257_v19 = vsel %vm2218_vm7, %v1358_v13, %v1359_v12  ;;  %v212_v21 = vsel %vm2217_vm8, %v1353_v15, %v1354_v14  ;;  %vm2280_vm7 = vcmp.ge.s32.totalorder %v1653_v27, 1  ;;  %vm2285_vm8 = vcmp.ge.s32.totalorder %v1656_v31, 1 }
  0x86   :  { %v1230_v23 = vpack.c.bf16 %v257_v19, %v212_v21  ;;  %v1367_v28 = vpop.permute.xlu1 %1366  ;;  %v1362_v29 = vpop.permute.xlu0 %1361  ;;  %vm1800_vm4 = vmand %vm2280_vm7, %vm1777_vm9  ;;  %v2300_v19 = vmov 0 }
  0x87   :  { %v1369_v35 = vunpack.i.h.bf16 %v1367_v28  ;;  %v1368_v36 = vunpack.i.l.bf16 %v1367_v28  ;;  %v1364_v37 = vunpack.i.h.bf16 %v1362_v29  ;;  %v1363_v38 = vunpack.i.l.bf16 %v1362_v29  ;;  %vm1810_vm13 = vmand %vm2285_vm8, %vm1783_vm2 }
  0x88   :  { %1231 = vmatprep.subr.msk.bf16.mxu0 %vm2224_vm14, %v1230_v23  ;;  %v2282_v16 = vsel %vm1800_vm4, 4294967295, %v2281_v16  ;;  %v2287_v30 = vsel %vm1810_vm13, 4294967295, %v2286_v30  ;;  %vm2288_vm14 = vmmov %vm2283_vm15 }
  0x89   :  { %v256_v17 = vsel %vm2283_vm15, %v1368_v36, %v1358_v13  ;;  %v211_v25 = vsel %vm2284_vm12, %v1363_v38, %v1353_v15  ;;  %v258_v39 = vsel %vm2288_vm14, %v1359_v12, %v1369_v35  ;;  %v213_v40 = vsel %vm2289_vm10, %v1354_v14, %v1364_v37  ;;  %vm2290_vm7 = vmmov %vm2288_vm14 }
  0x8a   :  { %v1233_v42 = vpack.c.bf16 %v256_v17, %v211_v25  ;;  %v254_v43 = vpop.permute.xlu1 %253  ;;  %v209_v44 = vpop.permute.xlu0 %208  ;;  %vm2291_vm15 = vmmov %vm2289_vm10  ;;  %v1257_v49 = vpack.c.bf16 %v258_v39, %v213_v40  ;;  %vm2230_vm14 = vcmask 1039360   ;;  %v2296_v12 = vmov 0 }
  0x8b   :  { %v259_v45 = vsel %vm2290_vm7, %v1369_v35, %v254_v43  ;;  %v214_v47 = vsel %vm2291_vm15, %v1364_v37, %v209_v44  ;;  %vm2227_vm12 = vmpackc.low %vm1673_vm5, %vm1800_vm4  ;;  %vm1510_vm7 = vmmov 1   ;;  %v2305_v35 = vmov 0 }
  0x8c   :  { %v1254_v48 = vpack.c.bf16 %v259_v45, %v214_v47  ;;  %vm2292_vm8 = vmpackc.low %vm1659_vm3, %vm1765_vm6  ;;  %vm2236_vm6 = vcmask 916480  }
  0x8d   :  { %1234 = vmatpush1.bf16.msk.msra.mxu0 %vm2292_vm8, %v1233_v42  ;;  %vm2226_vm10 = vmpackc.low %vm1689_vm11, %vm1810_vm13  ;;  %vm2295_vm8 = vnez %v2270_v7 }
  0x8e   :  { %v1377_v50 = vpop.permute.xlu1 %1376  ;;  %v1372_v51 = vpop.permute.xlu0 %1371  ;;  %1255 = vmatprep.subr.msk.bf16.mxu1 %vm2227_vm12, %v1254_v48  ;;  %vm1846_vm15 = vmpackc.low %vm1730_vm0, %vm1510_vm7 }
  0x8f   :  { %v1379_v52 = vunpack.i.h.bf16 %v1377_v50  ;;  %v1378_v53 = vunpack.i.l.bf16 %v1377_v50  ;;  %v1374_v54 = vunpack.i.h.bf16 %v1372_v51  ;;  %v1373_v56 = vunpack.i.l.bf16 %v1372_v51  ;;  %1258 = vmatpush1.bf16.msk.msra.mxu1 %vm2226_vm10, %v1257_v49  ;;  %vm1856_vm10 = vmpackc.low %vm2295_vm8, %vm1510_vm7 }
  0x90   :  { %v2294_v59 = vsel %vm1846_vm15, 4294967295, %v2293_v59  ;;  %v2297_v12 = vsel %vm1856_vm10, 4294967295, %v2296_v12  ;;  %vm1865_vm13 = vmpackc.low %vm1777_vm9, %vm1510_vm7 }
  0x91   :  { %v309_v57 = vsel %vm2230_vm14, %v1378_v53, %v1373_v56  ;;  %v310_v58 = vsel %vm2230_vm14, %v1373_v56, %v1374_v54  ;;  %v311_v62 = vsel %vm2230_vm14, %v1374_v54, %v1379_v52  ;;  %vm1875_vm12 = vmpackc.low %vm1783_vm2, %vm1510_vm7  ;;  %vm2240_vm7 = vcmp.le.s32.totalorder %v1645_v24, 14 }
  0x92   :  { %v1236_v63 = vpack.c.bf16 %v310_v58, %v1574_v2  ;;  %v1239_v5 = vpack.c.bf16 %v309_v57, %v1569_v1  ;;  %v1382_v8 = vpop.permute.xlu1 %1381  ;;  %v307_v10 = vpop.permute.xlu0 %306  ;;  %v2298_v1 = vmov 0  ;;  %v2301_v19 = vsel %vm1875_vm12, 4294967295, %v2300_v19 }
  0x93   :  { %v1384_v13 = vunpack.i.h.bf16 %v1382_v8  ;;  %v1383_v14 = vunpack.i.l.bf16 %v1382_v8  ;;  %v312_v15 = vsel %vm2230_vm14, %v1379_v52, %v307_v10  ;;  %v2299_v1 = vsel %vm1865_vm13, 4294967295, %v2298_v1  ;;  %v979_v52 = vld [vmem:[%s2207_s5] sm:$0xff] }
  0x94   :  { %v1260_v2 = vpack.c.bf16 %v312_v15, %v1587_v6  ;;  %1237 = vmatprep.subr.msk.bf16.mxu0 %vm1846_vm15, %v1236_v63  ;;  %v1263_v21 = vpack.c.bf16 %v311_v62, %v1564_v0  ;;  %vm2302_vm14 = vcmp.le.s32.totalorder %v1640_v20, 14  ;;  %vm2303_vm15 = vcmask 924672  }
  0x95   :  { %1240 = vmatpush1.bf16.msk.msra.mxu0 %vm1856_vm10, %v1239_v5  ;;  %vm75_vm4 = vmand %vm2302_vm14, %vm1649_vm1  ;;  %v355_v28 = vsel %vm2303_vm15, %v1383_v14, %v1384_v13  ;;  %v2319_v58 = vmov 0 }
  0x96   :  { %v1392_v6 = vpop.permute.xlu1 %1391  ;;  %v1387_v23 = vpop.permute.xlu0 %1386  ;;  %1261 = vmatprep.subr.msk.bf16.mxu1 %vm1865_vm13, %v1260_v2  ;;  %vm2304_vm10 = vmmov %vm2302_vm14  ;;  %vm2239_vm14 = vcmp.le.s32.totalorder %v1653_v27, 14  ;;  %vm2311_vm13 = vcmp.le.s32.totalorder %v1656_v31, 14 }
  0x97   :  { %v1389_v29 = vunpack.i.h.bf16 %v1387_v23  ;;  %v1388_v0 = vunpack.i.l.bf16 %v1387_v23  ;;  %1264 = vmatpush1.bf16.msk.msra.mxu1 %vm1875_vm12, %v1263_v21  ;;  %vm1894_vm2 = vmpackc.low %vm2304_vm10, %vm75_vm4  ;;  %v1393_v36 = vunpack.i.l.bf16 %v1392_v6  ;;  %v1394_v42 = vunpack.i.h.bf16 %v1392_v6 }
  0x98   :  { %v2306_v35 = vsel %vm1894_vm2, 4294967295, %v2305_v35  ;;  %vm74_vm15 = vmand %vm2240_vm7, %vm1659_vm3  ;;  %vm2310_vm12 = vcmask 916480  }
  0x99   :  { %v400_v37 = vsel %vm2236_vm6, %v1388_v0, %v1389_v29  ;;  %vm77_vm4 = vmand %vm2239_vm14, %vm1673_vm5  ;;  %vm2309_vm6 = vcmask 924672  }
  0x9a   :  { %v1242_v38 = vpack.c.bf16 %v400_v37, %v355_v28  ;;  %v1397_v17 = vpop.permute.xlu0 %1396  ;;  %v352_v25 = vpop.permute.xlu1 %351  ;;  %vm1913_vm10 = vmpackc.low %vm2240_vm7, %vm74_vm15  ;;  %v354_v44 = vsel %vm2309_vm6, %v1393_v36, %v1383_v14  ;;  %vm2315_vm7 = vcmp.le.s32.totalorder %v1653_v27, 14 }
  0x9b   :  { %v1399_v39 = vunpack.i.h.bf16 %v1397_v17  ;;  %v1398_v40 = vunpack.i.l.bf16 %v1397_v17  ;;  %vm1923_vm3 = vmand %vm2311_vm13, %vm1689_vm11  ;;  %v357_v53 = vsel %vm2309_vm6, %v1394_v42, %v352_v25  ;;  %vm2318_vm13 = vcmp.le.s32.totalorder %v1645_v24, 14 }
  0x9c   :  { %1243 = vmatprep.subr.msk.bf16.mxu0 %vm1894_vm2, %v1242_v38  ;;  %vm2314_vm14 = vmmov %vm2310_vm12  ;;  %v2326_v24 = vmov 0 }
  0x9d   :  { %v399_v45 = vsel %vm2310_vm12, %v1398_v40, %v1388_v0  ;;  %v401_v48 = vsel %vm2314_vm14, %v1389_v29, %v1399_v39  ;;  %vm1930_vm2 = vmpackc.low %vm2315_vm7, %vm77_vm4  ;;  %vm2322_vm7 = vcmp.le.s32.totalorder %v1656_v31, 14 }
  0x9e   :  { %v1245_v49 = vpack.c.bf16 %v399_v45, %v354_v44  ;;  %v397_v50 = vpop.permute.xlu0 %396  ;;  %v1402_v51 = vpop.permute.xlu1 %1401  ;;  %vm1940_vm14 = vmand %vm2318_vm13, %vm2295_vm8  ;;  %vm2325_vm8 = vcmp.le.s32.totalorder %v1640_v20, 14 }
  0x9f   :  { %v402_v54 = vsel %vm2310_vm12, %v1399_v39, %v397_v50  ;;  %v1404_v56 = vunpack.i.h.bf16 %v1402_v51  ;;  %v1403_v57 = vunpack.i.l.bf16 %v1402_v51  ;;  %v2320_v58 = vsel %vm1940_vm14, 4294967295, %v2319_v58  ;;  %vm2321_vm15 = vmmov %vm2309_vm6 }
  0xa0   :  { %v356_v62 = vsel %vm2321_vm15, %v1384_v13, %v1394_v42  ;;  %v1266_v63 = vpack.c.bf16 %v402_v54, %v357_v53  ;;  %1246 = vmatpush1.bf16.msk.msra.mxu0 %vm1913_vm10, %v1245_v49  ;;  %vm1951_vm4 = vmpackc.low %vm2322_vm7, %vm1923_vm3  ;;  %vm2328_vm15 = vcmask 908288   ;;  %vm2329_vm3 = vcmp.le.s32.totalorder %v1653_v27, 14 }
  0xa1   :  { %v1269_v7 = vpack.c.bf16 %v401_v48, %v356_v62  ;;  %vm1959_vm6 = vmand %vm2325_vm8, %vm1730_vm0  ;;  %v444_v8 = vsel %vm2328_vm15, %v1403_v57, %v1404_v56  ;;  %v2330_v13 = vmov 0  ;;  %vm2332_vm0 = vnez %v2279_v33  ;;  %v460_v33 = vld [vmem:[%s2203_s1] sm:$0xff] }
  0xa2   :  { %v2327_v24 = vsel %vm1959_vm6, 4294967295, %v2326_v24  ;;  %v1407_v10 = vpop.permute.xlu0 %1406  ;;  %1267 = vmatprep.subr.msk.bf16.mxu1 %vm1930_vm2, %v1266_v63  ;;  %vm1970_vm12 = vmand %vm2329_vm3, %vm1777_vm9  ;;  %v442_v61 = vpop.permute.xlu1 %441  ;;  %v452_v20 = vsel %vm1940_vm14, %v444_v8, 0.0  ;;  %vm2243_vm9 = vcmask 1043456   ;;  %v497_v17 = vpack.c.bf16 %v460_v33, %v460_v33 }
  0xa3   :  { %v2331_v13 = vsel %vm1970_vm12, 4294967295, %v2330_v13  ;;  %v1409_v14 = vunpack.i.h.bf16 %v1407_v10  ;;  %v1408_v15 = vunpack.i.l.bf16 %v1407_v10  ;;  %1270 = vmatpush1.bf16.msk.msra.mxu1 %vm1951_vm4, %v1269_v7  ;;  %v514_v2 = vpack.c.bf16 %v452_v20, %v452_v20  ;;  %vm2333_vm13 = vmmov %vm2322_vm7 }
  0xa4   :  { %vm1982_vm7 = vmand %vm2333_vm13, %vm2332_vm0  ;;  %vm2242_vm0 = vcmask 588800   ;;  %vm2348_vm14 = vnez %v2262_v55 }
  0xa5   :  { %vm2336_vm8 = vmmov %vm2328_vm15  ;;  %v530_v36 = vsel %vm2243_vm9, %v514_v2, 0 }
  0xa6   :  { %v445_v22 = vsel %vm2336_vm8, %v1404_v56, %v1408_v15  ;;  %vm2337_vm15 = vmmov %vm2336_vm8 }
  0xa7   :  { %v447_v21 = vsel %vm2337_vm15, %v1409_v14, %v442_v61  ;;  %vm2338_vm3 = vmmov %vm2336_vm8  ;;  %v453_v23 = vsel %vm1959_vm6, %v445_v22, 0.0 }
  0xa8   :  { %v446_v6 = vsel %vm2338_vm3, %v1408_v15, %v1409_v14  ;;  %v455_v28 = vsel %vm1970_vm12, %v447_v21, 0.0  ;;  %v515_v0 = vpack.c.bf16 %v453_v23, %v453_v23  ;;  %v624_v23 = vld [vmem:[%s2204_s4] sm:$0xff] }
  0xa9   :  { %v454_v31 = vsel %vm1982_vm7, %v446_v6, 0.0  ;;  %v517_v29 = vpack.c.bf16 %v455_v28, %v455_v28 }
  0xaa   :  { %v516_v37 = vpack.c.bf16 %v454_v31, %v454_v31  ;;  %1215 = vmatprep.subr.msk.bf16.mxu0 %vm2243_vm9, %v515_v0 }
  0xab   :  { %1217 = vmatprep.subr.msk.bf16.mxu1 %vm2243_vm9, %v517_v29  ;;  %550 = vmatpush1.bf16.msra.mxu0 %v530_v36  ;;  %v623_v29 = vld [vmem:[%s2205_s3] sm:$0xff] }
  0xac   :  { %v536_v38 = vsel %vm2243_vm9, %v516_v37, 0 }
  0xad   :  { %591 = vmatpush1.bf16.msra.mxu1 %v536_v38 }
  0xae   :  { %1216 = vmatmul.mubr.msk.bf16.vlgmr.msra.gmra.mrb[0].mxu0 %vm2242_vm0, %v497_v17 }
  0xaf   :  { %1090 = vmatprep.mubr.bf16.mxu0 %v1508_v9 }
  0xb0   :  { %1218 = vmatmul.mubr.msk.bf16.vlgmr.msra.gmra.mrb[0].mxu1 %vm2242_vm0, %v497_v17 }
  0xb1   :  { %1131 = vmatprep.mubr.bf16.mxu1 %v1508_v9 }
  0xb3   :  { %v522_v25 = vpop.permute.xlu0 %521 }
 0x181   :  { %v575_v39 = vpop.f32.mrb[0].mxu0 }
 0x182   :  { %v576_v42 = vadd.f32 %v575_v39, %v522_v25  ;;  %v577_v44 = vpop.f32.mrb[1].mxu0 }
 0x183   :  { %v616_v40 = vpop.f32.mrb[0].mxu1  ;;  %v578_v47 = vadd.f32 %v577_v44, %v522_v25  ;;  %v579_v48 = vpop.f32.mrb[2].mxu0 }
 0x184   :  { %v618_v45 = vpop.f32.mrb[1].mxu1  ;;  %v580_v50 = vpop.f32.mrb[3].mxu0  ;;  %v617_v53 = vadd.f32 %v616_v40, %v522_v25 }
 0x185   :  { %v620_v49 = vpop.f32.mrb[2].mxu1  ;;  %v625_v54 = vadd.f32 %v578_v47, %v576_v42  ;;  %v619_v56 = vadd.f32 %v618_v45, %v522_v25 }
 0x186   :  { %v621_v51 = vpop.f32.mrb[3].mxu1 }
 0x187   :  { %v626_v57 = vadd.f32 %v625_v54, %v617_v53 }
 0x189   :  { %v627_v62 = vadd.f32 %v626_v57, %v619_v56 }
 0x18b   :  { %628 = vadd.xlane.f32.xlu1 %v627_v62 }
 0x218   :  { %v629_v63 = vpop.xlane.xlu1 %628 }
 0x219   :  { %v631_v7 = vmul.f32 0.001953125, %v629_v63 }
 0x21b   :  { %v632_v9 = vsub.f32 %v576_v42, %v631_v7  ;;  %v633_v8 = vsub.f32 %v578_v47, %v631_v7  ;;  %v634_v10 = vsub.f32 %v617_v53, %v631_v7  ;;  %v635_v61 = vsub.f32 %v619_v56, %v631_v7 }
 0x21d   :  { %v636_v20 = vmul.f32 %v632_v9, %v632_v9  ;;  %v637_v14 = vmul.f32 %v633_v8, %v633_v8  ;;  %v638_v15 = vmul.f32 %v634_v10, %v634_v10  ;;  %v639_v22 = vmul.f32 %v635_v61, %v635_v61 }
 0x21f   :  { %v640_v2 = vadd.f32 %v637_v14, %v636_v20 }
 0x221   :  { %v641_v21 = vadd.f32 %v640_v2, %v638_v15 }
 0x223   :  { %v642_v6 = vadd.f32 %v641_v21, %v639_v22 }
 0x225   :  { %643 = vadd.xlane.f32.xlu0 %v642_v6 }
 0x23b   :  { %660 = vperm.xlu0 %1410, %v624_v23  }
 0x23f   :  { %853 = vrot.lane.b32.xlu0 %v1500_v3, %s1505_s21 }
 0x243   :  { %925 = vrot.lane.b32.xlu0 %v1500_v3, %s1507_s23 }
 0x2b2   :  { %v644_v28 = vpop.xlane.xlu0 %643 }
 0x2b3   :  { %v645_v31 = vmul.f32 0.001953125, %v644_v28 }
 0x2b5   :  { %v646_v33 = vadd.f32 1e-05, %v645_v31 }
 0x2b7   :  { %1492 = vrsqrt.f32 %v646_v33 }
 0x2ba   :  { %v661_v39 = vpop.permute.xlu0 %660 }
 0x2c1   :  { %v1493_v0 = vpop.eup %1492 }
 0x2c2   :  { %v648_v36 = vmul.f32 %v1493_v0, %v623_v29 }
 0x2c4   :  { %651 = vperm.xlu1 %1411, %v648_v36  }
 0x2c8   :  { %889 = vrot.lane.b32.xlu1 %v1500_v3, %s1506_s22 }
 0x343   :  { %v652_v37 = vpop.permute.xlu1 %651 }
 0x344   :  { %v654_v38 = vmul.f32 %v652_v37, %v632_v9  ;;  %v655_v17 = vmul.f32 %v652_v37, %v633_v8  ;;  %v656_v25 = vmul.f32 %v652_v37, %v634_v10  ;;  %v657_v40 = vmul.f32 %v652_v37, %v635_v61  ;;  %v1037_v10 = vld [vmem:[%s2206_s6] sm:$0xff]  ;;  %v2065_v61 = vpop.permute.xlu0 %853 }
 0x346   :  { %v663_v42 = vadd.f32 %v661_v39, %v654_v38  ;;  %v664_v44 = vadd.f32 %v661_v39, %v655_v17  ;;  %v665_v45 = vadd.f32 %v661_v39, %v656_v25  ;;  %v666_v47 = vadd.f32 %v661_v39, %v657_v40 }
 0x347   :  { %v2067_v20 = vpop.permute.xlu1 %889 }
 0x348   :  { %vm667_vm13 = vcmp.ge.f32.partialorder %v663_v42, 0.0  ;;  %vm668_vm8 = vcmp.ge.f32.partialorder %v664_v44, 0.0  ;;  %vm669_vm15 = vcmp.ge.f32.partialorder %v665_v45, 0.0  ;;  %v671_v48 = vmul.f32 0.2, %v663_v42  ;;  %v2069_v14 = vpop.permute.xlu0 %925 }
 0x349   :  { %v672_v49 = vmul.f32 0.2, %v664_v44  ;;  %v673_v50 = vmul.f32 0.2, %v665_v45  ;;  %v674_v62 = vmul.f32 0.2, %v666_v47 }
 0x34a   :  { %v2018_v51 = vsel %vm667_vm13, %v663_v42, %v671_v48  ;;  %vm670_vm3 = vcmp.ge.f32.partialorder %v666_v47, 0.0  ;;  %vm2339_vm13 = vcmask 138240  }
 0x34b   :  { %v2020_v53 = vsel %vm668_vm8, %v664_v44, %v672_v49  ;;  %v2022_v54 = vsel %vm669_vm15, %v665_v45, %v673_v50  ;;  %v2030_v63 = vsel %vm670_vm3, %v666_v47, %v674_v62  ;;  %vm2340_vm8 = vcmask 130048   ;;  %vm2342_vm3 = vmmov %vm2339_vm13 }
 0x34c   :  { %v1422_v56 = vpack.i.bf16 %v2022_v54, %v1500_v3  ;;  %v1412_v57 = vpack.i.bf16 %v2020_v53, %v2018_v51  ;;  %v1452_v7 = vpack.i.bf16 %v2022_v54, %v2020_v53  ;;  %v1477_v9 = vpack.i.bf16 %v2030_v63, %v2018_v51  ;;  %vm2343_vm0 = vmmov %vm2340_vm8 }
 0x34d   :  { %v1487_v8 = vpack.i.bf16 %v2030_v63, %v2022_v54  ;;  %vm2341_vm15 = vnez %v2260_v46  ;;  %vm2344_vm9 = vmmov %vm2343_vm0 }
 0x34e   :  { %1423 = vrot.lane.b32.xlu0 %v1422_v56, %s1501_s15  ;;  %1413 = vrot.lane.b32.xlu1 %v1412_v57, %s1501_s15  ;;  %vm2347_vm12 = vmmov %vm2342_vm3 }
 0x352   :  { %701 = vrot.lane.b32.xlu0 %v2030_v63, %s1501_s15  ;;  %1418 = vrot.lane.b32.xlu1 %v1412_v57, %s1502_s16 }
 0x356   :  { %1433 = vrot.lane.b32.xlu0 %v1412_v57, %s1504_s20  ;;  %1428 = vrot.lane.b32.xlu1 %v1422_v56, %s1502_s16 }
 0x35a   :  { %1443 = vrot.lane.b32.xlu0 %v1422_v56, %s1504_s20  ;;  %737 = vrot.lane.b32.xlu1 %v2030_v63, %s1502_s16 }
 0x35e   :  { %773 = vrot.lane.b32.xlu0 %v2030_v63, %s1504_s20  ;;  %1438 = vrot.lane.b32.xlu1 %v1412_v57, %s1503_s19 }
 0x362   :  { %1453 = vrot.lane.b32.xlu0 %v1452_v7, %s1505_s21  ;;  %1448 = vrot.lane.b32.xlu1 %v1422_v56, %s1503_s19 }
 0x366   :  { %1468 = vrot.lane.b32.xlu0 %v1452_v7, %s1507_s23  ;;  %809 = vrot.lane.b32.xlu1 %v2030_v63, %s1503_s19 }
 0x36a   :  { %1478 = vrot.lane.b32.xlu0 %v1477_v9, %s1507_s23  ;;  %1458 = vrot.lane.b32.xlu1 %v1477_v9, %s1505_s21 }
 0x36e   :  { %1488 = vrot.lane.b32.xlu0 %v1487_v8, %s1509_s24  ;;  %1463 = vrot.lane.b32.xlu1 %v1452_v7, %s1506_s22 }
 0x372   :  { %1040 = vperm.xlu0 %1410, %v1037_v10   ;;  %1473 = vrot.lane.b32.xlu1 %v1477_v9, %s1506_s22 }
 0x376   :  { %1483 = vrot.lane.b32.xlu1 %v1412_v57, %s1509_s24 }
 0x37a   :  { %961 = vrot.lane.b32.xlu1 %v1500_v3, %s1509_s24 }
 0x3c0   :  { %v1414_v15 = vpop.permute.xlu1 %1413  ;;  %v1424_v2 = vpop.permute.xlu0 %1423 }
 0x3c1   :  { %v1416_v22 = vunpack.i.h.bf16 %v1414_v15  ;;  %v1415_v21 = vunpack.i.l.bf16 %v1414_v15  ;;  %v1425_v29 = vunpack.i.l.bf16 %v1424_v2  ;;  %v1426_v25 = vunpack.i.h.bf16 %v1424_v2 }
 0x3c3   :  { %v704_v33 = vsel %vm2339_vm13, %v1415_v21, %v1416_v22  ;;  %v703_v39 = vsel %vm2342_vm3, %v1425_v29, %v1415_v21  ;;  %vm2345_vm13 = vmmov %vm2342_vm3  ;;  %v705_v50 = vsel %vm2347_vm12, %v1416_v22, %v1426_v25  ;;  %vm2352_vm12 = vcmask 7168  }
 0x3c4   :  { %v1419_v6 = vpop.permute.xlu1 %1418  ;;  %v702_v23 = vpop.permute.xlu0 %701 }
 0x3c5   :  { %v1421_v28 = vunpack.i.h.bf16 %v1419_v6  ;;  %v1420_v31 = vunpack.i.l.bf16 %v1419_v6  ;;  %v706_v48 = vsel %vm2345_vm13, %v1426_v25, %v702_v23 }
 0x3c7   :  { %v740_v0 = vsel %vm2340_vm8, %v1420_v31, %v1421_v28  ;;  %vm2346_vm8 = vmmov %vm2343_vm0 }
 0x3c8   :  { %v1272_v3 = vpack.c.bf16 %v740_v0, %v704_v33  ;;  %v1429_v36 = vpop.permute.xlu1 %1428  ;;  %v1434_v37 = vpop.permute.xlu0 %1433 }
 0x3c9   :  { %v1431_v38 = vunpack.i.h.bf16 %v1429_v36  ;;  %v1430_v17 = vunpack.i.l.bf16 %v1429_v36  ;;  %v1436_v57 = vunpack.i.h.bf16 %v1434_v37  ;;  %v1435_v62 = vunpack.i.l.bf16 %v1434_v37 }
 0x3ca   :  { %1273 = vmatprep.subr.msk.bf16.mxu0 %vm2341_vm15, %v1272_v3  ;;  %vm2351_vm15 = vcmask 121856  }
 0x3cb   :  { %v739_v40 = vsel %vm2343_vm0, %v1430_v17, %v1420_v31  ;;  %v741_v42 = vsel %vm2344_vm9, %v1421_v28, %v1431_v38  ;;  %vm2349_vm9 = vnez %v2264_v60  ;;  %vm2350_vm0 = vnez %v2268_v4  ;;  %vm2355_vm13 = vmmov %vm2351_vm15 }
 0x3cc   :  { %v1275_v44 = vpack.c.bf16 %v739_v40, %v703_v39  ;;  %v738_v45 = vpop.permute.xlu1 %737  ;;  %v1444_v47 = vpop.permute.xlu0 %1443  ;;  %v1299_v46 = vpack.c.bf16 %v741_v42, %v705_v50  ;;  %v776_v15 = vsel %vm2351_vm15, %v1435_v62, %v1436_v57  ;;  %vm2359_vm15 = vmmov %vm2355_vm13 }
 0x3cd   :  { %v742_v49 = vsel %vm2346_vm8, %v1431_v38, %v738_v45  ;;  %v1445_v2 = vunpack.i.l.bf16 %v1444_v47  ;;  %v1446_v29 = vunpack.i.h.bf16 %v1444_v47  ;;  %vm2356_vm8 = vmmov %vm2352_vm12 }
 0x3ce   :  { %v1296_v56 = vpack.c.bf16 %v742_v49, %v706_v48  ;;  %1276 = vmatpush1.bf16.msk.msra.mxu0 %vm2348_vm14, %v1275_v44  ;;  %vm2353_vm14 = vnez %v2273_v11  ;;  %vm2361_vm6 = vmmov %vm2355_vm13 }
 0x3cf   :  { %vm2354_vm3 = vmpackc.low %vm1649_vm1, %vm2353_vm14  ;;  %v775_v60 = vsel %vm2355_vm13, %v1445_v2, %v1435_v62  ;;  %v777_v11 = vsel %vm2361_vm6, %v1436_v57, %v1446_v29  ;;  %vm2362_vm1 = vnez %v2250_v32  ;;  %vm2363_vm14 = vnez %v2275_v18 }
 0x3d0   :  { %v1439_v7 = vpop.permute.xlu1 %1438  ;;  %v774_v9 = vpop.permute.xlu0 %773  ;;  %1297 = vmatprep.subr.msk.bf16.mxu1 %vm2349_vm9, %v1296_v56  ;;  %vm2357_vm9 = vcmask 1039360   ;;  %vm2365_vm13 = vnez %v2294_v59  ;;  %vm2368_vm6 = vnez %v2287_v30 }
 0x3d1   :  { %v1441_v8 = vunpack.i.h.bf16 %v1439_v7  ;;  %v1440_v10 = vunpack.i.l.bf16 %v1439_v7  ;;  %1300 = vmatpush1.bf16.msk.msra.mxu1 %vm2350_vm0, %v1299_v46  ;;  %vm2358_vm0 = vmmov %vm2356_vm8  ;;  %v778_v25 = vsel %vm2359_vm15, %v1446_v29, %v774_v9  ;;  %vm2370_vm15 = vcmask 1039360  }
 0x3d3   :  { %v812_v22 = vsel %vm2352_vm12, %v1440_v10, %v1441_v8  ;;  %vm2360_vm12 = vmmov %vm2358_vm0 }
 0x3d4   :  { %v1278_v55 = vpack.c.bf16 %v812_v22, %v776_v15  ;;  %v1449_v21 = vpop.permute.xlu1 %1448  ;;  %v1454_v6 = vpop.permute.xlu0 %1453 }
 0x3d5   :  { %v1451_v23 = vunpack.i.h.bf16 %v1449_v21  ;;  %v1450_v28 = vunpack.i.l.bf16 %v1449_v21  ;;  %v1456_v31 = vunpack.i.h.bf16 %v1454_v6  ;;  %v1455_v33 = vunpack.i.l.bf16 %v1454_v6 }
 0x3d6   :  { %1279 = vmatprep.subr.msk.bf16.mxu0 %vm2354_vm3, %v1278_v55  ;;  %vm2364_vm3 = vmpackc.low %vm2362_vm1, %vm2363_vm14  ;;  %vm2375_vm14 = vcmask 916480  }
 0x3d7   :  { %v811_v4 = vsel %vm2356_vm8, %v1450_v28, %v1440_v10  ;;  %v856_v0 = vsel %vm2357_vm9, %v1455_v33, %v1456_v31  ;;  %v813_v3 = vsel %vm2358_vm0, %v1441_v8, %v1451_v23  ;;  %vm2366_vm8 = vnez %v2282_v16  ;;  %vm2369_vm0 = vmpackc.low %vm1689_vm11, %vm2368_vm6 }
 0x3d8   :  { %v1281_v36 = vpack.c.bf16 %v811_v4, %v775_v60  ;;  %v1284_v37 = vpack.c.bf16 %v856_v0, %v2020_v53  ;;  %v810_v38 = vpop.permute.xlu1 %809  ;;  %v1469_v17 = vpop.permute.xlu0 %1468  ;;  %v1305_v40 = vpack.c.bf16 %v813_v3, %v777_v11  ;;  %vm2367_vm9 = vmpackc.low %vm1673_vm5, %vm2366_vm8  ;;  %vm2373_vm5 = vnez %v2297_v12 }
 0x3d9   :  { %v814_v26 = vsel %vm2360_vm12, %v1451_v23, %v810_v38  ;;  %v1471_v32 = vunpack.i.h.bf16 %v1469_v17  ;;  %v1470_v18 = vunpack.i.l.bf16 %v1469_v17  ;;  %vm2371_vm12 = vmmov %vm2370_vm15  ;;  %vm2374_vm11 = vnez %v2299_v1 }
 0x3da   :  { %v1302_v39 = vpack.c.bf16 %v814_v26, %v778_v25  ;;  %1282 = vmatpush1.bf16.msk.msra.mxu0 %vm2364_vm3, %v1281_v36  ;;  %vm2372_vm1 = vmmov %vm2371_vm12  ;;  %vm2376_vm3 = vcmask 924672   ;;  %v1016_v36 = vpack.c.bf16 %v979_v52, %v979_v52  ;;  %v1496_v52 = vld [vmem:[%s2201_s0] sm:$0xff] }
 0x3db   :  { %1285 = vmatprep.subr.msk.bf16.mxu0 %vm2365_vm13, %v1284_v37  ;;  %vm2377_vm13 = vnez %v2301_v19  ;;  %vm2378_vm8 = vmmov %vm2375_vm14 }
 0x3dc   :  { %v1459_v53 = vpop.permute.xlu1 %1458  ;;  %v1479_v42 = vpop.permute.xlu0 %1478  ;;  %1303 = vmatprep.subr.msk.bf16.mxu1 %vm2367_vm9, %v1302_v39  ;;  %vm2379_vm9 = vmmov %vm2378_vm8 }
 0x3dd   :  { %v1461_v44 = vunpack.i.h.bf16 %v1459_v53  ;;  %v1460_v45 = vunpack.i.l.bf16 %v1459_v53  ;;  %1306 = vmatpush1.bf16.msk.msra.mxu1 %vm2369_vm0, %v1305_v40  ;;  %v1481_v46 = vunpack.i.h.bf16 %v1479_v42  ;;  %v1480_v57 = vunpack.i.l.bf16 %v1479_v42  ;;  %vm2380_vm6 = vmmov %vm2378_vm8 }
 0x3de   :  { %vm2381_vm0 = vnez %v2306_v35 }
 0x3df   :  { %v855_v59 = vsel %vm2370_vm15, %v1460_v45, %v1455_v33  ;;  %v857_v47 = vsel %vm2371_vm12, %v1456_v31, %v1461_v44  ;;  %v858_v34 = vsel %vm2372_vm1, %v1461_v44, %v2065_v61  ;;  %v928_v61 = vsel %vm2375_vm14, %v1470_v18, %v1471_v32  ;;  %vm2383_vm12 = vmmov %vm2376_vm3 }
 0x3e0   :  { %v1287_v16 = vpack.c.bf16 %v855_v59, %v2018_v51  ;;  %v1308_v48 = vpack.c.bf16 %v858_v34, %v2030_v63  ;;  %v1311_v49 = vpack.c.bf16 %v857_v47, %v2022_v54  ;;  %v1464_v41 = vpop.permute.xlu1 %1463  ;;  %v1489_v50 = vpop.permute.xlu0 %1488  ;;  %v930_v12 = vsel %vm2378_vm8, %v1481_v46, %v2069_v14  ;;  %vm2384_vm1 = vmmov %vm2376_vm3  ;;  %v1141_v47 = vld [vmem:[%s2208_s8] sm:$0xff] }
 0x3e1   :  { %v1466_v30 = vunpack.i.h.bf16 %v1464_v41  ;;  %v1465_v56 = vunpack.i.l.bf16 %v1464_v41  ;;  %v1491_v62 = vunpack.i.h.bf16 %v1489_v50  ;;  %v1490_v63 = vunpack.i.l.bf16 %v1489_v50 }
 0x3e2   :  { %1288 = vmatpush1.bf16.msk.msra.mxu0 %vm2373_vm5, %v1287_v16  ;;  %1309 = vmatprep.subr.msk.bf16.mxu1 %vm2374_vm11, %v1308_v48  ;;  %v927_v10 = vsel %vm2379_vm9, %v1480_v57, %v1470_v18  ;;  %v929_v1 = vsel %vm2380_vm6, %v1471_v32, %v1481_v46  ;;  %vm2382_vm15 = vcmask 908288   ;;  %vm2385_vm5 = vmmov %vm2384_vm1  ;;  %vm2396_vm6 = vcmask 588800  }
 0x3e3   :  { %v892_v51 = vsel %vm2376_vm3, %v1465_v56, %v1466_v30  ;;  %1312 = vmatpush1.bf16.msk.msra.mxu1 %vm2377_vm13, %v1311_v49  ;;  %v965_v15 = vsel %vm2382_vm15, %v1490_v63, %v1491_v62  ;;  %vm2386_vm11 = vmmov %vm2382_vm15  ;;  %vm2388_vm3 = vnez %v2327_v24  ;;  %vm2389_vm13 = vnez %v2320_v58 }
 0x3e4   :  { %v1290_v54 = vpack.c.bf16 %v928_v61, %v892_v51  ;;  %v1474_v7 = vpop.permute.xlu1 %1473  ;;  %v973_v35 = vsel %vm1982_vm7, %v965_v15, 0.0  ;;  %vm2387_vm14 = vmmov %vm2386_vm11 }
 0x3e5   :  { %v1476_v9 = vunpack.i.h.bf16 %v1474_v7  ;;  %v1475_v8 = vunpack.i.l.bf16 %v1474_v7  ;;  %v1035_v0 = vpack.c.bf16 %v973_v35, %v973_v35 }
 0x3e6   :  { %1291 = vmatprep.subr.msk.bf16.mxu0 %vm2381_vm0, %v1290_v54  ;;  %vm2397_vm0 = vmmov %vm2396_vm6 }
 0x3e7   :  { %v894_v19 = vsel %vm2383_vm12, %v1476_v9, %v2067_v20  ;;  %v891_v2 = vsel %vm2384_vm1, %v1475_v8, %v1465_v56  ;;  %v893_v22 = vsel %vm2385_vm5, %v1466_v30, %v1476_v9  ;;  %v1140_v9 = vld [vmem:[%s2209_s7] sm:$0xff] }
 0x3e8   :  { %v1293_v55 = vpack.c.bf16 %v927_v10, %v891_v2  ;;  %v1314_v21 = vpack.c.bf16 %v930_v12, %v894_v19  ;;  %v1317_v6 = vpack.c.bf16 %v929_v1, %v893_v22  ;;  %v1484_v14 = vpop.permute.xlu1 %1483 }
 0x3e9   :  { %v1486_v23 = vunpack.i.h.bf16 %v1484_v14  ;;  %v1485_v28 = vunpack.i.l.bf16 %v1484_v14 }
 0x3ea   :  { %1294 = vmatpush1.bf16.msk.msra.mxu0 %vm1913_vm10, %v1293_v55  ;;  %1315 = vmatprep.subr.msk.bf16.mxu1 %vm1930_vm2, %v1314_v21  ;;  %vm2390_vm2 = vmmov %vm2386_vm11  ;;  %vm2391_vm10 = vnez %v2331_v13 }
 0x3eb   :  { %v963_v20 = vsel %vm2386_vm11, %v1485_v28, %v1486_v23  ;;  %v964_v31 = vsel %vm2387_vm14, %v1486_v23, %v1490_v63  ;;  %1318 = vmatpush1.bf16.msk.msra.mxu1 %vm1951_vm4, %v1317_v6  ;;  %vm2392_vm4 = vcmask 1043456  }
 0x3ec   :  { %v972_v33 = vsel %vm2388_vm3, %v964_v31, 0.0  ;;  %v962_v29 = vpop.permute.xlu1 %961  ;;  %v971_v43 = vsel %vm2389_vm13, %v963_v20, 0.0  ;;  %vm2393_vm7 = vmmov %vm2392_vm4 }
 0x3ed   :  { %v966_v27 = vsel %vm2390_vm2, %v1491_v62, %v962_v29  ;;  %v1034_v60 = vpack.c.bf16 %v972_v33, %v972_v33  ;;  %v1033_v4 = vpack.c.bf16 %v971_v43, %v971_v43  ;;  %vm2394_vm8 = vmmov %vm2392_vm4 }
 0x3ee   :  { %v974_v5 = vsel %vm2391_vm10, %v966_v27, 0.0  ;;  %vm2395_vm9 = vmmov %vm2392_vm4 }
 0x3ef   :  { %v1036_v3 = vpack.c.bf16 %v974_v5, %v974_v5  ;;  %1219 = vmatprep.subr.msk.bf16.mxu0 %vm2392_vm4, %v1034_v60  ;;  %v1047_v24 = vsel %vm2393_vm7, %v1033_v4, 0  ;;  %v1053_v58 = vsel %vm2395_vm9, %v1035_v0, 0  ;;  %v1497_v60 = vld [vmem:[%s2201_s0 + $0x8] sm:$0xff]  ;;  %v1498_v0 = vld [vmem:[%s2201_s0 + $0x10] sm:$0xff] }
 0x3f0   :  { %1067 = vmatpush1.bf16.msra.mxu0 %v1047_v24 }
 0x3f1   :  { %1221 = vmatprep.subr.msk.bf16.mxu1 %vm2394_vm8, %v1036_v3  ;;  %v1041_v37 = vpop.permute.xlu0 %1040  ;;  %v1499_v3 = vld [vmem:[%s2201_s0 + $0x18] sm:$0xff] }
 0x3f2   :  { %1108 = vmatpush1.bf16.msra.mxu1 %v1053_v58 }
 0x3f3   :  { %1220 = vmatmul.mubr.msk.bf16.vlgmr.msra.gmra.mrb[4].mxu0 %vm2396_vm6, %v1016_v36 }
 0x3f5   :  { %1222 = vmatmul.mubr.msk.bf16.vlgmr.msra.gmra.mrb[4].mxu1 %vm2397_vm0, %v1016_v36 }
 0x4c6   :  { %v1092_v38 = vpop.f32.mrb[4].mxu0 }
 0x4c7   :  { %v1093_v13 = vadd.f32 %v1092_v38, %v1041_v37  ;;  %v1094_v17 = vpop.f32.mrb[5].mxu0 }
 0x4c8   :  { %v1095_v25 = vadd.f32 %v1094_v17, %v1041_v37  ;;  %v1096_v26 = vpop.f32.mrb[6].mxu0  ;;  %v1133_v11 = vpop.f32.mrb[4].mxu1 }
 0x4c9   :  { %v1134_v39 = vadd.f32 %v1133_v11, %v1041_v37  ;;  %v1097_v40 = vpop.f32.mrb[7].mxu0  ;;  %v1135_v53 = vpop.f32.mrb[5].mxu1 }
 0x4ca   :  { %v1142_v42 = vadd.f32 %v1095_v25, %v1093_v13  ;;  %v1137_v44 = vpop.f32.mrb[6].mxu1  ;;  %v1136_v18 = vadd.f32 %v1135_v53, %v1041_v37 }
 0x4cb   :  { %v1138_v45 = vpop.f32.mrb[7].mxu1 }
 0x4cc   :  { %v1143_v32 = vadd.f32 %v1142_v42, %v1134_v39 }
 0x4ce   :  { %v1144_v59 = vadd.f32 %v1143_v32, %v1136_v18 }
 0x4d0   :  { %1145 = vadd.xlane.f32.xlu1 %v1144_v59 }
 0x4e1   :  { %1176 = vperm.xlu1 %1411, %v1141_v47  }
 0x55d   :  { %v1146_v34 = vpop.xlane.xlu1 %1145 }
 0x55e   :  { %v1147_v16 = vmul.f32 0.001953125, %v1146_v34 }
 0x560   :  { %v1148_v48 = vsub.f32 %v1093_v13, %v1147_v16  ;;  %v1149_v49 = vsub.f32 %v1095_v25, %v1147_v16  ;;  %v1150_v41 = vsub.f32 %v1134_v39, %v1147_v16  ;;  %v1151_v50 = vsub.f32 %v1136_v18, %v1147_v16 }
 0x561   :  { %v1177_v22 = vpop.permute.xlu1 %1176 }
 0x562   :  { %v1152_v30 = vmul.f32 %v1148_v48, %v1148_v48  ;;  %v1153_v56 = vmul.f32 %v1149_v49, %v1149_v49  ;;  %v1154_v46 = vmul.f32 %v1150_v41, %v1150_v41  ;;  %v1155_v61 = vmul.f32 %v1151_v50, %v1151_v50 }
 0x564   :  { %v1156_v57 = vadd.f32 %v1153_v56, %v1152_v30 }
 0x566   :  { %v1157_v51 = vadd.f32 %v1156_v57, %v1154_v46 }
 0x568   :  { %v1158_v62 = vadd.f32 %v1157_v51, %v1155_v61 }
 0x56a   :  { %1159 = vadd.xlane.f32.xlu0 %v1158_v62 }
 0x5f7   :  { %v1160_v63 = vpop.xlane.xlu0 %1159 }
 0x5f8   :  { %v1161_v54 = vmul.f32 0.001953125, %v1160_v63 }
 0x5fa   :  { %v1162_v7 = vadd.f32 1e-05, %v1161_v54 }
 0x5fc   :  { %1494 = vrsqrt.f32 %v1162_v7 }
 0x606   :  { %v1495_v8 = vpop.eup %1494 }
 0x607   :  { %v1164_v12 = vmul.f32 %v1495_v8, %v1140_v9 }
 0x609   :  { %1167 = vperm.xlu0 %1410, %v1164_v12  }
 0x688   :  { %v1168_v10 = vpop.permute.xlu0 %1167 }
 0x689   :  { %v1170_v1 = vmul.f32 %v1168_v10, %v1148_v48  ;;  %v1171_v15 = vmul.f32 %v1168_v10, %v1149_v49  ;;  %v1172_v19 = vmul.f32 %v1168_v10, %v1150_v41  ;;  %v1173_v2 = vmul.f32 %v1168_v10, %v1151_v50 }
 0x68b   :  { %v1179_v55 = vadd.f32 %v1177_v22, %v1170_v1  ;;  %v1180_v21 = vadd.f32 %v1177_v22, %v1171_v15  ;;  %v1181_v6 = vadd.f32 %v1177_v22, %v1172_v19  ;;  %v1182_v14 = vadd.f32 %v1177_v22, %v1173_v2 }
 0x68d   :  { %vm1183_vm15 = vcmp.ge.f32.partialorder %v1179_v55, 0.0  ;;  %vm1184_vm12 = vcmp.ge.f32.partialorder %v1180_v21, 0.0  ;;  %vm1185_vm1 = vcmp.ge.f32.partialorder %v1181_v6, 0.0  ;;  %vm1186_vm5 = vcmp.ge.f32.partialorder %v1182_v14, 0.0 }
 0x68e   :  { %v1187_v23 = vmul.f32 0.2, %v1179_v55  ;;  %v1188_v28 = vmul.f32 0.2, %v1180_v21  ;;  %v1189_v35 = vmul.f32 0.2, %v1181_v6 }
 0x68f   :  { %v1190_v20 = vmul.f32 0.2, %v1182_v14 }
 0x690   :  { %v1191_v31 = vsel %vm1183_vm15, %v1179_v55, %v1187_v23  ;;  %v1192_v33 = vsel %vm1184_vm12, %v1180_v21, %v1188_v28  ;;  %v1193_v29 = vsel %vm1185_vm1, %v1181_v6, %v1189_v35 }
 0x691   :  { %v1194_v43 = vsel %vm1186_vm5, %v1182_v14, %v1190_v20  ;;  %v1195_v27 = vadd.f32 %v1496_v52, %v1191_v31  ;;  %v1196_v4 = vadd.f32 %v1497_v60, %v1192_v33  ;;  %v1197_v5 = vadd.f32 %v1498_v0, %v1193_v29 }
 0x692   :  { %v1198_v24 = vadd.f32 %v1499_v3, %v1194_v43 }
 0x693   :  { %1207 = vst [vmem:[%s2210_s9] sm:$0xff] %v1195_v27  ;;  %1208 = vst [vmem:[%s2210_s9 + $0x8] sm:$0xff] %v1196_v4 }
 0x694   :  { %1209 = vst [vmem:[%s2210_s9 + $0x10] sm:$0xff] %v1197_v5  ;;  %1210 = vst [vmem:[%s2210_s9 + $0x18] sm:$0xff] %v1198_v24 }

// kernel: resnet_vqvae_fwd.21
= control target key start
LH: loop header
LB: loop body
LE: loop exit
PB: predicated region body
PF: predicated region fallthrough
CT: control target
= control target key end

     0   :  { %v1006_v2 = vmov 0   ;;  %v1007_v3 = vmov 0.0   ;;  %s1008_s13 = smov 8   ;;  %s1009_s14 = smov 9   ;;  %vm319_vm0 = vcmask 130048   ;;  %v33_v13 = vlaneseq  ;;  %s1401_s0 = inlined_call_operand.vmem [shape: f32[16,128], index: 0, kind: input, shape index: {}]   ;;  %s1402_s1 = inlined_call_operand.vmem [shape: f32[1,16,144], index: 1, kind: input, shape index: {}]   ;;  %s1403_s2 = inlined_call_operand.vmem [shape: f32[1,16,1], index: 2, kind: input, shape index: {}]   ;;  %s1404_s3 = inlined_call_operand.vmem [shape: f32[1,16,1], index: 3, kind: input, shape index: {}]   ;;  %s1405_s4 = inlined_call_operand.vmem [shape: f32[1,16,1], index: 4, kind: input, shape index: {}]   ;;  %s1406_s6 = inlined_call_operand.vmem [shape: f32[1,16,1], index: 6, kind: input, shape index: {}]   ;;  %s1407_s5 = inlined_call_operand.vmem [shape: f32[1,16,144], index: 5, kind: input, shape index: {}]   ;;  %s1408_s7 = inlined_call_operand.vmem [shape: f32[1,16,1], index: 7, kind: input, shape index: {}]   ;;  %s1409_s8 = inlined_call_operand.vmem [shape: f32[1,16,1], index: 8, kind: input, shape index: {}]   ;;  %s1410_s9 = inlined_call_operand.vmem [shape: f32[16,128], index: 9, kind: output, shape index: {}]  }
   0x1   :  { %v1069_v0 = vld [vmem:[%s1401_s0] sm:$0xff]  ;;  %v1074_v1 = vld [vmem:[%s1401_s0 + $0x8] sm:$0xff]  ;;  %323 = vmatprep.subr.bf16.mxu0 %v1006_v2  ;;  %916 = vset.pattern.permute.xlu0 %v1006_v2  ;;  %s1010_s0 = smov 7   ;;  %s1011_s15 = smov 1   ;;  %v277_v9 = vld [vmem:[%s1402_s1 + $0x18] sm:$0xff]  ;;  %vm99_vm3 = vcmask 64512  }
   0x2   :  { %v846_v4 = vpack.i.bf16 %v1069_v0, %v1007_v3  ;;  %917 = vset.pattern.permute.xlu1 %v1006_v2  ;;  %667 = vmatprep.subr.bf16.mxu1 %v1006_v2  ;;  %v851_v5 = vpack.i.bf16 %v1074_v1, %v1007_v3  ;;  %v881_v6 = vpack.i.bf16 %v1007_v3, %v1074_v1  ;;  %s1012_s16 = smov 127   ;;  %s1013_s17 = smov 121   ;;  %v275_v8 = vld [vmem:[%s1402_s1 + $0x8] sm:$0xff]  ;;  %v307_v11 = vld [vmem:[%s1403_s2] sm:$0xff]  ;;  %v34_v14 = vand.u32 127, %v33_v13 }
   0x3   :  { %v876_v7 = vpack.i.bf16 %v1007_v3, %v1069_v0  ;;  %s1014_s18 = smov 120   ;;  %s1015_s23 = smov 119   ;;  %v297_v10 = vpack.c.bf16 %v277_v9, %v275_v8  ;;  %v308_v12 = vld [vmem:[%s1403_s2 + $0x8] sm:$0xff]  ;;  %vm72_vm5 = vcmask 72704   ;;  %vm126_vm7 = vcmask 56320  }
   0x4   :  { %847 = vrot.lane.b32.xlu1 %v846_v4, %s1008_s13  ;;  %837 = vrot.lane.b32.xlu0 %v846_v4, %s1009_s14  ;;  %v36_v15 = vshra.s32 %v34_v14, 3  ;;  %v35_v16 = vand.u32 7, %v34_v14  ;;  %vm1413_vm10 = vcmask 7168   ;;  %vm1411_vm14 = vcmask 1039360  }
   0x5   :  { %776 = vmatprep.mubr.msk.bf16.mxu0 %vm319_vm0, %v297_v10  ;;  %v302_v9 = vpack.c.bf16 %v1074_v1, %v1069_v0  ;;  %vm1414_vm15 = vcmask 990208  }
   0x6   :  { %v1117_v17 = vand.u32 7, %v36_v15  ;;  %vm1120_vm2 = vcmp.ge.s32.totalorder %v35_v16, 1  ;;  %vm1139_vm8 = vcmp.le.s32.totalorder %v35_v16, 6 }
   0x7   :  { %vm1412_vm13 = vmpackc.low %vm1120_vm2, %vm1120_vm2 }
   0x8   :  { %852 = vrot.lane.b32.xlu1 %v851_v5, %s1008_s13  ;;  %842 = vrot.lane.b32.xlu0 %v851_v5, %s1009_s14  ;;  %vm38_vm1 = vcmp.ge.s32.totalorder %v1117_v17, 1 }
   0x9   :  { %vm1128_vm4 = vmand %vm38_vm1, %vm1120_vm2 }
   0xa   :  { %vm778_vm6 = vmpackc.low %vm1128_vm4, %vm1128_vm4 }
   0xb   :  { %vm1154_vm9 = vmpackc.low %vm38_vm1, %vm38_vm1 }
   0xc   :  { %862 = vrot.lane.b32.xlu1 %v851_v5, %s1010_s0  ;;  %857 = vrot.lane.b32.xlu0 %v846_v4, %s1010_s0  ;;  %vm1162_vm11 = vmand %vm38_vm1, %vm1139_vm8  ;;  %vm39_vm1 = vcmp.le.s32.totalorder %v1117_v17, 6 }
   0xd   :  { %vm1415_vm12 = vmpackc.low %vm1162_vm11, %vm1162_vm11 }
  0x10   :  { %872 = vrot.lane.b32.xlu1 %v851_v5, %s1011_s15  ;;  %867 = vrot.lane.b32.xlu0 %v846_v4, %s1011_s15 }
  0x14   :  { %882 = vrot.lane.b32.xlu1 %v881_v6, %s1012_s16  ;;  %877 = vrot.lane.b32.xlu0 %v876_v7, %s1012_s16 }
  0x18   :  { %892 = vrot.lane.b32.xlu1 %v881_v6, %s1013_s17  ;;  %887 = vrot.lane.b32.xlu0 %v876_v7, %s1013_s17 }
  0x1c   :  { %902 = vrot.lane.b32.xlu1 %v881_v6, %s1014_s18  ;;  %897 = vrot.lane.b32.xlu0 %v876_v7, %s1014_s18 }
  0x20   :  { %912 = vrot.lane.b32.xlu1 %v881_v6, %s1015_s23  ;;  %907 = vrot.lane.b32.xlu0 %v876_v7, %s1015_s23 }
  0x24   :  { %311 = vperm.xlu0 %916, %v307_v11   ;;  %316 = vperm.xlu1 %917, %v308_v12  }
  0x76   :  { %v848_v18 = vpop.permute.xlu1 %847  ;;  %v838_v19 = vpop.permute.xlu0 %837 }
  0x77   :  { %v840_v21 = vunpack.i.h.bf16 %v838_v19  ;;  %v839_v22 = vunpack.i.l.bf16 %v838_v19  ;;  %v850_v23 = vunpack.i.h.bf16 %v848_v18  ;;  %v849_v24 = vunpack.i.l.bf16 %v848_v18 }
  0x79   :  { %v73_v32 = vsel %vm72_vm5, %v839_v22, %v840_v21  ;;  %v100_v34 = vsel %vm99_vm3, %v849_v24, %v850_v23 }
  0x7a   :  { %v853_v25 = vpop.permute.xlu1 %852  ;;  %v843_v26 = vpop.permute.xlu0 %842 }
  0x7b   :  { %v855_v28 = vunpack.i.h.bf16 %v853_v25  ;;  %v854_v29 = vunpack.i.l.bf16 %v853_v25  ;;  %v845_v30 = vunpack.i.h.bf16 %v843_v26  ;;  %v844_v31 = vunpack.i.l.bf16 %v843_v26  ;;  %v621_v25 = vld [vmem:[%s1407_s5 + $0x10] sm:$0xff] }
  0x7d   :  { %v74_v33 = vsel %vm72_vm5, %v844_v31, %v845_v30  ;;  %v101_v35 = vsel %vm99_vm3, %v854_v29, %v855_v28 }
  0x7e   :  { %v779_v36 = vpack.c.bf16 %v74_v33, %v73_v32  ;;  %v863_v37 = vpop.permute.xlu1 %862  ;;  %v858_v38 = vpop.permute.xlu0 %857  ;;  %v782_v47 = vpack.c.bf16 %v101_v35, %v100_v34 }
  0x7f   :  { %v865_v40 = vunpack.i.h.bf16 %v863_v37  ;;  %v864_v41 = vunpack.i.l.bf16 %v863_v37  ;;  %v860_v42 = vunpack.i.h.bf16 %v858_v38  ;;  %v859_v43 = vunpack.i.l.bf16 %v858_v38 }
  0x80   :  { %780 = vmatpush1.bf16.msk.msra.mxu0 %vm778_vm6, %v779_v36 }
  0x81   :  { %v128_v44 = vsel %vm126_vm7, %v864_v41, %v865_v40  ;;  %v127_v45 = vsel %vm126_vm7, %v859_v43, %v860_v42  ;;  %325 = vmatprep.subr.bf16.mxu0 %v1006_v2  ;;  %v274_v43 = vld [vmem:[%s1402_s1] sm:$0xff] }
  0x82   :  { %v873_v48 = vpop.permute.xlu1 %872  ;;  %v868_v49 = vpop.permute.xlu0 %867  ;;  %v785_v55 = vpack.c.bf16 %v128_v44, %v127_v45  ;;  %v276_v44 = vld [vmem:[%s1402_s1 + $0x10] sm:$0xff] }
  0x83   :  { %v875_v51 = vunpack.i.h.bf16 %v873_v48  ;;  %v874_v52 = vunpack.i.l.bf16 %v873_v48  ;;  %v870_v53 = vunpack.i.h.bf16 %v868_v49  ;;  %v869_v54 = vunpack.i.l.bf16 %v868_v49 }
  0x84   :  { %783 = vmatpush1.bf16.msk.msra.mxu0 %vm1154_vm9, %v782_v47  ;;  %v296_v17 = vpack.c.bf16 %v276_v44, %v274_v43  ;;  %v653_v43 = vld [vmem:[%s1406_s6 + $0x8] sm:$0xff]  ;;  %v652_v44 = vld [vmem:[%s1406_s6] sm:$0xff] }
  0x85   :  { %v155_v56 = vsel %vm1413_vm10, %v874_v52, %v875_v51  ;;  %v154_v57 = vsel %vm1413_vm10, %v869_v54, %v870_v53  ;;  %327 = vmatprep.subr.bf16.mxu0 %v1006_v2  ;;  %vm1204_vm10 = vmand %vm39_vm1, %vm1120_vm2 }
  0x86   :  { %v883_v58 = vpop.permute.xlu1 %882  ;;  %v878_v59 = vpop.permute.xlu0 %877  ;;  %v788_v60 = vpack.c.bf16 %v155_v56, %v154_v57 }
  0x87   :  { %v885_v61 = vunpack.i.h.bf16 %v883_v58  ;;  %v884_v62 = vunpack.i.l.bf16 %v883_v58  ;;  %v880_v63 = vunpack.i.h.bf16 %v878_v59  ;;  %v879_v4 = vunpack.i.l.bf16 %v878_v59 }
  0x88   :  { %786 = vmatpush1.bf16.msk.msra.mxu0 %vm1415_vm12, %v785_v55  ;;  %vm1419_vm12 = vcmask 973824  }
  0x89   :  { %329 = vmatprep.subr.bf16.mxu0 %v1006_v2  ;;  %v186_v7 = vsel %vm1411_vm14, %v884_v62, %v885_v61  ;;  %v185_v8 = vsel %vm1411_vm14, %v879_v4, %v880_v63  ;;  %vm1417_vm14 = vmpackc.low %vm1139_vm8, %vm1139_vm8 }
  0x8a   :  { %v893_v5 = vpop.permute.xlu1 %892  ;;  %v888_v6 = vpop.permute.xlu0 %887  ;;  %v791_v16 = vpack.c.bf16 %v186_v7, %v185_v8 }
  0x8b   :  { %v895_v10 = vunpack.i.h.bf16 %v893_v5  ;;  %v894_v11 = vunpack.i.l.bf16 %v893_v5  ;;  %v890_v12 = vunpack.i.h.bf16 %v888_v6  ;;  %v889_v13 = vunpack.i.l.bf16 %v888_v6 }
  0x8c   :  { %789 = vmatpush1.bf16.msk.msra.mxu0 %vm1412_vm13, %v788_v60  ;;  %vm1416_vm13 = vcmask 982016  }
  0x8d   :  { %331 = vmatprep.subr.bf16.mxu0 %v1006_v2  ;;  %v213_v23 = vsel %vm1414_vm15, %v894_v11, %v895_v10  ;;  %v212_v24 = vsel %vm1414_vm15, %v889_v13, %v890_v12  ;;  %vm793_vm15 = vmpackc.low %vm1204_vm10, %vm1204_vm10  ;;  %v365_v11 = vld [vmem:[%s1404_s3 + $0x8] sm:$0xff] }
  0x8e   :  { %v903_v14 = vpop.permute.xlu1 %902  ;;  %v898_v15 = vpop.permute.xlu0 %897  ;;  %v794_v29 = vpack.c.bf16 %v213_v23, %v212_v24 }
  0x8f   :  { %v905_v18 = vunpack.i.h.bf16 %v903_v14  ;;  %v904_v19 = vunpack.i.l.bf16 %v903_v14  ;;  %v900_v21 = vunpack.i.h.bf16 %v898_v15  ;;  %v899_v22 = vunpack.i.l.bf16 %v898_v15  ;;  %v367_v15 = vld [vmem:[%s1405_s4 + $0x8] sm:$0xff] }
  0x90   :  { %332 = vmatpush1.bf16.msra.mxu0 %v302_v9  ;;  %v364_v9 = vld [vmem:[%s1404_s3] sm:$0xff] }
  0x91   :  { %333 = vmatprep.subr.bf16.mxu0 %v1006_v2  ;;  %v240_v30 = vsel %vm1416_vm13, %v904_v19, %v905_v18  ;;  %v239_v31 = vsel %vm1416_vm13, %v899_v22, %v900_v21  ;;  %vm1230_vm13 = vmpackc.low %vm39_vm1, %vm39_vm1 }
  0x92   :  { %v913_v26 = vpop.permute.xlu1 %912  ;;  %v908_v28 = vpop.permute.xlu0 %907  ;;  %v797_v36 = vpack.c.bf16 %v240_v30, %v239_v31 }
  0x93   :  { %v915_v32 = vunpack.i.h.bf16 %v913_v26  ;;  %v914_v33 = vunpack.i.l.bf16 %v913_v26  ;;  %v910_v34 = vunpack.i.h.bf16 %v908_v28  ;;  %v909_v35 = vunpack.i.l.bf16 %v908_v28 }
  0x94   :  { %792 = vmatpush1.bf16.msk.msra.mxu0 %vm1417_vm14, %v791_v16  ;;  %vm1238_vm14 = vmand %vm39_vm1, %vm1139_vm8  ;;  %v366_v16 = vld [vmem:[%s1405_s4] sm:$0xff] }
  0x95   :  { %335 = vmatprep.subr.bf16.mxu0 %v1006_v2  ;;  %v267_v37 = vsel %vm1419_vm12, %v914_v33, %v915_v32  ;;  %v266_v38 = vsel %vm1419_vm12, %v909_v35, %v910_v34  ;;  %vm1418_vm1 = vmpackc.low %vm1238_vm14, %vm1238_vm14 }
  0x96   :  { %v800_v42 = vpack.c.bf16 %v267_v37, %v266_v38  ;;  %v620_v38 = vld [vmem:[%s1407_s5 + $0x8] sm:$0xff] }
  0x98   :  { %795 = vmatpush1.bf16.msk.msra.mxu0 %vm793_vm15, %v794_v29 }
  0x99   :  { %337 = vmatprep.subr.bf16.mxu0 %v1006_v2 }
  0x9c   :  { %798 = vmatpush1.bf16.msk.msra.mxu0 %vm1230_vm13, %v797_v36 }
  0x9d   :  { %339 = vmatprep.subr.bf16.mxu0 %v1006_v2 }
  0xa0   :  { %801 = vmatpush1.bf16.msk.msra.mxu0 %vm1418_vm1, %v800_v42  ;;  %v622_v42 = vld [vmem:[%s1407_s5 + $0x18] sm:$0xff] }
  0xa3   :  { %356 = vmatmul.mubr.bf16.vlgmr.msra.gmra.mrb[0].mxu0 %v296_v17  ;;  %v312_v45 = vpop.permute.xlu0 %311  ;;  %v317_v48 = vpop.permute.xlu1 %316 }
 0x176   :  { %v357_v47 = vpop.f32.mrb[0].mxu0 }
 0x177   :  { %v358_v49 = vadd.f32 %v357_v47, %v312_v45  ;;  %v359_v51 = vpop.f32.mrb[1].mxu0 }
 0x178   :  { %v360_v52 = vpop.f32.mrb[2].mxu0 }
 0x179   :  { %v361_v53 = vadd.f32 %v360_v52, %v317_v48  ;;  %v362_v54 = vpop.f32.mrb[3].mxu0  ;;  %368 = vadd.xlane.f32.xlu1 %v358_v49 }
 0x17b   :  { %370 = vadd.xlane.f32.xlu0 %v361_v53 }
 0x206   :  { %v369_v55 = vpop.xlane.xlu1 %368 }
 0x207   :  { %v373_v56 = vmul.f32 0.0078125, %v369_v55 }
 0x208   :  { %v371_v57 = vpop.xlane.xlu0 %370 }
 0x209   :  { %v375_v58 = vsub.f32 %v358_v49, %v373_v56  ;;  %v374_v59 = vmul.f32 0.0078125, %v371_v57 }
 0x20b   :  { %v376_v60 = vsub.f32 %v361_v53, %v374_v59  ;;  %v377_v61 = vmul.f32 %v375_v58, %v375_v58 }
 0x20d   :  { %379 = vadd.xlane.f32.xlu0 %v377_v61  ;;  %v378_v62 = vmul.f32 %v376_v60, %v376_v60 }
 0x20f   :  { %381 = vadd.xlane.f32.xlu1 %v378_v62 }
 0x29a   :  { %v380_v63 = vpop.xlane.xlu0 %379 }
 0x29b   :  { %v383_v4 = vmul.f32 0.0078125, %v380_v63 }
 0x29c   :  { %v382_v5 = vpop.xlane.xlu1 %381 }
 0x29d   :  { %v385_v6 = vadd.f32 1e-05, %v383_v4  ;;  %v384_v7 = vmul.f32 0.0078125, %v382_v5 }
 0x29f   :  { %998 = vrsqrt.f32 %v385_v6  ;;  %v386_v8 = vadd.f32 1e-05, %v384_v7 }
 0x2a1   :  { %1000 = vrsqrt.f32 %v386_v8 }
 0x2a9   :  { %v999_v10 = vpop.eup %998 }
 0x2aa   :  { %v389_v12 = vmul.f32 %v999_v10, %v364_v9 }
 0x2ab   :  { %v1001_v13 = vpop.eup %1000 }
 0x2ac   :  { %393 = vperm.xlu0 %916, %v389_v12   ;;  %v390_v14 = vmul.f32 %v1001_v13, %v365_v11 }
 0x2ae   :  { %398 = vperm.xlu1 %917, %v390_v14  }
 0x2b0   :  { %410 = vperm.xlu0 %916, %v367_v15  }
 0x2b2   :  { %405 = vperm.xlu1 %917, %v366_v16  }
 0x32b   :  { %v394_v18 = vpop.permute.xlu0 %393 }
 0x32c   :  { %v401_v23 = vmul.f32 %v394_v18, %v375_v58 }
 0x32d   :  { %v399_v19 = vpop.permute.xlu1 %398 }
 0x32e   :  { %v402_v21 = vmul.f32 %v399_v19, %v376_v60 }
 0x32f   :  { %v411_v22 = vpop.permute.xlu0 %410 }
 0x330   :  { %v414_v24 = vadd.f32 %v411_v22, %v402_v21 }
 0x331   :  { %v406_v26 = vpop.permute.xlu1 %405 }
 0x332   :  { %vm416_vm1 = vcmp.ge.f32.partialorder %v414_v24, 0.0  ;;  %v418_v28 = vmul.f32 0.2, %v414_v24  ;;  %v413_v29 = vadd.f32 %v406_v26, %v401_v23 }
 0x334   :  { %v1271_v30 = vsel %vm416_vm1, %v414_v24, %v418_v28  ;;  %vm415_vm12 = vcmp.ge.f32.partialorder %v413_v29, 0.0  ;;  %v417_v31 = vmul.f32 0.2, %v413_v29  ;;  %vm1447_vm1 = vcmask 973824  }
 0x335   :  { %v938_v32 = vpack.i.bf16 %v1271_v30, %v1007_v3  ;;  %v978_v36 = vpack.i.bf16 %v1007_v3, %v1271_v30  ;;  %vm1448_vm10 = vmmov %vm1447_vm1 }
 0x336   :  { %v1275_v33 = vsel %vm415_vm12, %v413_v29, %v417_v31  ;;  %vm1445_vm12 = vcmask 982016  }
 0x337   :  { %939 = vrot.lane.b32.xlu0 %v938_v32, %s1009_s14  ;;  %v918_v34 = vpack.i.bf16 %v1275_v33, %v1007_v3  ;;  %v647_v35 = vpack.c.bf16 %v1271_v30, %v1275_v33  ;;  %v958_v37 = vpack.i.bf16 %v1007_v3, %v1275_v33  ;;  %v642_v3 = vpack.c.bf16 %v622_v42, %v620_v38 }
 0x339   :  { %919 = vrot.lane.b32.xlu1 %v918_v34, %s1009_s14  ;;  %777 = vmatprep.mubr.msk.bf16.mxu1 %vm319_vm0, %v642_v3  ;;  %vm1436_vm0 = vmpackc.low %vm1162_vm11, %vm1162_vm11 }
 0x33b   :  { %944 = vrot.lane.b32.xlu0 %v938_v32, %s1008_s13 }
 0x33d   :  { %924 = vrot.lane.b32.xlu1 %v918_v34, %s1008_s13 }
 0x33f   :  { %949 = vrot.lane.b32.xlu0 %v938_v32, %s1010_s0 }
 0x341   :  { %929 = vrot.lane.b32.xlu1 %v918_v34, %s1010_s0 }
 0x343   :  { %954 = vrot.lane.b32.xlu0 %v938_v32, %s1011_s15 }
 0x345   :  { %934 = vrot.lane.b32.xlu1 %v918_v34, %s1011_s15 }
 0x347   :  { %979 = vrot.lane.b32.xlu0 %v978_v36, %s1012_s16 }
 0x349   :  { %959 = vrot.lane.b32.xlu1 %v958_v37, %s1012_s16 }
 0x34b   :  { %984 = vrot.lane.b32.xlu0 %v978_v36, %s1013_s17 }
 0x34d   :  { %964 = vrot.lane.b32.xlu1 %v958_v37, %s1013_s17 }
 0x34f   :  { %989 = vrot.lane.b32.xlu0 %v978_v36, %s1014_s18 }
 0x351   :  { %969 = vrot.lane.b32.xlu1 %v958_v37, %s1014_s18 }
 0x353   :  { %994 = vrot.lane.b32.xlu0 %v978_v36, %s1015_s23 }
 0x355   :  { %974 = vrot.lane.b32.xlu1 %v958_v37, %s1015_s23 }
 0x357   :  { %661 = vperm.xlu0 %916, %v653_v43  }
 0x359   :  { %656 = vperm.xlu1 %917, %v652_v44  }
 0x3a9   :  { %v940_v17 = vpop.permute.xlu0 %939 }
 0x3aa   :  { %v942_v45 = vunpack.i.h.bf16 %v940_v17  ;;  %v941_v47 = vunpack.i.l.bf16 %v940_v17 }
 0x3ab   :  { %v920_v48 = vpop.permute.xlu1 %919 }
 0x3ac   :  { %v922_v49 = vunpack.i.h.bf16 %v920_v48  ;;  %v921_v51 = vunpack.i.l.bf16 %v920_v48  ;;  %v440_v56 = vsel %vm72_vm5, %v941_v47, %v942_v45 }
 0x3ad   :  { %v945_v52 = vpop.permute.xlu0 %944 }
 0x3ae   :  { %v947_v53 = vunpack.i.h.bf16 %v945_v52  ;;  %v946_v54 = vunpack.i.l.bf16 %v945_v52  ;;  %v439_v55 = vsel %vm72_vm5, %v921_v51, %v922_v49  ;;  %vm1439_vm5 = vmpackc.low %vm1120_vm2, %vm1120_vm2  ;;  %vm1442_vm2 = vcmask 990208  }
 0x3af   :  { %v925_v57 = vpop.permute.xlu1 %924  ;;  %v803_v58 = vpack.c.bf16 %v440_v56, %v439_v55  ;;  %vm1444_vm11 = vmmov %vm1442_vm2 }
 0x3b0   :  { %v927_v59 = vunpack.i.h.bf16 %v925_v57  ;;  %v926_v60 = vunpack.i.l.bf16 %v925_v57  ;;  %v464_v62 = vsel %vm99_vm3, %v946_v54, %v947_v53 }
 0x3b1   :  { %v950_v61 = vpop.permute.xlu0 %949  ;;  %804 = vmatpush1.bf16.msk.msra.mxu1 %vm778_vm6, %v803_v58  ;;  %vm1440_vm6 = vcmask 1039360   ;;  %v619_v58 = vld [vmem:[%s1407_s5] sm:$0xff] }
 0x3b2   :  { %v463_v63 = vsel %vm99_vm3, %v926_v60, %v927_v59  ;;  %v952_v4 = vunpack.i.h.bf16 %v950_v61  ;;  %v951_v5 = vunpack.i.l.bf16 %v950_v61  ;;  %669 = vmatprep.subr.bf16.mxu1 %v1006_v2  ;;  %vm1437_vm3 = vcmask 7168  }
 0x3b3   :  { %v806_v6 = vpack.c.bf16 %v464_v62, %v463_v63  ;;  %v930_v7 = vpop.permute.xlu1 %929  ;;  %vm1438_vm4 = vmmov %vm1437_vm3  ;;  %v641_v61 = vpack.c.bf16 %v621_v25, %v619_v58 }
 0x3b4   :  { %v932_v8 = vunpack.i.h.bf16 %v930_v7  ;;  %v931_v9 = vunpack.i.l.bf16 %v930_v7  ;;  %v488_v27 = vsel %vm126_vm7, %v951_v5, %v952_v4 }
 0x3b5   :  { %v955_v10 = vpop.permute.xlu0 %954  ;;  %807 = vmatpush1.bf16.msk.msra.mxu1 %vm1154_vm9, %v806_v6  ;;  %vm1443_vm9 = vmpackc.low %vm1139_vm8, %vm1139_vm8 }
 0x3b6   :  { %v487_v11 = vsel %vm126_vm7, %v931_v9, %v932_v8  ;;  %v957_v12 = vunpack.i.h.bf16 %v955_v10  ;;  %v956_v13 = vunpack.i.l.bf16 %v955_v10  ;;  %671 = vmatprep.subr.bf16.mxu1 %v1006_v2  ;;  %vm1441_vm7 = vmmov %vm1440_vm6 }
 0x3b7   :  { %v809_v14 = vpack.c.bf16 %v488_v27, %v487_v11  ;;  %v935_v15 = vpop.permute.xlu1 %934  ;;  %vm1446_vm8 = vmmov %vm1445_vm12 }
 0x3b8   :  { %v937_v16 = vunpack.i.h.bf16 %v935_v15  ;;  %v936_v18 = vunpack.i.l.bf16 %v935_v15  ;;  %v512_v46 = vsel %vm1437_vm3, %v956_v13, %v957_v12 }
 0x3b9   :  { %v980_v19 = vpop.permute.xlu0 %979  ;;  %810 = vmatpush1.bf16.msk.msra.mxu1 %vm1436_vm0, %v809_v14 }
 0x3ba   :  { %v511_v21 = vsel %vm1438_vm4, %v936_v18, %v937_v16  ;;  %673 = vmatprep.subr.bf16.mxu1 %v1006_v2  ;;  %v982_v50 = vunpack.i.h.bf16 %v980_v19  ;;  %v981_v29 = vunpack.i.l.bf16 %v980_v19 }
 0x3bb   :  { %v812_v22 = vpack.c.bf16 %v512_v46, %v511_v21  ;;  %v960_v23 = vpop.permute.xlu1 %959  ;;  %v708_v21 = vld [vmem:[%s1408_s7] sm:$0xff] }
 0x3bc   :  { %v962_v24 = vunpack.i.h.bf16 %v960_v23  ;;  %v961_v26 = vunpack.i.l.bf16 %v960_v23  ;;  %v540_v38 = vsel %vm1441_vm7, %v981_v29, %v982_v50  ;;  %v709_v23 = vld [vmem:[%s1408_s7 + $0x8] sm:$0xff]  ;;  %v710_v29 = vld [vmem:[%s1409_s8] sm:$0xff] }
 0x3bd   :  { %v985_v28 = vpop.permute.xlu0 %984  ;;  %813 = vmatpush1.bf16.msk.msra.mxu1 %vm1439_vm5, %v812_v22  ;;  %v711_v50 = vld [vmem:[%s1409_s8 + $0x8] sm:$0xff] }
 0x3be   :  { %675 = vmatprep.subr.bf16.mxu1 %v1006_v2  ;;  %v539_v32 = vsel %vm1440_vm6, %v961_v26, %v962_v24  ;;  %v987_v42 = vunpack.i.h.bf16 %v985_v28  ;;  %v986_v20 = vunpack.i.l.bf16 %v985_v28 }
 0x3bf   :  { %v965_v31 = vpop.permute.xlu1 %964  ;;  %v815_v3 = vpack.c.bf16 %v540_v38, %v539_v32 }
 0x3c0   :  { %v967_v34 = vunpack.i.h.bf16 %v965_v31  ;;  %v966_v36 = vunpack.i.l.bf16 %v965_v31  ;;  %v564_v30 = vsel %vm1444_vm11, %v986_v20, %v987_v42 }
 0x3c1   :  { %v990_v37 = vpop.permute.xlu0 %989  ;;  %676 = vmatpush1.bf16.msra.mxu1 %v647_v35 }
 0x3c2   :  { %677 = vmatprep.subr.bf16.mxu1 %v1006_v2  ;;  %v563_v44 = vsel %vm1442_vm2, %v966_v36, %v967_v34  ;;  %v992_v33 = vunpack.i.h.bf16 %v990_v37  ;;  %v991_v35 = vunpack.i.l.bf16 %v990_v37 }
 0x3c3   :  { %v970_v43 = vpop.permute.xlu1 %969  ;;  %v818_v47 = vpack.c.bf16 %v564_v30, %v563_v44 }
 0x3c4   :  { %v972_v17 = vunpack.i.h.bf16 %v970_v43  ;;  %v971_v45 = vunpack.i.l.bf16 %v970_v43  ;;  %v588_v39 = vsel %vm1446_vm8, %v991_v35, %v992_v33 }
 0x3c5   :  { %816 = vmatpush1.bf16.msk.msra.mxu1 %vm1443_vm9, %v815_v3  ;;  %v995_v48 = vpop.permute.xlu0 %994 }
 0x3c6   :  { %679 = vmatprep.subr.bf16.mxu1 %v1006_v2  ;;  %v587_v51 = vsel %vm1445_vm12, %v971_v45, %v972_v17  ;;  %v997_v54 = vunpack.i.h.bf16 %v995_v48  ;;  %v996_v55 = vunpack.i.l.bf16 %v995_v48 }
 0x3c7   :  { %v975_v49 = vpop.permute.xlu1 %974  ;;  %v821_v56 = vpack.c.bf16 %v588_v39, %v587_v51 }
 0x3c8   :  { %v977_v52 = vunpack.i.h.bf16 %v975_v49  ;;  %v976_v53 = vunpack.i.l.bf16 %v975_v49  ;;  %v612_v59 = vsel %vm1448_vm10, %v996_v55, %v997_v54 }
 0x3c9   :  { %819 = vmatpush1.bf16.msk.msra.mxu1 %vm793_vm15, %v818_v47  ;;  %vm1449_vm15 = vmpackc.low %vm1238_vm14, %vm1238_vm14 }
 0x3ca   :  { %681 = vmatprep.subr.bf16.mxu1 %v1006_v2  ;;  %v611_v57 = vsel %vm1447_vm1, %v976_v53, %v977_v52 }
 0x3cb   :  { %v824_v60 = vpack.c.bf16 %v612_v59, %v611_v57 }
 0x3cd   :  { %822 = vmatpush1.bf16.msk.msra.mxu1 %vm1230_vm13, %v821_v56 }
 0x3ce   :  { %683 = vmatprep.subr.bf16.mxu1 %v1006_v2 }
 0x3d1   :  { %825 = vmatpush1.bf16.msk.msra.mxu1 %vm1449_vm15, %v824_v60 }
 0x3d4   :  { %700 = vmatmul.mubr.bf16.vlgmr.msra.gmra.mrb[0].mxu1 %v641_v61 }
 0x3d6   :  { %v662_v5 = vpop.permute.xlu0 %661 }
 0x3d8   :  { %v657_v40 = vpop.permute.xlu1 %656 }
 0x4a7   :  { %v701_v62 = vpop.f32.mrb[0].mxu1 }
 0x4a8   :  { %v702_v63 = vadd.f32 %v701_v62, %v657_v40  ;;  %v703_v4 = vpop.f32.mrb[1].mxu1 }
 0x4a9   :  { %v704_v6 = vpop.f32.mrb[2].mxu1 }
 0x4aa   :  { %v705_v7 = vadd.f32 %v704_v6, %v662_v5  ;;  %v706_v8 = vpop.f32.mrb[3].mxu1  ;;  %712 = vadd.xlane.f32.xlu1 %v702_v63 }
 0x4ac   :  { %714 = vadd.xlane.f32.xlu0 %v705_v7 }
 0x537   :  { %v713_v2 = vpop.xlane.xlu1 %712 }
 0x538   :  { %v716_v9 = vmul.f32 0.0078125, %v713_v2 }
 0x539   :  { %v715_v10 = vpop.xlane.xlu0 %714 }
 0x53a   :  { %v718_v27 = vsub.f32 %v702_v63, %v716_v9  ;;  %v717_v11 = vmul.f32 0.0078125, %v715_v10 }
 0x53c   :  { %v719_v12 = vsub.f32 %v705_v7, %v717_v11  ;;  %v720_v41 = vmul.f32 %v718_v27, %v718_v27 }
 0x53e   :  { %722 = vadd.xlane.f32.xlu0 %v720_v41  ;;  %v721_v13 = vmul.f32 %v719_v12, %v719_v12 }
 0x540   :  { %724 = vadd.xlane.f32.xlu1 %v721_v13 }
 0x5cb   :  { %v723_v14 = vpop.xlane.xlu0 %722 }
 0x5cc   :  { %v726_v15 = vmul.f32 0.0078125, %v723_v14 }
 0x5cd   :  { %v725_v16 = vpop.xlane.xlu1 %724 }
 0x5ce   :  { %v728_v18 = vadd.f32 1e-05, %v726_v15  ;;  %v727_v19 = vmul.f32 0.0078125, %v725_v16 }
 0x5d0   :  { %1002 = vrsqrt.f32 %v728_v18  ;;  %v729_v46 = vadd.f32 1e-05, %v727_v19 }
 0x5d2   :  { %1004 = vrsqrt.f32 %v729_v46 }
 0x5da   :  { %v1003_v22 = vpop.eup %1002 }
 0x5db   :  { %v732_v24 = vmul.f32 %v1003_v22, %v708_v21 }
 0x5dc   :  { %v1005_v26 = vpop.eup %1004 }
 0x5dd   :  { %736 = vperm.xlu0 %916, %v732_v24   ;;  %v733_v28 = vmul.f32 %v1005_v26, %v709_v23 }
 0x5df   :  { %741 = vperm.xlu1 %917, %v733_v28  }
 0x5e1   :  { %753 = vperm.xlu0 %916, %v711_v50  }
 0x5e3   :  { %748 = vperm.xlu1 %917, %v710_v29  }
 0x65c   :  { %v737_v31 = vpop.permute.xlu0 %736 }
 0x65d   :  { %v744_v37 = vmul.f32 %v737_v31, %v718_v27 }
 0x65e   :  { %v742_v32 = vpop.permute.xlu1 %741 }
 0x65f   :  { %v745_v34 = vmul.f32 %v742_v32, %v719_v12 }
 0x660   :  { %v754_v36 = vpop.permute.xlu0 %753 }
 0x661   :  { %v757_v38 = vadd.f32 %v754_v36, %v745_v34 }
 0x662   :  { %v749_v42 = vpop.permute.xlu1 %748 }
 0x663   :  { %vm759_vm13 = vcmp.ge.f32.partialorder %v757_v38, 0.0  ;;  %v761_v20 = vmul.f32 0.2, %v757_v38  ;;  %v756_v3 = vadd.f32 %v749_v42, %v744_v37 }
 0x665   :  { %v763_v43 = vsel %vm759_vm13, %v757_v38, %v761_v20  ;;  %vm758_vm14 = vcmp.ge.f32.partialorder %v756_v3, 0.0  ;;  %v760_v44 = vmul.f32 0.2, %v756_v3 }
 0x666   :  { %v765_v17 = vadd.f32 %v763_v43, %v1074_v1 }
 0x667   :  { %v762_v45 = vsel %vm758_vm14, %v756_v3, %v760_v44 }
 0x668   :  { %771 = vst [vmem:[%s1410_s9 + $0x8] sm:$0xff] %v765_v17  ;;  %v764_v30 = vadd.f32 %v762_v45, %v1069_v0 }
 0x66a   :  { %770 = vst [vmem:[%s1410_s9] sm:$0xff] %v764_v30 }

// kernel: resnet_vqvae_fwd.22
= control target key start
LH: loop header
LB: loop body
LE: loop exit
PB: predicated region body
PF: predicated region fallthrough
CT: control target
= control target key end

     0   :  { %v280_v3 = vmov 0   ;;  %vm63_vm0 = vcmask 523264   ;;  %vm127_vm1 = vcmask 261120   ;;  %s429_s0 = inlined_call_operand.vmem [shape: f32[64,32], index: 0, kind: input, shape index: {}]   ;;  %s430_s1 = inlined_call_operand.vmem [shape: f32[32,64], index: 1, kind: input, shape index: {}]   ;;  %s431_s2 = inlined_call_operand.vmem [shape: f32[32,1], index: 2, kind: input, shape index: {}]   ;;  %s432_s4 = inlined_call_operand.vmem [shape: f32[32,1], index: 4, kind: input, shape index: {}]   ;;  %s433_s3 = inlined_call_operand.vmem [shape: f32[32,1], index: 3, kind: input, shape index: {}]   ;;  %s434_s5 = inlined_call_operand.vmem [shape: f32[32,32], index: 5, kind: output, shape index: {}]  }
   0x1   :  { %v25_v0 = vld [vmem:[%s429_s0] sm:$0xff]  ;;  %v26_v1 = vld [vmem:[%s429_s0 + $0x8] sm:$0xff]  ;;  %v27_v2 = vld [vmem:[%s429_s0 + $0x10] sm:$0xff]  ;;  %270 = vset.pattern.permute.xlu0 %v280_v3  ;;  %271 = vset.pattern.permute.xlu1 %v280_v3 }
   0x2   :  { %v35_v4 = vpack.c.bf16 %v26_v1, %v25_v0  ;;  %v28_v5 = vld [vmem:[%s429_s0 + $0x18] sm:$0xff]  ;;  %v29_v7 = vld [vmem:[%s429_s0 + $0x20] sm:$0xff]  ;;  %v30_v8 = vld [vmem:[%s429_s0 + $0x28] sm:$0xff] }
   0x3   :  { %v36_v6 = vpack.c.bf16 %v28_v5, %v27_v2  ;;  %v21_v9 = vld [vmem:[%s430_s1] sm:$0xff]  ;;  %v22_v10 = vld [vmem:[%s430_s1 + $0x8] sm:$0xff]  ;;  %v41_v13 = vld [vmem:[%s431_s2 + $0x10] sm:$0xff]  ;;  %v37_v14 = vpack.c.bf16 %v30_v8, %v29_v7 }
   0x4   :  { %257 = vmatprep.subr.bf16.mxu0 %v35_v4  ;;  %v33_v11 = vpack.c.bf16 %v22_v10, %v21_v9  ;;  %v39_v12 = vld [vmem:[%s431_s2] sm:$0xff]  ;;  %v31_v15 = vld [vmem:[%s429_s0 + $0x30] sm:$0xff]  ;;  %v32_v16 = vld [vmem:[%s429_s0 + $0x38] sm:$0xff]  ;;  %55 = vperm.xlu1 %271, %v41_v13  }
   0x5   :  { %258 = vmatpush3.bf16.msra.mxu0 %v35_v4  ;;  %45 = vperm.xlu0 %270, %v39_v12   ;;  %v40_v17 = vld [vmem:[%s431_s2 + $0x8] sm:$0xff]  ;;  %v42_v18 = vld [vmem:[%s431_s2 + $0x18] sm:$0xff]  ;;  %v38_v19 = vpack.c.bf16 %v32_v16, %v31_v15  ;;  %v23_v20 = vld [vmem:[%s430_s1 + $0x10] sm:$0xff] }
   0x6   :  { %259 = vmatprep.subr.bf16.mxu0 %v36_v6  ;;  %265 = vmatprep.mubr.msk.bf16.mxu0 %vm63_vm0, %v33_v11  ;;  %v24_v21 = vld [vmem:[%s430_s1 + $0x18] sm:$0xff]  ;;  %v124_v59 = vld [vmem:[%s432_s4 + $0x8] sm:$0xff]  ;;  %v123_v60 = vld [vmem:[%s432_s4] sm:$0xff] }
   0x7   :  { %v34_v22 = vpack.c.bf16 %v24_v21, %v23_v20  ;;  %v120_v9 = vld [vmem:[%s433_s3 + $0x8] sm:$0xff]  ;;  %v121_v11 = vld [vmem:[%s433_s3 + $0x10] sm:$0xff]  ;;  %v122_v20 = vld [vmem:[%s433_s3 + $0x18] sm:$0xff] }
   0x8   :  { %60 = vperm.xlu1 %271, %v42_v18   ;;  %v125_v16 = vld [vmem:[%s432_s4 + $0x10] sm:$0xff] }
   0x9   :  { %260 = vmatpush3.bf16.msra.mxu0 %v36_v6  ;;  %50 = vperm.xlu0 %270, %v40_v17   ;;  %v119_v17 = vld [vmem:[%s433_s3] sm:$0xff] }
   0xa   :  { %261 = vmatprep.subr.bf16.mxu0 %v37_v14 }
   0xd   :  { %262 = vmatpush3.bf16.msra.mxu0 %v37_v14 }
   0xe   :  { %263 = vmatprep.subr.bf16.mxu0 %v38_v19 }
  0x11   :  { %264 = vmatpush3.bf16.msra.mxu0 %v38_v19 }
  0x14   :  { %266 = vmatmul.mubr.msk.bf16.vlgmr.msra.gmra.mrb[0].mxu0 %vm63_vm0, %v34_v22  ;;  %v126_v22 = vld [vmem:[%s432_s4 + $0x18] sm:$0xff] }
  0x83   :  { %v56_v24 = vpop.permute.xlu1 %55 }
  0x84   :  { %v46_v23 = vpop.permute.xlu0 %45 }
  0x87   :  { %v61_v34 = vpop.permute.xlu1 %60 }
  0x88   :  { %v51_v29 = vpop.permute.xlu0 %50 }
  0xe7   :  { %v267_v25 = vpop.f32.mrb[0].mxu0 }
  0xe8   :  { %v104_v26 = vpop.f32.mrb[1].mxu0  ;;  %v113_v31 = vadd.f32 %v267_v25, %v56_v24 }
  0xe9   :  { %v105_v27 = vadd.f32 %v104_v26, %v46_v23  ;;  %v268_v28 = vpop.f32.mrb[2].mxu0 }
  0xea   :  { %v107_v30 = vpop.f32.mrb[3].mxu0  ;;  %v116_v36 = vadd.f32 %v268_v28, %v61_v34  ;;  %v134_v37 = vsel %vm127_vm1, %v113_v31, 0.0 }
  0xeb   :  { %v108_v32 = vadd.f32 %v107_v30, %v51_v29  ;;  %v128_v33 = vsel %vm127_vm1, %v105_v27, 0.0 }
  0xec   :  { %129 = vadd.xlane.f32.xlu0 %v128_v33  ;;  %v137_v38 = vsel %vm127_vm1, %v116_v36, 0.0 }
  0xed   :  { %v131_v35 = vsel %vm127_vm1, %v108_v32, 0.0 }
  0xee   :  { %132 = vadd.xlane.f32.xlu1 %v131_v35 }
  0xf0   :  { %135 = vadd.xlane.f32.xlu0 %v134_v37 }
  0xf4   :  { %138 = vadd.xlane.f32.xlu0 %v137_v38 }
 0x179   :  { %v130_v39 = vpop.xlane.xlu0 %129 }
 0x17a   :  { %v141_v40 = vmul.f32 0.03125, %v130_v39 }
 0x17b   :  { %v133_v41 = vpop.xlane.xlu1 %132 }
 0x17c   :  { %v365_v42 = vsub.f32 %v105_v27, %v141_v40  ;;  %v142_v43 = vmul.f32 0.03125, %v133_v41 }
 0x17d   :  { %v136_v44 = vpop.xlane.xlu0 %135 }
 0x17e   :  { %v367_v45 = vsub.f32 %v108_v32, %v142_v43  ;;  %v143_v46 = vmul.f32 0.03125, %v136_v44  ;;  %v149_v47 = vmul.f32 %v365_v42, %v365_v42 }
 0x180   :  { %v371_v48 = vsub.f32 %v113_v31, %v143_v46  ;;  %v153_v49 = vsel %vm127_vm1, %v149_v47, 0.0  ;;  %v150_v50 = vmul.f32 %v367_v45, %v367_v45 }
 0x181   :  { %154 = vadd.xlane.f32.xlu1 %v153_v49  ;;  %v139_v51 = vpop.xlane.xlu0 %138 }
 0x182   :  { %v144_v52 = vmul.f32 0.03125, %v139_v51  ;;  %v156_v53 = vsel %vm127_vm1, %v150_v50, 0.0  ;;  %v151_v54 = vmul.f32 %v371_v48, %v371_v48 }
 0x183   :  { %157 = vadd.xlane.f32.xlu0 %v156_v53 }
 0x184   :  { %v379_v55 = vsub.f32 %v116_v36, %v144_v52  ;;  %v159_v56 = vsel %vm127_vm1, %v151_v54, 0.0 }
 0x185   :  { %160 = vadd.xlane.f32.xlu1 %v159_v56 }
 0x186   :  { %v152_v57 = vmul.f32 %v379_v55, %v379_v55 }
 0x188   :  { %v162_v58 = vsel %vm127_vm1, %v152_v57, 0.0 }
 0x189   :  { %163 = vadd.xlane.f32.xlu0 %v162_v58 }
 0x196   :  { %212 = vperm.xlu1 %271, %v124_v59  }
 0x19f   :  { %207 = vperm.xlu0 %270, %v123_v60  }
 0x20e   :  { %v155_v61 = vpop.xlane.xlu1 %154 }
 0x20f   :  { %v165_v63 = vmul.f32 0.03125, %v155_v61 }
 0x210   :  { %v158_v62 = vpop.xlane.xlu0 %157 }
 0x211   :  { %v166_v0 = vmul.f32 0.03125, %v158_v62  ;;  %v169_v4 = vadd.f32 1e-05, %v165_v63 }
 0x212   :  { %v161_v1 = vpop.xlane.xlu1 %160 }
 0x213   :  { %v170_v2 = vadd.f32 1e-05, %v166_v0  ;;  %v167_v3 = vmul.f32 0.03125, %v161_v1 }
 0x215   :  { %272 = vrsqrt.f32 %v170_v2  ;;  %v171_v5 = vadd.f32 1e-05, %v167_v3 }
 0x216   :  { %v164_v6 = vpop.xlane.xlu0 %163  ;;  %v213_v24 = vpop.permute.xlu1 %212 }
 0x217   :  { %274 = vrsqrt.f32 %v171_v5  ;;  %v168_v7 = vmul.f32 0.03125, %v164_v6 }
 0x218   :  { %276 = vrsqrt.f32 %v169_v4 }
 0x219   :  { %v172_v8 = vadd.f32 1e-05, %v168_v7 }
 0x21b   :  { %278 = vrsqrt.f32 %v172_v8 }
 0x21e   :  { %v208_v23 = vpop.permute.xlu0 %207 }
 0x21f   :  { %v273_v10 = vpop.eup %272 }
 0x220   :  { %v178_v12 = vmul.f32 %v273_v10, %v120_v9 }
 0x221   :  { %v275_v13 = vpop.eup %274 }
 0x222   :  { %188 = vperm.xlu0 %270, %v178_v12   ;;  %v179_v14 = vmul.f32 %v275_v13, %v121_v11  ;;  %v277_v15 = vpop.eup %276 }
 0x223   :  { %v177_v18 = vmul.f32 %v277_v15, %v119_v17 }
 0x224   :  { %193 = vperm.xlu1 %271, %v179_v14  }
 0x225   :  { %v279_v19 = vpop.eup %278 }
 0x226   :  { %217 = vperm.xlu0 %270, %v125_v16   ;;  %v180_v21 = vmul.f32 %v279_v19, %v122_v20 }
 0x228   :  { %183 = vperm.xlu1 %271, %v177_v18  }
 0x22c   :  { %198 = vperm.xlu1 %271, %v180_v21  }
 0x230   :  { %222 = vperm.xlu1 %271, %v126_v22  }
 0x2a1   :  { %v189_v25 = vpop.permute.xlu0 %188 }
 0x2a2   :  { %v202_v26 = vmul.f32 %v189_v25, %v367_v45 }
 0x2a3   :  { %v194_v27 = vpop.permute.xlu1 %193 }
 0x2a4   :  { %v226_v28 = vadd.f32 %v213_v24, %v202_v26  ;;  %v203_v29 = vmul.f32 %v194_v27, %v371_v48 }
 0x2a5   :  { %v218_v30 = vpop.permute.xlu0 %217 }
 0x2a6   :  { %vm230_vm2 = vcmp.ge.f32.partialorder %v226_v28, 0.0  ;;  %v234_v31 = vmul.f32 0.2, %v226_v28  ;;  %v227_v32 = vadd.f32 %v218_v30, %v203_v29 }
 0x2a7   :  { %v184_v33 = vpop.permute.xlu1 %183 }
 0x2a8   :  { %v238_v34 = vsel %vm230_vm2, %v226_v28, %v234_v31  ;;  %vm231_vm3 = vcmp.ge.f32.partialorder %v227_v32, 0.0  ;;  %v235_v35 = vmul.f32 0.2, %v227_v32  ;;  %v201_v36 = vmul.f32 %v184_v33, %v365_v42 }
 0x2a9   :  { %242 = vst.msk [vmem:[%s434_s5 + $0x8] sm:$0xff] %vm127_vm1, %v238_v34 }
 0x2aa   :  { %v239_v37 = vsel %vm231_vm3, %v227_v32, %v235_v35  ;;  %v225_v38 = vadd.f32 %v208_v23, %v201_v36 }
 0x2ab   :  { %243 = vst.msk [vmem:[%s434_s5 + $0x10] sm:$0xff] %vm127_vm1, %v239_v37  ;;  %v199_v39 = vpop.permute.xlu1 %198 }
 0x2ac   :  { %vm229_vm4 = vcmp.ge.f32.partialorder %v225_v38, 0.0  ;;  %v233_v40 = vmul.f32 0.2, %v225_v38  ;;  %v204_v43 = vmul.f32 %v199_v39, %v379_v55 }
 0x2ae   :  { %v237_v41 = vsel %vm229_vm4, %v225_v38, %v233_v40 }
 0x2af   :  { %241 = vst.msk [vmem:[%s434_s5] sm:$0xff] %vm127_vm1, %v237_v41  ;;  %v223_v42 = vpop.permute.xlu1 %222 }
 0x2b0   :  { %v228_v44 = vadd.f32 %v223_v42, %v204_v43 }
 0x2b2   :  { %vm232_vm5 = vcmp.ge.f32.partialorder %v228_v44, 0.0  ;;  %v236_v45 = vmul.f32 0.2, %v228_v44 }
 0x2b4   :  { %v240_v46 = vsel %vm232_vm5, %v228_v44, %v236_v45 }
 0x2b5   :  { %244 = vst.msk [vmem:[%s434_s5 + $0x18] sm:$0xff] %vm127_vm1, %v240_v46 }

// kernel: resnet_vqvae_fwd.19
= control target key start
LH: loop header
LB: loop body
LE: loop exit
PB: predicated region body
PF: predicated region fallthrough
CT: control target
= control target key end

     0   :  { %v295_v3 = vmov 0   ;;  %vm132_vm0 = vcmask 261120   ;;  %s466_s0 = inlined_call_operand.vmem [shape: f32[128,32], index: 0, kind: input, shape index: {}]   ;;  %s467_s1 = inlined_call_operand.vmem [shape: f32[32,128], index: 1, kind: input, shape index: {}]   ;;  %s468_s2 = inlined_call_operand.vmem [shape: f32[32,1], index: 2, kind: input, shape index: {}]   ;;  %s469_s4 = inlined_call_operand.vmem [shape: f32[32,1], index: 4, kind: input, shape index: {}]   ;;  %s470_s3 = inlined_call_operand.vmem [shape: f32[32,1], index: 3, kind: input, shape index: {}]   ;;  %s471_s5 = inlined_call_operand.vmem [shape: f32[32,32], index: 5, kind: output, shape index: {}]  }
   0x1   :  { %v25_v0 = vld [vmem:[%s466_s0] sm:$0xff]  ;;  %v26_v1 = vld [vmem:[%s466_s0 + $0x8] sm:$0xff]  ;;  %v27_v2 = vld [vmem:[%s466_s0 + $0x10] sm:$0xff]  ;;  %285 = vset.pattern.permute.xlu0 %v295_v3  ;;  %286 = vset.pattern.permute.xlu1 %v295_v3 }
   0x2   :  { %v43_v4 = vpack.c.bf16 %v26_v1, %v25_v0  ;;  %v28_v5 = vld [vmem:[%s466_s0 + $0x18] sm:$0xff]  ;;  %v29_v7 = vld [vmem:[%s466_s0 + $0x20] sm:$0xff]  ;;  %v30_v8 = vld [vmem:[%s466_s0 + $0x28] sm:$0xff] }
   0x3   :  { %v44_v6 = vpack.c.bf16 %v28_v5, %v27_v2  ;;  %v45_v9 = vpack.c.bf16 %v30_v8, %v29_v7  ;;  %v21_v10 = vld [vmem:[%s467_s1] sm:$0xff]  ;;  %v22_v11 = vld [vmem:[%s467_s1 + $0x8] sm:$0xff]  ;;  %v31_v12 = vld [vmem:[%s466_s0 + $0x30] sm:$0xff] }
   0x4   :  { %264 = vmatprep.subr.bf16.mxu0 %v43_v4  ;;  %v32_v13 = vld [vmem:[%s466_s0 + $0x38] sm:$0xff]  ;;  %v41_v14 = vpack.c.bf16 %v22_v11, %v21_v10  ;;  %v51_v15 = vld [vmem:[%s468_s2] sm:$0xff]  ;;  %v53_v16 = vld [vmem:[%s468_s2 + $0x10] sm:$0xff] }
   0x5   :  { %265 = vmatpush3.bf16.msra.mxu0 %v43_v4  ;;  %57 = vperm.xlu0 %285, %v51_v15   ;;  %v52_v17 = vld [vmem:[%s468_s2 + $0x8] sm:$0xff]  ;;  %v46_v18 = vpack.c.bf16 %v32_v13, %v31_v12  ;;  %v33_v19 = vld [vmem:[%s466_s0 + $0x40] sm:$0xff]  ;;  %v54_v21 = vld [vmem:[%s468_s2 + $0x18] sm:$0xff] }
   0x6   :  { %266 = vmatprep.subr.bf16.mxu0 %v44_v6  ;;  %280 = vmatprep.mubr.bf16.mxu0 %v41_v14  ;;  %v34_v20 = vld [vmem:[%s466_s0 + $0x48] sm:$0xff]  ;;  %v35_v23 = vld [vmem:[%s466_s0 + $0x50] sm:$0xff]  ;;  %v36_v24 = vld [vmem:[%s466_s0 + $0x58] sm:$0xff] }
   0x7   :  { %67 = vperm.xlu1 %286, %v53_v16   ;;  %v47_v22 = vpack.c.bf16 %v34_v20, %v33_v19  ;;  %v48_v25 = vpack.c.bf16 %v36_v24, %v35_v23  ;;  %v37_v26 = vld [vmem:[%s466_s0 + $0x60] sm:$0xff]  ;;  %v38_v27 = vld [vmem:[%s466_s0 + $0x68] sm:$0xff]  ;;  %v39_v29 = vld [vmem:[%s466_s0 + $0x70] sm:$0xff] }
   0x8   :  { %v49_v28 = vpack.c.bf16 %v38_v27, %v37_v26  ;;  %v40_v30 = vld [vmem:[%s466_s0 + $0x78] sm:$0xff]  ;;  %v23_v32 = vld [vmem:[%s467_s1 + $0x10] sm:$0xff]  ;;  %v129_v7 = vld [vmem:[%s469_s4 + $0x8] sm:$0xff] }
   0x9   :  { %267 = vmatpush3.bf16.msra.mxu0 %v44_v6  ;;  %62 = vperm.xlu0 %285, %v52_v17   ;;  %v50_v31 = vpack.c.bf16 %v40_v30, %v39_v29  ;;  %v24_v33 = vld [vmem:[%s467_s1 + $0x18] sm:$0xff]  ;;  %v128_v8 = vld [vmem:[%s469_s4] sm:$0xff]  ;;  %v126_v23 = vld [vmem:[%s470_s3 + $0x10] sm:$0xff] }
   0xa   :  { %268 = vmatprep.subr.bf16.mxu0 %v45_v9  ;;  %v42_v34 = vpack.c.bf16 %v24_v33, %v23_v32  ;;  %v124_v29 = vld [vmem:[%s470_s3] sm:$0xff]  ;;  %v127_v32 = vld [vmem:[%s470_s3 + $0x18] sm:$0xff] }
   0xb   :  { %72 = vperm.xlu1 %286, %v54_v21   ;;  %v125_v21 = vld [vmem:[%s470_s3 + $0x8] sm:$0xff] }
   0xd   :  { %269 = vmatpush3.bf16.msra.mxu0 %v45_v9 }
   0xe   :  { %270 = vmatprep.subr.bf16.mxu0 %v46_v18 }
  0x11   :  { %271 = vmatpush3.bf16.msra.mxu0 %v46_v18 }
  0x12   :  { %272 = vmatprep.subr.bf16.mxu0 %v47_v22 }
  0x15   :  { %273 = vmatpush3.bf16.msra.mxu0 %v47_v22 }
  0x16   :  { %274 = vmatprep.subr.bf16.mxu0 %v48_v25 }
  0x19   :  { %275 = vmatpush3.bf16.msra.mxu0 %v48_v25 }
  0x1a   :  { %276 = vmatprep.subr.bf16.mxu0 %v49_v28 }
  0x1d   :  { %277 = vmatpush3.bf16.msra.mxu0 %v49_v28  ;;  %v130_v28 = vld [vmem:[%s469_s4 + $0x10] sm:$0xff] }
  0x1e   :  { %278 = vmatprep.subr.bf16.mxu0 %v50_v31 }
  0x21   :  { %279 = vmatpush3.bf16.msra.mxu0 %v50_v31 }
  0x24   :  { %281 = vmatmul.mubr.bf16.vlgmr.msra.gmra.mrb[0].mxu0 %v42_v34  ;;  %v131_v34 = vld [vmem:[%s469_s4 + $0x18] sm:$0xff] }
  0x84   :  { %v58_v35 = vpop.permute.xlu0 %57 }
  0x86   :  { %v68_v36 = vpop.permute.xlu1 %67 }
  0x88   :  { %v63_v41 = vpop.permute.xlu0 %62 }
  0x8a   :  { %v73_v46 = vpop.permute.xlu1 %72 }
  0xf7   :  { %v282_v37 = vpop.f32.mrb[0].mxu0 }
  0xf8   :  { %v109_v38 = vpop.f32.mrb[1].mxu0  ;;  %v118_v43 = vadd.f32 %v282_v37, %v68_v36 }
  0xf9   :  { %v110_v39 = vadd.f32 %v109_v38, %v58_v35  ;;  %v283_v40 = vpop.f32.mrb[2].mxu0 }
  0xfa   :  { %v112_v42 = vpop.f32.mrb[3].mxu0  ;;  %v121_v48 = vadd.f32 %v283_v40, %v73_v46  ;;  %v139_v49 = vsel %vm132_vm0, %v118_v43, 0.0 }
  0xfb   :  { %v113_v44 = vadd.f32 %v112_v42, %v63_v41  ;;  %v133_v45 = vsel %vm132_vm0, %v110_v39, 0.0 }
  0xfc   :  { %134 = vadd.xlane.f32.xlu0 %v133_v45  ;;  %v142_v50 = vsel %vm132_vm0, %v121_v48, 0.0 }
  0xfd   :  { %v136_v47 = vsel %vm132_vm0, %v113_v44, 0.0 }
  0xfe   :  { %137 = vadd.xlane.f32.xlu1 %v136_v47 }
 0x100   :  { %140 = vadd.xlane.f32.xlu0 %v139_v49 }
 0x104   :  { %143 = vadd.xlane.f32.xlu0 %v142_v50 }
 0x189   :  { %v135_v51 = vpop.xlane.xlu0 %134 }
 0x18a   :  { %v146_v52 = vmul.f32 0.03125, %v135_v51 }
 0x18b   :  { %v138_v53 = vpop.xlane.xlu1 %137 }
 0x18c   :  { %v402_v54 = vsub.f32 %v110_v39, %v146_v52  ;;  %v147_v55 = vmul.f32 0.03125, %v138_v53 }
 0x18d   :  { %v141_v56 = vpop.xlane.xlu0 %140 }
 0x18e   :  { %v404_v57 = vsub.f32 %v113_v44, %v147_v55  ;;  %v148_v58 = vmul.f32 0.03125, %v141_v56  ;;  %v154_v59 = vmul.f32 %v402_v54, %v402_v54 }
 0x190   :  { %v408_v60 = vsub.f32 %v118_v43, %v148_v58  ;;  %v158_v61 = vsel %vm132_vm0, %v154_v59, 0.0  ;;  %v155_v62 = vmul.f32 %v404_v57, %v404_v57 }
 0x191   :  { %159 = vadd.xlane.f32.xlu1 %v158_v61  ;;  %v144_v63 = vpop.xlane.xlu0 %143 }
 0x192   :  { %v149_v0 = vmul.f32 0.03125, %v144_v63  ;;  %v161_v1 = vsel %vm132_vm0, %v155_v62, 0.0  ;;  %v156_v2 = vmul.f32 %v408_v60, %v408_v60 }
 0x193   :  { %162 = vadd.xlane.f32.xlu0 %v161_v1 }
 0x194   :  { %v416_v3 = vsub.f32 %v121_v48, %v149_v0  ;;  %v164_v4 = vsel %vm132_vm0, %v156_v2, 0.0 }
 0x195   :  { %165 = vadd.xlane.f32.xlu1 %v164_v4 }
 0x196   :  { %v157_v5 = vmul.f32 %v416_v3, %v416_v3 }
 0x198   :  { %v167_v6 = vsel %vm132_vm0, %v157_v5, 0.0 }
 0x199   :  { %168 = vadd.xlane.f32.xlu0 %v167_v6 }
 0x1a6   :  { %217 = vperm.xlu1 %286, %v129_v7  }
 0x1af   :  { %212 = vperm.xlu0 %285, %v128_v8  }
 0x21e   :  { %v160_v9 = vpop.xlane.xlu1 %159 }
 0x21f   :  { %v170_v11 = vmul.f32 0.03125, %v160_v9 }
 0x220   :  { %v163_v10 = vpop.xlane.xlu0 %162 }
 0x221   :  { %v171_v12 = vmul.f32 0.03125, %v163_v10  ;;  %v174_v16 = vadd.f32 1e-05, %v170_v11 }
 0x222   :  { %v166_v13 = vpop.xlane.xlu1 %165 }
 0x223   :  { %v175_v14 = vadd.f32 1e-05, %v171_v12  ;;  %v172_v15 = vmul.f32 0.03125, %v166_v13 }
 0x225   :  { %287 = vrsqrt.f32 %v175_v14  ;;  %v176_v17 = vadd.f32 1e-05, %v172_v15 }
 0x226   :  { %v169_v18 = vpop.xlane.xlu0 %168  ;;  %v218_v36 = vpop.permute.xlu1 %217 }
 0x227   :  { %289 = vrsqrt.f32 %v176_v17  ;;  %v173_v19 = vmul.f32 0.03125, %v169_v18 }
 0x228   :  { %291 = vrsqrt.f32 %v174_v16 }
 0x229   :  { %v177_v20 = vadd.f32 1e-05, %v173_v19 }
 0x22b   :  { %293 = vrsqrt.f32 %v177_v20 }
 0x22e   :  { %v213_v35 = vpop.permute.xlu0 %212 }
 0x22f   :  { %v288_v22 = vpop.eup %287 }
 0x230   :  { %v183_v24 = vmul.f32 %v288_v22, %v125_v21 }
 0x231   :  { %v290_v25 = vpop.eup %289 }
 0x232   :  { %193 = vperm.xlu0 %285, %v183_v24   ;;  %v184_v26 = vmul.f32 %v290_v25, %v126_v23  ;;  %v292_v27 = vpop.eup %291 }
 0x233   :  { %v182_v30 = vmul.f32 %v292_v27, %v124_v29 }
 0x234   :  { %198 = vperm.xlu1 %286, %v184_v26  }
 0x235   :  { %v294_v31 = vpop.eup %293 }
 0x236   :  { %222 = vperm.xlu0 %285, %v130_v28   ;;  %v185_v33 = vmul.f32 %v294_v31, %v127_v32 }
 0x238   :  { %188 = vperm.xlu1 %286, %v182_v30  }
 0x23c   :  { %203 = vperm.xlu1 %286, %v185_v33  }
 0x240   :  { %227 = vperm.xlu1 %286, %v131_v34  }
 0x2b1   :  { %v194_v37 = vpop.permute.xlu0 %193 }
 0x2b2   :  { %v207_v38 = vmul.f32 %v194_v37, %v404_v57 }
 0x2b3   :  { %v199_v39 = vpop.permute.xlu1 %198 }
 0x2b4   :  { %v231_v40 = vadd.f32 %v218_v36, %v207_v38  ;;  %v208_v41 = vmul.f32 %v199_v39, %v408_v60 }
 0x2b5   :  { %v223_v42 = vpop.permute.xlu0 %222 }
 0x2b6   :  { %vm235_vm1 = vcmp.ge.f32.partialorder %v231_v40, 0.0  ;;  %v239_v43 = vmul.f32 0.2, %v231_v40  ;;  %v232_v44 = vadd.f32 %v223_v42, %v208_v41 }
 0x2b7   :  { %v189_v45 = vpop.permute.xlu1 %188 }
 0x2b8   :  { %v243_v46 = vsel %vm235_vm1, %v231_v40, %v239_v43  ;;  %vm236_vm2 = vcmp.ge.f32.partialorder %v232_v44, 0.0  ;;  %v240_v47 = vmul.f32 0.2, %v232_v44  ;;  %v206_v48 = vmul.f32 %v189_v45, %v402_v54 }
 0x2b9   :  { %247 = vst.msk [vmem:[%s471_s5 + $0x8] sm:$0xff] %vm132_vm0, %v243_v46 }
 0x2ba   :  { %v244_v49 = vsel %vm236_vm2, %v232_v44, %v240_v47  ;;  %v230_v50 = vadd.f32 %v213_v35, %v206_v48 }
 0x2bb   :  { %248 = vst.msk [vmem:[%s471_s5 + $0x10] sm:$0xff] %vm132_vm0, %v244_v49  ;;  %v204_v51 = vpop.permute.xlu1 %203 }
 0x2bc   :  { %vm234_vm3 = vcmp.ge.f32.partialorder %v230_v50, 0.0  ;;  %v238_v52 = vmul.f32 0.2, %v230_v50  ;;  %v209_v55 = vmul.f32 %v204_v51, %v416_v3 }
 0x2be   :  { %v242_v53 = vsel %vm234_vm3, %v230_v50, %v238_v52 }
 0x2bf   :  { %246 = vst.msk [vmem:[%s471_s5] sm:$0xff] %vm132_vm0, %v242_v53  ;;  %v228_v54 = vpop.permute.xlu1 %227 }
 0x2c0   :  { %v233_v56 = vadd.f32 %v228_v54, %v209_v55 }
 0x2c2   :  { %vm237_vm4 = vcmp.ge.f32.partialorder %v233_v56, 0.0  ;;  %v241_v57 = vmul.f32 0.2, %v233_v56 }
 0x2c4   :  { %v245_v58 = vsel %vm237_vm4, %v233_v56, %v241_v57 }
 0x2c5   :  { %249 = vst.msk [vmem:[%s471_s5 + $0x18] sm:$0xff] %vm132_vm0, %v245_v58 }

// kernel: resnet_vqvae_fwd.24
= control target key start
LH: loop header
LB: loop body
LE: loop exit
PB: predicated region body
PF: predicated region fallthrough
CT: control target
= control target key end

     0   :  { %vm53_vm0 = vcmask 261120   ;;  %vm51_vm1 = vcmask 1047808   ;;  %v724_v3 = vmov 0.0   ;;  %s725_s13 = smov 5   ;;  %s726_s26 = smov 4   ;;  %vm733_vm2 = vmmov 0   ;;  %s1035_s0 = inlined_call_operand.vmem [shape: f32[32,32], index: 0, kind: input, shape index: {}]   ;;  %s1036_s1 = inlined_call_operand.vmem [shape: f32[32,32], index: 1, kind: input, shape index: {}]   ;;  %s1037_s2 = inlined_call_operand.vmem [shape: f32[32,32], index: 2, kind: input, shape index: {}]   ;;  %s1038_s3 = inlined_call_operand.vmem [shape: f32[16,288], index: 3, kind: input, shape index: {}]   ;;  %s1039_s4 = inlined_call_operand.vmem [shape: f32[16,1], index: 4, kind: input, shape index: {}]   ;;  %s1040_s6 = inlined_call_operand.vmem [shape: f32[8,1], index: 6, kind: input, shape index: {}]   ;;  %s1041_s5 = inlined_call_operand.vmem [shape: f32[8,16], index: 5, kind: input, shape index: {}]   ;;  %s1042_s7 = inlined_call_operand.vmem [shape: f32[8,32], index: 7, kind: output, shape index: {}]  }
   0x1   :  { %v28_v0 = vld [vmem:[%s1035_s0 + $0x8] sm:$0xff]  ;;  %55 = vst.msk [vmem:[#allocation2 + $0x20] sm:$0xff] %vm51_vm1, %v724_v3  ;;  %52 = vst.msk [vmem:[#allocation2 + $0x8] sm:$0xff] %vm51_vm1, %v724_v3  ;;  %657 = vmatprep.subr.bf16.mxu1 %v724_v3  ;;  %v30_v5 = vld [vmem:[%s1035_s0 + $0x18] sm:$0xff]  ;;  %688 = vrot.lane.b32.xlu1 %v724_v3, %s725_s13  ;;  %s730_s27 = smov 1   ;;  %s731_s28 = smov 124   ;;  %v65_v35 = vlaneseq }
   0x2   :  { %v32_v1 = vld [vmem:[%s1036_s1 + $0x8] sm:$0xff]  ;;  %57 = vst.msk [vmem:[#allocation2 + $0x38] sm:$0xff] %vm51_vm1, %v724_v3  ;;  %59 = vst.msk [vmem:[#allocation2 + $0x50] sm:$0xff] %vm51_vm1, %v724_v3  ;;  %v34_v6 = vld [vmem:[%s1036_s1 + $0x18] sm:$0xff]  ;;  %683 = vrot.lane.b32.xlu0 %v724_v3, %s725_s13  ;;  %s732_s10 = smov 123   ;;  %661 = vmatprep.mubr.msk.bf16.mxu1 %vm733_vm2, %v724_v3  ;;  %v734_v31 = vmov 0  }
   0x3   :  { %v40_v2 = vld [vmem:[%s1037_s2 + $0x8] sm:$0xff]  ;;  %v36_v4 = vadd.f32 %v32_v1, %v28_v0  ;;  %v42_v7 = vld [vmem:[%s1037_s2 + $0x18] sm:$0xff]  ;;  %v38_v8 = vadd.f32 %v34_v6, %v30_v5  ;;  %v27_v9 = vld [vmem:[%s1035_s0] sm:$0xff]  ;;  %723 = vset.pattern.permute.xlu1 %v734_v31  ;;  %722 = vset.pattern.permute.xlu0 %v734_v31  ;;  %v66_v36 = vand.u32 127, %v65_v35  ;;  %vm112_vm5 = vcmask 39936  }
   0x4   :  { %v31_v10 = vld [vmem:[%s1036_s1] sm:$0xff]  ;;  %v29_v14 = vld [vmem:[%s1035_s0 + $0x10] sm:$0xff]  ;;  %s727_s0 = smov 127   ;;  %v411_v28 = vld [vmem:[%s1038_s3 + $0x8] sm:$0xff]  ;;  %vm163_vm7 = vcmask 31744   ;;  %vm214_vm9 = vcmask 23552  }
   0x5   :  { %v44_v11 = vadd.f32 %v40_v2, %v36_v4  ;;  %v35_v12 = vadd.f32 %v31_v10, %v27_v9  ;;  %v39_v13 = vld [vmem:[%s1037_s2] sm:$0xff]  ;;  %v33_v15 = vld [vmem:[%s1036_s1 + $0x10] sm:$0xff]  ;;  %v46_v16 = vadd.f32 %v42_v7, %v38_v8  ;;  %s728_s1 = smov 3   ;;  %v474_v32 = vld [vmem:[%s1039_s4 + $0x8] sm:$0xff]  ;;  %v68_v37 = vshra.s32 %v66_v36, 2 }
   0x6   :  { %v37_v17 = vadd.f32 %v33_v15, %v29_v14  ;;  %v41_v18 = vld [vmem:[%s1037_s2 + $0x10] sm:$0xff]  ;;  %693 = vrot.lane.b32.xlu0 %v724_v3, %s726_s26  ;;  %s729_s2 = smov 125   ;;  %v414_v29 = vld [vmem:[%s1038_s3 + $0x20] sm:$0xff]  ;;  %v67_v39 = vand.u32 3, %v66_v36  ;;  %vm265_vm13 = vcmask 7168   ;;  %vm579_vm15 = vcmask 130048  }
   0x7   :  { %62 = vst.msk [vmem:[#allocation2 + $0x20] sm:$0xff] %vm53_vm0, %v44_v11  ;;  %v43_v19 = vadd.f32 %v39_v13, %v35_v12  ;;  %64 = vst.msk [vmem:[#allocation2 + $0x50] sm:$0xff] %vm53_vm0, %v46_v16  ;;  %v453_v30 = vpack.c.bf16 %v414_v29, %v411_v28  ;;  %v473_v33 = vld [vmem:[%s1039_s4] sm:$0xff]  ;;  %v855_v40 = vand.u32 3, %v68_v37 }
   0x8   :  { %v45_v20 = vadd.f32 %v41_v18, %v37_v17  ;;  %v573_v34 = vld [vmem:[%s1040_s6] sm:$0xff]  ;;  %vm858_vm4 = vcmp.ge.s32.totalorder %v67_v39, 1  ;;  %vm889_vm8 = vcmp.le.s32.totalorder %v67_v39, 2 }
   0x9   :  { %61 = vst.msk [vmem:[#allocation2 + $0x8] sm:$0xff] %vm53_vm0, %v43_v19  ;;  %520 = vmatprep.mubr.bf16.mxu0 %v453_v30  ;;  %vm70_vm3 = vcmp.ge.s32.totalorder %v855_v40, 1  ;;  %vm71_vm10 = vcmp.le.s32.totalorder %v855_v40, 2 }
   0xa   :  { %63 = vst.msk [vmem:[#allocation2 + $0x38] sm:$0xff] %vm53_vm0, %v45_v20  ;;  %vm866_vm6 = vmand %vm70_vm3, %vm858_vm4 }
   0xb   :  { %vm923_vm11 = vmand %vm70_vm3, %vm889_vm8 }
   0xc   :  { %vm932_vm12 = vmand %vm71_vm10, %vm858_vm4 }
   0xd   :  { %vm992_vm14 = vmand %vm71_vm10, %vm889_vm8 }
   0xe   :  { %v81_v21 = vld [vmem:[#allocation2 + $0x20] sm:$0xff]  ;;  %v85_v22 = vld [vmem:[#allocation2 + $0x50] sm:$0xff] }
   0xf   :  { %102 = vrot.lane.b32.xlu1 %v81_v21, %s725_s13  ;;  %287 = vst.msk [vmem:[#allocation3 + $0x88] sm:$0xff] %vm53_vm0, %v81_v21  ;;  %289 = vst.msk [vmem:[#allocation3 + $0x98] sm:$0xff] %vm53_vm0, %v85_v22 }
  0x10   :  { %v79_v23 = vld [vmem:[#allocation2 + $0x8] sm:$0xff] }
  0x11   :  { %98 = vrot.lane.b32.xlu0 %v79_v23, %s725_s13  ;;  %v83_v24 = vld [vmem:[#allocation2 + $0x38] sm:$0xff]  ;;  %286 = vst.msk [vmem:[#allocation3 + $0x80] sm:$0xff] %vm53_vm0, %v79_v23 }
  0x12   :  { %288 = vst.msk [vmem:[#allocation3 + $0x90] sm:$0xff] %vm53_vm0, %v83_v24 }
  0x13   :  { %110 = vrot.lane.b32.xlu1 %v85_v22, %s725_s13 }
  0x15   :  { %106 = vrot.lane.b32.xlu0 %v83_v24, %s725_s13 }
  0x16   :  { %v433_v25 = vld [vmem:[#allocation3 + $0x88] sm:$0xff]  ;;  %v435_v2 = vld [vmem:[#allocation3 + $0x98] sm:$0xff] }
  0x17   :  { %149 = vrot.lane.b32.xlu1 %v79_v23, %s726_s26 }
  0x18   :  { %v432_v26 = vld [vmem:[#allocation3 + $0x80] sm:$0xff] }
  0x19   :  { %153 = vrot.lane.b32.xlu0 %v81_v21, %s726_s26  ;;  %v463_v27 = vpack.c.bf16 %v433_v25, %v432_v26  ;;  %v434_v1 = vld [vmem:[#allocation3 + $0x90] sm:$0xff] }
  0x1a   :  { %v464_v12 = vpack.c.bf16 %v435_v2, %v434_v1 }
  0x1b   :  { %300 = vrot.lane.b32.xlu1 %v79_v23, %s727_s0  ;;  %630 = vmatprep.subr.bf16.mxu0 %v463_v27 }
  0x1d   :  { %302 = vrot.lane.b32.xlu0 %v81_v21, %s727_s0 }
  0x1f   :  { %698 = vrot.lane.b32.xlu1 %v724_v3, %s726_s26 }
  0x21   :  { %157 = vrot.lane.b32.xlu0 %v83_v24, %s726_s26 }
  0x23   :  { %161 = vrot.lane.b32.xlu1 %v85_v22, %s726_s26 }
  0x25   :  { %304 = vrot.lane.b32.xlu0 %v83_v24, %s727_s0 }
  0x27   :  { %306 = vrot.lane.b32.xlu1 %v85_v22, %s727_s0 }
  0x29   :  { %703 = vrot.lane.b32.xlu0 %v724_v3, %s728_s1 }
  0x2b   :  { %200 = vrot.lane.b32.xlu1 %v79_v23, %s728_s1 }
  0x2d   :  { %204 = vrot.lane.b32.xlu0 %v81_v21, %s728_s1 }
  0x2f   :  { %330 = vrot.lane.b32.xlu1 %v79_v23, %s729_s2 }
  0x31   :  { %332 = vrot.lane.b32.xlu0 %v81_v21, %s729_s2 }
  0x33   :  { %708 = vrot.lane.b32.xlu1 %v724_v3, %s728_s1 }
  0x35   :  { %208 = vrot.lane.b32.xlu0 %v83_v24, %s728_s1 }
  0x37   :  { %212 = vrot.lane.b32.xlu1 %v85_v22, %s728_s1 }
  0x39   :  { %334 = vrot.lane.b32.xlu0 %v83_v24, %s729_s2 }
  0x3b   :  { %336 = vrot.lane.b32.xlu1 %v85_v22, %s729_s2 }
  0x3d   :  { %713 = vrot.lane.b32.xlu0 %v724_v3, %s730_s27 }
  0x3f   :  { %251 = vrot.lane.b32.xlu1 %v79_v23, %s730_s27 }
  0x41   :  { %255 = vrot.lane.b32.xlu0 %v81_v21, %s730_s27 }
  0x43   :  { %360 = vrot.lane.b32.xlu1 %v79_v23, %s731_s28 }
  0x45   :  { %362 = vrot.lane.b32.xlu0 %v81_v21, %s731_s28 }
  0x47   :  { %718 = vrot.lane.b32.xlu1 %v724_v3, %s730_s27 }
  0x49   :  { %259 = vrot.lane.b32.xlu0 %v83_v24, %s730_s27 }
  0x4b   :  { %263 = vrot.lane.b32.xlu1 %v85_v22, %s730_s27 }
  0x4d   :  { %364 = vrot.lane.b32.xlu0 %v83_v24, %s731_s28 }
  0x4f   :  { %366 = vrot.lane.b32.xlu1 %v85_v22, %s731_s28 }
  0x51   :  { %390 = vrot.lane.b32.xlu0 %v79_v23, %s732_s10 }
  0x53   :  { %392 = vrot.lane.b32.xlu1 %v81_v21, %s732_s10 }
  0x55   :  { %394 = vrot.lane.b32.xlu0 %v83_v24, %s732_s10 }
  0x57   :  { %396 = vrot.lane.b32.xlu1 %v85_v22, %s732_s10 }
  0x59   :  { %477 = vperm.xlu0 %722, %v473_v33  }
  0x5b   :  { %482 = vperm.xlu1 %723, %v474_v32  }
  0x5f   :  { %576 = vperm.xlu1 %723, %v573_v34  }
  0x73   :  { %v689_v41 = vpop.permute.xlu1 %688 }
  0x74   :  { %v684_v38 = vpop.permute.xlu0 %683  ;;  %v691_v51 = vunpack.i.h.bf16 %v689_v41  ;;  %v690_v55 = vunpack.i.l.bf16 %v689_v41 }
  0x75   :  { %v686_v44 = vunpack.i.h.bf16 %v684_v38  ;;  %v685_v47 = vunpack.i.l.bf16 %v684_v38 }
  0x78   :  { %v694_v42 = vpop.permute.xlu0 %693 }
  0x79   :  { %v695_v59 = vunpack.i.l.bf16 %v694_v42  ;;  %v696_v63 = vunpack.i.h.bf16 %v694_v42 }
  0x81   :  { %v103_v46 = vpop.permute.xlu1 %102 }
  0x82   :  { %v114_v48 = vsel %vm112_vm5, %v686_v44, %v103_v46 }
  0x83   :  { %v122_v49 = vsel %vm866_vm6, %v114_v48, 0.0  ;;  %v99_v50 = vpop.permute.xlu0 %98 }
  0x84   :  { %126 = vst.msk [vmem:[#allocation3 + $0x8] sm:$0xff] %vm53_vm0, %v122_v49  ;;  %v113_v52 = vsel %vm112_vm5, %v685_v47, %v99_v50 }
  0x85   :  { %v111_v53 = vpop.permute.xlu1 %110  ;;  %v121_v54 = vsel %vm866_vm6, %v113_v52, 0.0 }
  0x86   :  { %v116_v56 = vsel %vm112_vm5, %v691_v51, %v111_v53  ;;  %125 = vst.msk [vmem:[#allocation3] sm:$0xff] %vm53_vm0, %v121_v54 }
  0x87   :  { %v124_v57 = vsel %vm866_vm6, %v116_v56, 0.0  ;;  %v107_v58 = vpop.permute.xlu0 %106 }
  0x88   :  { %128 = vst.msk [vmem:[#allocation3 + $0x18] sm:$0xff] %vm53_vm0, %v124_v57  ;;  %v115_v60 = vsel %vm112_vm5, %v690_v55, %v107_v58 }
  0x89   :  { %v150_v61 = vpop.permute.xlu1 %149  ;;  %v123_v62 = vsel %vm866_vm6, %v115_v60, 0.0 }
  0x8a   :  { %v164_v0 = vsel %vm163_vm7, %v695_v59, %v150_v61  ;;  %127 = vst.msk [vmem:[#allocation3 + $0x10] sm:$0xff] %vm53_vm0, %v123_v62 }
  0x8b   :  { %v172_v4 = vsel %vm70_vm3, %v164_v0, 0.0  ;;  %v154_v6 = vpop.permute.xlu0 %153  ;;  %v417_v7 = vld [vmem:[#allocation3 + $0x8] sm:$0xff] }
  0x8c   :  { %176 = vst.msk [vmem:[#allocation3 + $0x20] sm:$0xff] %vm53_vm0, %v172_v4  ;;  %v165_v8 = vsel %vm163_vm7, %v696_v63, %v154_v6 }
  0x8d   :  { %v301_v9 = vpop.permute.xlu1 %300  ;;  %v173_v10 = vsel %vm70_vm3, %v165_v8, 0.0  ;;  %v416_v11 = vld [vmem:[#allocation3] sm:$0xff] }
  0x8e   :  { %v312_v13 = vsel %vm889_vm8, %v301_v9, 0.0  ;;  %177 = vst.msk [vmem:[#allocation3 + $0x28] sm:$0xff] %vm53_vm0, %v173_v10  ;;  %v455_v14 = vpack.c.bf16 %v417_v7, %v416_v11 }
  0x8f   :  { %316 = vst.msk [vmem:[#allocation3 + $0xa0] sm:$0xff] %vm53_vm0, %v312_v13  ;;  %v303_v15 = vpop.permute.xlu0 %302  ;;  %v419_v16 = vld [vmem:[#allocation3 + $0x18] sm:$0xff] }
  0x90   :  { %v313_v17 = vsel %vm889_vm8, %v303_v15, 0.0  ;;  %631 = vmatpush3.bf16.msra.mxu0 %v455_v14 }
  0x91   :  { %v699_v18 = vpop.permute.xlu1 %698  ;;  %317 = vst.msk [vmem:[#allocation3 + $0xa8] sm:$0xff] %vm53_vm0, %v313_v17  ;;  %632 = vmatprep.subr.bf16.mxu0 %v464_v12  ;;  %v418_v19 = vld [vmem:[#allocation3 + $0x10] sm:$0xff] }
  0x92   :  { %v700_v20 = vunpack.i.l.bf16 %v699_v18  ;;  %v456_v21 = vpack.c.bf16 %v419_v16, %v418_v19  ;;  %v701_v23 = vunpack.i.h.bf16 %v699_v18 }
  0x93   :  { %v158_v22 = vpop.permute.xlu0 %157  ;;  %v420_v31 = vld [vmem:[#allocation3 + $0x20] sm:$0xff] }
  0x94   :  { %v166_v24 = vsel %vm163_vm7, %v700_v20, %v158_v22  ;;  %633 = vmatpush3.bf16.msra.mxu0 %v456_v21 }
  0x95   :  { %v162_v25 = vpop.permute.xlu1 %161  ;;  %v174_v26 = vsel %vm70_vm3, %v166_v24, 0.0  ;;  %v421_v32 = vld [vmem:[#allocation3 + $0x28] sm:$0xff] }
  0x96   :  { %v167_v27 = vsel %vm163_vm7, %v701_v23, %v162_v25  ;;  %178 = vst.msk [vmem:[#allocation3 + $0x30] sm:$0xff] %vm53_vm0, %v174_v26  ;;  %v436_v28 = vld [vmem:[#allocation3 + $0xa0] sm:$0xff]  ;;  %v457_v38 = vpack.c.bf16 %v421_v32, %v420_v31 }
  0x97   :  { %v175_v29 = vsel %vm70_vm3, %v167_v27, 0.0  ;;  %v305_v30 = vpop.permute.xlu0 %304 }
  0x98   :  { %179 = vst.msk [vmem:[#allocation3 + $0x38] sm:$0xff] %vm53_vm0, %v175_v29  ;;  %v314_v33 = vsel %vm889_vm8, %v305_v30, 0.0  ;;  %v437_v34 = vld [vmem:[#allocation3 + $0xa8] sm:$0xff] }
  0x99   :  { %v307_v35 = vpop.permute.xlu1 %306  ;;  %318 = vst.msk [vmem:[#allocation3 + $0xb0] sm:$0xff] %vm53_vm0, %v314_v33  ;;  %v465_v36 = vpack.c.bf16 %v437_v34, %v436_v28 }
  0x9a   :  { %v315_v37 = vsel %vm889_vm8, %v307_v35, 0.0 }
  0x9b   :  { %319 = vst.msk [vmem:[#allocation3 + $0xb8] sm:$0xff] %vm53_vm0, %v315_v37  ;;  %634 = vmatprep.subr.bf16.mxu0 %v465_v36  ;;  %v704_v39 = vpop.permute.xlu0 %703 }
  0x9c   :  { %v706_v41 = vunpack.i.h.bf16 %v704_v39  ;;  %v705_v42 = vunpack.i.l.bf16 %v704_v39  ;;  %635 = vmatpush3.bf16.msra.mxu0 %v457_v38 }
  0x9d   :  { %v201_v45 = vpop.permute.xlu1 %200  ;;  %v422_v59 = vld [vmem:[#allocation3 + $0x30] sm:$0xff] }
  0x9e   :  { %v215_v46 = vsel %vm214_vm9, %v705_v42, %v201_v45 }
  0x9f   :  { %v205_v48 = vpop.permute.xlu0 %204  ;;  %v223_v49 = vsel %vm923_vm11, %v215_v46, 0.0  ;;  %v423_v54 = vld [vmem:[#allocation3 + $0x38] sm:$0xff] }
  0xa0   :  { %v216_v50 = vsel %vm214_vm9, %v706_v41, %v205_v48  ;;  %227 = vst.msk [vmem:[#allocation3 + $0x40] sm:$0xff] %vm53_vm0, %v223_v49  ;;  %v438_v51 = vld [vmem:[#allocation3 + $0xb0] sm:$0xff]  ;;  %v458_v61 = vpack.c.bf16 %v423_v54, %v422_v59 }
  0xa1   :  { %v331_v52 = vpop.permute.xlu1 %330  ;;  %v224_v53 = vsel %vm923_vm11, %v216_v50, 0.0 }
  0xa2   :  { %v342_v55 = vsel %vm932_vm12, %v331_v52, 0.0  ;;  %228 = vst.msk [vmem:[#allocation3 + $0x48] sm:$0xff] %vm53_vm0, %v224_v53  ;;  %v439_v56 = vld [vmem:[#allocation3 + $0xb8] sm:$0xff] }
  0xa3   :  { %346 = vst.msk [vmem:[#allocation3 + $0xc0] sm:$0xff] %vm53_vm0, %v342_v55  ;;  %v466_v57 = vpack.c.bf16 %v439_v56, %v438_v51  ;;  %v333_v58 = vpop.permute.xlu0 %332 }
  0xa4   :  { %v343_v60 = vsel %vm932_vm12, %v333_v58, 0.0 }
  0xa5   :  { %v709_v62 = vpop.permute.xlu1 %708  ;;  %636 = vmatprep.subr.bf16.mxu0 %v466_v57  ;;  %347 = vst.msk [vmem:[#allocation3 + $0xc8] sm:$0xff] %vm53_vm0, %v343_v60 }
  0xa6   :  { %v710_v63 = vunpack.i.l.bf16 %v709_v62  ;;  %637 = vmatpush3.bf16.msra.mxu0 %v458_v61  ;;  %v711_v1 = vunpack.i.h.bf16 %v709_v62 }
  0xa7   :  { %v209_v0 = vpop.permute.xlu0 %208  ;;  %v424_v11 = vld [vmem:[#allocation3 + $0x40] sm:$0xff] }
  0xa8   :  { %v217_v2 = vsel %vm214_vm9, %v710_v63, %v209_v0 }
  0xa9   :  { %v213_v4 = vpop.permute.xlu1 %212  ;;  %v225_v6 = vsel %vm923_vm11, %v217_v2, 0.0  ;;  %v425_v12 = vld [vmem:[#allocation3 + $0x48] sm:$0xff] }
  0xaa   :  { %v218_v7 = vsel %vm214_vm9, %v711_v1, %v213_v4  ;;  %229 = vst.msk [vmem:[#allocation3 + $0x50] sm:$0xff] %vm53_vm0, %v225_v6  ;;  %v440_v8 = vld [vmem:[#allocation3 + $0xc0] sm:$0xff]  ;;  %v459_v18 = vpack.c.bf16 %v425_v12, %v424_v11 }
  0xab   :  { %v226_v9 = vsel %vm923_vm11, %v218_v7, 0.0  ;;  %v335_v10 = vpop.permute.xlu0 %334  ;;  %v410_v6 = vld [vmem:[%s1038_s3] sm:$0xff]  ;;  %v413_v7 = vld [vmem:[%s1038_s3 + $0x18] sm:$0xff] }
  0xac   :  { %230 = vst.msk [vmem:[#allocation3 + $0x58] sm:$0xff] %vm53_vm0, %v226_v9  ;;  %v344_v13 = vsel %vm932_vm12, %v335_v10, 0.0  ;;  %v441_v14 = vld [vmem:[#allocation3 + $0xc8] sm:$0xff]  ;;  %v452_v12 = vpack.c.bf16 %v413_v7, %v410_v6 }
  0xad   :  { %v337_v15 = vpop.permute.xlu1 %336  ;;  %348 = vst.msk [vmem:[#allocation3 + $0xd0] sm:$0xff] %vm53_vm0, %v344_v13  ;;  %v467_v16 = vpack.c.bf16 %v441_v14, %v440_v8 }
  0xae   :  { %v345_v17 = vsel %vm932_vm12, %v337_v15, 0.0 }
  0xaf   :  { %349 = vst.msk [vmem:[#allocation3 + $0xd8] sm:$0xff] %vm53_vm0, %v345_v17  ;;  %638 = vmatprep.subr.bf16.mxu0 %v467_v16  ;;  %v714_v19 = vpop.permute.xlu0 %713  ;;  %v412_v16 = vld [vmem:[%s1038_s3 + $0x10] sm:$0xff]  ;;  %v415_v17 = vld [vmem:[%s1038_s3 + $0x28] sm:$0xff] }
  0xb0   :  { %v716_v20 = vunpack.i.h.bf16 %v714_v19  ;;  %v715_v21 = vunpack.i.l.bf16 %v714_v19  ;;  %639 = vmatpush3.bf16.msra.mxu0 %v459_v18 }
  0xb1   :  { %v252_v22 = vpop.permute.xlu1 %251  ;;  %v426_v35 = vld [vmem:[#allocation3 + $0x50] sm:$0xff] }
  0xb2   :  { %v266_v23 = vsel %vm265_vm13, %v715_v21, %v252_v22 }
  0xb3   :  { %v256_v24 = vpop.permute.xlu0 %255  ;;  %v274_v25 = vsel %vm858_vm4, %v266_v23, 0.0  ;;  %v427_v30 = vld [vmem:[#allocation3 + $0x58] sm:$0xff] }
  0xb4   :  { %v267_v26 = vsel %vm265_vm13, %v716_v20, %v256_v24  ;;  %278 = vst.msk [vmem:[#allocation3 + $0x60] sm:$0xff] %vm53_vm0, %v274_v25  ;;  %v442_v27 = vld [vmem:[#allocation3 + $0xd0] sm:$0xff]  ;;  %v460_v37 = vpack.c.bf16 %v427_v30, %v426_v35  ;;  %v454_v20 = vpack.c.bf16 %v415_v17, %v412_v16 }
  0xb5   :  { %v361_v28 = vpop.permute.xlu1 %360  ;;  %v275_v29 = vsel %vm858_vm4, %v267_v26, 0.0 }
  0xb6   :  { %v372_v31 = vsel %vm71_vm10, %v361_v28, 0.0  ;;  %279 = vst.msk [vmem:[#allocation3 + $0x68] sm:$0xff] %vm53_vm0, %v275_v29  ;;  %v443_v32 = vld [vmem:[#allocation3 + $0xd8] sm:$0xff] }
  0xb7   :  { %376 = vst.msk [vmem:[#allocation3 + $0xe0] sm:$0xff] %vm53_vm0, %v372_v31  ;;  %v363_v33 = vpop.permute.xlu0 %362  ;;  %v468_v34 = vpack.c.bf16 %v443_v32, %v442_v27 }
  0xb8   :  { %v373_v36 = vsel %vm71_vm10, %v363_v33, 0.0 }
  0xb9   :  { %v719_v38 = vpop.permute.xlu1 %718  ;;  %377 = vst.msk [vmem:[#allocation3 + $0xe8] sm:$0xff] %vm53_vm0, %v373_v36  ;;  %640 = vmatprep.subr.bf16.mxu0 %v468_v34 }
  0xba   :  { %v720_v39 = vunpack.i.l.bf16 %v719_v38  ;;  %641 = vmatpush3.bf16.msra.mxu0 %v460_v37  ;;  %v721_v42 = vunpack.i.h.bf16 %v719_v38 }
  0xbb   :  { %v260_v41 = vpop.permute.xlu0 %259  ;;  %v428_v51 = vld [vmem:[#allocation3 + $0x60] sm:$0xff] }
  0xbc   :  { %v268_v44 = vsel %vm265_vm13, %v720_v39, %v260_v41 }
  0xbd   :  { %v264_v45 = vpop.permute.xlu1 %263  ;;  %v276_v46 = vsel %vm858_vm4, %v268_v44, 0.0  ;;  %v429_v52 = vld [vmem:[#allocation3 + $0x68] sm:$0xff] }
  0xbe   :  { %v269_v47 = vsel %vm265_vm13, %v721_v42, %v264_v45  ;;  %280 = vst.msk [vmem:[#allocation3 + $0x70] sm:$0xff] %vm53_vm0, %v276_v46  ;;  %v444_v48 = vld [vmem:[#allocation3 + $0xe0] sm:$0xff]  ;;  %v461_v58 = vpack.c.bf16 %v429_v52, %v428_v51 }
  0xbf   :  { %v277_v49 = vsel %vm858_vm4, %v269_v47, 0.0  ;;  %v365_v50 = vpop.permute.xlu0 %364 }
  0xc0   :  { %281 = vst.msk [vmem:[#allocation3 + $0x78] sm:$0xff] %vm53_vm0, %v277_v49  ;;  %v374_v53 = vsel %vm71_vm10, %v365_v50, 0.0  ;;  %v445_v54 = vld [vmem:[#allocation3 + $0xe8] sm:$0xff] }
  0xc1   :  { %v367_v55 = vpop.permute.xlu1 %366  ;;  %378 = vst.msk [vmem:[#allocation3 + $0xf0] sm:$0xff] %vm53_vm0, %v374_v53  ;;  %v469_v43 = vpack.c.bf16 %v445_v54, %v444_v48 }
  0xc2   :  { %v375_v57 = vsel %vm71_vm10, %v367_v55, 0.0 }
  0xc3   :  { %379 = vst.msk [vmem:[#allocation3 + $0xf8] sm:$0xff] %vm53_vm0, %v375_v57  ;;  %v391_v59 = vpop.permute.xlu0 %390  ;;  %642 = vmatprep.subr.bf16.mxu0 %v469_v43 }
  0xc4   :  { %v402_v60 = vsel %vm992_vm14, %v391_v59, 0.0  ;;  %643 = vmatpush3.bf16.msra.mxu0 %v461_v58 }
  0xc5   :  { %v393_v5 = vpop.permute.xlu1 %392  ;;  %406 = vst.msk [vmem:[#allocation3 + $0x100] sm:$0xff] %vm53_vm0, %v402_v60  ;;  %v430_v9 = vld [vmem:[#allocation3 + $0x70] sm:$0xff] }
  0xc6   :  { %v403_v61 = vsel %vm992_vm14, %v393_v5, 0.0 }
  0xc7   :  { %407 = vst.msk [vmem:[#allocation3 + $0x108] sm:$0xff] %vm53_vm0, %v403_v61  ;;  %v395_v62 = vpop.permute.xlu0 %394  ;;  %v431_v1 = vld [vmem:[#allocation3 + $0x78] sm:$0xff] }
  0xc8   :  { %v404_v40 = vsel %vm992_vm14, %v395_v62, 0.0  ;;  %v446_v63 = vld [vmem:[#allocation3 + $0xf0] sm:$0xff]  ;;  %v462_v10 = vpack.c.bf16 %v431_v1, %v430_v9 }
  0xc9   :  { %v397_v0 = vpop.permute.xlu1 %396  ;;  %408 = vst.msk [vmem:[#allocation3 + $0x110] sm:$0xff] %vm53_vm0, %v404_v40 }
  0xca   :  { %v405_v2 = vsel %vm992_vm14, %v397_v0, 0.0  ;;  %v447_v4 = vld [vmem:[#allocation3 + $0xf8] sm:$0xff] }
  0xcb   :  { %409 = vst.msk [vmem:[#allocation3 + $0x118] sm:$0xff] %vm53_vm0, %v405_v2  ;;  %v470_v8 = vpack.c.bf16 %v447_v4, %v446_v63 }
  0xcc   :  { %v448_v11 = vld [vmem:[#allocation3 + $0x100] sm:$0xff] }
  0xcd   :  { %644 = vmatprep.subr.bf16.mxu0 %v470_v8 }
  0xce   :  { %645 = vmatpush3.bf16.msra.mxu0 %v462_v10  ;;  %v449_v13 = vld [vmem:[#allocation3 + $0x108] sm:$0xff] }
  0xcf   :  { %v471_v14 = vpack.c.bf16 %v449_v13, %v448_v11 }
  0xd0   :  { %v450_v15 = vld [vmem:[#allocation3 + $0x110] sm:$0xff] }
  0xd1   :  { %521 = vmatmul.mubr.bf16.vlgmr.msra.gmra.mrb[0].mxu0 %v452_v12  ;;  %658 = vmatpush3.bf16.msra.mxu1 %v471_v14 }
  0xd2   :  { %659 = vmatprep.subr.bf16.mxu1 %v724_v3  ;;  %v451_v18 = vld [vmem:[#allocation3 + $0x118] sm:$0xff] }
  0xd3   :  { %v472_v19 = vpack.c.bf16 %v451_v18, %v450_v15 }
  0xd5   :  { %660 = vmatpush3.bf16.msra.mxu1 %v472_v19 }
  0xd6   :  { %665 = vmatprep.subr.bf16.mxu1 %v724_v3 }
  0xd8   :  { %662 = vmatmul.mubr.msk.bf16.vlgmr.msra.gmra.mrb[0].mxu1 %vm53_vm0, %v454_v20  ;;  %v478_v23 = vpop.permute.xlu0 %477 }
  0xd9   :  { %667 = vmatprep.mubr.msk.bf16.mxu1 %vm733_vm2, %v724_v3  ;;  %v570_v3 = vld [vmem:[%s1041_s5] sm:$0xff] }
  0xda   :  { %v483_v29 = vpop.permute.xlu1 %482  ;;  %v571_v38 = vpack.c.bf16 %v570_v3, %v570_v3 }
  0xde   :  { %v577_v39 = vpop.permute.xlu1 %576 }
 0x1a4   :  { %v646_v21 = vpop.f32.mrb[0].mxu0 }
 0x1a5   :  { %v647_v22 = vpop.f32.mrb[1].mxu0 }
 0x1a6   :  { %v648_v24 = vadd.f32 %v647_v22, %v646_v21  ;;  %v649_v25 = vpop.f32.mrb[2].mxu0 }
 0x1a7   :  { %v650_v26 = vpop.f32.mrb[3].mxu0 }
 0x1a8   :  { %v651_v27 = vadd.f32 %v650_v26, %v649_v25  ;;  %v523_v28 = vadd.f32 %v648_v24, %v478_v23 }
 0x1aa   :  { %v526_v33 = vadd.f32 %v651_v27, %v483_v29 }
 0x1ab   :  { %v563_v30 = vpop.f32.mrb[0].mxu1 }
 0x1ac   :  { %v564_v31 = vadd.f32 %v563_v30, %v523_v28  ;;  %v663_v32 = vpop.f32.mrb[1].mxu1 }
 0x1ad   :  { %v566_v34 = vpop.f32.mrb[2].mxu1 }
 0x1ae   :  { %v567_v35 = vadd.f32 %v566_v34, %v526_v33  ;;  %v664_v36 = vpop.f32.mrb[3].mxu1 }
 0x1b0   :  { %v572_v37 = vpack.c.bf16 %v567_v35, %v564_v31 }
 0x1b2   :  { %666 = vmatpush3.bf16.msra.mxu1 %v572_v37 }
 0x1b5   :  { %668 = vmatmul.mubr.msk.bf16.vlgmr.msra.gmra.mrb[4].mxu1 %vm579_vm15, %v571_v38 }
 0x288   :  { %v617_v41 = vpop.f32.mrb[4].mxu1 }
 0x289   :  { %v618_v42 = vadd.f32 %v617_v41, %v577_v39  ;;  %v669_v44 = vpop.f32.mrb[5].mxu1 }
 0x28a   :  { %v620_v45 = vpop.f32.mrb[6].mxu1 }
 0x28b   :  { %623 = vst.msk [vmem:[%s1042_s7] sm:$0xff] %vm53_vm0, %v618_v42  ;;  %v670_v46 = vpop.f32.mrb[7].mxu1 }

// kernel: resnet_vqvae_fwd.26
= control target key start
LH: loop header
LB: loop body
LE: loop exit
PB: predicated region body
PF: predicated region fallthrough
CT: control target
= control target key end

     0   :  { %vm25_vm0 = vcmask 261120   ;;  %vm23_vm1 = vcmask 1047808   ;;  %v416_v0 = vmov 0.0   ;;  %s417_s18 = smov 4   ;;  %s418_s19 = smov 5   ;;  %vm183_vm2 = vcmask 588800   ;;  %s586_s0 = inlined_call_operand.vmem [shape: f32[8,32], index: 0, kind: input, shape index: {}]   ;;  %s587_s1 = inlined_call_operand.vmem [shape: f32[32,72], index: 1, kind: input, shape index: {}]   ;;  %s588_s2 = inlined_call_operand.vmem [shape: f32[32,1], index: 2, kind: input, shape index: {}]   ;;  %s589_s4 = inlined_call_operand.vmem [shape: f32[32,1], index: 4, kind: input, shape index: {}]   ;;  %s590_s3 = inlined_call_operand.vmem [shape: f32[32,1], index: 3, kind: input, shape index: {}]   ;;  %s591_s5 = inlined_call_operand.vmem [shape: f32[32,32], index: 5, kind: output, shape index: {}]  }
   0x1   :  { %62 = vrot.lane.b32.xlu1 %v416_v0, %s417_s18  ;;  %47 = vrot.lane.b32.xlu0 %v416_v0, %s418_s19  ;;  %v21_v1 = vld [vmem:[%s586_s0] sm:$0xff]  ;;  %24 = vst.msk [vmem:[#allocation2 + $0x8] sm:$0xff] %vm23_vm1, %v416_v0  ;;  %s419_s22 = smov 3   ;;  %s420_s23 = smov 1   ;;  %v140_v4 = vld [vmem:[%s587_s1 + $0x8] sm:$0xff]  ;;  %v425_v6 = vmov 0   ;;  %v28_v11 = vlaneseq }
   0x2   :  { %27 = vst.msk [vmem:[#allocation2 + $0x8] sm:$0xff] %vm25_vm0, %v21_v1  ;;  %s421_s24 = smov 127   ;;  %s422_s25 = smov 125   ;;  %v139_v3 = vld [vmem:[%s587_s1] sm:$0xff]  ;;  %407 = vset.pattern.permute.xlu1 %v425_v6  ;;  %v160_v7 = vld [vmem:[%s588_s2 + $0x8] sm:$0xff]  ;;  %406 = vset.pattern.permute.xlu0 %v425_v6  ;;  %v161_v9 = vld [vmem:[%s588_s2 + $0x10] sm:$0xff] }
   0x3   :  { %s423_s26 = smov 124   ;;  %s424_s0 = smov 123   ;;  %v152_v5 = vpack.c.bf16 %v140_v4, %v139_v3  ;;  %v159_v8 = vld [vmem:[%s588_s2] sm:$0xff]  ;;  %v162_v10 = vld [vmem:[%s588_s2 + $0x18] sm:$0xff]  ;;  %v29_v12 = vand.u32 127, %v28_v11  ;;  %vm66_vm5 = vcmask 31744  }
   0x4   :  { %vm51_vm6 = vcmask 39936   ;;  %vm81_vm9 = vcmask 23552   ;;  %vm96_vm11 = vcmask 7168   ;;  %vm190_vm15 = vcmask 1043456   ;;  %v141_v56 = vld [vmem:[%s587_s1 + $0x10] sm:$0xff]  ;;  %v142_v57 = vld [vmem:[%s587_s1 + $0x18] sm:$0xff] }
   0x5   :  { %77 = vrot.lane.b32.xlu0 %v416_v0, %s419_s22  ;;  %391 = vmatprep.mubr.msk.bf16.mxu0 %vm183_vm2, %v152_v5  ;;  %v31_v13 = vshra.s32 %v29_v12, 2  ;;  %v30_v16 = vand.u32 3, %v29_v12  ;;  %v153_v59 = vpack.c.bf16 %v142_v57, %v141_v56  ;;  %v244_v56 = vld [vmem:[%s590_s3 + $0x8] sm:$0xff]  ;;  %v250_v57 = vld [vmem:[%s589_s4 + $0x18] sm:$0xff] }
   0x7   :  { %v32_v15 = vand.u32 3, %v31_v13  ;;  %vm480_vm4 = vcmp.ge.s32.totalorder %v30_v16, 1  ;;  %vm486_vm8 = vcmp.le.s32.totalorder %v30_v16, 2 }
   0x9   :  { %v57_v2 = vld [vmem:[#allocation2 + $0x8] sm:$0xff]  ;;  %vm33_vm3 = vcmp.ge.s32.totalorder %v32_v15, 1  ;;  %vm34_vm12 = vcmp.le.s32.totalorder %v32_v15, 2 }
   0xa   :  { %64 = vrot.lane.b32.xlu1 %v57_v2, %s417_s18  ;;  %49 = vrot.lane.b32.xlu0 %v57_v2, %s418_s19  ;;  %102 = vst.msk [vmem:[#allocation3 + $0x20] sm:$0xff] %vm25_vm0, %v57_v2  ;;  %vm37_vm7 = vmand %vm33_vm3, %vm480_vm4 }
   0xb   :  { %vm38_vm10 = vmand %vm33_vm3, %vm486_vm8 }
   0xc   :  { %vm39_vm13 = vmand %vm34_vm12, %vm480_vm4 }
   0xd   :  { %vm40_vm14 = vmand %vm34_vm12, %vm486_vm8 }
   0xe   :  { %79 = vrot.lane.b32.xlu1 %v57_v2, %s419_s22  ;;  %92 = vrot.lane.b32.xlu0 %v416_v0, %s420_s23 }
  0x11   :  { %v147_v44 = vld [vmem:[#allocation3 + $0x20] sm:$0xff] }
  0x12   :  { %94 = vrot.lane.b32.xlu1 %v57_v2, %s420_s23  ;;  %107 = vrot.lane.b32.xlu0 %v57_v2, %s421_s24 }
  0x16   :  { %116 = vrot.lane.b32.xlu1 %v57_v2, %s422_s25  ;;  %125 = vrot.lane.b32.xlu0 %v57_v2, %s423_s26 }
  0x1a   :  { %134 = vrot.lane.b32.xlu1 %v57_v2, %s424_s0  ;;  %165 = vperm.xlu0 %406, %v159_v8  }
  0x1e   :  { %170 = vperm.xlu1 %407, %v160_v7   ;;  %180 = vperm.xlu0 %406, %v162_v10  }
  0x22   :  { %175 = vperm.xlu1 %407, %v161_v9  }
  0x73   :  { %v48_v14 = vpop.permute.xlu0 %47  ;;  %v63_v17 = vpop.permute.xlu1 %62 }
  0x77   :  { %v78_v18 = vpop.permute.xlu0 %77 }
  0x7c   :  { %v65_v20 = vpop.permute.xlu1 %64  ;;  %v50_v22 = vpop.permute.xlu0 %49 }
  0x7d   :  { %v67_v23 = vsel %vm66_vm5, %v63_v17, %v65_v20  ;;  %v52_v24 = vsel %vm51_vm6, %v48_v14, %v50_v22 }
  0x7e   :  { %v69_v25 = vsel %vm33_vm3, %v67_v23, 0.0  ;;  %v54_v26 = vsel %vm37_vm7, %v52_v24, 0.0 }
  0x7f   :  { %70 = vst.msk [vmem:[#allocation3 + $0x8] sm:$0xff] %vm25_vm0, %v69_v25  ;;  %55 = vst.msk [vmem:[#allocation3] sm:$0xff] %vm25_vm0, %v54_v26 }
  0x80   :  { %v80_v27 = vpop.permute.xlu1 %79  ;;  %v93_v28 = vpop.permute.xlu0 %92 }
  0x81   :  { %v82_v29 = vsel %vm81_vm9, %v78_v18, %v80_v27 }
  0x82   :  { %v84_v30 = vsel %vm38_vm10, %v82_v29, 0.0 }
  0x83   :  { %85 = vst.msk [vmem:[#allocation3 + $0x10] sm:$0xff] %vm25_vm0, %v84_v30 }
  0x84   :  { %v95_v31 = vpop.permute.xlu1 %94  ;;  %v108_v32 = vpop.permute.xlu0 %107 }
  0x85   :  { %v97_v33 = vsel %vm96_vm11, %v93_v28, %v95_v31  ;;  %v110_v34 = vsel %vm486_vm8, %v108_v32, 0.0  ;;  %v247_v32 = vld [vmem:[%s589_s4] sm:$0xff] }
  0x86   :  { %v99_v35 = vsel %vm480_vm4, %v97_v33, 0.0  ;;  %111 = vst.msk [vmem:[#allocation3 + $0x28] sm:$0xff] %vm25_vm0, %v110_v34  ;;  %v143_v36 = vld [vmem:[#allocation3] sm:$0xff]  ;;  %v144_v37 = vld [vmem:[#allocation3 + $0x8] sm:$0xff]  ;;  %v248_v33 = vld [vmem:[%s589_s4 + $0x8] sm:$0xff] }
  0x87   :  { %100 = vst.msk [vmem:[#allocation3 + $0x18] sm:$0xff] %vm25_vm0, %v99_v35  ;;  %v154_v38 = vpack.c.bf16 %v144_v37, %v143_v36 }
  0x88   :  { %v117_v39 = vpop.permute.xlu1 %116  ;;  %v126_v40 = vpop.permute.xlu0 %125 }
  0x89   :  { %v119_v41 = vsel %vm39_vm13, %v117_v39, 0.0  ;;  %381 = vmatprep.subr.bf16.mxu0 %v154_v38  ;;  %v128_v42 = vsel %vm34_vm12, %v126_v40, 0.0 }
  0x8a   :  { %120 = vst.msk [vmem:[#allocation3 + $0x30] sm:$0xff] %vm25_vm0, %v119_v41  ;;  %129 = vst.msk [vmem:[#allocation3 + $0x38] sm:$0xff] %vm25_vm0, %v128_v42  ;;  %382 = vmatpush3.bf16.msra.mxu0 %v154_v38  ;;  %v145_v47 = vld [vmem:[#allocation3 + $0x10] sm:$0xff] }
  0x8c   :  { %v135_v43 = vpop.permute.xlu1 %134 }
  0x8d   :  { %v137_v45 = vsel %vm40_vm14, %v135_v43, 0.0  ;;  %v148_v46 = vld [vmem:[#allocation3 + $0x28] sm:$0xff] }
  0x8e   :  { %138 = vst.msk [vmem:[#allocation3 + $0x40] sm:$0xff] %vm25_vm0, %v137_v45  ;;  %v146_v48 = vld [vmem:[#allocation3 + $0x18] sm:$0xff]  ;;  %v156_v50 = vpack.c.bf16 %v148_v46, %v147_v44  ;;  %v243_v46 = vld [vmem:[%s590_s3] sm:$0xff] }
  0x8f   :  { %v155_v49 = vpack.c.bf16 %v146_v48, %v145_v47 }
  0x91   :  { %383 = vmatprep.subr.bf16.mxu0 %v155_v49  ;;  %v149_v51 = vld [vmem:[#allocation3 + $0x30] sm:$0xff]  ;;  %v150_v52 = vld [vmem:[#allocation3 + $0x38] sm:$0xff] }
  0x92   :  { %384 = vmatpush3.bf16.msra.mxu0 %v155_v49  ;;  %v157_v53 = vpack.c.bf16 %v150_v52, %v149_v51  ;;  %v246_v49 = vld [vmem:[%s590_s3 + $0x18] sm:$0xff] }
  0x93   :  { %385 = vmatprep.subr.bf16.mxu0 %v156_v50 }
  0x95   :  { %v151_v54 = vld [vmem:[#allocation3 + $0x40] sm:$0xff] }
  0x96   :  { %386 = vmatpush3.bf16.msra.mxu0 %v156_v50  ;;  %v158_v55 = vpack.c.bf16 %v151_v54, %v151_v54  ;;  %v245_v50 = vld [vmem:[%s590_s3 + $0x10] sm:$0xff] }
  0x97   :  { %387 = vmatprep.subr.bf16.mxu0 %v157_v53 }
  0x98   :  { %v192_v58 = vsel %vm190_vm15, %v158_v55, 0 }
  0x99   :  { %v166_v60 = vpop.permute.xlu0 %165 }
  0x9a   :  { %388 = vmatpush3.bf16.msra.mxu0 %v157_v53 }
  0x9b   :  { %395 = vmatprep.subr.msk.bf16.mxu0 %vm190_vm15, %v158_v55 }
  0x9d   :  { %v171_v61 = vpop.permute.xlu1 %170  ;;  %v181_v0 = vpop.permute.xlu0 %180 }
  0x9e   :  { %390 = vmatpush3.bf16.msra.mxu0 %v192_v58 }
  0xa1   :  { %392 = vmatmul.mubr.msk.bf16.vlgmr.msra.gmra.mrb[0].mxu0 %vm183_vm2, %v153_v59  ;;  %v176_v3 = vpop.permute.xlu1 %175  ;;  %v249_v59 = vld [vmem:[%s589_s4 + $0x10] sm:$0xff] }
 0x174   :  { %v393_v62 = vpop.f32.mrb[0].mxu0 }
 0x175   :  { %v228_v63 = vpop.f32.mrb[1].mxu0  ;;  %v237_v8 = vadd.f32 %v393_v62, %v176_v3 }
 0x176   :  { %v229_v1 = vadd.f32 %v228_v63, %v166_v60  ;;  %v394_v2 = vpop.f32.mrb[2].mxu0 }
 0x177   :  { %v231_v4 = vpop.f32.mrb[3].mxu0  ;;  %v240_v5 = vadd.f32 %v394_v2, %v181_v0  ;;  %v257_v11 = vsel %vm25_vm0, %v237_v8, 0.0 }
 0x178   :  { %v232_v6 = vadd.f32 %v231_v4, %v171_v61  ;;  %v251_v7 = vsel %vm25_vm0, %v229_v1, 0.0 }
 0x179   :  { %252 = vadd.xlane.f32.xlu1 %v251_v7  ;;  %v260_v10 = vsel %vm25_vm0, %v240_v5, 0.0 }
 0x17a   :  { %v254_v9 = vsel %vm25_vm0, %v232_v6, 0.0 }
 0x17b   :  { %255 = vadd.xlane.f32.xlu0 %v254_v9 }
 0x17d   :  { %261 = vadd.xlane.f32.xlu1 %v260_v10 }
 0x17f   :  { %258 = vadd.xlane.f32.xlu0 %v257_v11 }
 0x206   :  { %v253_v12 = vpop.xlane.xlu1 %252 }
 0x207   :  { %v264_v13 = vmul.f32 0.03125, %v253_v12 }
 0x208   :  { %v256_v14 = vpop.xlane.xlu0 %255 }
 0x209   :  { %v522_v15 = vsub.f32 %v229_v1, %v264_v13  ;;  %v265_v16 = vmul.f32 0.03125, %v256_v14 }
 0x20a   :  { %v262_v17 = vpop.xlane.xlu1 %261 }
 0x20b   :  { %v524_v18 = vsub.f32 %v232_v6, %v265_v16  ;;  %v267_v19 = vmul.f32 0.03125, %v262_v17  ;;  %v272_v20 = vmul.f32 %v522_v15, %v522_v15 }
 0x20c   :  { %v259_v21 = vpop.xlane.xlu0 %258 }
 0x20d   :  { %v528_v22 = vsub.f32 %v240_v5, %v267_v19  ;;  %v266_v23 = vmul.f32 0.03125, %v259_v21  ;;  %v276_v24 = vsel %vm25_vm0, %v272_v20, 0.0  ;;  %v273_v25 = vmul.f32 %v524_v18, %v524_v18 }
 0x20e   :  { %277 = vadd.xlane.f32.xlu0 %v276_v24 }
 0x20f   :  { %v533_v26 = vsub.f32 %v237_v8, %v266_v23  ;;  %v279_v27 = vsel %vm25_vm0, %v273_v25, 0.0  ;;  %v275_v28 = vmul.f32 %v528_v22, %v528_v22 }
 0x210   :  { %280 = vadd.xlane.f32.xlu1 %v279_v27 }
 0x211   :  { %v274_v29 = vmul.f32 %v533_v26, %v533_v26  ;;  %v285_v30 = vsel %vm25_vm0, %v275_v28, 0.0 }
 0x213   :  { %v282_v31 = vsel %vm25_vm0, %v274_v29, 0.0 }
 0x214   :  { %286 = vadd.xlane.f32.xlu1 %v285_v30  ;;  %283 = vadd.xlane.f32.xlu0 %v282_v31 }
 0x225   :  { %330 = vperm.xlu1 %407, %v247_v32  }
 0x22a   :  { %335 = vperm.xlu0 %406, %v248_v33  }
 0x29b   :  { %v278_v34 = vpop.xlane.xlu0 %277 }
 0x29c   :  { %v288_v35 = vmul.f32 0.03125, %v278_v34 }
 0x29d   :  { %v281_v36 = vpop.xlane.xlu1 %280 }
 0x29e   :  { %v292_v37 = vadd.f32 1e-05, %v288_v35  ;;  %v289_v38 = vmul.f32 0.03125, %v281_v36 }
 0x2a0   :  { %408 = vrsqrt.f32 %v292_v37  ;;  %v293_v45 = vadd.f32 1e-05, %v289_v38 }
 0x2a1   :  { %v287_v39 = vpop.xlane.xlu1 %286  ;;  %v284_v40 = vpop.xlane.xlu0 %283 }
 0x2a2   :  { %v291_v41 = vmul.f32 0.03125, %v287_v39  ;;  %v290_v42 = vmul.f32 0.03125, %v284_v40 }
 0x2a4   :  { %v295_v43 = vadd.f32 1e-05, %v291_v41  ;;  %v294_v44 = vadd.f32 1e-05, %v290_v42 }
 0x2a5   :  { %v331_v63 = vpop.permute.xlu1 %330 }
 0x2a6   :  { %410 = vrsqrt.f32 %v295_v43 }
 0x2a7   :  { %412 = vrsqrt.f32 %v294_v44 }
 0x2a8   :  { %414 = vrsqrt.f32 %v293_v45 }
 0x2a9   :  { %v336_v60 = vpop.permute.xlu0 %335 }
 0x2aa   :  { %v409_v47 = vpop.eup %408 }
 0x2ab   :  { %v300_v48 = vmul.f32 %v409_v47, %v243_v46 }
 0x2ad   :  { %306 = vperm.xlu0 %406, %v300_v48  }
 0x2b0   :  { %v411_v51 = vpop.eup %410 }
 0x2b1   :  { %v413_v52 = vpop.eup %412  ;;  %v303_v53 = vmul.f32 %v411_v51, %v246_v49 }
 0x2b2   :  { %v302_v54 = vmul.f32 %v413_v52, %v245_v50  ;;  %v415_v55 = vpop.eup %414 }
 0x2b3   :  { %321 = vperm.xlu0 %406, %v303_v53   ;;  %v301_v58 = vmul.f32 %v415_v55, %v244_v56 }
 0x2b4   :  { %316 = vperm.xlu1 %407, %v302_v54  }
 0x2b7   :  { %345 = vperm.xlu0 %406, %v250_v57  }
 0x2b8   :  { %311 = vperm.xlu1 %407, %v301_v58  }
 0x2bc   :  { %340 = vperm.xlu1 %407, %v249_v59  }
 0x32c   :  { %v307_v61 = vpop.permute.xlu0 %306 }
 0x32d   :  { %v324_v62 = vmul.f32 %v307_v61, %v522_v15 }
 0x32f   :  { %v348_v0 = vadd.f32 %v331_v63, %v324_v62 }
 0x331   :  { %vm352_vm1 = vcmp.ge.f32.partialorder %v348_v0, 0.0  ;;  %v356_v1 = vmul.f32 0.2, %v348_v0 }
 0x332   :  { %v322_v2 = vpop.permute.xlu0 %321 }
 0x333   :  { %v360_v3 = vsel %vm352_vm1, %v348_v0, %v356_v1  ;;  %v317_v4 = vpop.permute.xlu1 %316  ;;  %v327_v5 = vmul.f32 %v322_v2, %v528_v22 }
 0x334   :  { %364 = vst.msk [vmem:[%s591_s5] sm:$0xff] %vm25_vm0, %v360_v3  ;;  %v326_v11 = vmul.f32 %v317_v4, %v533_v26 }
 0x336   :  { %v346_v6 = vpop.permute.xlu0 %345 }
 0x337   :  { %v312_v7 = vpop.permute.xlu1 %311  ;;  %v351_v8 = vadd.f32 %v346_v6, %v327_v5 }
 0x338   :  { %v325_v9 = vmul.f32 %v312_v7, %v524_v18 }
 0x339   :  { %vm355_vm2 = vcmp.ge.f32.partialorder %v351_v8, 0.0  ;;  %v359_v10 = vmul.f32 0.2, %v351_v8 }
 0x33a   :  { %v349_v12 = vadd.f32 %v336_v60, %v325_v9 }
 0x33b   :  { %v363_v13 = vsel %vm355_vm2, %v351_v8, %v359_v10  ;;  %v341_v14 = vpop.permute.xlu1 %340 }
 0x33c   :  { %vm353_vm3 = vcmp.ge.f32.partialorder %v349_v12, 0.0  ;;  %v357_v15 = vmul.f32 0.2, %v349_v12  ;;  %367 = vst.msk [vmem:[%s591_s5 + $0x18] sm:$0xff] %vm25_vm0, %v363_v13  ;;  %v350_v16 = vadd.f32 %v341_v14, %v326_v11 }
 0x33e   :  { %v361_v17 = vsel %vm353_vm3, %v349_v12, %v357_v15  ;;  %vm354_vm4 = vcmp.ge.f32.partialorder %v350_v16, 0.0  ;;  %v358_v19 = vmul.f32 0.2, %v350_v16 }
 0x33f   :  { %365 = vst.msk [vmem:[%s591_s5 + $0x8] sm:$0xff] %vm25_vm0, %v361_v17 }
 0x340   :  { %v362_v18 = vsel %vm354_vm4, %v350_v16, %v358_v19 }
 0x341   :  { %366 = vst.msk [vmem:[%s591_s5 + $0x10] sm:$0xff] %vm25_vm0, %v362_v18 }

// kernel: resnet_vqvae_fwd.25
= control target key start
LH: loop header
LB: loop body
LE: loop exit
PB: predicated region body
PF: predicated region fallthrough
CT: control target
= control target key end

     0   :  { %vm28_vm0 = vcmask 64512   ;;  %s836_s0 = inlined_call_operand.vmem [shape: f32[32,8], index: 0, kind: input, shape index: {}]   ;;  %s837_s1 = inlined_call_operand.vmem [shape: f32[8,128], index: 1, kind: input, shape index: {}]   ;;  %s838_s2 = inlined_call_operand.vmem [shape: f32[128,8], index: 2, kind: input, shape index: {}]   ;;  %s839_s3 = inlined_call_operand.vmem [shape: f32[32,8], index: 3, kind: output, shape index: {0}]   ;;  %s840_s4 = inlined_call_operand.vmem [shape: s32[1,32], index: 4, kind: output, shape index: {1}]   ;;  %s841_s5 = inlined_call_operand.vmem [shape: f32[1,128], index: 5, kind: output, shape index: {2}]   ;;  %s842_s6 = inlined_call_operand.hbm [shape: f32[1,1], index: 6, kind: output, shape index: {3}]  }
   0x1   :  { %v23_v0 = vld [vmem:[%s837_s1] sm:$0xff]  ;;  %v652_v2 = vld [vmem:[%s836_s0 + $0x8] sm:$0xff]  ;;  %v659_v3 = vld [vmem:[%s836_s0 + $0x10] sm:$0xff] }
   0x2   :  { %v647_v1 = vld [vmem:[%s836_s0] sm:$0xff]  ;;  %480 = vmatprep.subr.mxu0 %v23_v0  ;;  %v664_v4 = vld [vmem:[%s836_s0 + $0x18] sm:$0xff]  ;;  %v25_v6 = vmul.f32 %v652_v2, %v652_v2 }
   0x3   :  { %482 = vmatprep.mubr.msk.f32.mxu0 %vm28_vm0, %v647_v1  ;;  %v24_v5 = vmul.f32 %v647_v1, %v647_v1 }
   0x4   :  { %12 = vsyncpa [#allocation3], 0  ;;  %481 = vmatpush3.msra.mxu0 %v23_v0  ;;  %v26_v7 = vmul.f32 %v659_v3, %v659_v3  ;;  %v27_v8 = vmul.f32 %v664_v4, %v664_v4  ;;  %v32_v11 = vsel %vm28_vm0, %v25_v6, 0.0  ;;  %v146_v13 = vmul.f32 %v23_v0, %v23_v0  ;;  %v248_v62 = vld [vmem:[%s838_s2] sm:$0xff]  ;;  %v249_v63 = vld [vmem:[%s838_s2 + $0x8] sm:$0xff] }
   0x5   :  { %483 = vmatmul.mubr.msk.f32.vlgmr.msra.gmra.mrb[0].mxu0 %vm28_vm0, %v652_v2  ;;  %v29_v9 = vsel %vm28_vm0, %v24_v5, 0.0  ;;  %v157_v19 = vlaneseq  ;;  %v250_v0 = vld [vmem:[%s838_s2 + $0x10] sm:$0xff]  ;;  %v526_v5 = vpack.c.bf16 %v249_v63, %v248_v62  ;;  %v251_v6 = vld [vmem:[%s838_s2 + $0x18] sm:$0xff]  ;;  %vm362_vm10 = vcmask 130112  }
   0x6   :  { %485 = vmatprep.mubr.msk.f32.mxu0 %vm28_vm0, %v659_v3  ;;  %30 = vadd.xlane.f32.xlu0 %v29_v9  ;;  %v35_v10 = vsel %vm28_vm0, %v26_v7, 0.0  ;;  %v38_v12 = vsel %vm28_vm0, %v27_v8, 0.0  ;;  %v147_v14 = vrot.slane %v146_v13, 4  ;;  %v530_v7 = vpack.c.bf16 %v251_v6, %v250_v0  ;;  %v252_v8 = vld [vmem:[%s838_s2 + $0x20] sm:$0xff]  ;;  %v253_v9 = vld [vmem:[%s838_s2 + $0x28] sm:$0xff] }
   0x7   :  { %36 = vadd.xlane.f32.xlu1 %v35_v10  ;;  %v685_v24 = vand.u32 127, %v157_v19  ;;  %527 = vmatprep.subr.bf16.mxu0 %v526_v5  ;;  %v534_v10 = vpack.c.bf16 %v253_v9, %v252_v8  ;;  %vm369_vm13 = vcmask 195712   ;;  %vm376_vm15 = vcmask 261312  }
   0x8   :  { %v148_v15 = vadd.f32 %v147_v14, %v146_v13  ;;  %558 = vmatprep.subr.bf16.mxu1 %v526_v5  ;;  %529 = vmatpush3.bf16.msra.mxu0 %v526_v5  ;;  %v256_v14 = vld [vmem:[%s838_s2 + $0x40] sm:$0xff] }
   0x9   :  { %486 = vmatmul.mubr.msk.f32.gmra.mrb[2].mxu0 %vm28_vm0, %v664_v4  ;;  %vm159_vm1 = vcmp.lt.s32.totalorder %v685_v24, 32  ;;  %566 = vmatpush3.bf16.msra.mxu1 %v526_v5 }
   0xa   :  { %33 = vadd.xlane.f32.xlu0 %v32_v11  ;;  %v149_v16 = vrot.slane %v148_v15, 2  ;;  %531 = vmatprep.subr.bf16.mxu0 %v530_v7  ;;  %v254_v11 = vld [vmem:[%s838_s2 + $0x30] sm:$0xff] }
   0xb   :  { %39 = vadd.xlane.f32.xlu1 %v38_v12  ;;  %559 = vmatprep.subr.bf16.mxu1 %v530_v7  ;;  %v255_v12 = vld [vmem:[%s838_s2 + $0x38] sm:$0xff] }
   0xc   :  { %v150_v17 = vadd.f32 %v149_v16, %v148_v15  ;;  %533 = vmatpush3.bf16.msra.mxu0 %v530_v7  ;;  %v538_v13 = vpack.c.bf16 %v255_v12, %v254_v11  ;;  %v257_v15 = vld [vmem:[%s838_s2 + $0x48] sm:$0xff] }
   0xd   :  { %567 = vmatpush3.bf16.msra.mxu1 %v530_v7  ;;  %535 = vmatprep.subr.bf16.mxu0 %v534_v10  ;;  %v542_v16 = vpack.c.bf16 %v257_v15, %v256_v14  ;;  %v604_v15 = vmov 1.0  }
   0xe   :  { %v151_v20 = vrot.slane %v150_v17, 1  ;;  %560 = vmatprep.subr.bf16.mxu1 %v534_v10 }
  0x10   :  { %v152_v25 = vadd.f32 %v151_v20, %v150_v17  ;;  %537 = vmatpush3.bf16.msra.mxu0 %v534_v10  ;;  %v258_v17 = vld [vmem:[%s838_s2 + $0x50] sm:$0xff] }
  0x11   :  { %568 = vmatpush3.bf16.msra.mxu1 %v534_v10  ;;  %539 = vmatprep.subr.bf16.mxu0 %v538_v13  ;;  %v603_v10 = vmov 0.0  }
  0x12   :  { %561 = vmatprep.subr.bf16.mxu1 %v538_v13 }
  0x14   :  { %541 = vmatpush3.bf16.msra.mxu0 %v538_v13 }
  0x15   :  { %569 = vmatpush3.bf16.msra.mxu1 %v538_v13  ;;  %543 = vmatprep.subr.bf16.mxu0 %v542_v16 }
  0x16   :  { %562 = vmatprep.subr.bf16.mxu1 %v542_v16 }
  0x18   :  { %545 = vmatpush3.bf16.msra.mxu0 %v542_v16 }
  0x19   :  { %570 = vmatpush3.bf16.msra.mxu1 %v542_v16 }
  0x93   :  { %v31_v18 = vpop.xlane.xlu0 %30 }
  0x94   :  { %v37_v21 = vpop.xlane.xlu1 %36 }
  0x97   :  { %v34_v23 = vpop.xlane.xlu0 %33 }
  0x98   :  { %v40_v32 = vpop.xlane.xlu1 %39 }
  0xd8   :  { %v484_v22 = vpop.f32.mrb[0].mxu0 }
  0xd9   :  { %v139_v26 = vmul.f32 2.0, %v484_v22  ;;  %v119_v27 = vpop.f32.mrb[1].mxu0  ;;  %v261_v22 = vld [vmem:[%s838_s2 + $0x68] sm:$0xff] }
  0xda   :  { %v138_v28 = vmul.f32 2.0, %v119_v27 }
  0xdb   :  { %v143_v29 = vsub.f32 %v34_v23, %v139_v26 }
  0xdc   :  { %v142_v30 = vsub.f32 %v31_v18, %v138_v28  ;;  %v487_v31 = vpop.f32.mrb[2].mxu0  ;;  %v259_v18 = vld [vmem:[%s838_s2 + $0x58] sm:$0xff] }
  0xdd   :  { %v141_v33 = vmul.f32 2.0, %v487_v31  ;;  %v129_v34 = vpop.f32.mrb[3].mxu0  ;;  %v154_v35 = vadd.f32 %v152_v25, %v143_v29  ;;  %v546_v20 = vpack.c.bf16 %v259_v18, %v258_v17 }
  0xde   :  { %v140_v36 = vmul.f32 2.0, %v129_v34  ;;  %v153_v37 = vadd.f32 %v152_v25, %v142_v30 }
  0xdf   :  { %v145_v38 = vsub.f32 %v40_v32, %v141_v33  ;;  %v161_v39 = vsel %vm159_vm1, %v154_v35, 1e+30  ;;  %547 = vmatprep.subr.bf16.mxu0 %v546_v20  ;;  %563 = vmatprep.subr.bf16.mxu1 %v546_v20 }
  0xe0   :  { %v144_v40 = vsub.f32 %v37_v21, %v140_v36  ;;  %166 = vmin.xlane.f32.xlu1 %v161_v39  ;;  %v160_v41 = vsel %vm159_vm1, %v153_v37, 1e+30  ;;  %v260_v21 = vld [vmem:[%s838_s2 + $0x60] sm:$0xff]  ;;  %549 = vmatpush3.bf16.msra.mxu0 %v546_v20 }
  0xe1   :  { %164 = vmin.xlane.f32.xlu0 %v160_v41  ;;  %v156_v42 = vadd.f32 %v152_v25, %v145_v38  ;;  %v550_v23 = vpack.c.bf16 %v261_v22, %v260_v21  ;;  %571 = vmatpush3.bf16.msra.mxu1 %v546_v20 }
  0xe2   :  { %v155_v43 = vadd.f32 %v152_v25, %v144_v40 }
  0xe3   :  { %v163_v44 = vsel %vm159_vm1, %v156_v42, 1e+30  ;;  %551 = vmatprep.subr.bf16.mxu0 %v550_v23  ;;  %564 = vmatprep.subr.bf16.mxu1 %v550_v23  ;;  %v263_v42 = vld [vmem:[%s838_s2 + $0x78] sm:$0xff] }
  0xe4   :  { %170 = vmin.xlane.f32.xlu1 %v163_v44  ;;  %v162_v45 = vsel %vm159_vm1, %v155_v43, 1e+30  ;;  %553 = vmatpush3.bf16.msra.mxu0 %v550_v23 }
  0xe5   :  { %168 = vmin.xlane.f32.xlu0 %v162_v45  ;;  %572 = vmatpush3.bf16.msra.mxu1 %v550_v23 }
 0x16d   :  { %v167_v46 = vpop.xlane.xlu1 %166 }
 0x16e   :  { %vm173_vm2 = vcmp.le.f32.partialorder %v161_v39, %v167_v46  ;;  %v165_v47 = vpop.xlane.xlu0 %164  ;;  %v357_v46 = vadd.s32 4294967288, %v685_v24 }
 0x16f   :  { %v697_v48 = vsel %vm173_vm2, %v685_v24, 128  ;;  %vm172_vm3 = vcmp.le.f32.partialorder %v160_v41, %v165_v47  ;;  %v262_v41 = vld [vmem:[%s838_s2 + $0x70] sm:$0xff]  ;;  %vm378_vm2 = vcmask 253952  }
 0x170   :  { %v700_v49 = vsel %vm172_vm3, %v685_v24, 128  ;;  %v195_v50 = vshra.s32 %v697_v48, 16  ;;  %v194_v25 = vand.u32 65535, %v697_v48  ;;  %v554_v43 = vpack.c.bf16 %v263_v42, %v262_v41 }
 0x171   :  { %v171_v51 = vpop.xlane.xlu1 %170  ;;  %v181_v52 = vshra.s32 %v700_v49, 16  ;;  %v180_v26 = vand.u32 65535, %v700_v49  ;;  %vm415_vm3 = vcmask 0  }
 0x172   :  { %vm175_vm4 = vcmp.le.f32.partialorder %v163_v44, %v171_v51  ;;  %v169_v53 = vpop.xlane.xlu0 %168  ;;  %v704_v54 = vcvt.s32.f32 %v195_v50  ;;  %v196_v29 = vcvt.s32.f32 %v194_v25  ;;  %555 = vmatprep.subr.bf16.mxu0 %v554_v43  ;;  %565 = vmatprep.subr.bf16.mxu1 %v554_v43 }
 0x173   :  { %v707_v55 = vsel %vm175_vm4, %v685_v24, 128  ;;  %vm174_vm5 = vcmp.le.f32.partialorder %v162_v45, %v169_v53  ;;  %v709_v56 = vcvt.s32.f32 %v181_v52  ;;  %v182_v32 = vcvt.s32.f32 %v180_v26  ;;  %557 = vmatpush3.bf16.msra.mxu0 %v554_v43  ;;  %573 = vmatpush3.bf16.msra.mxu1 %v554_v43 }
 0x174   :  { %v712_v57 = vsel %vm174_vm5, %v685_v24, 128  ;;  %198 = vmin.xlane.f32.xlu1 %v704_v54  ;;  %v223_v58 = vshra.s32 %v707_v55, 16  ;;  %v222_v27 = vand.u32 65535, %v707_v55  ;;  %v354_v45 = vshrl.u32 %v157_v19, 7 }
 0x175   :  { %184 = vmin.xlane.f32.xlu0 %v709_v56  ;;  %v209_v59 = vshra.s32 %v712_v57, 16  ;;  %v208_v30 = vand.u32 65535, %v712_v57  ;;  %v364_v55 = vadd.s32 4294967280, %v685_v24  ;;  %v371_v19 = vadd.s32 4294967272, %v685_v24 }
 0x176   :  { %v718_v60 = vcvt.s32.f32 %v223_v58  ;;  %v224_v36 = vcvt.s32.f32 %v222_v27  ;;  %v360_v52 = vsub.s32 %v357_v46, %v354_v45  ;;  %v355_v57 = vsub.s32 %v685_v24, %v354_v45 }
 0x177   :  { %v720_v61 = vcvt.s32.f32 %v209_v59  ;;  %v210_v38 = vcvt.s32.f32 %v208_v30  ;;  %v367_v7 = vsub.s32 %v364_v55, %v354_v45  ;;  %v374_v12 = vsub.s32 %v371_v19, %v354_v45 }
 0x178   :  { %226 = vmin.xlane.f32.xlu1 %v718_v60 }
 0x179   :  { %212 = vmin.xlane.f32.xlu0 %v720_v61 }
 0x201   :  { %v199_v28 = vpop.xlane.xlu1 %198 }
 0x202   :  { %v185_v31 = vpop.xlane.xlu0 %184  ;;  %vm200_vm6 = vcmp.eq.f32.partialorder %v704_v54, %v199_v28  ;;  %v205_v44 = vcvt.f32.s32 %v199_v28 }
 0x203   :  { %v201_v33 = vsel %vm200_vm6, %v196_v29, inf  ;;  %vm186_vm7 = vcmp.eq.f32.partialorder %v709_v56, %v185_v31  ;;  %v191_v47 = vcvt.f32.s32 %v185_v31 }
 0x204   :  { %202 = vmin.xlane.f32.xlu1 %v201_v33  ;;  %v187_v34 = vsel %vm186_vm7, %v182_v32, inf  ;;  %v206_v51 = vshll.u32 %v205_v44, 16 }
 0x205   :  { %v227_v35 = vpop.xlane.xlu1 %226  ;;  %188 = vmin.xlane.f32.xlu0 %v187_v34  ;;  %v192_v56 = vshll.u32 %v191_v47, 16 }
 0x206   :  { %v213_v37 = vpop.xlane.xlu0 %212  ;;  %vm228_vm8 = vcmp.eq.f32.partialorder %v718_v60, %v227_v35  ;;  %v233_v48 = vcvt.f32.s32 %v227_v35 }
 0x207   :  { %v229_v39 = vsel %vm228_vm8, %v224_v36, inf  ;;  %vm214_vm9 = vcmp.eq.f32.partialorder %v720_v61, %v213_v37  ;;  %v219_v49 = vcvt.f32.s32 %v213_v37 }
 0x208   :  { %230 = vmin.xlane.f32.xlu1 %v229_v39  ;;  %v215_v40 = vsel %vm214_vm9, %v210_v38, inf  ;;  %v234_v59 = vshll.u32 %v233_v48, 16 }
 0x209   :  { %216 = vmin.xlane.f32.xlu0 %v215_v40  ;;  %v220_v61 = vshll.u32 %v219_v49, 16 }
 0x291   :  { %v203_v50 = vpop.xlane.xlu1 %202 }
 0x292   :  { %v204_v53 = vcvt.f32.s32 %v203_v50  ;;  %v189_v54 = vpop.xlane.xlu0 %188 }
 0x293   :  { %v190_v58 = vcvt.f32.s32 %v189_v54 }
 0x294   :  { %v207_v60 = vadd.s32 %v206_v51, %v204_v53 }
 0x295   :  { %v193_v62 = vadd.s32 %v192_v56, %v190_v58  ;;  %v231_v63 = vpop.xlane.xlu1 %230 }
 0x296   :  { %vm237_vm11 = vcmp.eq.s32.totalorder %v685_v24, %v207_v60  ;;  %v361_v0 = vrot.slane %v207_v60, %v360_v52  ;;  %v232_v5 = vcvt.f32.s32 %v231_v63  ;;  %v217_v6 = vpop.xlane.xlu0 %216 }
 0x297   :  { %v356_v8 = vrot.slane %v193_v62, %v355_v57  ;;  %v218_v9 = vcvt.f32.s32 %v217_v6  ;;  %vm236_vm12 = vcmp.eq.s32.totalorder %v685_v24, %v193_v62  ;;  %v448_v11 = vsel %vm237_vm11, 1.0, %v603_v10 }
 0x298   :  { %v235_v13 = vadd.s32 %v234_v59, %v232_v5  ;;  %v447_v14 = vsel %vm236_vm12, 1.0, %v603_v10  ;;  %520 = vmatprep.mubr.msk.f32.mxu0 %vm236_vm12, %v604_v15 }
 0x299   :  { %v363_v16 = vsel %vm362_vm10, %v361_v0, %v356_v8  ;;  %521 = vmatmul.mubr.msk.f32.vlgmr.msra.gmra.mrb[4].mxu0 %vm237_vm11, %v604_v15  ;;  %v221_v17 = vadd.s32 %v220_v61, %v218_v9  ;;  %v380_v18 = vadd.f32 %v448_v11, %v447_v14 }
 0x29a   :  { %vm239_vm1 = vcmp.eq.s32.totalorder %v685_v24, %v235_v13  ;;  %v375_v21 = vrot.slane %v235_v13, %v374_v12 }
 0x29b   :  { %vm238_vm14 = vcmp.eq.s32.totalorder %v685_v24, %v221_v17  ;;  %v368_v20 = vrot.slane %v221_v17, %v367_v7  ;;  %v450_v27 = vsel %vm239_vm1, 1.0, %v603_v10 }
 0x29c   :  { %v449_v22 = vsel %vm238_vm14, 1.0, %v603_v10  ;;  %523 = vmatprep.mubr.msk.f32.mxu1 %vm238_vm14, %v604_v15 }
 0x29d   :  { %v370_v23 = vsel %vm369_vm13, %v368_v20, %v363_v16  ;;  %v381_v25 = vadd.f32 %v449_v22, %v380_v18  ;;  %524 = vmatmul.mubr.msk.f32.vlgmr.msra.gmra.mrb[0].mxu1 %vm239_vm1, %v604_v15 }
 0x29e   :  { %v377_v26 = vsel %vm376_vm15, %v375_v21, %v370_v23 }
 0x29f   :  { %379 = vst.msk [vmem:[%s840_s4] sm:$0x1] %vm378_vm2, %v377_v26  ;;  %v382_v28 = vadd.f32 %v450_v27, %v381_v25 }
 0x2a1   :  { %v383_v29 = vrot.slane %v382_v28, 4 }
 0x2a3   :  { %v384_v30 = vadd.f32 %v383_v29, %v382_v28 }
 0x2a5   :  { %v385_v31 = vrot.slane %v384_v30, 2 }
 0x2a7   :  { %v386_v32 = vadd.f32 %v385_v31, %v384_v30 }
 0x2a9   :  { %v387_v33 = vrot.slane %v386_v32, 1 }
 0x2ab   :  { %v388_v24 = vadd.f32 %v387_v33, %v386_v32 }
 0x2ad   :  { %389 = vst [vmem:[%s841_s5] sm:$0x1] %v388_v24 }
 0x36c   :  { %v522_v34 = vpop.f32.mrb[4].mxu0 }
 0x36d   :  { %350 = vst.msk [vmem:[%s839_s3 + $0x8] sm:$0xff] %vm28_vm0, %v522_v34  ;;  %v391_v35 = vsub.f32 %v522_v34, %v652_v2  ;;  %v330_v36 = vpop.f32.mrb[5].mxu0 }
 0x36e   :  { %349 = vst.msk [vmem:[%s839_s3] sm:$0xff] %vm28_vm0, %v330_v36  ;;  %v390_v37 = vsub.f32 %v330_v36, %v647_v1 }
 0x36f   :  { %v395_v38 = vmul.f32 %v391_v35, %v391_v35 }
 0x370   :  { %v394_v39 = vmul.f32 %v390_v37, %v390_v37  ;;  %v525_v40 = vpop.f32.mrb[0].mxu1 }
 0x371   :  { %v399_v41 = vsel %vm28_vm0, %v395_v38, 0.0  ;;  %352 = vst.msk [vmem:[%s839_s3 + $0x18] sm:$0xff] %vm28_vm0, %v525_v40  ;;  %v393_v2 = vsub.f32 %v525_v40, %v664_v4  ;;  %v340_v42 = vpop.f32.mrb[1].mxu1 }
 0x372   :  { %v398_v43 = vsel %vm28_vm0, %v394_v39, 0.0  ;;  %351 = vst.msk [vmem:[%s839_s3 + $0x10] sm:$0xff] %vm28_vm0, %v340_v42  ;;  %v392_v1 = vsub.f32 %v340_v42, %v659_v3  ;;  %s605_s3 = smov [#allocation2]  }
 0x373   :  { %v400_v44 = vadd.f32 %v399_v41, %v398_v43  ;;  %v397_v45 = vmul.f32 %v393_v2, %v393_v2  ;;  %s429_s20 = sshll.u32 %s605_s3, 4  ;;  %s430_s20 = int_to_ptr.vmem [resolvable:$true] %s429_s20 }
 0x374   :  { %v396_v46 = vmul.f32 %v392_v1, %v392_v1  ;;  %s579_s22 = scalar_lea.vmem %s430_s20, 16  ;;  %s583_s23 = scalar_lea.vmem %s430_s20, 32 }
 0x375   :  { %v403_v49 = vsel %vm28_vm0, %v397_v45, 0.0  ;;  %p580_p0 = scmp.ne.s32.totalorder %s430_s20, %s579_s22  ;;  %p584_p1 = scmp.lt.s32.totalorder %s430_s20, %s430_s20 }
 0x376   :  { %v401_v47 = vsel %vm28_vm0, %v396_v46, 0.0  ;;  %p585_p2 = scmp.lt.s32.totalorder %s583_s23, %s579_s22 }
 0x377   :  { %v402_v48 = vadd.f32 %v401_v47, %v400_v44 }
 0x378   :  { %p586_p3 = por %p585_p2, %p584_p1 }
 0x379   :  { %v404_v50 = vadd.f32 %v403_v49, %v402_v48 }
 0x37a   :  { %p587_p4 = pnand %p586_p3, %p580_p0 }
 0x37b   :  { %405 = vadd.xlane.f32.xlu0 %v404_v50 }
 0x408   :  { %v406_v4 = vpop.xlane.xlu0 %405 }
 0x409   :  { %v407_v51 = vrot.slane %v406_v4, 4 }
 0x40b   :  { %v408_v52 = vadd.f32 %v407_v51, %v406_v4 }
 0x40d   :  { %v409_v53 = vrot.slane %v408_v52, 2 }
 0x40f   :  { %v410_v54 = vadd.f32 %v409_v53, %v408_v52 }
 0x411   :  { %v411_v55 = vrot.slane %v410_v54, 1 }
 0x413   :  { %v412_v56 = vadd.f32 %v411_v55, %v410_v54 }
 0x415   :  { %574 = vpush %v412_v56 }
 0x446   :  { %s575_s21 = spop %574 }
 0x447   :  { %v414_v3 = vstv %s575_s21 }
 0x448   :  { %416 = vst.msk [vmem:[#allocation2] sm:$0x1] %vm415_vm3, %v414_v3 }
 0x449   :  { %590 = shalt.err (!%p587_p4)
}
 0x44a   :  { %s591_s26 = scalar_lea.hbm %s842_s6, 16 }
 0x44b   :  { %p592_p5 = scmp.ne.s32.totalorder %s842_s6, %s591_s26  ;;  %p595_p6 = scmp.lt.u32.totalorder %s591_s26, %s842_s6 }
 0x44d   :  { %p597_p7 = pnand %p595_p6, %p592_p5 }
 0x44f   :  { %600 = shalt.err (!%p597_p7)
}
 0x450   :  { %432 = dma.vmem_to_hbm [thread:$0]  %s430_s20, 16, %s842_s6, [#allocation3]  }
 0x451   :  { %601 = dma.done.wait [#allocation3], 16  }
 0x452   :  { %602 = vsyncadd [#allocation3], 4294967280 }
 0x453   :  { %442 = vsyncpa [#allocation3], 1 }

// kernel: resnet_vqvae_fwd.27
= control target key start
LH: loop header
LB: loop body
LE: loop exit
PB: predicated region body
PF: predicated region fallthrough
CT: control target
= control target key end

     0   :  { %v340_v3 = vmov 0   ;;  %vm39_vm0 = vcmask 261120   ;;  %s524_s0 = inlined_call_operand.vmem [shape: f32[32,32], index: 0, kind: input, shape index: {}]   ;;  %s525_s1 = inlined_call_operand.vmem [shape: f32[64,32], index: 1, kind: input, shape index: {}]   ;;  %s526_s2 = inlined_call_operand.vmem [shape: f32[16,1], index: 2, kind: input, shape index: {}]   ;;  %s527_s3 = inlined_call_operand.vmem [shape: f32[16,1], index: 3, kind: input, shape index: {}]   ;;  %s528_s4 = inlined_call_operand.vmem [shape: f32[16,1], index: 4, kind: input, shape index: {}]   ;;  %s529_s5 = inlined_call_operand.vmem [shape: f32[64,32], index: 5, kind: output, shape index: {}]  }
   0x1   :  { %v29_v0 = vld [vmem:[%s524_s0] sm:$0xff]  ;;  %v30_v1 = vld [vmem:[%s524_s0 + $0x8] sm:$0xff]  ;;  %v31_v2 = vld [vmem:[%s524_s0 + $0x10] sm:$0xff]  ;;  %334 = vset.pattern.permute.xlu0 %v340_v3  ;;  %335 = vset.pattern.permute.xlu1 %v340_v3 }
   0x2   :  { %v37_v4 = vpack.c.bf16 %v30_v1, %v29_v0  ;;  %v32_v5 = vld [vmem:[%s524_s0 + $0x18] sm:$0xff]  ;;  %v21_v6 = vld [vmem:[%s525_s1] sm:$0xff]  ;;  %v22_v7 = vld [vmem:[%s525_s1 + $0x8] sm:$0xff] }
   0x3   :  { %v38_v8 = vpack.c.bf16 %v32_v5, %v31_v2  ;;  %v33_v9 = vpack.c.bf16 %v22_v7, %v21_v6  ;;  %v25_v10 = vld [vmem:[%s525_s1 + $0x20] sm:$0xff]  ;;  %v26_v11 = vld [vmem:[%s525_s1 + $0x28] sm:$0xff]  ;;  %v23_v13 = vld [vmem:[%s525_s1 + $0x10] sm:$0xff] }
   0x4   :  { %317 = vmatprep.subr.bf16.mxu0 %v37_v4  ;;  %329 = vmatprep.subr.bf16.mxu1 %v37_v4  ;;  %v35_v12 = vpack.c.bf16 %v26_v11, %v25_v10  ;;  %v24_v14 = vld [vmem:[%s525_s1 + $0x18] sm:$0xff]  ;;  %v27_v15 = vld [vmem:[%s525_s1 + $0x30] sm:$0xff]  ;;  %v117_v17 = vld [vmem:[%s526_s2] sm:$0xff] }
   0x5   :  { %318 = vmatpush3.bf16.msra.mxu0 %v37_v4  ;;  %331 = vmatpush3.bf16.msra.mxu1 %v37_v4  ;;  %v28_v16 = vld [vmem:[%s525_s1 + $0x38] sm:$0xff]  ;;  %v34_v18 = vpack.c.bf16 %v24_v14, %v23_v13  ;;  %v118_v20 = vld [vmem:[%s526_s2 + $0x8] sm:$0xff] }
   0x6   :  { %319 = vmatprep.subr.bf16.mxu0 %v38_v8  ;;  %330 = vmatprep.subr.bf16.mxu1 %v38_v8  ;;  %v36_v19 = vpack.c.bf16 %v28_v16, %v27_v15 }
   0x7   :  { %321 = vmatprep.mubr.msk.bf16.mxu0 %vm39_vm0, %v33_v9  ;;  %325 = vmatprep.mubr.msk.bf16.mxu1 %vm39_vm0, %v35_v12 }
   0x8   :  { %121 = vperm.xlu0 %334, %v117_v17  }
   0x9   :  { %320 = vmatpush3.bf16.msra.mxu0 %v38_v8  ;;  %332 = vmatpush3.bf16.msra.mxu1 %v38_v8 }
   0xc   :  { %322 = vmatmul.mubr.msk.bf16.vlgmr.msra.gmra.mrb[0].mxu0 %vm39_vm0, %v34_v18  ;;  %326 = vmatmul.mubr.msk.bf16.vlgmr.msra.gmra.mrb[0].mxu1 %vm39_vm0, %v36_v19 }
   0xd   :  { %126 = vperm.xlu0 %334, %v118_v20  }
  0x87   :  { %v122_v21 = vpop.permute.xlu0 %121 }
  0x8c   :  { %v127_v37 = vpop.permute.xlu0 %126 }
  0xdf   :  { %v323_v22 = vpop.f32.mrb[0].mxu0  ;;  %v327_v23 = vpop.f32.mrb[0].mxu1 }
  0xe0   :  { %v417_v24 = vadd.f32 %v323_v22, %v122_v21  ;;  %v419_v25 = vadd.f32 %v327_v23, %v122_v21  ;;  %v86_v26 = vpop.f32.mrb[1].mxu0  ;;  %v102_v27 = vpop.f32.mrb[1].mxu1 }
  0xe1   :  { %v324_v28 = vpop.f32.mrb[2].mxu0  ;;  %v328_v29 = vpop.f32.mrb[2].mxu1  ;;  %v421_v30 = vadd.f32 %v122_v21, %v86_v26  ;;  %v427_v35 = vadd.f32 %v122_v21, %v102_v27 }
  0xe2   :  { %v89_v31 = vpop.f32.mrb[3].mxu0  ;;  %v105_v32 = vpop.f32.mrb[3].mxu1  ;;  %v161_v33 = vsel %vm39_vm0, %v419_v25, 0.0  ;;  %v145_v34 = vsel %vm39_vm0, %v417_v24, 0.0  ;;  %v431_v38 = vadd.f32 %v324_v28, %v127_v37  ;;  %v443_v44 = vadd.f32 %v328_v29, %v127_v37 }
  0xe3   :  { %162 = vadd.xlane.f32.xlu1 %v161_v33  ;;  %146 = vadd.xlane.f32.xlu0 %v145_v34  ;;  %v137_v36 = vsel %vm39_vm0, %v421_v30, 0.0  ;;  %v153_v39 = vsel %vm39_vm0, %v427_v35, 0.0  ;;  %v435_v40 = vadd.f32 %v127_v37, %v89_v31  ;;  %v439_v42 = vadd.f32 %v127_v37, %v105_v32 }
  0xe4   :  { %v148_v41 = vsel %vm39_vm0, %v431_v38, 0.0  ;;  %v164_v46 = vsel %vm39_vm0, %v443_v44, 0.0 }
  0xe5   :  { %v140_v43 = vsel %vm39_vm0, %v435_v40, 0.0  ;;  %v156_v45 = vsel %vm39_vm0, %v439_v42, 0.0 }
  0xe7   :  { %138 = vadd.xlane.f32.xlu1 %v137_v36 }
  0xeb   :  { %154 = vadd.xlane.f32.xlu1 %v153_v39 }
  0xef   :  { %149 = vadd.xlane.f32.xlu1 %v148_v41 }
  0xf3   :  { %141 = vadd.xlane.f32.xlu1 %v140_v43 }
  0xf7   :  { %157 = vadd.xlane.f32.xlu1 %v156_v45 }
  0xfb   :  { %165 = vadd.xlane.f32.xlu1 %v164_v46 }
 0x170   :  { %v163_v47 = vpop.xlane.xlu1 %162  ;;  %v147_v49 = vpop.xlane.xlu0 %146 }
 0x174   :  { %v139_v48 = vpop.xlane.xlu1 %138 }
 0x175   :  { %v151_v50 = vadd.f32 %v147_v49, %v139_v48  ;;  %v221_v49 = vld [vmem:[%s527_s3] sm:$0xff] }
 0x178   :  { %v155_v51 = vpop.xlane.xlu1 %154 }
 0x179   :  { %v159_v52 = vadd.f32 %v155_v51, %v151_v50 }
 0x17b   :  { %v167_v53 = vadd.f32 %v163_v47, %v159_v52  ;;  %v222_v52 = vld [vmem:[%s527_s3 + $0x8] sm:$0xff] }
 0x17c   :  { %v150_v54 = vpop.xlane.xlu1 %149 }
 0x17d   :  { %v449_v55 = vmul.f32 0.0078125, %v167_v53  ;;  %v229_v53 = vld [vmem:[%s528_s4] sm:$0xff] }
 0x17f   :  { %v171_v56 = vsub.f32 %v421_v30, %v449_v55  ;;  %v183_v57 = vsub.f32 %v417_v24, %v449_v55  ;;  %v195_v62 = vsub.f32 %v427_v35, %v449_v55  ;;  %v207_v8 = vsub.f32 %v419_v25, %v449_v55 }
 0x180   :  { %v142_v58 = vpop.xlane.xlu1 %141 }
 0x181   :  { %v173_v59 = vmul.f32 %v171_v56, %v171_v56  ;;  %v185_v61 = vmul.f32 %v183_v57, %v183_v57  ;;  %v152_v0 = vadd.f32 %v150_v54, %v142_v58  ;;  %v197_v3 = vmul.f32 %v195_v62, %v195_v62 }
 0x182   :  { %v209_v14 = vmul.f32 %v207_v8, %v207_v8 }
 0x183   :  { %v175_v60 = vsel %vm39_vm0, %v173_v59, 0.0  ;;  %v187_v2 = vsel %vm39_vm0, %v185_v61, 0.0  ;;  %v199_v7 = vsel %vm39_vm0, %v197_v3, 0.0  ;;  %v230_v59 = vld [vmem:[%s528_s4 + $0x8] sm:$0xff] }
 0x184   :  { %176 = vadd.xlane.f32.xlu1 %v175_v60  ;;  %v158_v63 = vpop.xlane.xlu1 %157  ;;  %v211_v20 = vsel %vm39_vm0, %v209_v14, 0.0 }
 0x185   :  { %v160_v1 = vadd.f32 %v158_v63, %v152_v0 }
 0x188   :  { %188 = vadd.xlane.f32.xlu1 %v187_v2  ;;  %v166_v4 = vpop.xlane.xlu1 %165 }
 0x189   :  { %v168_v5 = vadd.f32 %v166_v4, %v160_v1 }
 0x18b   :  { %v170_v6 = vmul.f32 0.0078125, %v168_v5 }
 0x18c   :  { %200 = vadd.xlane.f32.xlu1 %v199_v7 }
 0x18d   :  { %v184_v9 = vsub.f32 %v431_v38, %v170_v6  ;;  %v172_v10 = vsub.f32 %v435_v40, %v170_v6  ;;  %v196_v11 = vsub.f32 %v439_v42, %v170_v6  ;;  %v208_v18 = vsub.f32 %v443_v44, %v170_v6 }
 0x18f   :  { %v186_v12 = vmul.f32 %v184_v9, %v184_v9  ;;  %v174_v13 = vmul.f32 %v172_v10, %v172_v10  ;;  %v198_v17 = vmul.f32 %v196_v11, %v196_v11  ;;  %v210_v21 = vmul.f32 %v208_v18, %v208_v18 }
 0x191   :  { %v190_v15 = vsel %vm39_vm0, %v186_v12, 0.0  ;;  %v178_v16 = vsel %vm39_vm0, %v174_v13, 0.0  ;;  %v202_v19 = vsel %vm39_vm0, %v198_v17, 0.0  ;;  %v214_v22 = vsel %vm39_vm0, %v210_v21, 0.0 }
 0x192   :  { %191 = vadd.xlane.f32.xlu0 %v190_v15  ;;  %179 = vadd.xlane.f32.xlu1 %v178_v16 }
 0x196   :  { %203 = vadd.xlane.f32.xlu0 %v202_v19  ;;  %212 = vadd.xlane.f32.xlu1 %v211_v20 }
 0x19a   :  { %215 = vadd.xlane.f32.xlu0 %v214_v22 }
 0x211   :  { %v177_v23 = vpop.xlane.xlu1 %176 }
 0x215   :  { %v189_v26 = vpop.xlane.xlu1 %188 }
 0x216   :  { %v193_v31 = vadd.f32 %v189_v26, %v177_v23 }
 0x219   :  { %v201_v27 = vpop.xlane.xlu1 %200 }
 0x21a   :  { %v205_v32 = vadd.f32 %v201_v27, %v193_v31 }
 0x21f   :  { %v192_v28 = vpop.xlane.xlu0 %191  ;;  %v180_v29 = vpop.xlane.xlu1 %179 }
 0x220   :  { %v194_v36 = vadd.f32 %v192_v28, %v180_v29 }
 0x223   :  { %v204_v33 = vpop.xlane.xlu0 %203  ;;  %v213_v34 = vpop.xlane.xlu1 %212 }
 0x224   :  { %v217_v37 = vadd.f32 %v213_v34, %v205_v32  ;;  %v206_v39 = vadd.f32 %v204_v33, %v194_v36 }
 0x226   :  { %v219_v41 = vmul.f32 0.0078125, %v217_v37 }
 0x227   :  { %v216_v43 = vpop.xlane.xlu0 %215 }
 0x228   :  { %v223_v45 = vadd.f32 1e-05, %v219_v41  ;;  %v218_v46 = vadd.f32 %v216_v43, %v206_v39 }
 0x22a   :  { %336 = vrsqrt.f32 %v223_v45  ;;  %v220_v47 = vmul.f32 0.0078125, %v218_v46 }
 0x22c   :  { %v224_v48 = vadd.f32 1e-05, %v220_v47 }
 0x22e   :  { %338 = vrsqrt.f32 %v224_v48 }
 0x234   :  { %v337_v50 = vpop.eup %336 }
 0x235   :  { %v227_v51 = vmul.f32 %v337_v50, %v221_v49 }
 0x237   :  { %237 = vperm.xlu1 %335, %v227_v51   ;;  %v231_v54 = vmul.f32 %v227_v51, %v449_v55 }
 0x238   :  { %v339_v56 = vpop.eup %338 }
 0x239   :  { %v228_v57 = vmul.f32 %v339_v56, %v222_v52  ;;  %v233_v58 = vsub.f32 %v229_v53, %v231_v54 }
 0x23b   :  { %242 = vperm.xlu0 %334, %v228_v57   ;;  %249 = vperm.xlu1 %335, %v233_v58   ;;  %v232_v60 = vmul.f32 %v228_v57, %v170_v6 }
 0x23d   :  { %v234_v61 = vsub.f32 %v230_v59, %v232_v60 }
 0x23f   :  { %254 = vperm.xlu1 %335, %v234_v61  }
 0x2b6   :  { %v238_v62 = vpop.permute.xlu1 %237 }
 0x2b7   :  { %v245_v63 = vmul.f32 %v238_v62, %v421_v30  ;;  %v267_v0 = vmul.f32 %v238_v62, %v417_v24  ;;  %v279_v1 = vmul.f32 %v238_v62, %v427_v35  ;;  %v291_v55 = vmul.f32 %v238_v62, %v419_v25 }
 0x2ba   :  { %v243_v2 = vpop.permute.xlu0 %242  ;;  %v250_v3 = vpop.permute.xlu1 %249 }
 0x2bb   :  { %v257_v4 = vadd.f32 %v250_v3, %v245_v63  ;;  %v269_v5 = vadd.f32 %v267_v0, %v250_v3  ;;  %v281_v7 = vadd.f32 %v279_v1, %v250_v3  ;;  %v293_v8 = vadd.f32 %v291_v55, %v250_v3 }
 0x2bc   :  { %v246_v9 = vmul.f32 %v243_v2, %v435_v40  ;;  %v268_v6 = vmul.f32 %v243_v2, %v431_v38  ;;  %v280_v10 = vmul.f32 %v243_v2, %v439_v42  ;;  %v292_v30 = vmul.f32 %v243_v2, %v443_v44 }
 0x2bd   :  { %vm259_vm1 = vcmp.ge.f32.partialorder %v257_v4, 0.0  ;;  %v261_v24 = vmul.f32 0.2, %v257_v4  ;;  %vm271_vm2 = vcmp.ge.f32.partialorder %v269_v5, 0.0  ;;  %v273_v35 = vmul.f32 0.2, %v269_v5 }
 0x2be   :  { %v255_v11 = vpop.permute.xlu1 %254  ;;  %vm283_vm3 = vcmp.ge.f32.partialorder %v281_v7, 0.0  ;;  %v285_v25 = vmul.f32 0.2, %v281_v7  ;;  %vm295_vm4 = vcmp.ge.f32.partialorder %v293_v8, 0.0  ;;  %v297_v12 = vmul.f32 0.2, %v293_v8 }
 0x2bf   :  { %v263_v13 = vsel %vm259_vm1, %v257_v4, %v261_v24  ;;  %v275_v14 = vsel %vm271_vm2, %v269_v5, %v273_v35  ;;  %v258_v15 = vadd.f32 %v255_v11, %v246_v9  ;;  %v270_v16 = vadd.f32 %v268_v6, %v255_v11 }
 0x2c0   :  { %265 = vst.msk [vmem:[%s529_s5] sm:$0xff] %vm39_vm0, %v263_v13  ;;  %277 = vst.msk [vmem:[%s529_s5 + $0x10] sm:$0xff] %vm39_vm0, %v275_v14  ;;  %v287_v38 = vsel %vm283_vm3, %v281_v7, %v285_v25  ;;  %v299_v40 = vsel %vm295_vm4, %v293_v8, %v297_v12  ;;  %v282_v42 = vadd.f32 %v280_v10, %v255_v11 }
 0x2c1   :  { %v294_v44 = vadd.f32 %v292_v30, %v255_v11  ;;  %289 = vst.msk [vmem:[%s529_s5 + $0x20] sm:$0xff] %vm39_vm0, %v287_v38  ;;  %301 = vst.msk [vmem:[%s529_s5 + $0x30] sm:$0xff] %vm39_vm0, %v299_v40  ;;  %vm260_vm5 = vcmp.ge.f32.partialorder %v258_v15, 0.0  ;;  %v262_v17 = vmul.f32 0.2, %v258_v15  ;;  %vm272_vm6 = vcmp.ge.f32.partialorder %v270_v16, 0.0 }
 0x2c2   :  { %v274_v18 = vmul.f32 0.2, %v270_v16  ;;  %vm284_vm7 = vcmp.ge.f32.partialorder %v282_v42, 0.0  ;;  %v286_v19 = vmul.f32 0.2, %v282_v42 }
 0x2c3   :  { %vm296_vm8 = vcmp.ge.f32.partialorder %v294_v44, 0.0  ;;  %v298_v20 = vmul.f32 0.2, %v294_v44  ;;  %v264_v21 = vsel %vm260_vm5, %v258_v15, %v262_v17 }
 0x2c4   :  { %v276_v22 = vsel %vm272_vm6, %v270_v16, %v274_v18  ;;  %266 = vst.msk [vmem:[%s529_s5 + $0x8] sm:$0xff] %vm39_vm0, %v264_v21  ;;  %v288_v23 = vsel %vm284_vm7, %v282_v42, %v286_v19 }
 0x2c5   :  { %278 = vst.msk [vmem:[%s529_s5 + $0x18] sm:$0xff] %vm39_vm0, %v276_v22  ;;  %v300_v26 = vsel %vm296_vm8, %v294_v44, %v298_v20  ;;  %290 = vst.msk [vmem:[%s529_s5 + $0x28] sm:$0xff] %vm39_vm0, %v288_v23 }
 0x2c6   :  { %302 = vst.msk [vmem:[%s529_s5 + $0x38] sm:$0xff] %vm39_vm0, %v300_v26 }

// kernel: resnet_vqvae_fwd.30
= control target key start
LH: loop header
LB: loop body
LE: loop exit
PB: predicated region body
PF: predicated region fallthrough
CT: control target
= control target key end

     0   :  { %v191_v3 = vmov 0   ;;  %vm30_vm0 = vcmask 130048   ;;  %s261_s0 = inlined_call_operand.vmem [shape: f32[16,128], index: 0, kind: input, shape index: {}]   ;;  %s262_s1 = inlined_call_operand.vmem [shape: f32[32,16], index: 1, kind: input, shape index: {}]   ;;  %s263_s2 = inlined_call_operand.vmem [shape: f32[8,1], index: 2, kind: input, shape index: {}]   ;;  %s264_s3 = inlined_call_operand.vmem [shape: f32[8,1], index: 3, kind: input, shape index: {}]   ;;  %s265_s4 = inlined_call_operand.vmem [shape: f32[8,1], index: 4, kind: input, shape index: {}]   ;;  %s266_s5 = inlined_call_operand.vmem [shape: f32[32,128], index: 5, kind: output, shape index: {}]  }
   0x1   :  { %v25_v0 = vld [vmem:[%s261_s0] sm:$0xff]  ;;  %v26_v1 = vld [vmem:[%s261_s0 + $0x8] sm:$0xff]  ;;  %187 = vset.pattern.permute.xlu0 %v191_v3  ;;  %188 = vset.pattern.permute.xlu1 %v191_v3  ;;  %v23_v6 = vld [vmem:[%s262_s1 + $0x10] sm:$0xff] }
   0x2   :  { %v21_v2 = vld [vmem:[%s262_s1] sm:$0xff]  ;;  %v29_v4 = vpack.c.bf16 %v26_v1, %v25_v0  ;;  %v22_v5 = vld [vmem:[%s262_s1 + $0x8] sm:$0xff]  ;;  %v24_v7 = vld [vmem:[%s262_s1 + $0x18] sm:$0xff] }
   0x3   :  { %v27_v8 = vpack.c.bf16 %v22_v5, %v21_v2  ;;  %v86_v9 = vld [vmem:[%s263_s2] sm:$0xff]  ;;  %v28_v10 = vpack.c.bf16 %v24_v7, %v23_v6 }
   0x4   :  { %180 = vmatprep.subr.bf16.mxu0 %v29_v4  ;;  %89 = vperm.xlu0 %187, %v86_v9   ;;  %v130_v45 = vld [vmem:[%s264_s3] sm:$0xff] }
   0x5   :  { %181 = vmatpush3.bf16.msra.mxu0 %v29_v4  ;;  %182 = vmatprep.mubr.msk.bf16.mxu0 %vm30_vm0, %v27_v8  ;;  %v134_v48 = vld [vmem:[%s265_s4] sm:$0xff] }
   0x8   :  { %183 = vmatmul.mubr.msk.bf16.vlgmr.msra.gmra.mrb[0].mxu0 %vm30_vm0, %v28_v10 }
  0x83   :  { %v90_v11 = vpop.permute.xlu0 %89 }
  0xdb   :  { %v184_v12 = vpop.f32.mrb[0].mxu0 }
  0xdc   :  { %v94_v13 = vadd.f32 %v184_v12, %v90_v11  ;;  %v71_v14 = vpop.f32.mrb[1].mxu0 }
  0xdd   :  { %v92_v15 = vadd.f32 %v90_v11, %v71_v14  ;;  %v185_v16 = vpop.f32.mrb[2].mxu0 }
  0xde   :  { %102 = vadd.xlane.f32.xlu1 %v94_v13  ;;  %v74_v17 = vpop.f32.mrb[3].mxu0  ;;  %v95_v19 = vadd.f32 %v185_v16, %v90_v11 }
  0xdf   :  { %v93_v18 = vadd.f32 %v90_v11, %v74_v17  ;;  %96 = vadd.xlane.f32.xlu0 %v92_v15 }
  0xe2   :  { %99 = vadd.xlane.f32.xlu1 %v93_v18 }
  0xe6   :  { %105 = vadd.xlane.f32.xlu1 %v95_v19 }
 0x16b   :  { %v103_v20 = vpop.xlane.xlu1 %102 }
 0x16c   :  { %v97_v21 = vpop.xlane.xlu0 %96 }
 0x16f   :  { %v100_v22 = vpop.xlane.xlu1 %99 }
 0x170   :  { %v101_v23 = vadd.f32 %v100_v22, %v97_v21 }
 0x172   :  { %v104_v24 = vadd.f32 %v103_v20, %v101_v23 }
 0x173   :  { %v106_v25 = vpop.xlane.xlu1 %105 }
 0x174   :  { %v107_v26 = vadd.f32 %v106_v25, %v104_v24 }
 0x176   :  { %v108_v27 = vmul.f32 0.001953125, %v107_v26 }
 0x178   :  { %v109_v28 = vsub.f32 %v92_v15, %v108_v27  ;;  %v114_v30 = vsub.f32 %v93_v18, %v108_v27  ;;  %v119_v32 = vsub.f32 %v94_v13, %v108_v27  ;;  %v124_v34 = vsub.f32 %v95_v19, %v108_v27 }
 0x17a   :  { %v110_v29 = vmul.f32 %v109_v28, %v109_v28  ;;  %v115_v31 = vmul.f32 %v114_v30, %v114_v30  ;;  %v120_v33 = vmul.f32 %v119_v32, %v119_v32  ;;  %v125_v35 = vmul.f32 %v124_v34, %v124_v34 }
 0x17c   :  { %111 = vadd.xlane.f32.xlu1 %v110_v29 }
 0x180   :  { %116 = vadd.xlane.f32.xlu1 %v115_v31 }
 0x184   :  { %121 = vadd.xlane.f32.xlu1 %v120_v33 }
 0x188   :  { %126 = vadd.xlane.f32.xlu1 %v125_v35 }
 0x209   :  { %v112_v36 = vpop.xlane.xlu1 %111 }
 0x20d   :  { %v117_v37 = vpop.xlane.xlu1 %116 }
 0x20e   :  { %v118_v39 = vadd.f32 %v117_v37, %v112_v36 }
 0x211   :  { %v122_v38 = vpop.xlane.xlu1 %121 }
 0x212   :  { %v123_v40 = vadd.f32 %v122_v38, %v118_v39 }
 0x215   :  { %v127_v41 = vpop.xlane.xlu1 %126 }
 0x216   :  { %v128_v42 = vadd.f32 %v127_v41, %v123_v40 }
 0x218   :  { %v129_v43 = vmul.f32 0.001953125, %v128_v42 }
 0x21a   :  { %v131_v44 = vadd.f32 1e-05, %v129_v43 }
 0x21c   :  { %189 = vrsqrt.f32 %v131_v44 }
 0x226   :  { %v190_v46 = vpop.eup %189 }
 0x227   :  { %v133_v47 = vmul.f32 %v190_v46, %v130_v45 }
 0x229   :  { %139 = vperm.xlu1 %188, %v133_v47   ;;  %v135_v49 = vmul.f32 %v133_v47, %v108_v27 }
 0x22b   :  { %v136_v50 = vsub.f32 %v134_v48, %v135_v49 }
 0x22d   :  { %145 = vperm.xlu0 %187, %v136_v50  }
 0x2a8   :  { %v140_v51 = vpop.permute.xlu1 %139 }
 0x2a9   :  { %v142_v52 = vmul.f32 %v140_v51, %v92_v15  ;;  %v153_v53 = vmul.f32 %v140_v51, %v93_v18  ;;  %v159_v54 = vmul.f32 %v140_v51, %v94_v13  ;;  %v165_v55 = vmul.f32 %v140_v51, %v95_v19 }
 0x2ac   :  { %v146_v56 = vpop.permute.xlu0 %145 }
 0x2ad   :  { %v148_v57 = vadd.f32 %v146_v56, %v142_v52  ;;  %v154_v58 = vadd.f32 %v153_v53, %v146_v56  ;;  %v160_v59 = vadd.f32 %v159_v54, %v146_v56  ;;  %v166_v60 = vadd.f32 %v165_v55, %v146_v56 }
 0x2af   :  { %vm149_vm1 = vcmp.ge.f32.partialorder %v148_v57, 0.0  ;;  %v150_v61 = vmul.f32 0.2, %v148_v57  ;;  %vm155_vm2 = vcmp.ge.f32.partialorder %v154_v58, 0.0  ;;  %v156_v62 = vmul.f32 0.2, %v154_v58 }
 0x2b0   :  { %vm161_vm3 = vcmp.ge.f32.partialorder %v160_v59, 0.0  ;;  %v162_v63 = vmul.f32 0.2, %v160_v59  ;;  %vm167_vm4 = vcmp.ge.f32.partialorder %v166_v60, 0.0  ;;  %v168_v0 = vmul.f32 0.2, %v166_v60 }
 0x2b1   :  { %v151_v1 = vsel %vm149_vm1, %v148_v57, %v150_v61  ;;  %v157_v2 = vsel %vm155_vm2, %v154_v58, %v156_v62 }
 0x2b2   :  { %152 = vst [vmem:[%s266_s5] sm:$0xff] %v151_v1  ;;  %158 = vst [vmem:[%s266_s5 + $0x8] sm:$0xff] %v157_v2  ;;  %v163_v3 = vsel %vm161_vm3, %v160_v59, %v162_v63  ;;  %v169_v4 = vsel %vm167_vm4, %v166_v60, %v168_v0 }
 0x2b3   :  { %164 = vst [vmem:[%s266_s5 + $0x10] sm:$0xff] %v163_v3  ;;  %170 = vst [vmem:[%s266_s5 + $0x18] sm:$0xff] %v169_v4 }

// kernel: resnet_vqvae_fwd.32
= control target key start
LH: loop header
LB: loop body
LE: loop exit
PB: predicated region body
PF: predicated region fallthrough
CT: control target
= control target key end

     0   :  { %v521_v3 = vmov 0   ;;  %vm51_vm0 = vcmask 261120   ;;  %s851_s0 = inlined_call_operand.vmem [shape: f32[32,32], index: 0, kind: input, shape index: {}]   ;;  %s852_s1 = inlined_call_operand.vmem [shape: f32[128,32], index: 1, kind: input, shape index: {}]   ;;  %s853_s2 = inlined_call_operand.vmem [shape: f32[8,1], index: 2, kind: input, shape index: {}]   ;;  %s854_s3 = inlined_call_operand.vmem [shape: f32[8,1], index: 3, kind: input, shape index: {}]   ;;  %s855_s4 = inlined_call_operand.vmem [shape: f32[8,1], index: 4, kind: input, shape index: {}]   ;;  %s856_s5 = inlined_call_operand.vmem [shape: f32[128,32], index: 5, kind: output, shape index: {}]  }
   0x1   :  { %v37_v0 = vld [vmem:[%s851_s0] sm:$0xff]  ;;  %v38_v1 = vld [vmem:[%s851_s0 + $0x8] sm:$0xff]  ;;  %v39_v2 = vld [vmem:[%s851_s0 + $0x10] sm:$0xff]  ;;  %517 = vset.pattern.permute.xlu0 %v521_v3  ;;  %518 = vset.pattern.permute.xlu1 %v521_v3 }
   0x2   :  { %v49_v4 = vpack.c.bf16 %v38_v1, %v37_v0  ;;  %v40_v5 = vld [vmem:[%s851_s0 + $0x18] sm:$0xff]  ;;  %v21_v6 = vld [vmem:[%s852_s1] sm:$0xff]  ;;  %v22_v7 = vld [vmem:[%s852_s1 + $0x8] sm:$0xff] }
   0x3   :  { %v50_v8 = vpack.c.bf16 %v40_v5, %v39_v2  ;;  %v41_v9 = vpack.c.bf16 %v22_v7, %v21_v6  ;;  %v29_v10 = vld [vmem:[%s852_s1 + $0x40] sm:$0xff]  ;;  %v30_v11 = vld [vmem:[%s852_s1 + $0x48] sm:$0xff]  ;;  %v23_v13 = vld [vmem:[%s852_s1 + $0x10] sm:$0xff] }
   0x4   :  { %492 = vmatprep.subr.bf16.mxu0 %v49_v4  ;;  %512 = vmatprep.subr.bf16.mxu1 %v49_v4  ;;  %v45_v12 = vpack.c.bf16 %v30_v11, %v29_v10  ;;  %v24_v14 = vld [vmem:[%s852_s1 + $0x18] sm:$0xff]  ;;  %v31_v15 = vld [vmem:[%s852_s1 + $0x50] sm:$0xff]  ;;  %v25_v17 = vld [vmem:[%s852_s1 + $0x20] sm:$0xff] }
   0x5   :  { %493 = vmatpush3.bf16.msra.mxu0 %v49_v4  ;;  %514 = vmatpush3.bf16.msra.mxu1 %v49_v4  ;;  %v32_v16 = vld [vmem:[%s852_s1 + $0x58] sm:$0xff]  ;;  %v26_v18 = vld [vmem:[%s852_s1 + $0x28] sm:$0xff]  ;;  %v33_v19 = vld [vmem:[%s852_s1 + $0x60] sm:$0xff]  ;;  %v42_v22 = vpack.c.bf16 %v24_v14, %v23_v13 }
   0x6   :  { %494 = vmatprep.subr.bf16.mxu0 %v50_v8  ;;  %513 = vmatprep.subr.bf16.mxu1 %v50_v8  ;;  %v34_v20 = vld [vmem:[%s852_s1 + $0x68] sm:$0xff]  ;;  %v173_v21 = vld [vmem:[%s853_s2] sm:$0xff]  ;;  %v46_v23 = vpack.c.bf16 %v32_v16, %v31_v15  ;;  %v43_v24 = vpack.c.bf16 %v26_v18, %v25_v17  ;;  %v27_v26 = vld [vmem:[%s852_s1 + $0x30] sm:$0xff] }
   0x7   :  { %496 = vmatprep.mubr.msk.bf16.mxu0 %vm51_vm0, %v41_v9  ;;  %504 = vmatprep.mubr.msk.bf16.mxu1 %vm51_vm0, %v45_v12  ;;  %v47_v25 = vpack.c.bf16 %v34_v20, %v33_v19  ;;  %v28_v27 = vld [vmem:[%s852_s1 + $0x38] sm:$0xff]  ;;  %v35_v28 = vld [vmem:[%s852_s1 + $0x70] sm:$0xff] }
   0x8   :  { %176 = vperm.xlu0 %517, %v173_v21   ;;  %v36_v29 = vld [vmem:[%s852_s1 + $0x78] sm:$0xff]  ;;  %v44_v30 = vpack.c.bf16 %v28_v27, %v27_v26 }
   0x9   :  { %495 = vmatpush3.bf16.msra.mxu0 %v50_v8  ;;  %515 = vmatpush3.bf16.msra.mxu1 %v50_v8  ;;  %v48_v31 = vpack.c.bf16 %v36_v29, %v35_v28 }
   0xc   :  { %497 = vmatmul.mubr.msk.bf16.vlgmr.msra.gmra.mrb[0].mxu0 %vm51_vm0, %v42_v22  ;;  %505 = vmatmul.mubr.msk.bf16.vlgmr.msra.gmra.mrb[0].mxu1 %vm51_vm0, %v46_v23 }
   0xd   :  { %500 = vmatprep.mubr.msk.bf16.mxu0 %vm51_vm0, %v43_v24  ;;  %508 = vmatprep.mubr.msk.bf16.mxu1 %vm51_vm0, %v47_v25 }
  0x14   :  { %501 = vmatmul.mubr.msk.bf16.gmra.mrb[4].mxu0 %vm51_vm0, %v44_v30  ;;  %509 = vmatmul.mubr.msk.bf16.gmra.mrb[4].mxu1 %vm51_vm0, %v48_v31 }
  0x87   :  { %v177_v32 = vpop.permute.xlu0 %176 }
  0xdf   :  { %v498_v33 = vpop.f32.mrb[0].mxu0  ;;  %v506_v34 = vpop.f32.mrb[0].mxu1 }
  0xe0   :  { %v623_v35 = vadd.f32 %v498_v33, %v177_v32  ;;  %v110_v36 = vpop.f32.mrb[1].mxu0  ;;  %v142_v37 = vpop.f32.mrb[1].mxu1  ;;  %v631_v45 = vadd.f32 %v506_v34, %v177_v32 }
  0xe1   :  { %v625_v38 = vadd.f32 %v177_v32, %v110_v36  ;;  %v499_v39 = vpop.f32.mrb[2].mxu0  ;;  %v507_v40 = vpop.f32.mrb[2].mxu1  ;;  %v665_v6 = vadd.f32 %v177_v32, %v142_v37 }
  0xe2   :  { %v627_v41 = vadd.f32 %v499_v39, %v177_v32  ;;  %v113_v42 = vpop.f32.mrb[3].mxu0  ;;  %v145_v43 = vpop.f32.mrb[3].mxu1  ;;  %v203_v44 = vsel %vm51_vm0, %v623_v35, 0.0  ;;  %v235_v51 = vsel %vm51_vm0, %v631_v45, 0.0  ;;  %v673_v10 = vadd.f32 %v507_v40, %v177_v32 }
  0xe3   :  { %204 = vadd.xlane.f32.xlu1 %v203_v44  ;;  %v195_v46 = vsel %vm51_vm0, %v625_v38, 0.0  ;;  %v635_v47 = vadd.f32 %v177_v32, %v113_v42  ;;  %v669_v8 = vadd.f32 %v177_v32, %v145_v43  ;;  %v227_v9 = vsel %vm51_vm0, %v665_v6, 0.0 }
  0xe4   :  { %196 = vadd.xlane.f32.xlu0 %v195_v46  ;;  %v207_v48 = vsel %vm51_vm0, %v627_v41, 0.0  ;;  %v239_v13 = vsel %vm51_vm0, %v673_v10, 0.0 }
  0xe5   :  { %v199_v60 = vsel %vm51_vm0, %v635_v47, 0.0  ;;  %v231_v11 = vsel %vm51_vm0, %v669_v8, 0.0 }
  0xe7   :  { %v510_v49 = vpop.f32.mrb[4].mxu1  ;;  %208 = vadd.xlane.f32.xlu1 %v207_v48  ;;  %v502_v50 = vpop.f32.mrb[4].mxu0 }
  0xe8   :  { %v158_v52 = vpop.f32.mrb[5].mxu1  ;;  %236 = vadd.xlane.f32.xlu0 %v235_v51  ;;  %v126_v53 = vpop.f32.mrb[5].mxu0  ;;  %v643_v57 = vadd.f32 %v502_v50, %v177_v32  ;;  %v647_v61 = vadd.f32 %v510_v49, %v177_v32 }
  0xe9   :  { %v641_v54 = vadd.f32 %v177_v32, %v158_v52  ;;  %v503_v55 = vpop.f32.mrb[6].mxu0  ;;  %v511_v56 = vpop.f32.mrb[6].mxu1  ;;  %v651_v63 = vadd.f32 %v177_v32, %v126_v53 }
  0xea   :  { %v129_v58 = vpop.f32.mrb[7].mxu0  ;;  %v161_v59 = vpop.f32.mrb[7].mxu1  ;;  %v219_v0 = vsel %vm51_vm0, %v643_v57, 0.0  ;;  %v251_v1 = vsel %vm51_vm0, %v647_v61, 0.0  ;;  %v657_v2 = vadd.f32 %v503_v55, %v177_v32  ;;  %v681_v14 = vadd.f32 %v511_v56, %v177_v32 }
  0xeb   :  { %200 = vadd.xlane.f32.xlu1 %v199_v60  ;;  %v243_v62 = vsel %vm51_vm0, %v641_v54, 0.0  ;;  %v211_v3 = vsel %vm51_vm0, %v651_v63, 0.0  ;;  %v661_v4 = vadd.f32 %v177_v32, %v129_v58  ;;  %v677_v12 = vadd.f32 %v177_v32, %v161_v59 }
  0xec   :  { %244 = vadd.xlane.f32.xlu0 %v243_v62  ;;  %v223_v5 = vsel %vm51_vm0, %v657_v2, 0.0  ;;  %v255_v16 = vsel %vm51_vm0, %v681_v14, 0.0 }
  0xed   :  { %v215_v7 = vsel %vm51_vm0, %v661_v4, 0.0  ;;  %v247_v15 = vsel %vm51_vm0, %v677_v12, 0.0 }
  0xef   :  { %220 = vadd.xlane.f32.xlu1 %v219_v0 }
  0xf0   :  { %252 = vadd.xlane.f32.xlu0 %v251_v1 }
  0xf3   :  { %212 = vadd.xlane.f32.xlu1 %v211_v3 }
  0xf7   :  { %224 = vadd.xlane.f32.xlu1 %v223_v5 }
  0xfb   :  { %216 = vadd.xlane.f32.xlu1 %v215_v7 }
  0xff   :  { %228 = vadd.xlane.f32.xlu1 %v227_v9 }
 0x103   :  { %232 = vadd.xlane.f32.xlu1 %v231_v11 }
 0x107   :  { %240 = vadd.xlane.f32.xlu1 %v239_v13 }
 0x10b   :  { %248 = vadd.xlane.f32.xlu1 %v247_v15 }
 0x10f   :  { %256 = vadd.xlane.f32.xlu1 %v255_v16 }
 0x170   :  { %v205_v17 = vpop.xlane.xlu1 %204 }
 0x171   :  { %v197_v20 = vpop.xlane.xlu0 %196 }
 0x174   :  { %v209_v18 = vpop.xlane.xlu1 %208 }
 0x175   :  { %v237_v33 = vpop.xlane.xlu0 %236 }
 0x178   :  { %v201_v19 = vpop.xlane.xlu1 %200 }
 0x179   :  { %v202_v22 = vadd.f32 %v201_v19, %v197_v20  ;;  %v245_v40 = vpop.xlane.xlu0 %244 }
 0x17b   :  { %v206_v24 = vadd.f32 %v205_v17, %v202_v22 }
 0x17c   :  { %v221_v21 = vpop.xlane.xlu1 %220 }
 0x17d   :  { %v210_v26 = vadd.f32 %v209_v18, %v206_v24  ;;  %v253_v49 = vpop.xlane.xlu0 %252 }
 0x180   :  { %v213_v23 = vpop.xlane.xlu1 %212 }
 0x181   :  { %v214_v27 = vadd.f32 %v213_v23, %v210_v26 }
 0x184   :  { %v225_v25 = vpop.xlane.xlu1 %224 }
 0x188   :  { %v217_v28 = vpop.xlane.xlu1 %216 }
 0x189   :  { %v218_v29 = vadd.f32 %v217_v28, %v214_v27 }
 0x18b   :  { %v222_v30 = vadd.f32 %v221_v21, %v218_v29 }
 0x18c   :  { %v229_v31 = vpop.xlane.xlu1 %228 }
 0x18d   :  { %v226_v32 = vadd.f32 %v225_v25, %v222_v30 }
 0x18f   :  { %v230_v34 = vadd.f32 %v229_v31, %v226_v32 }
 0x190   :  { %v233_v36 = vpop.xlane.xlu1 %232 }
 0x191   :  { %v234_v37 = vadd.f32 %v233_v36, %v230_v34 }
 0x193   :  { %v238_v39 = vadd.f32 %v237_v33, %v234_v37 }
 0x194   :  { %v241_v42 = vpop.xlane.xlu1 %240 }
 0x195   :  { %v242_v43 = vadd.f32 %v241_v42, %v238_v39 }
 0x197   :  { %v246_v44 = vadd.f32 %v245_v40, %v242_v43 }
 0x198   :  { %v249_v46 = vpop.xlane.xlu1 %248 }
 0x199   :  { %v250_v48 = vadd.f32 %v249_v46, %v246_v44 }
 0x19b   :  { %v254_v50 = vadd.f32 %v253_v49, %v250_v48 }
 0x19c   :  { %v257_v51 = vpop.xlane.xlu1 %256 }
 0x19d   :  { %v258_v52 = vadd.f32 %v257_v51, %v254_v50 }
 0x19f   :  { %v687_v53 = vmul.f32 0.001953125, %v258_v52 }
 0x1a1   :  { %v266_v55 = vsub.f32 %v635_v47, %v687_v53  ;;  %v260_v56 = vsub.f32 %v625_v38, %v687_v53  ;;  %v278_v58 = vsub.f32 %v627_v41, %v687_v53  ;;  %v272_v59 = vsub.f32 %v623_v35, %v687_v53 }
 0x1a2   :  { %v290_v0 = vsub.f32 %v661_v4, %v687_v53  ;;  %v284_v1 = vsub.f32 %v651_v63, %v687_v53  ;;  %v302_v11 = vsub.f32 %v657_v2, %v687_v53  ;;  %v296_v13 = vsub.f32 %v643_v57, %v687_v53 }
 0x1a3   :  { %v267_v60 = vmul.f32 %v266_v55, %v266_v55  ;;  %v261_v62 = vmul.f32 %v260_v56, %v260_v56  ;;  %v279_v7 = vmul.f32 %v278_v58, %v278_v58  ;;  %v273_v9 = vmul.f32 %v272_v59, %v272_v59 }
 0x1a4   :  { %v291_v17 = vmul.f32 %v290_v0, %v290_v0  ;;  %v285_v18 = vmul.f32 %v284_v1, %v284_v1  ;;  %v303_v19 = vmul.f32 %v302_v11, %v302_v11  ;;  %v297_v20 = vmul.f32 %v296_v13, %v296_v13 }
 0x1a5   :  { %v268_v3 = vsel %vm51_vm0, %v267_v60, 0.0  ;;  %v262_v5 = vsel %vm51_vm0, %v261_v62, 0.0  ;;  %v280_v15 = vsel %vm51_vm0, %v279_v7, 0.0  ;;  %v274_v16 = vsel %vm51_vm0, %v273_v9, 0.0 }
 0x1a6   :  { %269 = vadd.xlane.f32.xlu1 %v268_v3  ;;  %263 = vadd.xlane.f32.xlu0 %v262_v5  ;;  %v292_v21 = vsel %vm51_vm0, %v291_v17, 0.0  ;;  %v286_v22 = vsel %vm51_vm0, %v285_v18, 0.0  ;;  %v314_v23 = vsub.f32 %v669_v8, %v687_v53  ;;  %v308_v24 = vsub.f32 %v665_v6, %v687_v53 }
 0x1a7   :  { %v304_v25 = vsel %vm51_vm0, %v303_v19, 0.0  ;;  %v298_v26 = vsel %vm51_vm0, %v297_v20, 0.0  ;;  %v326_v29 = vsub.f32 %v673_v10, %v687_v53  ;;  %v320_v30 = vsub.f32 %v631_v45, %v687_v53 }
 0x1a8   :  { %v315_v27 = vmul.f32 %v314_v23, %v314_v23  ;;  %v309_v28 = vmul.f32 %v308_v24, %v308_v24  ;;  %v338_v31 = vsub.f32 %v677_v12, %v687_v53  ;;  %v332_v32 = vsub.f32 %v641_v54, %v687_v53 }
 0x1a9   :  { %v327_v36 = vmul.f32 %v326_v29, %v326_v29  ;;  %v321_v37 = vmul.f32 %v320_v30, %v320_v30  ;;  %v350_v39 = vsub.f32 %v681_v14, %v687_v53  ;;  %v344_v40 = vsub.f32 %v647_v61, %v687_v53 }
 0x1aa   :  { %281 = vadd.xlane.f32.xlu1 %v280_v15  ;;  %275 = vadd.xlane.f32.xlu0 %v274_v16  ;;  %v316_v33 = vsel %vm51_vm0, %v315_v27, 0.0  ;;  %v310_v34 = vsel %vm51_vm0, %v309_v28, 0.0  ;;  %v339_v44 = vmul.f32 %v338_v31, %v338_v31  ;;  %v333_v46 = vmul.f32 %v332_v32, %v332_v32 }
 0x1ab   :  { %v328_v42 = vsel %vm51_vm0, %v327_v36, 0.0  ;;  %v322_v43 = vsel %vm51_vm0, %v321_v37, 0.0  ;;  %v351_v50 = vmul.f32 %v350_v39, %v350_v39  ;;  %v345_v51 = vmul.f32 %v344_v40, %v344_v40  ;;  %v357_v36 = vld [vmem:[%s854_s3] sm:$0xff] }
 0x1ac   :  { %v340_v48 = vsel %vm51_vm0, %v339_v44, 0.0  ;;  %v334_v49 = vsel %vm51_vm0, %v333_v46, 0.0  ;;  %v361_v40 = vld [vmem:[%s855_s4] sm:$0xff] }
 0x1ad   :  { %v352_v52 = vsel %vm51_vm0, %v351_v50, 0.0  ;;  %v346_v55 = vsel %vm51_vm0, %v345_v51, 0.0 }
 0x1ae   :  { %293 = vadd.xlane.f32.xlu1 %v292_v21  ;;  %287 = vadd.xlane.f32.xlu0 %v286_v22 }
 0x1b2   :  { %305 = vadd.xlane.f32.xlu1 %v304_v25  ;;  %299 = vadd.xlane.f32.xlu0 %v298_v26 }
 0x1b6   :  { %317 = vadd.xlane.f32.xlu1 %v316_v33  ;;  %311 = vadd.xlane.f32.xlu0 %v310_v34 }
 0x1ba   :  { %329 = vadd.xlane.f32.xlu1 %v328_v42  ;;  %323 = vadd.xlane.f32.xlu0 %v322_v43 }
 0x1be   :  { %341 = vadd.xlane.f32.xlu1 %v340_v48  ;;  %335 = vadd.xlane.f32.xlu0 %v334_v49 }
 0x1c2   :  { %353 = vadd.xlane.f32.xlu1 %v352_v52  ;;  %347 = vadd.xlane.f32.xlu0 %v346_v55 }
 0x233   :  { %v270_v56 = vpop.xlane.xlu1 %269  ;;  %v264_v58 = vpop.xlane.xlu0 %263 }
 0x234   :  { %v271_v59 = vadd.f32 %v270_v56, %v264_v58 }
 0x237   :  { %v282_v60 = vpop.xlane.xlu1 %281  ;;  %v276_v62 = vpop.xlane.xlu0 %275 }
 0x238   :  { %v277_v0 = vadd.f32 %v276_v62, %v271_v59 }
 0x23a   :  { %v283_v1 = vadd.f32 %v282_v60, %v277_v0 }
 0x23b   :  { %v294_v3 = vpop.xlane.xlu1 %293  ;;  %v288_v5 = vpop.xlane.xlu0 %287 }
 0x23c   :  { %v289_v7 = vadd.f32 %v288_v5, %v283_v1 }
 0x23e   :  { %v295_v9 = vadd.f32 %v294_v3, %v289_v7 }
 0x23f   :  { %v306_v11 = vpop.xlane.xlu1 %305  ;;  %v300_v13 = vpop.xlane.xlu0 %299 }
 0x240   :  { %v301_v15 = vadd.f32 %v300_v13, %v295_v9 }
 0x242   :  { %v307_v16 = vadd.f32 %v306_v11, %v301_v15 }
 0x243   :  { %v318_v17 = vpop.xlane.xlu1 %317  ;;  %v312_v18 = vpop.xlane.xlu0 %311 }
 0x244   :  { %v313_v19 = vadd.f32 %v312_v18, %v307_v16 }
 0x246   :  { %v319_v20 = vadd.f32 %v318_v17, %v313_v19 }
 0x247   :  { %v330_v21 = vpop.xlane.xlu1 %329  ;;  %v324_v22 = vpop.xlane.xlu0 %323 }
 0x248   :  { %v325_v23 = vadd.f32 %v324_v22, %v319_v20 }
 0x24a   :  { %v331_v24 = vadd.f32 %v330_v21, %v325_v23 }
 0x24b   :  { %v342_v25 = vpop.xlane.xlu1 %341  ;;  %v336_v26 = vpop.xlane.xlu0 %335 }
 0x24c   :  { %v337_v27 = vadd.f32 %v336_v26, %v331_v24 }
 0x24e   :  { %v343_v28 = vadd.f32 %v342_v25, %v337_v27 }
 0x24f   :  { %v348_v29 = vpop.xlane.xlu0 %347  ;;  %v354_v31 = vpop.xlane.xlu1 %353 }
 0x250   :  { %v349_v30 = vadd.f32 %v348_v29, %v343_v28 }
 0x252   :  { %v355_v32 = vadd.f32 %v354_v31, %v349_v30 }
 0x254   :  { %v356_v33 = vmul.f32 0.001953125, %v355_v32 }
 0x256   :  { %v358_v34 = vadd.f32 1e-05, %v356_v33 }
 0x258   :  { %519 = vrsqrt.f32 %v358_v34 }
 0x262   :  { %v520_v37 = vpop.eup %519 }
 0x263   :  { %v360_v39 = vmul.f32 %v520_v37, %v357_v36 }
 0x265   :  { %366 = vperm.xlu0 %517, %v360_v39   ;;  %v362_v42 = vmul.f32 %v360_v39, %v687_v53 }
 0x267   :  { %v363_v43 = vsub.f32 %v361_v40, %v362_v42 }
 0x269   :  { %372 = vperm.xlu1 %518, %v363_v43  }
 0x2e4   :  { %v367_v44 = vpop.permute.xlu0 %366 }
 0x2e5   :  { %v369_v46 = vmul.f32 %v367_v44, %v625_v38  ;;  %v380_v48 = vmul.f32 %v367_v44, %v635_v47  ;;  %v386_v49 = vmul.f32 %v367_v44, %v623_v35  ;;  %v392_v50 = vmul.f32 %v367_v44, %v627_v41 }
 0x2e6   :  { %v398_v51 = vmul.f32 %v367_v44, %v651_v63  ;;  %v404_v52 = vmul.f32 %v367_v44, %v661_v4  ;;  %v410_v55 = vmul.f32 %v367_v44, %v643_v57  ;;  %v416_v56 = vmul.f32 %v367_v44, %v657_v2 }
 0x2e7   :  { %v422_v53 = vmul.f32 %v367_v44, %v665_v6  ;;  %v428_v58 = vmul.f32 %v367_v44, %v669_v8  ;;  %v434_v38 = vmul.f32 %v367_v44, %v631_v45  ;;  %v440_v47 = vmul.f32 %v367_v44, %v673_v10 }
 0x2e8   :  { %v446_v35 = vmul.f32 %v367_v44, %v641_v54  ;;  %v758_v41 = vmul.f32 %v367_v44, %v677_v12  ;;  %v761_v63 = vmul.f32 %v367_v44, %v647_v61  ;;  %v764_v57 = vmul.f32 %v367_v44, %v681_v14  ;;  %v766_v2 = vpop.permute.xlu1 %372 }
 0x2e9   :  { %v375_v4 = vadd.f32 %v766_v2, %v369_v46  ;;  %v381_v6 = vadd.f32 %v380_v48, %v766_v2  ;;  %v387_v45 = vadd.f32 %v386_v49, %v766_v2  ;;  %v393_v8 = vadd.f32 %v392_v50, %v766_v2 }
 0x2ea   :  { %v399_v54 = vadd.f32 %v398_v51, %v766_v2  ;;  %v405_v10 = vadd.f32 %v404_v52, %v766_v2  ;;  %v411_v61 = vadd.f32 %v410_v55, %v766_v2  ;;  %v417_v12 = vadd.f32 %v416_v56, %v766_v2 }
 0x2eb   :  { %vm376_vm1 = vcmp.ge.f32.partialorder %v375_v4, 0.0  ;;  %v377_v14 = vmul.f32 0.2, %v375_v4  ;;  %vm382_vm2 = vcmp.ge.f32.partialorder %v381_v6, 0.0  ;;  %v383_v59 = vmul.f32 0.2, %v381_v6 }
 0x2ec   :  { %vm388_vm3 = vcmp.ge.f32.partialorder %v387_v45, 0.0  ;;  %v389_v60 = vmul.f32 0.2, %v387_v45  ;;  %vm394_vm4 = vcmp.ge.f32.partialorder %v393_v8, 0.0  ;;  %v395_v62 = vmul.f32 0.2, %v393_v8 }
 0x2ed   :  { %v378_v0 = vsel %vm376_vm1, %v375_v4, %v377_v14  ;;  %v384_v1 = vsel %vm382_vm2, %v381_v6, %v383_v59  ;;  %vm400_vm5 = vcmp.ge.f32.partialorder %v399_v54, 0.0  ;;  %v401_v3 = vmul.f32 0.2, %v399_v54 }
 0x2ee   :  { %379 = vst.msk [vmem:[%s856_s5] sm:$0xff] %vm51_vm0, %v378_v0  ;;  %385 = vst.msk [vmem:[%s856_s5 + $0x8] sm:$0xff] %vm51_vm0, %v384_v1  ;;  %v390_v5 = vsel %vm388_vm3, %v387_v45, %v389_v60  ;;  %v396_v7 = vsel %vm394_vm4, %v393_v8, %v395_v62  ;;  %vm406_vm6 = vcmp.ge.f32.partialorder %v405_v10, 0.0  ;;  %v407_v9 = vmul.f32 0.2, %v405_v10 }
 0x2ef   :  { %391 = vst.msk [vmem:[%s856_s5 + $0x10] sm:$0xff] %vm51_vm0, %v390_v5  ;;  %397 = vst.msk [vmem:[%s856_s5 + $0x18] sm:$0xff] %vm51_vm0, %v396_v7  ;;  %v402_v11 = vsel %vm400_vm5, %v399_v54, %v401_v3  ;;  %vm412_vm7 = vcmp.ge.f32.partialorder %v411_v61, 0.0  ;;  %v413_v13 = vmul.f32 0.2, %v411_v61  ;;  %vm418_vm8 = vcmp.ge.f32.partialorder %v417_v12, 0.0 }
 0x2f0   :  { %403 = vst.msk [vmem:[%s856_s5 + $0x20] sm:$0xff] %vm51_vm0, %v402_v11  ;;  %v408_v15 = vsel %vm406_vm6, %v405_v10, %v407_v9  ;;  %v419_v16 = vmul.f32 0.2, %v417_v12  ;;  %v423_v17 = vadd.f32 %v422_v53, %v766_v2  ;;  %v429_v18 = vadd.f32 %v428_v58, %v766_v2 }
 0x2f1   :  { %409 = vst.msk [vmem:[%s856_s5 + $0x28] sm:$0xff] %vm51_vm0, %v408_v15  ;;  %v414_v19 = vsel %vm412_vm7, %v411_v61, %v413_v13  ;;  %v435_v20 = vadd.f32 %v434_v38, %v766_v2  ;;  %v441_v21 = vadd.f32 %v440_v47, %v766_v2  ;;  %v447_v22 = vadd.f32 %v446_v35, %v766_v2 }
 0x2f2   :  { %415 = vst.msk [vmem:[%s856_s5 + $0x30] sm:$0xff] %vm51_vm0, %v414_v19  ;;  %v420_v23 = vsel %vm418_vm8, %v417_v12, %v419_v16  ;;  %vm424_vm9 = vcmp.ge.f32.partialorder %v423_v17, 0.0  ;;  %v425_v24 = vmul.f32 0.2, %v423_v17  ;;  %vm430_vm10 = vcmp.ge.f32.partialorder %v429_v18, 0.0 }
 0x2f3   :  { %421 = vst.msk [vmem:[%s856_s5 + $0x38] sm:$0xff] %vm51_vm0, %v420_v23  ;;  %v431_v25 = vmul.f32 0.2, %v429_v18  ;;  %vm436_vm11 = vcmp.ge.f32.partialorder %v435_v20, 0.0  ;;  %v437_v26 = vmul.f32 0.2, %v435_v20  ;;  %v453_v32 = vadd.f32 %v758_v41, %v766_v2 }
 0x2f4   :  { %vm442_vm12 = vcmp.ge.f32.partialorder %v441_v21, 0.0  ;;  %v426_v27 = vsel %vm424_vm9, %v423_v17, %v425_v24  ;;  %v443_v28 = vmul.f32 0.2, %v441_v21  ;;  %vm448_vm13 = vcmp.ge.f32.partialorder %v447_v22, 0.0 }
 0x2f5   :  { %v449_v29 = vmul.f32 0.2, %v447_v22  ;;  %427 = vst.msk [vmem:[%s856_s5 + $0x40] sm:$0xff] %vm51_vm0, %v426_v27  ;;  %v432_v30 = vsel %vm430_vm10, %v429_v18, %v431_v25  ;;  %v438_v31 = vsel %vm436_vm11, %v435_v20, %v437_v26  ;;  %v459_v33 = vadd.f32 %v761_v63, %v766_v2 }
 0x2f6   :  { %433 = vst.msk [vmem:[%s856_s5 + $0x48] sm:$0xff] %vm51_vm0, %v432_v30  ;;  %439 = vst.msk [vmem:[%s856_s5 + $0x50] sm:$0xff] %vm51_vm0, %v438_v31  ;;  %v444_v34 = vsel %vm442_vm12, %v441_v21, %v443_v28  ;;  %v465_v37 = vadd.f32 %v764_v57, %v766_v2  ;;  %vm454_vm14 = vcmp.ge.f32.partialorder %v453_v32, 0.0  ;;  %v455_v39 = vmul.f32 0.2, %v453_v32 }
 0x2f7   :  { %v450_v36 = vsel %vm448_vm13, %v447_v22, %v449_v29  ;;  %445 = vst.msk [vmem:[%s856_s5 + $0x58] sm:$0xff] %vm51_vm0, %v444_v34  ;;  %vm460_vm15 = vcmp.ge.f32.partialorder %v459_v33, 0.0  ;;  %v461_v40 = vmul.f32 0.2, %v459_v33 }
 0x2f8   :  { %451 = vst.msk [vmem:[%s856_s5 + $0x60] sm:$0xff] %vm51_vm0, %v450_v36  ;;  %vm466_vm1 = vcmp.ge.f32.partialorder %v465_v37, 0.0  ;;  %v467_v42 = vmul.f32 0.2, %v465_v37  ;;  %v456_v43 = vsel %vm454_vm14, %v453_v32, %v455_v39 }
 0x2f9   :  { %v462_v44 = vsel %vm460_vm15, %v459_v33, %v461_v40  ;;  %457 = vst.msk [vmem:[%s856_s5 + $0x68] sm:$0xff] %vm51_vm0, %v456_v43 }
 0x2fa   :  { %463 = vst.msk [vmem:[%s856_s5 + $0x70] sm:$0xff] %vm51_vm0, %v462_v44  ;;  %v468_v46 = vsel %vm466_vm1, %v465_v37, %v467_v42 }
 0x2fb   :  { %469 = vst.msk [vmem:[%s856_s5 + $0x78] sm:$0xff] %vm51_vm0, %v468_v46 }

// kernel: squeeze.5
= control target key start
LH: loop header
LB: loop body
LE: loop exit
PB: predicated region body
PF: predicated region fallthrough
CT: control target
= control target key end

     0   :  { %s146_s0 = inlined_call_operand.vmem [shape: s32[32], index: 0, kind: input, shape index: {}]   ;;  %s147_s1 = inlined_call_operand.hbm [shape: s32[2,4,4], index: 1, kind: output, shape index: {}]  }
   0x1   :  { %v5_v0 = vld [vmem:[%s146_s0] sm:$0x1] }
   0x2   :  { %6 = vst [vmem:[#allocation3] sm:$0x1] %v5_v0 }
   0x3   :  { %2 = vsyncpa [#allocation1], 0  ;;  %s105_s0 = smov 124   ;;  %s106_s8 = smov 116   ;;  %vm8_vm0 = vcmask 31744  }
   0x4   :  { %s107_s9 = smov 120   ;;  %s108_s10 = smov 112  }
   0x5   :  { %s109_s11 = smov 108   ;;  %s110_s12 = smov 104  }
   0x6   :  { %s111_s13 = smov 100   ;;  %s112_s14 = smov [#allocation0]  }
   0x7   :  { %s67_s15 = sshll.u32 %s112_s14, 4  ;;  %s68_s15 = int_to_ptr.vmem [resolvable:$true] %s67_s15 }
   0x8   :  { %s81_s16 = scalar_lea.vmem %s68_s15, 128  ;;  %p86_p1 = scmp.lt.s32.totalorder %s68_s15, %s68_s15 }
   0x9   :  { %v10_v1 = vld [vmem:[#allocation3] sm:$0x1]   ;;  %p82_p0 = scmp.ne.s32.totalorder %s68_s15, %s81_s16  ;;  %p87_p2 = scmp.lt.s32.totalorder %s81_s16, %s81_s16 }
   0xa   :  { %v22_v2 = vld [vmem:[#allocation3] sm:$0x1]   ;;  %11 = vrot.lane.b32.xlu0 %v10_v1, %s105_s0 }
   0xb   :  { %23 = vrot.lane.b32.xlu1 %v22_v2, %s106_s8  ;;  %v16_v3 = vld [vmem:[#allocation3] sm:$0x1]   ;;  %p88_p3 = por %p87_p2, %p86_p1 }
   0xc   :  { %v28_v4 = vld [vmem:[#allocation3] sm:$0x1]  }
   0xd   :  { %v7_v5 = vld [vmem:[#allocation3] sm:$0x1]   ;;  %p89_p4 = pnand %p88_p3, %p82_p0 }
   0xe   :  { %9 = vst.msk [vmem:[#allocation2] sm:$0x1] %vm8_vm0, %v7_v5   ;;  %17 = vrot.lane.b32.xlu0 %v16_v3, %s107_s9  ;;  %v34_v6 = vld [vmem:[#allocation3] sm:$0x1]  }
   0xf   :  { %29 = vrot.lane.b32.xlu1 %v28_v4, %s108_s10  ;;  %v40_v7 = vld [vmem:[#allocation3] sm:$0x1]  }
  0x10   :  { %v46_v8 = vld [vmem:[#allocation3] sm:$0x1]  }
  0x12   :  { %35 = vrot.lane.b32.xlu0 %v34_v6, %s109_s11 }
  0x13   :  { %41 = vrot.lane.b32.xlu1 %v40_v7, %s110_s12 }
  0x16   :  { %47 = vrot.lane.b32.xlu0 %v46_v8, %s111_s13 }
  0x7c   :  { %v12_v9 = vpop.permute.xlu0 %11  }
  0x7d   :  { %v24_v10 = vpop.permute.xlu1 %23   ;;  %15 = vst.msk [vmem:[#allocation2 + $0x1] sm:$0x1] %vm8_vm0, %v12_v9  }
  0x7e   :  { %27 = vst.msk [vmem:[#allocation2 + $0x3] sm:$0x1] %vm8_vm0, %v24_v10  }
  0x80   :  { %v18_v11 = vpop.permute.xlu0 %17  }
  0x81   :  { %v30_v12 = vpop.permute.xlu1 %29   ;;  %21 = vst.msk [vmem:[#allocation2 + $0x2] sm:$0x1] %vm8_vm0, %v18_v11  }
  0x82   :  { %33 = vst.msk [vmem:[#allocation2 + $0x8] sm:$0x1] %vm8_vm0, %v30_v12  }
  0x84   :  { %v36_v13 = vpop.permute.xlu0 %35  }
  0x85   :  { %v42_v14 = vpop.permute.xlu1 %41   ;;  %39 = vst.msk [vmem:[#allocation2 + $0x9] sm:$0x1] %vm8_vm0, %v36_v13  }
  0x86   :  { %45 = vst.msk [vmem:[#allocation2 + $0xa] sm:$0x1] %vm8_vm0, %v42_v14  }
  0x88   :  { %v48_v15 = vpop.permute.xlu0 %47   ;;  %v55_v16 = vld [vmem:[#allocation2] sm:$0xf] }
  0x89   :  { %51 = vst.msk [vmem:[#allocation2 + $0xb] sm:$0x1] %vm8_vm0, %v48_v15   ;;  %57 = vst [vmem:[#allocation0] sm:$0xf] %v55_v16 }
  0x90   :  { %v59_v17 = vld [vmem:[#allocation2 + $0x8] sm:$0xf] }
  0x91   :  { %62 = vst [vmem:[#allocation0 + $0x4] sm:$0xf] %v59_v17 }
  0x92   :  { %92 = shalt.err (!%p89_p4)
}
  0x93   :  { %s93_s19 = scalar_lea.hbm %s147_s1, 128 }
  0x94   :  { %p94_p5 = scmp.ne.s32.totalorder %s147_s1, %s93_s19  ;;  %p97_p6 = scmp.lt.u32.totalorder %s93_s19, %s147_s1 }
  0x96   :  { %p99_p7 = pnand %p97_p6, %p94_p5 }
  0x98   :  { %102 = shalt.err (!%p99_p7)
}
  0x99   :  { %70 = dma.vmem_to_hbm [thread:$0]  %s68_s15, 128, %s147_s1, [#allocation1]  }
  0x9a   :  { %103 = dma.done.wait [#allocation1], 128  }
  0x9b   :  { %104 = vsyncadd [#allocation1], 4294967168 }
  0x9c   :  { %72 = vsyncpa [#allocation1], 1 }

// kernel: resnet_vqvae_fwd.33
= control target key start
LH: loop header
LB: loop body
LE: loop exit
PB: predicated region body
PF: predicated region fallthrough
CT: control target
= control target key end

     0   :  { %s763_s20 = smov 16   ;;  %s764_s21 = smov 17   ;;  %v765_v6 = vmov 0.0   ;;  %v771_v9 = vmov 0   ;;  %v25_v11 = vlaneseq  ;;  %vm102_vm3 = vcmask 138240   ;;  %s1078_s0 = inlined_call_operand.vmem [shape: f32[8,512], index: 0, kind: input, shape index: {}]   ;;  %s1079_s2 = inlined_call_operand.vmem [shape: f32[3,1], index: 2, kind: input, shape index: {}]   ;;  %s1080_s1 = inlined_call_operand.vmem [shape: f32[3,72], index: 1, kind: input, shape index: {}]   ;;  %s1081_s3 = inlined_call_operand.vmem [shape: f32[3,512], index: 3, kind: output, shape index: {}]  }
   0x1   :  { %v797_v0 = vld [vmem:[%s1078_s0] sm:$0xff]  ;;  %v802_v1 = vld [vmem:[%s1078_s0 + $0x8] sm:$0xff]  ;;  %v807_v2 = vld [vmem:[%s1078_s0 + $0x10] sm:$0xff]  ;;  %s766_s22 = smov 15   ;;  %s767_s23 = smov 1   ;;  %555 = vmatprep.mubr.bf16.mxu0 %v771_v9  ;;  %596 = vmatprep.mubr.bf16.mxu1 %v771_v9  ;;  %vm147_vm4 = vcmask 130048  }
   0x2   :  { %v692_v3 = vpack.i.bf16 %v802_v1, %v797_v0  ;;  %v814_v4 = vld [vmem:[%s1078_s0 + $0x18] sm:$0xff]  ;;  %v722_v8 = vpack.i.bf16 %v807_v2, %v802_v1  ;;  %s768_s0 = smov 127   ;;  %s769_s24 = smov 113   ;;  %762 = vset.pattern.permute.xlu0 %v771_v9  ;;  %v500_v10 = vld [vmem:[%s1079_s2] sm:$0x7]  ;;  %v827_v12 = vand.u32 127, %v25_v11 }
   0x3   :  { %v697_v5 = vpack.i.bf16 %v814_v4, %v807_v2  ;;  %v727_v7 = vpack.i.bf16 %v765_v6, %v814_v4  ;;  %s770_s25 = smov 112   ;;  %s772_s26 = smov 111   ;;  %v1088_v31 = vmov 0 }
   0x4   :  { %693 = vrot.lane.b32.xlu1 %v692_v3, %s763_s20  ;;  %683 = vrot.lane.b32.xlu0 %v692_v3, %s764_s21  ;;  %v27_v13 = vadd.s32 128, %v827_v12  ;;  %v831_v14 = vadd.s32 384, %v827_v12  ;;  %v834_v16 = vadd.s32 256, %v827_v12  ;;  %v34_v21 = vshra.s32 %v827_v12, 4 }
   0x5   :  { %v30_v27 = vand.u32 15, %v827_v12 }
   0x6   :  { %v35_v15 = vshra.s32 %v27_v13, 4  ;;  %v37_v17 = vshra.s32 %v831_v14, 4  ;;  %v31_v18 = vand.u32 15, %v27_v13  ;;  %v36_v20 = vshra.s32 %v834_v16, 4 }
   0x7   :  { %v33_v22 = vand.u32 15, %v831_v14  ;;  %v32_v25 = vand.u32 15, %v834_v16  ;;  %v853_v28 = vand.u32 15, %v34_v21  ;;  %vm874_vm11 = vcmp.ge.s32.totalorder %v30_v27, 1 }
   0x8   :  { %698 = vrot.lane.b32.xlu1 %v697_v5, %s763_s20  ;;  %688 = vrot.lane.b32.xlu0 %v697_v5, %s764_s21  ;;  %v837_v19 = vand.u32 15, %v35_v15  ;;  %v842_v23 = vand.u32 15, %v37_v17  ;;  %vm845_vm1 = vcmp.ge.s32.totalorder %v31_v18, 1  ;;  %v850_v26 = vand.u32 15, %v36_v20 }
   0x9   :  { %vm860_vm6 = vcmp.ge.s32.totalorder %v33_v22, 1  ;;  %vm865_vm8 = vcmp.ge.s32.totalorder %v32_v25, 1  ;;  %vm42_vm10 = vcmp.ge.s32.totalorder %v853_v28, 1 }
   0xa   :  { %vm1082_vm0 = vcmp.ge.s32.totalorder %v837_v19, 1  ;;  %vm45_vm5 = vcmp.ge.s32.totalorder %v842_v23, 1  ;;  %v1089_v31 = vsel %vm860_vm6, 4294967295, %v1088_v31  ;;  %vm44_vm7 = vcmp.ge.s32.totalorder %v850_v26, 1  ;;  %vm58_vm14 = vmand %vm42_vm10, %vm874_vm11 }
   0xb   :  { %vm59_vm2 = vmand %vm1082_vm0, %vm845_vm1 }
   0xc   :  { %137 = vrot.lane.b32.xlu1 %v765_v6, %s763_s20  ;;  %92 = vrot.lane.b32.xlu0 %v765_v6, %s764_s21  ;;  %vm623_vm9 = vmpackc.low %vm1082_vm0, %vm59_vm2  ;;  %vm902_vm0 = vcmp.le.s32.totalorder %v31_v18, 14 }
   0xd   :  { %vm61_vm12 = vmand %vm45_vm5, %vm860_vm6 }
   0xe   :  { %vm60_vm13 = vmand %vm44_vm7, %vm865_vm8 }
   0xf   :  { %vm647_vm15 = vmpackc.low %vm45_vm5, %vm61_vm12  ;;  %vm1096_vm12 = vcmp.ge.s32.totalorder %v837_v19, 1 }
  0x10   :  { %708 = vrot.lane.b32.xlu1 %v697_v5, %s766_s22  ;;  %703 = vrot.lane.b32.xlu0 %v692_v3, %s766_s22  ;;  %vm650_vm2 = vmpackc.low %vm44_vm7, %vm60_vm13  ;;  %vm918_vm13 = vcmp.le.s32.totalorder %v32_v25, 14 }
  0x14   :  { %718 = vrot.lane.b32.xlu1 %v697_v5, %s767_s23  ;;  %713 = vrot.lane.b32.xlu0 %v692_v3, %s767_s23 }
  0x18   :  { %227 = vrot.lane.b32.xlu1 %v765_v6, %s767_s23  ;;  %182 = vrot.lane.b32.xlu0 %v765_v6, %s766_s22 }
  0x1c   :  { %728 = vrot.lane.b32.xlu1 %v727_v7, %s768_s0  ;;  %723 = vrot.lane.b32.xlu0 %v722_v8, %s768_s0 }
  0x20   :  { %733 = vrot.lane.b32.xlu1 %v722_v8, %s769_s24  ;;  %280 = vrot.lane.b32.xlu0 %v797_v0, %s768_s0 }
  0x24   :  { %743 = vrot.lane.b32.xlu1 %v722_v8, %s770_s25  ;;  %738 = vrot.lane.b32.xlu0 %v727_v7, %s769_s24 }
  0x28   :  { %325 = vrot.lane.b32.xlu1 %v797_v0, %s769_s24  ;;  %748 = vrot.lane.b32.xlu0 %v727_v7, %s770_s25 }
  0x2c   :  { %370 = vrot.lane.b32.xlu0 %v797_v0, %s770_s25  ;;  %753 = vrot.lane.b32.xlu1 %v692_v3, %s772_s26 }
  0x30   :  { %758 = vrot.lane.b32.xlu0 %v697_v5, %s772_s26  ;;  %423 = vrot.lane.b32.xlu1 %v765_v6, %s772_s26  ;;  %v1101_v6 = vmov 0 }
  0x31   :  { %v1102_v6 = vsel %vm918_vm13, 4294967295, %v1101_v6 }
  0x34   :  { %503 = vperm.xlu0 %762, %v500_v10  }
  0x76   :  { %v694_v29 = vpop.permute.xlu1 %693  ;;  %v684_v30 = vpop.permute.xlu0 %683 }
  0x77   :  { %v696_v32 = vunpack.i.h.bf16 %v694_v29  ;;  %v695_v33 = vunpack.i.l.bf16 %v694_v29  ;;  %v686_v34 = vunpack.i.h.bf16 %v684_v30  ;;  %v685_v35 = vunpack.i.l.bf16 %v684_v30 }
  0x79   :  { %v104_v37 = vsel %vm102_vm3, %v685_v35, %v686_v34  ;;  %v149_v38 = vsel %vm147_vm4, %v695_v33, %v696_v32 }
  0x7a   :  { %v699_v40 = vpop.permute.xlu1 %698  ;;  %v689_v41 = vpop.permute.xlu0 %688  ;;  %v624_v42 = vpack.c.bf16 %v149_v38, %v104_v37 }
  0x7b   :  { %v701_v43 = vunpack.i.h.bf16 %v699_v40  ;;  %v700_v44 = vunpack.i.l.bf16 %v699_v40  ;;  %v691_v45 = vunpack.i.h.bf16 %v689_v41  ;;  %v690_v46 = vunpack.i.l.bf16 %v689_v41 }
  0x7c   :  { %625 = vmatprep.subr.msk.bf16.mxu0 %vm623_vm9, %v624_v42  ;;  %vm626_vm9 = vmpackc.low %vm42_vm10, %vm58_vm14  ;;  %vm192_vm14 = vcmask 121856  }
  0x7d   :  { %v106_v47 = vsel %vm102_vm3, %v690_v46, %v691_v45  ;;  %v151_v48 = vsel %vm147_vm4, %v700_v44, %v701_v43  ;;  %v105_v49 = vsel %vm102_vm3, %v686_v34, %v690_v46  ;;  %v150_v50 = vsel %vm147_vm4, %v696_v32, %v700_v44 }
  0x7e   :  { %v138_v51 = vpop.permute.xlu1 %137  ;;  %v93_v52 = vpop.permute.xlu0 %92  ;;  %v648_v53 = vpack.c.bf16 %v151_v48, %v106_v47  ;;  %v651_v54 = vpack.c.bf16 %v150_v50, %v105_v49 }
  0x7f   :  { %v148_v55 = vsel %vm147_vm4, %v138_v51, %v695_v33  ;;  %v103_v56 = vsel %vm102_vm3, %v93_v52, %v685_v35  ;;  %vm910_vm4 = vmand %vm1096_vm12, %vm902_vm0  ;;  %vm914_vm3 = vcmp.le.s32.totalorder %v33_v22, 14 }
  0x80   :  { %v627_v58 = vpack.c.bf16 %v148_v55, %v103_v56  ;;  %649 = vmatprep.subr.msk.bf16.mxu1 %vm647_vm15, %v648_v53  ;;  %vm934_vm12 = vmand %vm45_vm5, %vm914_vm3 }
  0x81   :  { %652 = vmatpush1.bf16.msk.msra.mxu1 %vm650_vm2, %v651_v54  ;;  %vm926_vm2 = vcmp.le.s32.totalorder %v30_v27, 14  ;;  %vm942_vm15 = vmand %vm44_vm7, %vm918_vm13 }
  0x82   :  { %v709_v59 = vpop.permute.xlu1 %708  ;;  %v704_v60 = vpop.permute.xlu0 %703  ;;  %628 = vmatpush1.bf16.msk.msra.mxu0 %vm626_vm9, %v627_v58  ;;  %vm237_vm9 = vcmask 7168   ;;  %vm952_vm5 = vmand %vm42_vm10, %vm926_vm2 }
  0x83   :  { %v711_v63 = vunpack.i.h.bf16 %v709_v59  ;;  %v706_v3 = vunpack.i.h.bf16 %v704_v60  ;;  %v705_v5 = vunpack.i.l.bf16 %v704_v60  ;;  %v710_v7 = vunpack.i.l.bf16 %v709_v59  ;;  %vm653_vm7 = vmpackc.low %vm860_vm6, %vm934_vm12 }
  0x84   :  { %vm656_vm10 = vmpackc.low %vm865_vm8, %vm942_vm15  ;;  %vm290_vm15 = vcmask 1039360  }
  0x85   :  { %v194_v17 = vsel %vm192_vm14, %v705_v5, %v706_v3  ;;  %v196_v18 = vsel %vm192_vm14, %v710_v7, %v711_v63  ;;  %v195_v25 = vsel %vm192_vm14, %v706_v3, %v710_v7  ;;  %vm632_vm12 = vmpackc.low %vm874_vm11, %vm952_vm5  ;;  %vm1085_vm5 = vcmp.le.s32.totalorder %v837_v19, 14 }
  0x86   :  { %v719_v9 = vpop.permute.xlu1 %718  ;;  %v714_v10 = vpop.permute.xlu0 %713  ;;  %vm1111_vm6 = vmpackc.low %vm845_vm1, %vm910_vm4 }
  0x87   :  { %v721_v12 = vunpack.i.h.bf16 %v719_v9  ;;  %v720_v13 = vunpack.i.l.bf16 %v719_v9  ;;  %v716_v14 = vunpack.i.h.bf16 %v714_v10  ;;  %v715_v15 = vunpack.i.l.bf16 %v714_v10 }
  0x89   :  { %v239_v21 = vsel %vm237_vm9, %v715_v15, %v716_v14  ;;  %v241_v22 = vsel %vm237_vm9, %v720_v13, %v721_v12  ;;  %v240_v27 = vsel %vm237_vm9, %v716_v14, %v720_v13 }
  0x8a   :  { %v228_v29 = vpop.permute.xlu1 %227  ;;  %v183_v30 = vpop.permute.xlu0 %182  ;;  %v630_v32 = vpack.c.bf16 %v239_v21, %v194_v17  ;;  %v654_v33 = vpack.c.bf16 %v241_v22, %v196_v18  ;;  %v657_v34 = vpack.c.bf16 %v240_v27, %v195_v25 }
  0x8b   :  { %v238_v35 = vsel %vm237_vm9, %v228_v29, %v715_v15  ;;  %v193_v37 = vsel %vm192_vm14, %v183_v30, %v705_v5  ;;  %vm773_vm14 = vmmov 1  }
  0x8c   :  { %v633_v38 = vpack.c.bf16 %v238_v35, %v193_v37  ;;  %631 = vmatprep.subr.msk.bf16.mxu0 %vm1111_vm6, %v630_v32  ;;  %655 = vmatprep.subr.msk.bf16.mxu1 %vm653_vm7, %v654_v33  ;;  %vm635_vm9 = vmpackc.low %vm902_vm0, %vm773_vm14 }
  0x8d   :  { %658 = vmatpush1.bf16.msk.msra.mxu1 %vm656_vm10, %v657_v34  ;;  %vm659_vm6 = vmpackc.low %vm914_vm3, %vm773_vm14 }
  0x8e   :  { %v729_v40 = vpop.permute.xlu1 %728  ;;  %v724_v41 = vpop.permute.xlu0 %723  ;;  %634 = vmatpush1.bf16.msk.msra.mxu0 %vm632_vm12, %v633_v38  ;;  %vm662_vm4 = vmpackc.low %vm918_vm13, %vm773_vm14  ;;  %vm380_vm12 = vcmask 916480   ;;  %vm49_vm13 = vcmp.le.s32.totalorder %v842_v23, 14 }
  0x8f   :  { %v731_v42 = vunpack.i.h.bf16 %v729_v40  ;;  %v730_v43 = vunpack.i.l.bf16 %v729_v40  ;;  %v726_v44 = vunpack.i.h.bf16 %v724_v41  ;;  %v725_v45 = vunpack.i.l.bf16 %v724_v41  ;;  %vm638_vm7 = vmpackc.low %vm926_vm2, %vm773_vm14 }
  0x90   :  { %vm67_vm10 = vmand %vm1085_vm5, %vm845_vm1  ;;  %vm48_vm14 = vcmp.le.s32.totalorder %v850_v26, 14  ;;  %vm1112_vm1 = vnez %v1089_v31 }
  0x91   :  { %v292_v46 = vsel %vm290_vm15, %v725_v45, %v726_v44  ;;  %v294_v47 = vsel %vm290_vm15, %v730_v43, %v731_v42  ;;  %v293_v48 = vsel %vm290_vm15, %v726_v44, %v730_v43 }
  0x92   :  { %v734_v49 = vpop.permute.xlu1 %733  ;;  %v281_v50 = vpop.permute.xlu0 %280  ;;  %v636_v51 = vpack.c.bf16 %v292_v46, %v802_v1  ;;  %v660_v52 = vpack.c.bf16 %v294_v47, %v814_v4  ;;  %v663_v53 = vpack.c.bf16 %v293_v48, %v807_v2 }
  0x93   :  { %v291_v54 = vsel %vm290_vm15, %v281_v50, %v725_v45  ;;  %v736_v56 = vunpack.i.h.bf16 %v734_v49  ;;  %v735_v1 = vunpack.i.l.bf16 %v734_v49  ;;  %vm335_vm15 = vcmask 924672  }
  0x94   :  { %v639_v55 = vpack.c.bf16 %v291_v54, %v797_v0  ;;  %637 = vmatprep.subr.msk.bf16.mxu0 %vm635_vm9, %v636_v51  ;;  %661 = vmatprep.subr.msk.bf16.mxu1 %vm659_vm6, %v660_v52  ;;  %vm641_vm9 = vmpackc.low %vm1085_vm5, %vm67_vm10  ;;  %vm46_vm6 = vcmp.le.s32.totalorder %v853_v28, 14 }
  0x95   :  { %664 = vmatpush1.bf16.msk.msra.mxu1 %vm662_vm4, %v663_v53  ;;  %v337_v61 = vsel %vm335_vm15, %v735_v1, %v736_v56  ;;  %vm69_vm4 = vmand %vm49_vm13, %vm1112_vm1 }
  0x96   :  { %v744_v2 = vpop.permute.xlu1 %743  ;;  %v739_v4 = vpop.permute.xlu0 %738  ;;  %640 = vmatpush1.bf16.msk.msra.mxu0 %vm638_vm7, %v639_v55  ;;  %vm68_vm7 = vmand %vm48_vm14, %vm865_vm8 }
  0x97   :  { %v746_v58 = vunpack.i.h.bf16 %v744_v2  ;;  %v745_v59 = vunpack.i.l.bf16 %v744_v2  ;;  %v741_v24 = vunpack.i.h.bf16 %v739_v4  ;;  %v740_v60 = vunpack.i.l.bf16 %v739_v4  ;;  %vm66_vm10 = vmand %vm46_vm6, %vm874_vm11 }
  0x98   :  { %vm1021_vm5 = vmpackc.low %vm49_vm13, %vm69_vm4  ;;  %vm1117_vm4 = vcmp.le.s32.totalorder %v837_v19, 14 }
  0x99   :  { %v382_v0 = vsel %vm380_vm12, %v745_v59, %v746_v58  ;;  %v339_v11 = vsel %vm335_vm15, %v740_v60, %v741_v24  ;;  %v338_v12 = vsel %vm335_vm15, %v736_v56, %v740_v60  ;;  %vm1031_vm8 = vmpackc.low %vm48_vm14, %vm68_vm7 }
  0x9a   :  { %v326_v63 = vpop.permute.xlu1 %325  ;;  %v749_v3 = vpop.permute.xlu0 %748  ;;  %v642_v5 = vpack.c.bf16 %v382_v0, %v337_v61  ;;  %vm644_vm11 = vmpackc.low %vm46_vm6, %vm66_vm10 }
  0x9b   :  { %v751_v7 = vunpack.i.h.bf16 %v749_v3  ;;  %v750_v9 = vunpack.i.l.bf16 %v749_v3  ;;  %v336_v17 = vsel %vm335_vm15, %v326_v63, %v735_v1  ;;  %vm70_vm1 = vmand %vm46_vm6, %vm926_vm2 }
  0x9c   :  { %643 = vmatprep.subr.msk.bf16.mxu0 %vm641_vm9, %v642_v5  ;;  %vm425_vm9 = vcmask 908288   ;;  %vm1049_vm7 = vmand %vm1117_vm4, %vm902_vm0  ;;  %vm1120_vm0 = vnez %v1102_v6  ;;  %v442_v6 = vld [vmem:[%s1080_s1] sm:$0x7] }
  0x9d   :  { %v383_v10 = vsel %vm380_vm12, %v746_v58, %v750_v9  ;;  %v384_v36 = vsel %vm380_vm12, %v750_v9, %v751_v7  ;;  %vm73_vm2 = vmand %vm49_vm13, %vm914_vm3  ;;  %vm510_vm3 = vcmask 1043456   ;;  %v479_v42 = vpack.c.bf16 %v442_v6, %v442_v6 }
  0x9e   :  { %v371_v13 = vpop.permute.xlu0 %370  ;;  %v754_v14 = vpop.permute.xlu1 %753  ;;  %v666_v15 = vpack.c.bf16 %v384_v36, %v339_v11  ;;  %v669_v16 = vpack.c.bf16 %v383_v10, %v338_v12  ;;  %vm506_vm13 = vcmask 588800  }
  0x9f   :  { %v381_v18 = vsel %vm380_vm12, %v371_v13, %v745_v59  ;;  %v756_v20 = vunpack.i.h.bf16 %v754_v14  ;;  %v755_v21 = vunpack.i.l.bf16 %v754_v14 }
  0xa0   :  { %v645_v22 = vpack.c.bf16 %v381_v18, %v336_v17  ;;  %667 = vmatprep.subr.msk.bf16.mxu1 %vm1021_vm5, %v666_v15  ;;  %vm72_vm5 = vmand %vm48_vm14, %vm1120_vm0 }
  0xa1   :  { %670 = vmatpush1.bf16.msk.msra.mxu1 %vm1031_vm8, %v669_v16  ;;  %v426_v8 = vsel %vm425_vm9, %v755_v21, %v756_v20 }
  0xa2   :  { %v759_v27 = vpop.permute.xlu0 %758  ;;  %646 = vmatpush1.bf16.msk.msra.mxu0 %vm644_vm11, %v645_v22  ;;  %v424_v28 = vpop.permute.xlu1 %423  ;;  %v434_v57 = vsel %vm70_vm1, %v426_v8, 0.0 }
  0xa3   :  { %v761_v29 = vunpack.i.h.bf16 %v759_v27  ;;  %v760_v19 = vunpack.i.l.bf16 %v759_v27  ;;  %v496_v33 = vpack.c.bf16 %v434_v57, %v434_v57 }
  0xa5   :  { %v429_v30 = vsel %vm425_vm9, %v761_v29, %v424_v28  ;;  %v427_v32 = vsel %vm425_vm9, %v756_v20, %v760_v19  ;;  %v428_v34 = vsel %vm425_vm9, %v760_v19, %v761_v29  ;;  %v512_v40 = vsel %vm510_vm3, %v496_v33, 0 }
  0xa6   :  { %v437_v62 = vsel %vm73_vm2, %v429_v30, 0.0  ;;  %v435_v23 = vsel %vm1049_vm7, %v427_v32, 0.0  ;;  %v436_v35 = vsel %vm72_vm5, %v428_v34, 0.0 }
  0xa7   :  { %v499_v37 = vpack.c.bf16 %v437_v62, %v437_v62  ;;  %v497_v26 = vpack.c.bf16 %v435_v23, %v435_v23  ;;  %v498_v38 = vpack.c.bf16 %v436_v35, %v436_v35 }
  0xa9   :  { %619 = vmatprep.subr.msk.bf16.mxu0 %vm510_vm3, %v497_v26  ;;  %621 = vmatprep.subr.msk.bf16.mxu1 %vm510_vm3, %v499_v37  ;;  %v518_v41 = vsel %vm510_vm3, %v498_v38, 0 }
  0xaa   :  { %532 = vmatpush1.bf16.msra.mxu0 %v512_v40  ;;  %573 = vmatpush1.bf16.msra.mxu1 %v518_v41 }
  0xad   :  { %620 = vmatmul.mubr.msk.bf16.vlgmr.msra.gmra.mrb[0].mxu0 %vm506_vm13, %v479_v42  ;;  %622 = vmatmul.mubr.msk.bf16.vlgmr.msra.gmra.mrb[0].mxu1 %vm506_vm13, %v479_v42 }
  0xb3   :  { %v504_v43 = vpop.permute.xlu0 %503 }
 0x180   :  { %v557_v44 = vpop.f32.mrb[0].mxu0  ;;  %v598_v45 = vpop.f32.mrb[0].mxu1 }
 0x181   :  { %v558_v46 = vadd.f32 %v557_v44, %v504_v43  ;;  %v599_v47 = vadd.f32 %v598_v45, %v504_v43  ;;  %v559_v48 = vpop.f32.mrb[1].mxu0  ;;  %v600_v49 = vpop.f32.mrb[1].mxu1 }
 0x182   :  { %v560_v50 = vadd.f32 %v559_v48, %v504_v43  ;;  %v601_v51 = vadd.f32 %v600_v49, %v504_v43  ;;  %v561_v52 = vpop.f32.mrb[2].mxu0  ;;  %v602_v53 = vpop.f32.mrb[2].mxu1 }
 0x183   :  { %v562_v54 = vpop.f32.mrb[3].mxu0  ;;  %v603_v55 = vpop.f32.mrb[3].mxu1 }
 0x184   :  { %v609_v56 = vcombine.low %v558_v46, %v560_v50  ;;  %v610_v1 = vcombine.low %v599_v47, %v601_v51 }
 0x186   :  { %613 = vst [vmem:[%s1081_s3] sm:$0x77] %v609_v56  ;;  %614 = vst [vmem:[%s1081_s3 + $0x8] sm:$0x77] %v610_v1 }

</bundles_post_ra>
